<compile_context>
chip_gen: v7x
topology: tpu7x:2x2x1
jax: 0.10.0
libtpu: 0.0.40
codegen_flags: <defaults>
</compile_context>

<pallas_src>
import functools

import jax
import jax.numpy as jnp
from jax.experimental import pallas as pl
from jax.experimental.pallas import tpu as pltpu


def _sigmoid(v):
    # sigmoid(x) == 0.5 * tanh(0.5 * x) + 0.5 : single EUP push + cheap VALU ops.
    return 0.5 * jnp.tanh(0.5 * v) + 0.5


def _predictive_ae_block_kernel(
    # inputs
    x_ref, h0_ref, c0_ref,
    wih_ref, whh_ref, bg_ref, w1_ref, b1_ref, w2_ref, b2_ref,
    # outputs
    out_ref, h_out_ref, c_out_ref,
    # scratch (persists across grid steps)
    h_scr, c_scr, hbuf,
    *, lstm_size, time_block,
):
    tb = pl.program_id(0)
    H = lstm_size
    TB = time_block
    B = h0_ref.shape[0]

    # Initialize the recurrent state from (h0, c0) on the first time-block.
    @pl.when(tb == 0)
    def _():
        h_scr[...] = h0_ref[...]
        c_scr[...] = c0_ref[...]

    # Hoist the gate-bias broadcast out of the unrolled time loop
    # (JAX does not CSE broadcast_in_dim).
    b_gates = jnp.broadcast_to(bg_ref[...], (B, 4 * H))   # (B, 4H) f32

    h = h_scr[...]            # (B, H) f32
    c = c_scr[...]            # (B, H) f32

    # ---- Serial recurrence over the TB timesteps of this block (unrolled). ----
    for s in range(TB):
        x = x_ref[s]          # (B, size) bf16, static slice of the streamed block
        # Fused gate pre-activation without a concat on the critical path:
        # x @ Wih^T + h @ Whh^T + (b_ih + b_hh), f32 MXU accumulation.
        gates = (
            jnp.dot(x, wih_ref[...], preferred_element_type=jnp.float32)
            + jnp.dot(h.astype(jnp.bfloat16), whh_ref[...],
                      preferred_element_type=jnp.float32)
            + b_gates
        )                                                  # (B, 4H) f32
        i_g = _sigmoid(gates[:, 0 * H:1 * H])
        f_g = _sigmoid(gates[:, 1 * H:2 * H])
        g_g = jnp.tanh(gates[:, 2 * H:3 * H])
        o_g = _sigmoid(gates[:, 3 * H:4 * H])
        c = f_g * c + i_g * g_g
        h = o_g * jnp.tanh(c)
        # Stash h_t for the batched (off-critical-path) MLP head.
        hbuf[s] = h

    h_scr[...] = h
    c_scr[...] = c

    # ---- MLP head, batched over the whole time block: one MXU pass through
    #      W1/W2 per TB timesteps instead of per step. ----
    hs = hbuf[...].astype(jnp.bfloat16).reshape(TB * B, H)            # (TB*B, H)
    z = (jnp.dot(hs, w1_ref[...], preferred_element_type=jnp.float32)
         + b1_ref[...])                                               # (TB*B, mid)
    z = jnp.maximum(z, 0.0)
    out = (jnp.dot(z.astype(jnp.bfloat16), w2_ref[...],
                   preferred_element_type=jnp.float32)
           + b2_ref[...])                                             # (TB*B, size)
    out_ref[...] = out.reshape(out_ref.shape).astype(out_ref.dtype)

    # Final recurrent state is written back only once, at the last block.
    @pl.when(tb == pl.num_programs(0) - 1)
    def _():
        h_out_ref[...] = h
        c_out_ref[...] = c


def _pick_time_block(T, tb_max):
    """Largest divisor of T that is <= tb_max."""
    best = 1
    for cand in range(1, min(tb_max, T) + 1):
        if T % cand == 0:
            best = cand
    return best


def predictive_ae_forward_seq(xs, h0, c0, params, *, tb_max=8):
    """Run the full recurrence over xs: [T, B, size].

    Returns (outs [T, B, size] f32, h_T [B, H] f32, c_T [B, H] f32).
    """
    T, B, size = xs.shape
    H = h0.shape[1]
    mid = params["w1_t"].shape[1]
    assert T >= 1, "need at least one timestep (h_T/c_T undefined for T=0)"
    TB = _pick_time_block(T, tb_max)

    xs_bf16 = xs.astype(jnp.bfloat16)

    kernel = functools.partial(
        _predictive_ae_block_kernel, lstm_size=H, time_block=TB)

    def resident(shape):
        # VMEM-resident across the whole time grid (loaded from HBM once).
        return pl.BlockSpec(shape, lambda t, _s=len(shape): (0,) * _s)

    grid_spec = pltpu.PrefetchScalarGridSpec(
        num_scalar_prefetch=0,
        grid=(T // TB,),
        in_specs=[
            pl.BlockSpec((TB, B, size), lambda t: (t, 0, 0)),  # x block (streamed)
            resident((B, H)),              # h0
            resident((B, H)),              # c0
            resident((size, 4 * H)),       # W_ih^T (bf16, resident)
            resident((H, 4 * H)),          # W_hh^T (bf16, resident)
            resident((1, 4 * H)),          # b_ih + b_hh
            resident((H, mid)),            # W1^T (bf16, resident)
            resident((1, mid)),            # b1
            resident((mid, size)),         # W2^T (bf16, resident)
            resident((1, size)),           # b2
        ],
        out_specs=(
            pl.BlockSpec((TB, B, size), lambda t: (t, 0, 0)),  # out block (streamed)
            resident((B, H)),              # h_T
            resident((B, H)),              # c_T
        ),
        scratch_shapes=[
            pltpu.VMEM((B, H), jnp.float32),       # h state (persists across blocks)
            pltpu.VMEM((B, H), jnp.float32),       # c state
            pltpu.VMEM((TB, B, H), jnp.float32),   # per-block h_t stash for the head
        ],
    )

    outs, h_T, c_T = pl.pallas_call(
        kernel,
        out_shape=(
            jax.ShapeDtypeStruct((T, B, size), jnp.float32),
            jax.ShapeDtypeStruct((B, H), jnp.float32),
            jax.ShapeDtypeStruct((B, H), jnp.float32),
        ),
        grid_spec=grid_spec,
        compiler_params=pltpu.CompilerParams(
            dimension_semantics=("arbitrary",),   # time axis is a serial recurrence
        ),
    )(
        xs_bf16, h0, c0,
        params["w_ih_t"], params["w_hh_t"], params["b_gates"],
        params["w1_t"], params["b1"], params["w2_t"], params["b2"],
    )
    return outs, h_T, c_T


def init_params(key, size, lstm_size, mid=256):
    """PyTorch-style uniform init; weights pre-transposed, matmul weights in bf16."""
    ks = jax.random.split(key, 8)
    H = lstm_size
    k_lstm = 1.0 / jnp.sqrt(H)
    k_lin1 = 1.0 / jnp.sqrt(H)
    k_lin2 = 1.0 / jnp.sqrt(mid)

    w_ih = jax.random.uniform(ks[0], (4 * H, size), jnp.float32, -k_lstm, k_lstm)
    w_hh = jax.random.uniform(ks[1], (4 * H, H), jnp.float32, -k_lstm, k_lstm)
    b_ih = jax.random.uniform(ks[2], (4 * H,), jnp.float32, -k_lstm, k_lstm)
    b_hh = jax.random.uniform(ks[3], (4 * H,), jnp.float32, -k_lstm, k_lstm)
    w1 = jax.random.uniform(ks[4], (mid, H), jnp.float32, -k_lin1, k_lin1)
    b1 = jax.random.uniform(ks[5], (mid,), jnp.float32, -k_lin1, k_lin1)
    w2 = jax.random.uniform(ks[6], (size, mid), jnp.float32, -k_lin2, k_lin2)
    b2 = jax.random.uniform(ks[7], (size,), jnp.float32, -k_lin2, k_lin2)

    return {
        "w_ih_t": w_ih.T.astype(jnp.bfloat16),   # (size, 4H) bf16
        "w_hh_t": w_hh.T.astype(jnp.bfloat16),   # (H, 4H)    bf16
        "b_gates": (b_ih + b_hh)[None, :],       # (1, 4H)    f32
        "w1_t": w1.T.astype(jnp.bfloat16),       # (H, mid)   bf16
        "b1": b1[None, :],                       # (1, mid)   f32
        "w2_t": w2.T.astype(jnp.bfloat16),       # (mid, size) bf16
        "b2": b2[None, :],                       # (1, size)  f32
    }


def reference_forward_seq(xs, h0, c0, p):
    """Pure-JAX reference with identical mixed-precision math (bf16 matmuls, f32 acc).

    NOTE: this validates the kernel against the same bf16-weight numerics, not
    against a strictly-f32 PyTorch LSTMCell (small drift vs f32 is expected
    over very long T).
    """
    H = h0.shape[1]

    def step(carry, x):
        h, c = carry
        gates = (
            jnp.dot(x.astype(jnp.bfloat16), p["w_ih_t"],
                    preferred_element_type=jnp.float32)
            + jnp.dot(h.astype(jnp.bfloat16), p["w_hh_t"],
                      preferred_element_type=jnp.float32)
            + p["b_gates"]
        )
        i_g = _sigmoid(gates[:, 0 * H:1 * H])
        f_g = _sigmoid(gates[:, 1 * H:2 * H])
        g_g = jnp.tanh(gates[:, 2 * H:3 * H])
        o_g = _sigmoid(gates[:, 3 * H:4 * H])
        c_new = f_g * c + i_g * g_g
        h_new = o_g * jnp.tanh(c_new)
        z = (jnp.dot(h_new.astype(jnp.bfloat16), p["w1_t"],
                     preferred_element_type=jnp.float32) + p["b1"])
        z = jnp.maximum(z, 0.0)
        out = (jnp.dot(z.astype(jnp.bfloat16), p["w2_t"],
                       preferred_element_type=jnp.float32) + p["b2"])
        return (h_new, c_new), out

    (h_T, c_T), outs = jax.lax.scan(step, (h0, c0), xs)
    return outs, h_T, c_T


if __name__ == "__main__":
    SIZE = 128        # module `size`
    LSTM_SIZE = 256   # module `lstm_size` (scaled down from 512 for the small test)
    BATCH = 16        # full bf16 vreg sublane packing
    T = 32            # timesteps; blocked as 4 grid steps x TB=8 unrolled steps

    key = jax.random.PRNGKey(0)
    k_param, k_x = jax.random.split(key)

    params = init_params(k_param, SIZE, LSTM_SIZE)
    xs = jax.random.normal(k_x, (T, BATCH, SIZE), jnp.float32)
    h0 = jnp.zeros((BATCH, LSTM_SIZE), jnp.float32)
    c0 = jnp.zeros((BATCH, LSTM_SIZE), jnp.float32)

    outs, hT, cT = predictive_ae_forward_seq(xs, h0, c0, params)
    jax.block_until_ready((outs, hT, cT))

    # Correctness vs a pure-JAX reference of the same mixed-precision math.
    ref_outs, ref_hT, ref_cT = reference_forward_seq(xs, h0, c0, params)
    assert jnp.allclose(outs, ref_outs, atol=2e-3, rtol=2e-3), \
        float(jnp.max(jnp.abs(outs - ref_outs)))
    assert jnp.allclose(hT, ref_hT, atol=2e-3, rtol=2e-3)
    assert jnp.allclose(cT, ref_cT, atol=2e-3, rtol=2e-3)

    # Continue the stateful recurrence from the returned state (PyTorch-style).
    outs2, hT2, cT2 = predictive_ae_forward_seq(xs, hT, cT, params)
    jax.block_until_ready(outs2)

    print("KERNEL_OK")
</pallas_src>

<mosaic_0001>
module attributes {stable_mosaic.version = 11 : i64} {
  func.func @_predictive_ae_block_kernel(%arg0: i32, %arg1: memref<8x16x128xbf16, #tpu.memory_space<vmem>>, %arg2: memref<16x256xf32, #tpu.memory_space<vmem>>, %arg3: memref<16x256xf32, #tpu.memory_space<vmem>>, %arg4: memref<128x1024xbf16, #tpu.memory_space<vmem>>, %arg5: memref<256x1024xbf16, #tpu.memory_space<vmem>>, %arg6: memref<1x1024xf32, #tpu.memory_space<vmem>>, %arg7: memref<256x256xbf16, #tpu.memory_space<vmem>>, %arg8: memref<1x256xf32, #tpu.memory_space<vmem>>, %arg9: memref<256x128xbf16, #tpu.memory_space<vmem>>, %arg10: memref<1x128xf32, #tpu.memory_space<vmem>>, %arg11: memref<8x16x128xf32, #tpu.memory_space<vmem>>, %arg12: memref<16x256xf32, #tpu.memory_space<vmem>>, %arg13: memref<16x256xf32, #tpu.memory_space<vmem>>, %arg14: memref<16x256xf32, #tpu.memory_space<vmem>>, %arg15: memref<16x256xf32, #tpu.memory_space<vmem>>, %arg16: memref<8x16x256xf32, #tpu.memory_space<vmem>>) attributes {dimension_semantics = [#tpu.dimension_semantics<arbitrary>], iteration_bounds = array<i64: 4>, scalar_prefetch = 0 : i64, scratch_operands = 3 : i64, tpu.core_type = #tpu.core_type<tc>, window_params = [{transform_indices = @transform_0, window_bounds = array<i64: 8, 16, 128>}, {pipeline_mode = #tpu.pipeline_mode<synchronous>, transform_indices = @transform_1, window_bounds = array<i64: 16, 256>}, {pipeline_mode = #tpu.pipeline_mode<synchronous>, transform_indices = @transform_2, window_bounds = array<i64: 16, 256>}, {pipeline_mode = #tpu.pipeline_mode<synchronous>, transform_indices = @transform_3, window_bounds = array<i64: 128, 1024>}, {pipeline_mode = #tpu.pipeline_mode<synchronous>, transform_indices = @transform_4, window_bounds = array<i64: 256, 1024>}, {pipeline_mode = #tpu.pipeline_mode<synchronous>, transform_indices = @transform_5, window_bounds = array<i64: 1, 1024>}, {pipeline_mode = #tpu.pipeline_mode<synchronous>, transform_indices = @transform_6, window_bounds = array<i64: 256, 256>}, {pipeline_mode = #tpu.pipeline_mode<synchronous>, transform_indices = @transform_7, window_bounds = array<i64: 1, 256>}, {pipeline_mode = #tpu.pipeline_mode<synchronous>, transform_indices = @transform_8, window_bounds = array<i64: 256, 128>}, {pipeline_mode = #tpu.pipeline_mode<synchronous>, transform_indices = @transform_9, window_bounds = array<i64: 1, 128>}, {transform_indices = @transform_10, window_bounds = array<i64: 8, 16, 128>}, {pipeline_mode = #tpu.pipeline_mode<synchronous>, transform_indices = @transform_11, window_bounds = array<i64: 16, 256>}, {pipeline_mode = #tpu.pipeline_mode<synchronous>, transform_indices = @transform_12, window_bounds = array<i64: 16, 256>}]} {
    %c0_i32 = arith.constant 0 : i32
    %0 = arith.cmpi eq, %arg0, %c0_i32 : i32
    %1 = arith.extui %0 : i1 to i32
    %c0_i32_0 = arith.constant 0 : i32
    %2 = arith.cmpi ne, %1, %c0_i32_0 : i32
    scf.if %2 {
      %c0_188 = arith.constant 0 : index
      %c0_189 = arith.constant 0 : index
      %375 = vector.load %arg2[%c0_188, %c0_189] : memref<16x256xf32, #tpu.memory_space<vmem>>, vector<16x256xf32>
      %c0_190 = arith.constant 0 : index
      %c0_191 = arith.constant 0 : index
      %376 = vector.load %arg14[%c0_190, %c0_191] : memref<16x256xf32, #tpu.memory_space<vmem>>, vector<16x256xf32>
      tpu.vector_store %arg14[%c0_190, %c0_191], %375 {strides = array<i32>} : memref<16x256xf32, #tpu.memory_space<vmem>>, vector<16x256xf32>,
      %c0_192 = arith.constant 0 : index
      %c0_193 = arith.constant 0 : index
      %377 = vector.load %arg3[%c0_192, %c0_193] : memref<16x256xf32, #tpu.memory_space<vmem>>, vector<16x256xf32>
      %c0_194 = arith.constant 0 : index
      %c0_195 = arith.constant 0 : index
      %378 = vector.load %arg15[%c0_194, %c0_195] : memref<16x256xf32, #tpu.memory_space<vmem>>, vector<16x256xf32>
      tpu.vector_store %arg15[%c0_194, %c0_195], %377 {strides = array<i32>} : memref<16x256xf32, #tpu.memory_space<vmem>>, vector<16x256xf32>,
    } else {
    }
    %c0 = arith.constant 0 : index
    %c0_1 = arith.constant 0 : index
    %3 = vector.load %arg6[%c0, %c0_1] : memref<1x1024xf32, #tpu.memory_space<vmem>>, vector<1x1024xf32>
    %4 = vector.shape_cast %3 : vector<1x1024xf32> to vector<1x1024xf32>
    %5 = vector.broadcast %4 : vector<1x1024xf32> to vector<16x1024xf32>
    %c0_2 = arith.constant 0 : index
    %c0_3 = arith.constant 0 : index
    %6 = vector.load %arg14[%c0_2, %c0_3] : memref<16x256xf32, #tpu.memory_space<vmem>>, vector<16x256xf32>
    %c0_4 = arith.constant 0 : index
    %c0_5 = arith.constant 0 : index
    %7 = vector.load %arg15[%c0_4, %c0_5] : memref<16x256xf32, #tpu.memory_space<vmem>>, vector<16x256xf32>
    %c0_6 = arith.constant 0 : index
    %c0_7 = arith.constant 0 : index
    %c0_8 = arith.constant 0 : index
    %8 = vector.load %arg1[%c0_6, %c0_7, %c0_8] : memref<8x16x128xbf16, #tpu.memory_space<vmem>>, vector<1x16x128xbf16>
    %9 = vector.shape_cast %8 : vector<1x16x128xbf16> to vector<16x128xbf16>
    %c0_9 = arith.constant 0 : index
    %c0_10 = arith.constant 0 : index
    %10 = vector.load %arg4[%c0_9, %c0_10] : memref<128x1024xbf16, #tpu.memory_space<vmem>>, vector<128x1024xbf16>
    %cst = arith.constant dense<0.000000e+00> : vector<16x1024xf32>
    %11 = tpu.matmul %9, %10, %cst {dimension_numbers = #tpu.dot_dimension_numbers<[1], [0], [0], [1], [0, 0, 1, 1], [], []>} : vector<16x128xbf16>, vector<128x1024xbf16>, vector<16x1024xf32> -> vector<16x1024xf32>
    %12 = arith.truncf %6 : vector<16x256xf32> to vector<16x256xbf16>
    %c0_11 = arith.constant 0 : index
    %c0_12 = arith.constant 0 : index
    %13 = vector.load %arg5[%c0_11, %c0_12] : memref<256x1024xbf16, #tpu.memory_space<vmem>>, vector<256x1024xbf16>
    %cst_13 = arith.constant dense<0.000000e+00> : vector<16x1024xf32>
    %14 = tpu.matmul %12, %13, %cst_13 {dimension_numbers = #tpu.dot_dimension_numbers<[1], [0], [0], [1], [0, 0, 1, 1], [], []>} : vector<16x256xbf16>, vector<256x1024xbf16>, vector<16x1024xf32> -> vector<16x1024xf32>
    %15 = arith.addf %11, %14 : vector<16x1024xf32>
    %16 = arith.addf %15, %5 : vector<16x1024xf32>
    %17 = vector.extract_strided_slice %16 {offsets = [0, 0], sizes = [16, 256], strides = [1, 1]} : vector<16x1024xf32> to vector<16x256xf32>
    %cst_14 = arith.constant 5.000000e-01 : f32
    %18 = vector.broadcast %cst_14 : f32 to vector<16x256xf32>
    %19 = arith.mulf %18, %17 : vector<16x256xf32>
    %20 = math.tanh %19 : vector<16x256xf32>
    %cst_15 = arith.constant 5.000000e-01 : f32
    %21 = vector.broadcast %cst_15 : f32 to vector<16x256xf32>
    %22 = arith.mulf %21, %20 : vector<16x256xf32>
    %cst_16 = arith.constant 5.000000e-01 : f32
    %23 = vector.broadcast %cst_16 : f32 to vector<16x256xf32>
    %24 = arith.addf %22, %23 : vector<16x256xf32>
    %25 = vector.extract_strided_slice %16 {offsets = [0, 256], sizes = [16, 256], strides = [1, 1]} : vector<16x1024xf32> to vector<16x256xf32>
    %cst_17 = arith.constant 5.000000e-01 : f32
    %26 = vector.broadcast %cst_17 : f32 to vector<16x256xf32>
    %27 = arith.mulf %26, %25 : vector<16x256xf32>
    %28 = math.tanh %27 : vector<16x256xf32>
    %cst_18 = arith.constant 5.000000e-01 : f32
    %29 = vector.broadcast %cst_18 : f32 to vector<16x256xf32>
    %30 = arith.mulf %29, %28 : vector<16x256xf32>
    %cst_19 = arith.constant 5.000000e-01 : f32
    %31 = vector.broadcast %cst_19 : f32 to vector<16x256xf32>
    %32 = arith.addf %30, %31 : vector<16x256xf32>
    %33 = vector.extract_strided_slice %16 {offsets = [0, 512], sizes = [16, 256], strides = [1, 1]} : vector<16x1024xf32> to vector<16x256xf32>
    %34 = math.tanh %33 : vector<16x256xf32>
    %35 = vector.extract_strided_slice %16 {offsets = [0, 768], sizes = [16, 256], strides = [1, 1]} : vector<16x1024xf32> to vector<16x256xf32>
    %cst_20 = arith.constant 5.000000e-01 : f32
    %36 = vector.broadcast %cst_20 : f32 to vector<16x256xf32>
    %37 = arith.mulf %36, %35 : vector<16x256xf32>
    %38 = math.tanh %37 : vector<16x256xf32>
    %cst_21 = arith.constant 5.000000e-01 : f32
    %39 = vector.broadcast %cst_21 : f32 to vector<16x256xf32>
    %40 = arith.mulf %39, %38 : vector<16x256xf32>
    %cst_22 = arith.constant 5.000000e-01 : f32
    %41 = vector.broadcast %cst_22 : f32 to vector<16x256xf32>
    %42 = arith.addf %40, %41 : vector<16x256xf32>
    %43 = arith.mulf %32, %7 : vector<16x256xf32>
    %44 = arith.mulf %24, %34 : vector<16x256xf32>
    %45 = arith.addf %43, %44 : vector<16x256xf32>
    %46 = math.tanh %45 : vector<16x256xf32>
    %47 = arith.mulf %42, %46 : vector<16x256xf32>
    %c0_23 = arith.constant 0 : index
    %c0_24 = arith.constant 0 : index
    %c0_25 = arith.constant 0 : index
    %48 = vector.load %arg16[%c0_23, %c0_24, %c0_25] : memref<8x16x256xf32, #tpu.memory_space<vmem>>, vector<1x16x256xf32>
    %49 = vector.shape_cast %48 : vector<1x16x256xf32> to vector<16x256xf32>
    %50 = vector.shape_cast %47 : vector<16x256xf32> to vector<1x16x256xf32>
    tpu.vector_store %arg16[%c0_23, %c0_24, %c0_25], %50 {strides = array<i32>} : memref<8x16x256xf32, #tpu.memory_space<vmem>>, vector<1x16x256xf32>,
    %c1 = arith.constant 1 : index
    %c0_26 = arith.constant 0 : index
    %c0_27 = arith.constant 0 : index
    %51 = vector.load %arg1[%c1, %c0_26, %c0_27] : memref<8x16x128xbf16, #tpu.memory_space<vmem>>, vector<1x16x128xbf16>
    %52 = vector.shape_cast %51 : vector<1x16x128xbf16> to vector<16x128xbf16>
    %c0_28 = arith.constant 0 : index
    %c0_29 = arith.constant 0 : index
    %53 = vector.load %arg4[%c0_28, %c0_29] : memref<128x1024xbf16, #tpu.memory_space<vmem>>, vector<128x1024xbf16>
    %cst_30 = arith.constant dense<0.000000e+00> : vector<16x1024xf32>
    %54 = tpu.matmul %52, %53, %cst_30 {dimension_numbers = #tpu.dot_dimension_numbers<[1], [0], [0], [1], [0, 0, 1, 1], [], []>} : vector<16x128xbf16>, vector<128x1024xbf16>, vector<16x1024xf32> -> vector<16x1024xf32>
    %55 = arith.truncf %47 : vector<16x256xf32> to vector<16x256xbf16>
    %c0_31 = arith.constant 0 : index
    %c0_32 = arith.constant 0 : index
    %56 = vector.load %arg5[%c0_31, %c0_32] : memref<256x1024xbf16, #tpu.memory_space<vmem>>, vector<256x1024xbf16>
    %cst_33 = arith.constant dense<0.000000e+00> : vector<16x1024xf32>
    %57 = tpu.matmul %55, %56, %cst_33 {dimension_numbers = #tpu.dot_dimension_numbers<[1], [0], [0], [1], [0, 0, 1, 1], [], []>} : vector<16x256xbf16>, vector<256x1024xbf16>, vector<16x1024xf32> -> vector<16x1024xf32>
    %58 = arith.addf %54, %57 : vector<16x1024xf32>
    %59 = arith.addf %58, %5 : vector<16x1024xf32>
    %60 = vector.extract_strided_slice %59 {offsets = [0, 0], sizes = [16, 256], strides = [1, 1]} : vector<16x1024xf32> to vector<16x256xf32>
    %cst_34 = arith.constant 5.000000e-01 : f32
    %61 = vector.broadcast %cst_34 : f32 to vector<16x256xf32>
    %62 = arith.mulf %61, %60 : vector<16x256xf32>
    %63 = math.tanh %62 : vector<16x256xf32>
    %cst_35 = arith.constant 5.000000e-01 : f32
    %64 = vector.broadcast %cst_35 : f32 to vector<16x256xf32>
    %65 = arith.mulf %64, %63 : vector<16x256xf32>
    %cst_36 = arith.constant 5.000000e-01 : f32
    %66 = vector.broadcast %cst_36 : f32 to vector<16x256xf32>
    %67 = arith.addf %65, %66 : vector<16x256xf32>
    %68 = vector.extract_strided_slice %59 {offsets = [0, 256], sizes = [16, 256], strides = [1, 1]} : vector<16x1024xf32> to vector<16x256xf32>
    %cst_37 = arith.constant 5.000000e-01 : f32
    %69 = vector.broadcast %cst_37 : f32 to vector<16x256xf32>
    %70 = arith.mulf %69, %68 : vector<16x256xf32>
    %71 = math.tanh %70 : vector<16x256xf32>
    %cst_38 = arith.constant 5.000000e-01 : f32
    %72 = vector.broadcast %cst_38 : f32 to vector<16x256xf32>
    %73 = arith.mulf %72, %71 : vector<16x256xf32>
    %cst_39 = arith.constant 5.000000e-01 : f32
    %74 = vector.broadcast %cst_39 : f32 to vector<16x256xf32>
    %75 = arith.addf %73, %74 : vector<16x256xf32>
    %76 = vector.extract_strided_slice %59 {offsets = [0, 512], sizes = [16, 256], strides = [1, 1]} : vector<16x1024xf32> to vector<16x256xf32>
    %77 = math.tanh %76 : vector<16x256xf32>
    %78 = vector.extract_strided_slice %59 {offsets = [0, 768], sizes = [16, 256], strides = [1, 1]} : vector<16x1024xf32> to vector<16x256xf32>
    %cst_40 = arith.constant 5.000000e-01 : f32
    %79 = vector.broadcast %cst_40 : f32 to vector<16x256xf32>
    %80 = arith.mulf %79, %78 : vector<16x256xf32>
    %81 = math.tanh %80 : vector<16x256xf32>
    %cst_41 = arith.constant 5.000000e-01 : f32
    %82 = vector.broadcast %cst_41 : f32 to vector<16x256xf32>
    %83 = arith.mulf %82, %81 : vector<16x256xf32>
    %cst_42 = arith.constant 5.000000e-01 : f32
    %84 = vector.broadcast %cst_42 : f32 to vector<16x256xf32>
    %85 = arith.addf %83, %84 : vector<16x256xf32>
    %86 = arith.mulf %75, %45 : vector<16x256xf32>
    %87 = arith.mulf %67, %77 : vector<16x256xf32>
    %88 = arith.addf %86, %87 : vector<16x256xf32>
    %89 = math.tanh %88 : vector<16x256xf32>
    %90 = arith.mulf %85, %89 : vector<16x256xf32>
    %c1_43 = arith.constant 1 : index
    %c0_44 = arith.constant 0 : index
    %c0_45 = arith.constant 0 : index
    %91 = vector.load %arg16[%c1_43, %c0_44, %c0_45] : memref<8x16x256xf32, #tpu.memory_space<vmem>>, vector<1x16x256xf32>
    %92 = vector.shape_cast %91 : vector<1x16x256xf32> to vector<16x256xf32>
    %93 = vector.shape_cast %90 : vector<16x256xf32> to vector<1x16x256xf32>
    tpu.vector_store %arg16[%c1_43, %c0_44, %c0_45], %93 {strides = array<i32>} : memref<8x16x256xf32, #tpu.memory_space<vmem>>, vector<1x16x256xf32>,
    %c2 = arith.constant 2 : index
    %c0_46 = arith.constant 0 : index
    %c0_47 = arith.constant 0 : index
    %94 = vector.load %arg1[%c2, %c0_46, %c0_47] : memref<8x16x128xbf16, #tpu.memory_space<vmem>>, vector<1x16x128xbf16>
    %95 = vector.shape_cast %94 : vector<1x16x128xbf16> to vector<16x128xbf16>
    %c0_48 = arith.constant 0 : index
    %c0_49 = arith.constant 0 : index
    %96 = vector.load %arg4[%c0_48, %c0_49] : memref<128x1024xbf16, #tpu.memory_space<vmem>>, vector<128x1024xbf16>
    %cst_50 = arith.constant dense<0.000000e+00> : vector<16x1024xf32>
    %97 = tpu.matmul %95, %96, %cst_50 {dimension_numbers = #tpu.dot_dimension_numbers<[1], [0], [0], [1], [0, 0, 1, 1], [], []>} : vector<16x128xbf16>, vector<128x1024xbf16>, vector<16x1024xf32> -> vector<16x1024xf32>
    %98 = arith.truncf %90 : vector<16x256xf32> to vector<16x256xbf16>
    %c0_51 = arith.constant 0 : index
    %c0_52 = arith.constant 0 : index
    %99 = vector.load %arg5[%c0_51, %c0_52] : memref<256x1024xbf16, #tpu.memory_space<vmem>>, vector<256x1024xbf16>
    %cst_53 = arith.constant dense<0.000000e+00> : vector<16x1024xf32>
    %100 = tpu.matmul %98, %99, %cst_53 {dimension_numbers = #tpu.dot_dimension_numbers<[1], [0], [0], [1], [0, 0, 1, 1], [], []>} : vector<16x256xbf16>, vector<256x1024xbf16>, vector<16x1024xf32> -> vector<16x1024xf32>
    %101 = arith.addf %97, %100 : vector<16x1024xf32>
    %102 = arith.addf %101, %5 : vector<16x1024xf32>
    %103 = vector.extract_strided_slice %102 {offsets = [0, 0], sizes = [16, 256], strides = [1, 1]} : vector<16x1024xf32> to vector<16x256xf32>
    %cst_54 = arith.constant 5.000000e-01 : f32
    %104 = vector.broadcast %cst_54 : f32 to vector<16x256xf32>
    %105 = arith.mulf %104, %103 : vector<16x256xf32>
    %106 = math.tanh %105 : vector<16x256xf32>
    %cst_55 = arith.constant 5.000000e-01 : f32
    %107 = vector.broadcast %cst_55 : f32 to vector<16x256xf32>
    %108 = arith.mulf %107, %106 : vector<16x256xf32>
    %cst_56 = arith.constant 5.000000e-01 : f32
    %109 = vector.broadcast %cst_56 : f32 to vector<16x256xf32>
    %110 = arith.addf %108, %109 : vector<16x256xf32>
    %111 = vector.extract_strided_slice %102 {offsets = [0, 256], sizes = [16, 256], strides = [1, 1]} : vector<16x1024xf32> to vector<16x256xf32>
    %cst_57 = arith.constant 5.000000e-01 : f32
    %112 = vector.broadcast %cst_57 : f32 to vector<16x256xf32>
    %113 = arith.mulf %112, %111 : vector<16x256xf32>
    %114 = math.tanh %113 : vector<16x256xf32>
    %cst_58 = arith.constant 5.000000e-01 : f32
    %115 = vector.broadcast %cst_58 : f32 to vector<16x256xf32>
    %116 = arith.mulf %115, %114 : vector<16x256xf32>
    %cst_59 = arith.constant 5.000000e-01 : f32
    %117 = vector.broadcast %cst_59 : f32 to vector<16x256xf32>
    %118 = arith.addf %116, %117 : vector<16x256xf32>
    %119 = vector.extract_strided_slice %102 {offsets = [0, 512], sizes = [16, 256], strides = [1, 1]} : vector<16x1024xf32> to vector<16x256xf32>
    %120 = math.tanh %119 : vector<16x256xf32>
    %121 = vector.extract_strided_slice %102 {offsets = [0, 768], sizes = [16, 256], strides = [1, 1]} : vector<16x1024xf32> to vector<16x256xf32>
    %cst_60 = arith.constant 5.000000e-01 : f32
    %122 = vector.broadcast %cst_60 : f32 to vector<16x256xf32>
    %123 = arith.mulf %122, %121 : vector<16x256xf32>
    %124 = math.tanh %123 : vector<16x256xf32>
    %cst_61 = arith.constant 5.000000e-01 : f32
    %125 = vector.broadcast %cst_61 : f32 to vector<16x256xf32>
    %126 = arith.mulf %125, %124 : vector<16x256xf32>
    %cst_62 = arith.constant 5.000000e-01 : f32
    %127 = vector.broadcast %cst_62 : f32 to vector<16x256xf32>
    %128 = arith.addf %126, %127 : vector<16x256xf32>
    %129 = arith.mulf %118, %88 : vector<16x256xf32>
    %130 = arith.mulf %110, %120 : vector<16x256xf32>
    %131 = arith.addf %129, %130 : vector<16x256xf32>
    %132 = math.tanh %131 : vector<16x256xf32>
    %133 = arith.mulf %128, %132 : vector<16x256xf32>
    %c2_63 = arith.constant 2 : index
    %c0_64 = arith.constant 0 : index
    %c0_65 = arith.constant 0 : index
    %134 = vector.load %arg16[%c2_63, %c0_64, %c0_65] : memref<8x16x256xf32, #tpu.memory_space<vmem>>, vector<1x16x256xf32>
    %135 = vector.shape_cast %134 : vector<1x16x256xf32> to vector<16x256xf32>
    %136 = vector.shape_cast %133 : vector<16x256xf32> to vector<1x16x256xf32>
    tpu.vector_store %arg16[%c2_63, %c0_64, %c0_65], %136 {strides = array<i32>} : memref<8x16x256xf32, #tpu.memory_space<vmem>>, vector<1x16x256xf32>,
    %c3 = arith.constant 3 : index
    %c0_66 = arith.constant 0 : index
    %c0_67 = arith.constant 0 : index
    %137 = vector.load %arg1[%c3, %c0_66, %c0_67] : memref<8x16x128xbf16, #tpu.memory_space<vmem>>, vector<1x16x128xbf16>
    %138 = vector.shape_cast %137 : vector<1x16x128xbf16> to vector<16x128xbf16>
    %c0_68 = arith.constant 0 : index
    %c0_69 = arith.constant 0 : index
    %139 = vector.load %arg4[%c0_68, %c0_69] : memref<128x1024xbf16, #tpu.memory_space<vmem>>, vector<128x1024xbf16>
    %cst_70 = arith.constant dense<0.000000e+00> : vector<16x1024xf32>
    %140 = tpu.matmul %138, %139, %cst_70 {dimension_numbers = #tpu.dot_dimension_numbers<[1], [0], [0], [1], [0, 0, 1, 1], [], []>} : vector<16x128xbf16>, vector<128x1024xbf16>, vector<16x1024xf32> -> vector<16x1024xf32>
    %141 = arith.truncf %133 : vector<16x256xf32> to vector<16x256xbf16>
    %c0_71 = arith.constant 0 : index
    %c0_72 = arith.constant 0 : index
    %142 = vector.load %arg5[%c0_71, %c0_72] : memref<256x1024xbf16, #tpu.memory_space<vmem>>, vector<256x1024xbf16>
    %cst_73 = arith.constant dense<0.000000e+00> : vector<16x1024xf32>
    %143 = tpu.matmul %141, %142, %cst_73 {dimension_numbers = #tpu.dot_dimension_numbers<[1], [0], [0], [1], [0, 0, 1, 1], [], []>} : vector<16x256xbf16>, vector<256x1024xbf16>, vector<16x1024xf32> -> vector<16x1024xf32>
    %144 = arith.addf %140, %143 : vector<16x1024xf32>
    %145 = arith.addf %144, %5 : vector<16x1024xf32>
    %146 = vector.extract_strided_slice %145 {offsets = [0, 0], sizes = [16, 256], strides = [1, 1]} : vector<16x1024xf32> to vector<16x256xf32>
    %cst_74 = arith.constant 5.000000e-01 : f32
    %147 = vector.broadcast %cst_74 : f32 to vector<16x256xf32>
    %148 = arith.mulf %147, %146 : vector<16x256xf32>
    %149 = math.tanh %148 : vector<16x256xf32>
    %cst_75 = arith.constant 5.000000e-01 : f32
    %150 = vector.broadcast %cst_75 : f32 to vector<16x256xf32>
    %151 = arith.mulf %150, %149 : vector<16x256xf32>
    %cst_76 = arith.constant 5.000000e-01 : f32
    %152 = vector.broadcast %cst_76 : f32 to vector<16x256xf32>
    %153 = arith.addf %151, %152 : vector<16x256xf32>
    %154 = vector.extract_strided_slice %145 {offsets = [0, 256], sizes = [16, 256], strides = [1, 1]} : vector<16x1024xf32> to vector<16x256xf32>
    %cst_77 = arith.constant 5.000000e-01 : f32
    %155 = vector.broadcast %cst_77 : f32 to vector<16x256xf32>
    %156 = arith.mulf %155, %154 : vector<16x256xf32>
    %157 = math.tanh %156 : vector<16x256xf32>
    %cst_78 = arith.constant 5.000000e-01 : f32
    %158 = vector.broadcast %cst_78 : f32 to vector<16x256xf32>
    %159 = arith.mulf %158, %157 : vector<16x256xf32>
    %cst_79 = arith.constant 5.000000e-01 : f32
    %160 = vector.broadcast %cst_79 : f32 to vector<16x256xf32>
    %161 = arith.addf %159, %160 : vector<16x256xf32>
    %162 = vector.extract_strided_slice %145 {offsets = [0, 512], sizes = [16, 256], strides = [1, 1]} : vector<16x1024xf32> to vector<16x256xf32>
    %163 = math.tanh %162 : vector<16x256xf32>
    %164 = vector.extract_strided_slice %145 {offsets = [0, 768], sizes = [16, 256], strides = [1, 1]} : vector<16x1024xf32> to vector<16x256xf32>
    %cst_80 = arith.constant 5.000000e-01 : f32
    %165 = vector.broadcast %cst_80 : f32 to vector<16x256xf32>
    %166 = arith.mulf %165, %164 : vector<16x256xf32>
    %167 = math.tanh %166 : vector<16x256xf32>
    %cst_81 = arith.constant 5.000000e-01 : f32
    %168 = vector.broadcast %cst_81 : f32 to vector<16x256xf32>
    %169 = arith.mulf %168, %167 : vector<16x256xf32>
    %cst_82 = arith.constant 5.000000e-01 : f32
    %170 = vector.broadcast %cst_82 : f32 to vector<16x256xf32>
    %171 = arith.addf %169, %170 : vector<16x256xf32>
    %172 = arith.mulf %161, %131 : vector<16x256xf32>
    %173 = arith.mulf %153, %163 : vector<16x256xf32>
    %174 = arith.addf %172, %173 : vector<16x256xf32>
    %175 = math.tanh %174 : vector<16x256xf32>
    %176 = arith.mulf %171, %175 : vector<16x256xf32>
    %c3_83 = arith.constant 3 : index
    %c0_84 = arith.constant 0 : index
    %c0_85 = arith.constant 0 : index
    %177 = vector.load %arg16[%c3_83, %c0_84, %c0_85] : memref<8x16x256xf32, #tpu.memory_space<vmem>>, vector<1x16x256xf32>
    %178 = vector.shape_cast %177 : vector<1x16x256xf32> to vector<16x256xf32>
    %179 = vector.shape_cast %176 : vector<16x256xf32> to vector<1x16x256xf32>
    tpu.vector_store %arg16[%c3_83, %c0_84, %c0_85], %179 {strides = array<i32>} : memref<8x16x256xf32, #tpu.memory_space<vmem>>, vector<1x16x256xf32>,
    %c4 = arith.constant 4 : index
    %c0_86 = arith.constant 0 : index
    %c0_87 = arith.constant 0 : index
    %180 = vector.load %arg1[%c4, %c0_86, %c0_87] : memref<8x16x128xbf16, #tpu.memory_space<vmem>>, vector<1x16x128xbf16>
    %181 = vector.shape_cast %180 : vector<1x16x128xbf16> to vector<16x128xbf16>
    %c0_88 = arith.constant 0 : index
    %c0_89 = arith.constant 0 : index
    %182 = vector.load %arg4[%c0_88, %c0_89] : memref<128x1024xbf16, #tpu.memory_space<vmem>>, vector<128x1024xbf16>
    %cst_90 = arith.constant dense<0.000000e+00> : vector<16x1024xf32>
    %183 = tpu.matmul %181, %182, %cst_90 {dimension_numbers = #tpu.dot_dimension_numbers<[1], [0], [0], [1], [0, 0, 1, 1], [], []>} : vector<16x128xbf16>, vector<128x1024xbf16>, vector<16x1024xf32> -> vector<16x1024xf32>
    %184 = arith.truncf %176 : vector<16x256xf32> to vector<16x256xbf16>
    %c0_91 = arith.constant 0 : index
    %c0_92 = arith.constant 0 : index
    %185 = vector.load %arg5[%c0_91, %c0_92] : memref<256x1024xbf16, #tpu.memory_space<vmem>>, vector<256x1024xbf16>
    %cst_93 = arith.constant dense<0.000000e+00> : vector<16x1024xf32>
    %186 = tpu.matmul %184, %185, %cst_93 {dimension_numbers = #tpu.dot_dimension_numbers<[1], [0], [0], [1], [0, 0, 1, 1], [], []>} : vector<16x256xbf16>, vector<256x1024xbf16>, vector<16x1024xf32> -> vector<16x1024xf32>
    %187 = arith.addf %183, %186 : vector<16x1024xf32>
    %188 = arith.addf %187, %5 : vector<16x1024xf32>
    %189 = vector.extract_strided_slice %188 {offsets = [0, 0], sizes = [16, 256], strides = [1, 1]} : vector<16x1024xf32> to vector<16x256xf32>
    %cst_94 = arith.constant 5.000000e-01 : f32
    %190 = vector.broadcast %cst_94 : f32 to vector<16x256xf32>
    %191 = arith.mulf %190, %189 : vector<16x256xf32>
    %192 = math.tanh %191 : vector<16x256xf32>
    %cst_95 = arith.constant 5.000000e-01 : f32
    %193 = vector.broadcast %cst_95 : f32 to vector<16x256xf32>
    %194 = arith.mulf %193, %192 : vector<16x256xf32>
    %cst_96 = arith.constant 5.000000e-01 : f32
    %195 = vector.broadcast %cst_96 : f32 to vector<16x256xf32>
    %196 = arith.addf %194, %195 : vector<16x256xf32>
    %197 = vector.extract_strided_slice %188 {offsets = [0, 256], sizes = [16, 256], strides = [1, 1]} : vector<16x1024xf32> to vector<16x256xf32>
    %cst_97 = arith.constant 5.000000e-01 : f32
    %198 = vector.broadcast %cst_97 : f32 to vector<16x256xf32>
    %199 = arith.mulf %198, %197 : vector<16x256xf32>
    %200 = math.tanh %199 : vector<16x256xf32>
    %cst_98 = arith.constant 5.000000e-01 : f32
    %201 = vector.broadcast %cst_98 : f32 to vector<16x256xf32>
    %202 = arith.mulf %201, %200 : vector<16x256xf32>
    %cst_99 = arith.constant 5.000000e-01 : f32
    %203 = vector.broadcast %cst_99 : f32 to vector<16x256xf32>
    %204 = arith.addf %202, %203 : vector<16x256xf32>
    %205 = vector.extract_strided_slice %188 {offsets = [0, 512], sizes = [16, 256], strides = [1, 1]} : vector<16x1024xf32> to vector<16x256xf32>
    %206 = math.tanh %205 : vector<16x256xf32>
    %207 = vector.extract_strided_slice %188 {offsets = [0, 768], sizes = [16, 256], strides = [1, 1]} : vector<16x1024xf32> to vector<16x256xf32>
    %cst_100 = arith.constant 5.000000e-01 : f32
    %208 = vector.broadcast %cst_100 : f32 to vector<16x256xf32>
    %209 = arith.mulf %208, %207 : vector<16x256xf32>
    %210 = math.tanh %209 : vector<16x256xf32>
    %cst_101 = arith.constant 5.000000e-01 : f32
    %211 = vector.broadcast %cst_101 : f32 to vector<16x256xf32>
    %212 = arith.mulf %211, %210 : vector<16x256xf32>
    %cst_102 = arith.constant 5.000000e-01 : f32
    %213 = vector.broadcast %cst_102 : f32 to vector<16x256xf32>
    %214 = arith.addf %212, %213 : vector<16x256xf32>
    %215 = arith.mulf %204, %174 : vector<16x256xf32>
    %216 = arith.mulf %196, %206 : vector<16x256xf32>
    %217 = arith.addf %215, %216 : vector<16x256xf32>
    %218 = math.tanh %217 : vector<16x256xf32>
    %219 = arith.mulf %214, %218 : vector<16x256xf32>
    %c4_103 = arith.constant 4 : index
    %c0_104 = arith.constant 0 : index
    %c0_105 = arith.constant 0 : index
    %220 = vector.load %arg16[%c4_103, %c0_104, %c0_105] : memref<8x16x256xf32, #tpu.memory_space<vmem>>, vector<1x16x256xf32>
    %221 = vector.shape_cast %220 : vector<1x16x256xf32> to vector<16x256xf32>
    %222 = vector.shape_cast %219 : vector<16x256xf32> to vector<1x16x256xf32>
    tpu.vector_store %arg16[%c4_103, %c0_104, %c0_105], %222 {strides = array<i32>} : memref<8x16x256xf32, #tpu.memory_space<vmem>>, vector<1x16x256xf32>,
    %c5 = arith.constant 5 : index
    %c0_106 = arith.constant 0 : index
    %c0_107 = arith.constant 0 : index
    %223 = vector.load %arg1[%c5, %c0_106, %c0_107] : memref<8x16x128xbf16, #tpu.memory_space<vmem>>, vector<1x16x128xbf16>
    %224 = vector.shape_cast %223 : vector<1x16x128xbf16> to vector<16x128xbf16>
    %c0_108 = arith.constant 0 : index
    %c0_109 = arith.constant 0 : index
    %225 = vector.load %arg4[%c0_108, %c0_109] : memref<128x1024xbf16, #tpu.memory_space<vmem>>, vector<128x1024xbf16>
    %cst_110 = arith.constant dense<0.000000e+00> : vector<16x1024xf32>
    %226 = tpu.matmul %224, %225, %cst_110 {dimension_numbers = #tpu.dot_dimension_numbers<[1], [0], [0], [1], [0, 0, 1, 1], [], []>} : vector<16x128xbf16>, vector<128x1024xbf16>, vector<16x1024xf32> -> vector<16x1024xf32>
    %227 = arith.truncf %219 : vector<16x256xf32> to vector<16x256xbf16>
    %c0_111 = arith.constant 0 : index
    %c0_112 = arith.constant 0 : index
    %228 = vector.load %arg5[%c0_111, %c0_112] : memref<256x1024xbf16, #tpu.memory_space<vmem>>, vector<256x1024xbf16>
    %cst_113 = arith.constant dense<0.000000e+00> : vector<16x1024xf32>
    %229 = tpu.matmul %227, %228, %cst_113 {dimension_numbers = #tpu.dot_dimension_numbers<[1], [0], [0], [1], [0, 0, 1, 1], [], []>} : vector<16x256xbf16>, vector<256x1024xbf16>, vector<16x1024xf32> -> vector<16x1024xf32>
    %230 = arith.addf %226, %229 : vector<16x1024xf32>
    %231 = arith.addf %230, %5 : vector<16x1024xf32>
    %232 = vector.extract_strided_slice %231 {offsets = [0, 0], sizes = [16, 256], strides = [1, 1]} : vector<16x1024xf32> to vector<16x256xf32>
    %cst_114 = arith.constant 5.000000e-01 : f32
    %233 = vector.broadcast %cst_114 : f32 to vector<16x256xf32>
    %234 = arith.mulf %233, %232 : vector<16x256xf32>
    %235 = math.tanh %234 : vector<16x256xf32>
    %cst_115 = arith.constant 5.000000e-01 : f32
    %236 = vector.broadcast %cst_115 : f32 to vector<16x256xf32>
    %237 = arith.mulf %236, %235 : vector<16x256xf32>
    %cst_116 = arith.constant 5.000000e-01 : f32
    %238 = vector.broadcast %cst_116 : f32 to vector<16x256xf32>
    %239 = arith.addf %237, %238 : vector<16x256xf32>
    %240 = vector.extract_strided_slice %231 {offsets = [0, 256], sizes = [16, 256], strides = [1, 1]} : vector<16x1024xf32> to vector<16x256xf32>
    %cst_117 = arith.constant 5.000000e-01 : f32
    %241 = vector.broadcast %cst_117 : f32 to vector<16x256xf32>
    %242 = arith.mulf %241, %240 : vector<16x256xf32>
    %243 = math.tanh %242 : vector<16x256xf32>
    %cst_118 = arith.constant 5.000000e-01 : f32
    %244 = vector.broadcast %cst_118 : f32 to vector<16x256xf32>
    %245 = arith.mulf %244, %243 : vector<16x256xf32>
    %cst_119 = arith.constant 5.000000e-01 : f32
    %246 = vector.broadcast %cst_119 : f32 to vector<16x256xf32>
    %247 = arith.addf %245, %246 : vector<16x256xf32>
    %248 = vector.extract_strided_slice %231 {offsets = [0, 512], sizes = [16, 256], strides = [1, 1]} : vector<16x1024xf32> to vector<16x256xf32>
    %249 = math.tanh %248 : vector<16x256xf32>
    %250 = vector.extract_strided_slice %231 {offsets = [0, 768], sizes = [16, 256], strides = [1, 1]} : vector<16x1024xf32> to vector<16x256xf32>
    %cst_120 = arith.constant 5.000000e-01 : f32
    %251 = vector.broadcast %cst_120 : f32 to vector<16x256xf32>
    %252 = arith.mulf %251, %250 : vector<16x256xf32>
    %253 = math.tanh %252 : vector<16x256xf32>
    %cst_121 = arith.constant 5.000000e-01 : f32
    %254 = vector.broadcast %cst_121 : f32 to vector<16x256xf32>
    %255 = arith.mulf %254, %253 : vector<16x256xf32>
    %cst_122 = arith.constant 5.000000e-01 : f32
    %256 = vector.broadcast %cst_122 : f32 to vector<16x256xf32>
    %257 = arith.addf %255, %256 : vector<16x256xf32>
    %258 = arith.mulf %247, %217 : vector<16x256xf32>
    %259 = arith.mulf %239, %249 : vector<16x256xf32>
    %260 = arith.addf %258, %259 : vector<16x256xf32>
    %261 = math.tanh %260 : vector<16x256xf32>
    %262 = arith.mulf %257, %261 : vector<16x256xf32>
    %c5_123 = arith.constant 5 : index
    %c0_124 = arith.constant 0 : index
    %c0_125 = arith.constant 0 : index
    %263 = vector.load %arg16[%c5_123, %c0_124, %c0_125] : memref<8x16x256xf32, #tpu.memory_space<vmem>>, vector<1x16x256xf32>
    %264 = vector.shape_cast %263 : vector<1x16x256xf32> to vector<16x256xf32>
    %265 = vector.shape_cast %262 : vector<16x256xf32> to vector<1x16x256xf32>
    tpu.vector_store %arg16[%c5_123, %c0_124, %c0_125], %265 {strides = array<i32>} : memref<8x16x256xf32, #tpu.memory_space<vmem>>, vector<1x16x256xf32>,
    %c6 = arith.constant 6 : index
    %c0_126 = arith.constant 0 : index
    %c0_127 = arith.constant 0 : index
    %266 = vector.load %arg1[%c6, %c0_126, %c0_127] : memref<8x16x128xbf16, #tpu.memory_space<vmem>>, vector<1x16x128xbf16>
    %267 = vector.shape_cast %266 : vector<1x16x128xbf16> to vector<16x128xbf16>
    %c0_128 = arith.constant 0 : index
    %c0_129 = arith.constant 0 : index
    %268 = vector.load %arg4[%c0_128, %c0_129] : memref<128x1024xbf16, #tpu.memory_space<vmem>>, vector<128x1024xbf16>
    %cst_130 = arith.constant dense<0.000000e+00> : vector<16x1024xf32>
    %269 = tpu.matmul %267, %268, %cst_130 {dimension_numbers = #tpu.dot_dimension_numbers<[1], [0], [0], [1], [0, 0, 1, 1], [], []>} : vector<16x128xbf16>, vector<128x1024xbf16>, vector<16x1024xf32> -> vector<16x1024xf32>
    %270 = arith.truncf %262 : vector<16x256xf32> to vector<16x256xbf16>
    %c0_131 = arith.constant 0 : index
    %c0_132 = arith.constant 0 : index
    %271 = vector.load %arg5[%c0_131, %c0_132] : memref<256x1024xbf16, #tpu.memory_space<vmem>>, vector<256x1024xbf16>
    %cst_133 = arith.constant dense<0.000000e+00> : vector<16x1024xf32>
    %272 = tpu.matmul %270, %271, %cst_133 {dimension_numbers = #tpu.dot_dimension_numbers<[1], [0], [0], [1], [0, 0, 1, 1], [], []>} : vector<16x256xbf16>, vector<256x1024xbf16>, vector<16x1024xf32> -> vector<16x1024xf32>
    %273 = arith.addf %269, %272 : vector<16x1024xf32>
    %274 = arith.addf %273, %5 : vector<16x1024xf32>
    %275 = vector.extract_strided_slice %274 {offsets = [0, 0], sizes = [16, 256], strides = [1, 1]} : vector<16x1024xf32> to vector<16x256xf32>
    %cst_134 = arith.constant 5.000000e-01 : f32
    %276 = vector.broadcast %cst_134 : f32 to vector<16x256xf32>
    %277 = arith.mulf %276, %275 : vector<16x256xf32>
    %278 = math.tanh %277 : vector<16x256xf32>
    %cst_135 = arith.constant 5.000000e-01 : f32
    %279 = vector.broadcast %cst_135 : f32 to vector<16x256xf32>
    %280 = arith.mulf %279, %278 : vector<16x256xf32>
    %cst_136 = arith.constant 5.000000e-01 : f32
    %281 = vector.broadcast %cst_136 : f32 to vector<16x256xf32>
    %282 = arith.addf %280, %281 : vector<16x256xf32>
    %283 = vector.extract_strided_slice %274 {offsets = [0, 256], sizes = [16, 256], strides = [1, 1]} : vector<16x1024xf32> to vector<16x256xf32>
    %cst_137 = arith.constant 5.000000e-01 : f32
    %284 = vector.broadcast %cst_137 : f32 to vector<16x256xf32>
    %285 = arith.mulf %284, %283 : vector<16x256xf32>
    %286 = math.tanh %285 : vector<16x256xf32>
    %cst_138 = arith.constant 5.000000e-01 : f32
    %287 = vector.broadcast %cst_138 : f32 to vector<16x256xf32>
    %288 = arith.mulf %287, %286 : vector<16x256xf32>
    %cst_139 = arith.constant 5.000000e-01 : f32
    %289 = vector.broadcast %cst_139 : f32 to vector<16x256xf32>
    %290 = arith.addf %288, %289 : vector<16x256xf32>
    %291 = vector.extract_strided_slice %274 {offsets = [0, 512], sizes = [16, 256], strides = [1, 1]} : vector<16x1024xf32> to vector<16x256xf32>
    %292 = math.tanh %291 : vector<16x256xf32>
    %293 = vector.extract_strided_slice %274 {offsets = [0, 768], sizes = [16, 256], strides = [1, 1]} : vector<16x1024xf32> to vector<16x256xf32>
    %cst_140 = arith.constant 5.000000e-01 : f32
    %294 = vector.broadcast %cst_140 : f32 to vector<16x256xf32>
    %295 = arith.mulf %294, %293 : vector<16x256xf32>
    %296 = math.tanh %295 : vector<16x256xf32>
    %cst_141 = arith.constant 5.000000e-01 : f32
    %297 = vector.broadcast %cst_141 : f32 to vector<16x256xf32>
    %298 = arith.mulf %297, %296 : vector<16x256xf32>
    %cst_142 = arith.constant 5.000000e-01 : f32
    %299 = vector.broadcast %cst_142 : f32 to vector<16x256xf32>
    %300 = arith.addf %298, %299 : vector<16x256xf32>
    %301 = arith.mulf %290, %260 : vector<16x256xf32>
    %302 = arith.mulf %282, %292 : vector<16x256xf32>
    %303 = arith.addf %301, %302 : vector<16x256xf32>
    %304 = math.tanh %303 : vector<16x256xf32>
    %305 = arith.mulf %300, %304 : vector<16x256xf32>
    %c6_143 = arith.constant 6 : index
    %c0_144 = arith.constant 0 : index
    %c0_145 = arith.constant 0 : index
    %306 = vector.load %arg16[%c6_143, %c0_144, %c0_145] : memref<8x16x256xf32, #tpu.memory_space<vmem>>, vector<1x16x256xf32>
    %307 = vector.shape_cast %306 : vector<1x16x256xf32> to vector<16x256xf32>
    %308 = vector.shape_cast %305 : vector<16x256xf32> to vector<1x16x256xf32>
    tpu.vector_store %arg16[%c6_143, %c0_144, %c0_145], %308 {strides = array<i32>} : memref<8x16x256xf32, #tpu.memory_space<vmem>>, vector<1x16x256xf32>,
    %c7 = arith.constant 7 : index
    %c0_146 = arith.constant 0 : index
    %c0_147 = arith.constant 0 : index
    %309 = vector.load %arg1[%c7, %c0_146, %c0_147] : memref<8x16x128xbf16, #tpu.memory_space<vmem>>, vector<1x16x128xbf16>
    %310 = vector.shape_cast %309 : vector<1x16x128xbf16> to vector<16x128xbf16>
    %c0_148 = arith.constant 0 : index
    %c0_149 = arith.constant 0 : index
    %311 = vector.load %arg4[%c0_148, %c0_149] : memref<128x1024xbf16, #tpu.memory_space<vmem>>, vector<128x1024xbf16>
    %cst_150 = arith.constant dense<0.000000e+00> : vector<16x1024xf32>
    %312 = tpu.matmul %310, %311, %cst_150 {dimension_numbers = #tpu.dot_dimension_numbers<[1], [0], [0], [1], [0, 0, 1, 1], [], []>} : vector<16x128xbf16>, vector<128x1024xbf16>, vector<16x1024xf32> -> vector<16x1024xf32>
    %313 = arith.truncf %305 : vector<16x256xf32> to vector<16x256xbf16>
    %c0_151 = arith.constant 0 : index
    %c0_152 = arith.constant 0 : index
    %314 = vector.load %arg5[%c0_151, %c0_152] : memref<256x1024xbf16, #tpu.memory_space<vmem>>, vector<256x1024xbf16>
    %cst_153 = arith.constant dense<0.000000e+00> : vector<16x1024xf32>
    %315 = tpu.matmul %313, %314, %cst_153 {dimension_numbers = #tpu.dot_dimension_numbers<[1], [0], [0], [1], [0, 0, 1, 1], [], []>} : vector<16x256xbf16>, vector<256x1024xbf16>, vector<16x1024xf32> -> vector<16x1024xf32>
    %316 = arith.addf %312, %315 : vector<16x1024xf32>
    %317 = arith.addf %316, %5 : vector<16x1024xf32>
    %318 = vector.extract_strided_slice %317 {offsets = [0, 0], sizes = [16, 256], strides = [1, 1]} : vector<16x1024xf32> to vector<16x256xf32>
    %cst_154 = arith.constant 5.000000e-01 : f32
    %319 = vector.broadcast %cst_154 : f32 to vector<16x256xf32>
    %320 = arith.mulf %319, %318 : vector<16x256xf32>
    %321 = math.tanh %320 : vector<16x256xf32>
    %cst_155 = arith.constant 5.000000e-01 : f32
    %322 = vector.broadcast %cst_155 : f32 to vector<16x256xf32>
    %323 = arith.mulf %322, %321 : vector<16x256xf32>
    %cst_156 = arith.constant 5.000000e-01 : f32
    %324 = vector.broadcast %cst_156 : f32 to vector<16x256xf32>
    %325 = arith.addf %323, %324 : vector<16x256xf32>
    %326 = vector.extract_strided_slice %317 {offsets = [0, 256], sizes = [16, 256], strides = [1, 1]} : vector<16x1024xf32> to vector<16x256xf32>
    %cst_157 = arith.constant 5.000000e-01 : f32
    %327 = vector.broadcast %cst_157 : f32 to vector<16x256xf32>
    %328 = arith.mulf %327, %326 : vector<16x256xf32>
    %329 = math.tanh %328 : vector<16x256xf32>
    %cst_158 = arith.constant 5.000000e-01 : f32
    %330 = vector.broadcast %cst_158 : f32 to vector<16x256xf32>
    %331 = arith.mulf %330, %329 : vector<16x256xf32>
    %cst_159 = arith.constant 5.000000e-01 : f32
    %332 = vector.broadcast %cst_159 : f32 to vector<16x256xf32>
    %333 = arith.addf %331, %332 : vector<16x256xf32>
    %334 = vector.extract_strided_slice %317 {offsets = [0, 512], sizes = [16, 256], strides = [1, 1]} : vector<16x1024xf32> to vector<16x256xf32>
    %335 = math.tanh %334 : vector<16x256xf32>
    %336 = vector.extract_strided_slice %317 {offsets = [0, 768], sizes = [16, 256], strides = [1, 1]} : vector<16x1024xf32> to vector<16x256xf32>
    %cst_160 = arith.constant 5.000000e-01 : f32
    %337 = vector.broadcast %cst_160 : f32 to vector<16x256xf32>
    %338 = arith.mulf %337, %336 : vector<16x256xf32>
    %339 = math.tanh %338 : vector<16x256xf32>
    %cst_161 = arith.constant 5.000000e-01 : f32
    %340 = vector.broadcast %cst_161 : f32 to vector<16x256xf32>
    %341 = arith.mulf %340, %339 : vector<16x256xf32>
    %cst_162 = arith.constant 5.000000e-01 : f32
    %342 = vector.broadcast %cst_162 : f32 to vector<16x256xf32>
    %343 = arith.addf %341, %342 : vector<16x256xf32>
    %344 = arith.mulf %333, %303 : vector<16x256xf32>
    %345 = arith.mulf %325, %335 : vector<16x256xf32>
    %346 = arith.addf %344, %345 : vector<16x256xf32>
    %347 = math.tanh %346 : vector<16x256xf32>
    %348 = arith.mulf %343, %347 : vector<16x256xf32>
    %c7_163 = arith.constant 7 : index
    %c0_164 = arith.constant 0 : index
    %c0_165 = arith.constant 0 : index
    %349 = vector.load %arg16[%c7_163, %c0_164, %c0_165] : memref<8x16x256xf32, #tpu.memory_space<vmem>>, vector<1x16x256xf32>
    %350 = vector.shape_cast %349 : vector<1x16x256xf32> to vector<16x256xf32>
    %351 = vector.shape_cast %348 : vector<16x256xf32> to vector<1x16x256xf32>
    tpu.vector_store %arg16[%c7_163, %c0_164, %c0_165], %351 {strides = array<i32>} : memref<8x16x256xf32, #tpu.memory_space<vmem>>, vector<1x16x256xf32>,
    %c0_166 = arith.constant 0 : index
    %c0_167 = arith.constant 0 : index
    %352 = vector.load %arg14[%c0_166, %c0_167] : memref<16x256xf32, #tpu.memory_space<vmem>>, vector<16x256xf32>
    tpu.vector_store %arg14[%c0_166, %c0_167], %348 {strides = array<i32>} : memref<16x256xf32, #tpu.memory_space<vmem>>, vector<16x256xf32>,
    %c0_168 = arith.constant 0 : index
    %c0_169 = arith.constant 0 : index
    %353 = vector.load %arg15[%c0_168, %c0_169] : memref<16x256xf32, #tpu.memory_space<vmem>>, vector<16x256xf32>
    tpu.vector_store %arg15[%c0_168, %c0_169], %346 {strides = array<i32>} : memref<16x256xf32, #tpu.memory_space<vmem>>, vector<16x256xf32>,
    %c0_170 = arith.constant 0 : index
    %c0_171 = arith.constant 0 : index
    %c0_172 = arith.constant 0 : index
    %354 = vector.load %arg16[%c0_170, %c0_171, %c0_172] : memref<8x16x256xf32, #tpu.memory_space<vmem>>, vector<8x16x256xf32>
    %355 = arith.truncf %354 : vector<8x16x256xf32> to vector<8x16x256xbf16>
    %356 = vector.shape_cast %355 : vector<8x16x256xbf16> to vector<128x256xbf16>
    %c0_173 = arith.constant 0 : index
    %c0_174 = arith.constant 0 : index
    %357 = vector.load %arg7[%c0_173, %c0_174] : memref<256x256xbf16, #tpu.memory_space<vmem>>, vector<256x256xbf16>
    %cst_175 = arith.constant dense<0.000000e+00> : vector<128x256xf32>
    %358 = tpu.matmul %356, %357, %cst_175 {dimension_numbers = #tpu.dot_dimension_numbers<[1], [0], [0], [1], [0, 0, 1, 1], [], []>} : vector<128x256xbf16>, vector<256x256xbf16>, vector<128x256xf32> -> vector<128x256xf32>
    %c0_176 = arith.constant 0 : index
    %c0_177 = arith.constant 0 : index
    %359 = vector.load %arg8[%c0_176, %c0_177] : memref<1x256xf32, #tpu.memory_space<vmem>>, vector<1x256xf32>
    %360 = vector.broadcast %359 : vector<1x256xf32> to vector<128x256xf32>
    %361 = arith.addf %358, %360 : vector<128x256xf32>
    %cst_178 = arith.constant 0.000000e+00 : f32
    %362 = vector.broadcast %cst_178 : f32 to vector<128x256xf32>
    %363 = arith.maximumf %361, %362 : vector<128x256xf32>
    %364 = arith.truncf %363 : vector<128x256xf32> to vector<128x256xbf16>
    %c0_179 = arith.constant 0 : index
    %c0_180 = arith.constant 0 : index
    %365 = vector.load %arg9[%c0_179, %c0_180] : memref<256x128xbf16, #tpu.memory_space<vmem>>, vector<256x128xbf16>
    %cst_181 = arith.constant dense<0.000000e+00> : vector<128x128xf32>
    %366 = tpu.matmul %364, %365, %cst_181 {dimension_numbers = #tpu.dot_dimension_numbers<[1], [0], [0], [1], [0, 0, 1, 1], [], []>} : vector<128x256xbf16>, vector<256x128xbf16>, vector<128x128xf32> -> vector<128x128xf32>
    %c0_182 = arith.constant 0 : index
    %c0_183 = arith.constant 0 : index
    %367 = vector.load %arg10[%c0_182, %c0_183] : memref<1x128xf32, #tpu.memory_space<vmem>>, vector<1x128xf32>
    %368 = vector.broadcast %367 : vector<1x128xf32> to vector<128x128xf32>
    %369 = arith.addf %366, %368 : vector<128x128xf32>
    %370 = vector.shape_cast %369 : vector<128x128xf32> to vector<8x16x128xf32>
    %c0_184 = arith.constant 0 : index
    %c0_185 = arith.constant 0 : index
    %c0_186 = arith.constant 0 : index
    %371 = vector.load %arg11[%c0_184, %c0_185, %c0_186] : memref<8x16x128xf32, #tpu.memory_space<vmem>>, vector<8x16x128xf32>
    tpu.vector_store %arg11[%c0_184, %c0_185, %c0_186], %370 {strides = array<i32>} : memref<8x16x128xf32, #tpu.memory_space<vmem>>, vector<8x16x128xf32>,
    %c3_i32 = arith.constant 3 : i32
    %372 = arith.cmpi eq, %arg0, %c3_i32 : i32
    %373 = arith.extui %372 : i1 to i32
    %c0_i32_187 = arith.constant 0 : i32
    %374 = arith.cmpi ne, %373, %c0_i32_187 : i32
    scf.if %374 {
      %c0_188 = arith.constant 0 : index
      %c0_189 = arith.constant 0 : index
      %375 = vector.load %arg12[%c0_188, %c0_189] : memref<16x256xf32, #tpu.memory_space<vmem>>, vector<16x256xf32>
      tpu.vector_store %arg12[%c0_188, %c0_189], %348 {strides = array<i32>} : memref<16x256xf32, #tpu.memory_space<vmem>>, vector<16x256xf32>,
      %c0_190 = arith.constant 0 : index
      %c0_191 = arith.constant 0 : index
      %376 = vector.load %arg13[%c0_190, %c0_191] : memref<16x256xf32, #tpu.memory_space<vmem>>, vector<16x256xf32>
      tpu.vector_store %arg13[%c0_190, %c0_191], %346 {strides = array<i32>} : memref<16x256xf32, #tpu.memory_space<vmem>>, vector<16x256xf32>,
    } else {
    }
    return
  }
  func.func @transform_0(%arg0: i32) -> (i32, i32, i32) {
    %c0_i32 = arith.constant 0 : i32
    %c0_i32_0 = arith.constant 0 : i32
    %c0_i32_1 = arith.constant 0 : i32
    return %arg0, %c0_i32, %c0_i32_0 : i32, i32, i32
  }
  func.func @transform_1(%arg0: i32) -> (i32, i32) {
    %c0_i32 = arith.constant 0 : i32
    %c0_i32_0 = arith.constant 0 : i32
    %c0_i32_1 = arith.constant 0 : i32
    return %c0_i32, %c0_i32_0 : i32, i32
  }
  func.func @transform_2(%arg0: i32) -> (i32, i32) {
    %c0_i32 = arith.constant 0 : i32
    %c0_i32_0 = arith.constant 0 : i32
    %c0_i32_1 = arith.constant 0 : i32
    return %c0_i32, %c0_i32_0 : i32, i32
  }
  func.func @transform_3(%arg0: i32) -> (i32, i32) {
    %c0_i32 = arith.constant 0 : i32
    %c0_i32_0 = arith.constant 0 : i32
    %c0_i32_1 = arith.constant 0 : i32
    return %c0_i32, %c0_i32_0 : i32, i32
  }
  func.func @transform_4(%arg0: i32) -> (i32, i32) {
    %c0_i32 = arith.constant 0 : i32
    %c0_i32_0 = arith.constant 0 : i32
    %c0_i32_1 = arith.constant 0 : i32
    return %c0_i32, %c0_i32_0 : i32, i32
  }
  func.func @transform_5(%arg0: i32) -> (i32, i32) {
    %c0_i32 = arith.constant 0 : i32
    %c0_i32_0 = arith.constant 0 : i32
    %c0_i32_1 = arith.constant 0 : i32
    return %c0_i32, %c0_i32_0 : i32, i32
  }
  func.func @transform_6(%arg0: i32) -> (i32, i32) {
    %c0_i32 = arith.constant 0 : i32
    %c0_i32_0 = arith.constant 0 : i32
    %c0_i32_1 = arith.constant 0 : i32
    return %c0_i32, %c0_i32_0 : i32, i32
  }
  func.func @transform_7(%arg0: i32) -> (i32, i32) {
    %c0_i32 = arith.constant 0 : i32
    %c0_i32_0 = arith.constant 0 : i32
    %c0_i32_1 = arith.constant 0 : i32
    return %c0_i32, %c0_i32_0 : i32, i32
  }
  func.func @transform_8(%arg0: i32) -> (i32, i32) {
    %c0_i32 = arith.constant 0 : i32
    %c0_i32_0 = arith.constant 0 : i32
    %c0_i32_1 = arith.constant 0 : i32
    return %c0_i32, %c0_i32_0 : i32, i32
  }
  func.func @transform_9(%arg0: i32) -> (i32, i32) {
    %c0_i32 = arith.constant 0 : i32
    %c0_i32_0 = arith.constant 0 : i32
    %c0_i32_1 = arith.constant 0 : i32
    return %c0_i32, %c0_i32_0 : i32, i32
  }
  func.func @transform_10(%arg0: i32) -> (i32, i32, i32) {
    %c0_i32 = arith.constant 0 : i32
    %c0_i32_0 = arith.constant 0 : i32
    %c0_i32_1 = arith.constant 0 : i32
    return %arg0, %c0_i32, %c0_i32_0 : i32, i32, i32
  }
  func.func @transform_11(%arg0: i32) -> (i32, i32) {
    %c0_i32 = arith.constant 0 : i32
    %c0_i32_0 = arith.constant 0 : i32
    %c0_i32_1 = arith.constant 0 : i32
    return %c0_i32, %c0_i32_0 : i32, i32
  }
  func.func @transform_12(%arg0: i32) -> (i32, i32) {
    %c0_i32 = arith.constant 0 : i32
    %c0_i32_0 = arith.constant 0 : i32
    %c0_i32_1 = arith.constant 0 : i32
    return %c0_i32, %c0_i32_0 : i32, i32
  }
}

</mosaic_0001>

<bundles_post_ra>
// kernel: tpu_custom_call.1
= control target key start
LH: loop header
LB: loop body
LE: loop exit
PB: predicated region body
PF: predicated region fallthrough
CT: control target
= control target key end

     0   :  { %s18185_s0 = inlined_call_operand.hbm [shape: bf16[32,16,128], index: 0, kind: input, shape index: {}]   ;;  %s18186_s1 = inlined_call_operand.hbm [shape: f32[16,256], index: 1, kind: input, shape index: {}]   ;;  %s18187_s2 = inlined_call_operand.hbm [shape: f32[16,256], index: 2, kind: input, shape index: {}]   ;;  %s18188_s3 = inlined_call_operand.hbm [shape: bf16[128,1024], index: 3, kind: input, shape index: {}]   ;;  %s18189_s4 = inlined_call_operand.hbm [shape: bf16[256,1024], index: 4, kind: input, shape index: {}]   ;;  %s18190_s5 = inlined_call_operand.vmem [shape: f32[1,1024], index: 5, kind: input, shape index: {}]   ;;  %s18191_s6 = inlined_call_operand.hbm [shape: bf16[256,256], index: 6, kind: input, shape index: {}]   ;;  %s18192_s7 = inlined_call_operand.vmem [shape: f32[1,256], index: 7, kind: input, shape index: {}]   ;;  %s18193_s8 = inlined_call_operand.hbm [shape: bf16[256,128], index: 8, kind: input, shape index: {}]   ;;  %s18194_s9 = inlined_call_operand.vmem [shape: f32[1,128], index: 9, kind: input, shape index: {}]   ;;  %s18195_s10 = inlined_call_operand.hbm [shape: f32[32,16,128], index: 10, kind: output, shape index: {0}]   ;;  %s18196_s11 = inlined_call_operand.hbm [shape: f32[16,256], index: 11, kind: output, shape index: {1}]   ;;  %s18197_s12 = inlined_call_operand.hbm [shape: f32[16,256], index: 12, kind: output, shape index: {2}]  }
   0x1   :  { %18209 = sst [smem:[#allocation27_spill]] %s18185_s0 }
   0x2   :  { %18210 = sst [smem:[#allocation28_spill]] %s18186_s1 }
   0x3   :  { %18211 = sst [smem:[#allocation29_spill]] %s18188_s3 }
   0x4   :  { %18212 = sst [smem:[#allocation30_spill]] %s18194_s9 }
   0x5   :  { %18213 = sst [smem:[#allocation31_spill]] %s18195_s10 }
   0x6   :  { %18214 = sst [smem:[#allocation32_spill]] %s18196_s11 }
   0x7   :  { %18215 = sst [smem:[#allocation33_spill]] %s18197_s12 }
   0x8   :  { %18 = vsyncpa [#allocation6], 0 }
   0x9   :  { %20 = vsyncpa [#allocation6 + $0x1], 0 }
   0xa   :  { %21 = vsyncpa [#allocation9], 0 }
   0xb   :  { %22 = vsyncpa [#allocation12], 0 }
   0xc   :  { %23 = vsyncpa [#allocation15], 0 }
   0xd   :  { %24 = vsyncpa [#allocation7], 0 }
   0xe   :  { %26 = vsyncpa [#allocation7 + $0x1], 0 }
   0xf   :  { %27 = vsyncpa [#allocation19], 0  ;;  %s17045_s21 = smov 0   ;;  %s17047_s22 = smov 0  }
  0x10   :  { %s17049_s23 = smov 0   ;;  %s17051_s24 = smov 0  }
  0x11 LB: > { %s16957_s25 = smov [#allocation8]   ;;  %s17066_s27 = sadd.s32 4294967295, %s16955_s24   ;;  %s16955_s24 = sphi %s17051_s24, %s18257_s24   ;;  %s16951_s23 = sphi %s17049_s23, %s18256_s23   ;;  %s16947_s22 = sphi %s17047_s22, %s18255_s22   ;;  %s16943_s21 = sphi %s17045_s21, %s18254_s21  }
  0x12   : > { %s333_s26 = sshll.u32 %s16957_s25, 4  ;;  %p14261_p0 = scmp.ge.s32.totalorder %s16955_s24, 1  ;;  %s17072_s26 = int_to_ptr.vmem [resolvable:$true] %s333_s26 }
  0x13   : > { %p18202_p1 = scmp.eq.s32.totalorder %s17066_s27, 0  ;;  %p321_p2 = scmp.lt.s32.totalorder %s16955_s24, 5 }
  0x14   : > { %s16958_s29 = smov [#allocation11]   ;;  %s16959_s14 = smov [#allocation14]  }
  0x15   : > { %p17074_p4 = pnand %p14261_p0, %p321_p2  ;;  %s359_s30 = sshll.u32 %s16958_s29, 4  ;;  %s17086_s30 = int_to_ptr.vmem [resolvable:$true] %s359_s30 }
  0x16   : > { %s17088_s15 = sshll.u32 %s16959_s14, 4  ;;  %s18218_s1 = sld [smem:[#allocation28_spill]]  ;;  %s389_s15 = int_to_ptr.vmem [resolvable:$true] %s17088_s15 }
  0x17   : > { %s18216_s28 = scalar_select %p17074_p4, 1, 0 }
  0x18   : > { %p16133_p5 = pneg %p17074_p4 }
  0x1a   : > { %p17082_p6 = pnand %p16133_p5, %p18202_p1 }
  0x1c   : > { %s16623_s18 = scalar_lea.hbm %s18218_s1, 512  ;;  %p17098_p8 = pneg %p17082_p6 }
  0x1d   : > { %p16624_p7 = scmp.ne.s32.totalorder %s18218_s1, %s16623_s18  ;;  %p16630_p11 = scmp.lt.u32.totalorder %s16623_s18, %s18218_s1 }
  0x1f   : > { %p16626_p9 = pnand %p17098_p8, %p16624_p7 }
  0x21   : > { %p16627_p10 = pneg %p16626_p9 }
  0x23   : > { %p16632_p12 = pnand %p16630_p11, %p16627_p10 }
  0x25   : > { %16635 = shalt.err (!%p16632_p12)
}
  0x26   : > { %s16636_s16 = scalar_lea.vmem %s17072_s26, 512  ;;  %p16644_p5 = scmp.lt.s32.totalorder %s17072_s26, %s17072_s26 }
  0x27   : > { %p16637_p13 = scmp.ne.s32.totalorder %s17072_s26, %s16636_s16  ;;  %p16645_p3 = scmp.lt.s32.totalorder %s16636_s16, %s16636_s16 }
  0x29   : > { %p16639_p0 = pnand %p16637_p13, %p17098_p8  ;;  %p16646_p7 = por %p16645_p3, %p16644_p5 }
  0x2b   : > { %p16640_p2 = pneg %p16639_p0 }
  0x2d   : > { %p16647_p9 = pnand %p16646_p7, %p16640_p2 }
  0x2f   : > { %16650 = shalt.err (!%p16647_p9)
}
  0x30   : > { %s18201_s17 = smov 256   ;;  %s18206_s18 = smov 16  }
  0x31   : > { %16136 = dma.hbm_to_vmem [thread:$0]  (!%p17082_p6), %s18218_s1, 512, %s17072_s26, [#allocation9], %s18201_s17, %s18201_s17, %s18206_s18  }
  0x32   : > { %s18220_s3 = sld [smem:[#allocation29_spill]] }
  0x38   : > { %s16651_s16 = scalar_lea.hbm %s18220_s3, 8192 }
  0x39   : > { %p16652_p3 = scmp.ne.s32.totalorder %s18220_s3, %s16651_s16  ;;  %p16658_p12 = scmp.lt.u32.totalorder %s16651_s16, %s18220_s3 }
  0x3b   : > { %p16654_p10 = pnand %p16652_p3, %p17098_p8 }
  0x3d   : > { %p16655_p11 = pneg %p16654_p10 }
  0x3f   : > { %p16660_p13 = pnand %p16658_p12, %p16655_p11 }
  0x41   : > { %16663 = shalt.err (!%p16660_p13)
}
  0x42   : > { %s16664_s26 = scalar_lea.vmem %s17086_s30, 8192  ;;  %p16672_p7 = scmp.lt.s32.totalorder %s17086_s30, %s17086_s30 }
  0x43   : > { %p16665_p0 = scmp.ne.s32.totalorder %s17086_s30, %s16664_s26  ;;  %p16673_p9 = scmp.lt.s32.totalorder %s16664_s26, %s16664_s26 }
  0x45   : > { %p16667_p2 = pnand %p16665_p0, %p17098_p8  ;;  %p16674_p3 = por %p16673_p9, %p16672_p7 }
  0x47   : > { %p16668_p5 = pneg %p16667_p2 }
  0x49   : > { %p16675_p10 = pnand %p16674_p3, %p16668_p5 }
  0x4b   : > { %16678 = shalt.err (!%p16675_p10)
}
  0x4c   : > { %s18204_s10 = smov 512   ;;  %s18205_s9 = smov 32  }
  0x4d   : > { %16142 = dma.hbm_to_vmem [thread:$0]  (!%p17082_p6), %s18220_s3, 8192, %s17086_s30, [#allocation12], %s18204_s10, %s18204_s10, %s18205_s9  }
  0x4e   : > { %s16679_s29 = scalar_lea.hbm %s18191_s6, 4096 }
  0x4f   : > { %p16680_p11 = scmp.ne.s32.totalorder %s18191_s6, %s16679_s29  ;;  %p16686_p0 = scmp.lt.u32.totalorder %s16679_s29, %s18191_s6 }
  0x51   : > { %p16682_p12 = pnand %p16680_p11, %p17098_p8 }
  0x53   : > { %p16683_p13 = pneg %p16682_p12 }
  0x55   : > { %p16688_p2 = pnand %p16686_p0, %p16683_p13 }
  0x57   : > { %16691 = shalt.err (!%p16688_p2)
}
  0x58   : > { %s16692_s11 = scalar_lea.vmem %s389_s15, 4096  ;;  %p16700_p3 = scmp.lt.s32.totalorder %s389_s15, %s389_s15 }
  0x59   : > { %p16693_p5 = scmp.ne.s32.totalorder %s389_s15, %s16692_s11  ;;  %p16701_p10 = scmp.lt.s32.totalorder %s16692_s11, %s16692_s11 }
  0x5b   : > { %p16695_p7 = pnand %p16693_p5, %p17098_p8  ;;  %p16702_p1 = por %p16701_p10, %p16700_p3 }
  0x5d   : > { %p16696_p9 = pneg %p16695_p7 }
  0x5f   : > { %p16703_p4 = pnand %p16702_p1, %p16696_p9 }
  0x61   : > { %16706 = shalt.err (!%p16703_p4)
}
  0x62   : > { %s16964_s30 = smov 128   ;;  %s16965_s12 = smov 8  }
  0x63   : > { %16148 = dma.hbm_to_vmem [thread:$0]  (!%p17082_p6), %s18191_s6, 4096, %s389_s15, [#allocation15], %s16964_s30, %s16964_s30, %s16965_s12  }
  0x64   : > { %s16966_s20 = smov [#allocation10]   ;;  %s16967_s14 = smov [#allocation13]  }
  0x65   : > { %s346_s29 = sshll.u32 %s16966_s20, 4  ;;  %s372_s16 = sshll.u32 %s16967_s14, 4  ;;  %s347_s29 = int_to_ptr.vmem [resolvable:$true] %s346_s29  ;;  %s373_s16 = int_to_ptr.vmem [resolvable:$true] %s372_s16 }
  0x66   : > { %s16707_s11 = scalar_lea.hbm %s18187_s2, 512 }
  0x67   : > { %p16708_p1 = scmp.ne.s32.totalorder %s18187_s2, %s16707_s11  ;;  %p16714_p12 = scmp.lt.u32.totalorder %s16707_s11, %s18187_s2 }
  0x69   : > { %p16710_p4 = pnand %p16708_p1, %p17098_p8 }
  0x6b   : > { %p16711_p11 = pneg %p16710_p4 }
  0x6d   : > { %p16716_p13 = pnand %p16714_p12, %p16711_p11 }
  0x6f   : > { %16719 = shalt.err (!%p16716_p13)
}
  0x70   : > { %s16720_s15 = scalar_lea.vmem %s347_s29, 512  ;;  %p16728_p7 = scmp.lt.s32.totalorder %s347_s29, %s347_s29 }
  0x71   : > { %p16721_p0 = scmp.ne.s32.totalorder %s347_s29, %s16720_s15  ;;  %p16729_p9 = scmp.lt.s32.totalorder %s16720_s15, %s16720_s15 }
  0x73   : > { %p16723_p2 = pnand %p16721_p0, %p17098_p8  ;;  %p16730_p3 = por %p16729_p9, %p16728_p7 }
  0x75   : > { %p16724_p5 = pneg %p16723_p2 }
  0x77   : > { %p16731_p10 = pnand %p16730_p3, %p16724_p5 }
  0x79   : > { %16734 = shalt.err (!%p16731_p10)
}
  0x7a   : > { %s18221_s18 = smov 16   ;;  %s18222_s10 = smov 256  }
  0x7b   : > { %16139 = dma.hbm_to_vmem [thread:$0]  (!%p17082_p6), %s18187_s2, 512, %s347_s29, [#allocation9], %s18222_s10, %s18222_s10, %s18221_s18  }
  0x7c   : > { %s16735_s12 = scalar_lea.hbm %s18189_s4, 16384 }
  0x7d   : > { %p16736_p1 = scmp.ne.s32.totalorder %s18189_s4, %s16735_s12  ;;  %p16742_p12 = scmp.lt.u32.totalorder %s16735_s12, %s18189_s4 }
  0x7f   : > { %p16738_p4 = pnand %p16736_p1, %p17098_p8 }
  0x81   : > { %p16739_p11 = pneg %p16738_p4 }
  0x83   : > { %p16744_p13 = pnand %p16742_p12, %p16739_p11 }
  0x85   : > { %16747 = shalt.err (!%p16744_p13)
}
  0x86   : > { %s16748_s26 = scalar_lea.vmem %s373_s16, 16384  ;;  %p16756_p7 = scmp.lt.s32.totalorder %s373_s16, %s373_s16 }
  0x87   : > { %p16749_p0 = scmp.ne.s32.totalorder %s373_s16, %s16748_s26  ;;  %p16757_p9 = scmp.lt.s32.totalorder %s16748_s26, %s16748_s26 }
  0x89   : > { %p16751_p2 = pnand %p16749_p0, %p17098_p8  ;;  %p16758_p3 = por %p16757_p9, %p16756_p7 }
  0x8b   : > { %p16752_p5 = pneg %p16751_p2 }
  0x8d   : > { %p16759_p10 = pnand %p16758_p3, %p16752_p5 }
  0x8f   : > { %16762 = shalt.err (!%p16759_p10)
}
  0x90   : > { %s18223_s29 = smov 32   ;;  %s18224_s11 = smov 512  }
  0x91   : > { %16145 = dma.hbm_to_vmem [thread:$0]  (!%p17082_p6), %s18189_s4, 16384, %s373_s16, [#allocation12], %s18224_s11, %s18224_s11, %s18223_s29  }
  0x92   : > { %s16968_s10 = smov [#allocation16]   ;;  %s16763_s30 = scalar_lea.hbm %s18193_s8, 2048 }
  0x93   : > { %s404_s1 = sshll.u32 %s16968_s10, 4  ;;  %p16764_p1 = scmp.ne.s32.totalorder %s18193_s8, %s16763_s30  ;;  %s405_s1 = int_to_ptr.vmem [resolvable:$true] %s404_s1 }
  0x94   : > { %p16770_p12 = scmp.lt.u32.totalorder %s16763_s30, %s18193_s8 }
  0x95   : > { %p16766_p4 = pnand %p16764_p1, %p17098_p8 }
  0x97   : > { %p16767_p11 = pneg %p16766_p4 }
  0x99   : > { %p16772_p13 = pnand %p16770_p12, %p16767_p11 }
  0x9b   : > { %16775 = shalt.err (!%p16772_p13)
}
  0x9c   : > { %s16776_s16 = scalar_lea.vmem %s405_s1, 2048  ;;  %p16784_p7 = scmp.lt.s32.totalorder %s405_s1, %s405_s1 }
  0x9d   : > { %p16777_p0 = scmp.ne.s32.totalorder %s405_s1, %s16776_s16  ;;  %p16785_p9 = scmp.lt.s32.totalorder %s16776_s16, %s16776_s16 }
  0x9f   : > { %p16779_p2 = pnand %p16777_p0, %p17098_p8  ;;  %p16786_p3 = por %p16785_p9, %p16784_p7 }
  0xa1   : > { %p16780_p5 = pneg %p16779_p2 }
  0xa3   : > { %p16787_p10 = pnand %p16786_p3, %p16780_p5 }
  0xa5   : > { %16790 = shalt.err (!%p16787_p10)
}
  0xa6   : > { %s16969_s14 = smov 64   ;;  %s16970_s25 = smov 4  }
  0xa7   : > { %16151 = dma.hbm_to_vmem [thread:$0]  (!%p17082_p6), %s18193_s8, 2048, %s405_s1, [#allocation15], %s16969_s14, %s16969_s14, %s16970_s25  }
  0xa8   : > { %s14260_s11 = sadd.s32 4294967294, %s16955_s24   ;;  %s17232_s15 = sadd.s32 1, %s16955_s24  }
  0xa9   : > { %s37_s18 = ssub.s32 %s16955_s24, %s17232_s15  ;;  %s40_s10 = sadd.s32 1, %s16951_s23 }
  0xaa   : > { %p38_p8 = scmp.eq.s32.totalorder %s37_s18, 0  ;;  %p47_p1 = scmp.ne.s32.totalorder %s16951_s23, %s16947_s22 }
  0xab   : > { %p48_p4 = scmp.eq.s32.totalorder %s16955_s24, 0  ;;  %p53_p11 = scmp.ne.s32.totalorder %s16947_s22, %s16943_s21 }
  0xac   : > { %s17243_s13 = scalar_select %p38_p8, %s16951_s23, %s40_s10  }
  0xad   : > { %p17245_p12 = por %p48_p4, %p47_p1  ;;  %p18226_p13 = scmp.eq.s32.totalorder %s17066_s27, 0 }
  0xae   : > { %p18207_p0 = scmp.eq.s32.totalorder %s17066_s27, 3  ;;  %p272_p2 = scmp.eq.s32.totalorder %s14260_s11, 3 }
  0xaf   : > { %p17251_p6 = por %p18226_p13, %p53_p11  ;;  %p16166_p5 = scmp.lt.s32.totalorder %s16955_s24, 4 }
  0xb0   : > { %s421_s9 = sand.u32 1, %s16951_s23   ;;  %p17260_p7 = por %p18207_p0, %p47_p1 }
  0xb1   : > { %p17264_p9 = por %p272_p2, %p53_p11  ;;  %s14269_s17 = sshll.u32 %s421_s9, 6 }
  0xb2   : > { %s18228_s30 = scalar_select %p17260_p7, 1, 0 }
  0xb3   : > { %s18229_s12 = scalar_select %p17264_p9, 1, 0 }
  0xb4   : > { %s15902_s19 = sshll.u32 %s16955_s24, 10  ;;  %s18230_s0 = sld [smem:[#allocation27_spill]] }
  0xb5   : > { %s425_s29 = scalar_lea.vmem [#allocation5], %s14269_s17  ;;  %p17278_p3 = pnand %p16166_p5, %p17245_p12 }
  0xb6   : > { %s433_s11 = sshll.u32 %s425_s29, 4  ;;  %s17282_s10 = scalar_lea.sflag [#allocation6], %s421_s9  ;;  %s17274_s11 = int_to_ptr.vmem [resolvable:$true] %s433_s11 }
  0xb7   : > { %p16793_p8 = pneg %p17278_p3 }
  0xba   : > { %s17272_s26 = scalar_lea.hbm %s18230_s0, %s15902_s19  ;;  %s16796_s3 = scalar_lea.hbm %s18230_s0, 4096 }
  0xbb   : > { %s16791_s20 = scalar_lea.hbm %s17272_s26, 1024  ;;  %p16797_p11 = scmp.lt.u32.totalorder %s17272_s26, %s18230_s0 }
  0xbc   : > { %p16792_p10 = scmp.ne.s32.totalorder %s17272_s26, %s16791_s20  ;;  %p16798_p12 = scmp.lt.u32.totalorder %s16796_s3, %s16791_s20 }
  0xbd   : > { %p16800_p2 = scmp.lt.u32.totalorder %s16791_s20, %s17272_s26 }
  0xbe   : > { %p16794_p1 = pnand %p16793_p8, %p16792_p10  ;;  %p16799_p13 = por %p16798_p12, %p16797_p11 }
  0xc0   : > { %p16795_p4 = pneg %p16794_p1  ;;  %p16801_p5 = por %p16800_p2, %p16799_p13 }
  0xc2   : > { %p16802_p0 = pnand %p16801_p5, %p16795_p4 }
  0xc4   : > { %16805 = shalt.err (!%p16802_p0)
}
  0xc5   : > { %s16806_s9 = scalar_lea.vmem %s17274_s11, 1024  ;;  %s16971_s17 = smov [#allocation5]  }
  0xc6   : > { %p16807_p10 = scmp.ne.s32.totalorder %s17274_s11, %s16806_s9  ;;  %s16811_s19 = sshll.u32 %s16971_s17, 4  ;;  %s16812_s19 = int_to_ptr.vmem [resolvable:$false] %s16811_s19 }
  0xc7   : > { %s16813_s16 = scalar_lea.vmem %s16812_s19, 2048  ;;  %p16814_p7 = scmp.lt.s32.totalorder %s17274_s11, %s16812_s19 }
  0xc8   : > { %p16809_p1 = pnand %p16807_p10, %p16793_p8  ;;  %p16815_p11 = scmp.lt.s32.totalorder %s16813_s16, %s16806_s9 }
  0xca   : > { %p16810_p9 = pneg %p16809_p1  ;;  %p16816_p12 = por %p16815_p11, %p16814_p7 }
  0xcc   : > { %p16817_p13 = pnand %p16816_p12, %p16810_p9 }
  0xce   : > { %16820 = shalt.err (!%p16817_p13)
}
  0xcf   : > { %16155 = dma.hbm_to_vmem [thread:$0]  (!%p17278_p3), %s17272_s26, 1024, %s17274_s11, %s17282_s10, %s16969_s14, %s16969_s14, %s16970_s25  }
  0xd0   : > { %p18232_p0 = scmp.ne.s32.totalorder %s18216_s28, 0 }
  0xd1   : > { %s17316_s20 = sand.u32 (!%p18232_p0), 1, %s16947_s22  }
  0xd2   : > { %445 = sbr.rel (%p18232_p0) target bundleno = 3848 (0xf08), region = 60  ;;  %s14274_s3 = sshll.u32 (!%p18232_p0), %s17316_s20, 6 }
  0xd3   : > { %s448_s29 = scalar_lea.sflag (!%p18232_p0), [#allocation6], %s17316_s20  ;;  %s17320_s9 = scalar_lea.vmem (!%p18232_p0), [#allocation5], %s14274_s3 }
  0xd9   : > { %16918 = dma.done.wait (%p17251_p6), %s448_s29, 1024  }
  0xda   : > { %16920 = vsyncadd (%p17251_p6), %s448_s29, 4294966272  ;;  %p18233_p7 = scmp.eq.s32.totalorder %s17066_s27, 0 }
  0xdc   : > { %16922 = dma.done.wait (%p18233_p7), [#allocation9], 1024   ;;  %p18234_p9 = pmov %p18233_p7 }
  0xdd   : > { %p18235_p3 = pmov %p18233_p7 }
  0xde   : > { %16924 = vsyncadd (%p18234_p9), [#allocation9], 4294966272 }
  0xdf   : > { %16926 = dma.done.wait (%p18235_p3), [#allocation12], 24576   ;;  %p18236_p8 = pmov %p18235_p3 }
  0xe0   : > { %p18237_p4 = pmov %p18235_p3 }
  0xe1   : > { %16928 = vsyncadd (%p18236_p8), [#allocation12], 4294942720 }
  0xe2   : > { %16930 = dma.done.wait (%p18237_p4), [#allocation15], 6144   ;;  %p18238_p2 = pmov %p18235_p3 }
  0xe3   : > { %s14281_s28 = sshll.u32 %s17316_s20, 7  ;;  %p18239_p6 = scmp.ne.s32.totalorder %s17066_s27, 0 }
  0xe4   : > { %16932 = vsyncadd (%p18238_p2), [#allocation15], 4294961152  ;;  %s17339_s14 = scalar_lea.vmem [#allocation17], %s14281_s28  ;;  %v523_v0 = vld [vmem:[#allocation8] sm:$0xff] (!%p18239_p6)  ;;  %v524_v1 = vld [vmem:[#allocation8 + $0x8] sm:$0xff] (!%p18239_p6) }
  0xe5   : > { %522 = sbr.rel (%p18239_p6) target bundleno = 236 (0xec), region = 92  ;;  %v525_v2 = vld [vmem:[#allocation8 + $0x10] sm:$0xff] (!%p18239_p6)  ;;  %527 = vst [vmem:[#allocation2] sm:$0xff] (!%p18239_p6), %v523_v0  ;;  %528 = vst [vmem:[#allocation2 + $0x8] sm:$0xff] (!%p18239_p6), %v524_v1  ;;  %v526_v3 = vld [vmem:[#allocation8 + $0x18] sm:$0xff] (!%p18239_p6) }
  0xe6   : > { %529 = vst [vmem:[#allocation2 + $0x10] sm:$0xff] (!%p18239_p6), %v525_v2  ;;  %v531_v4 = vld [vmem:[#allocation10] sm:$0xff] (!%p18239_p6)  ;;  %v532_v5 = vld [vmem:[#allocation10 + $0x8] sm:$0xff] (!%p18239_p6)  ;;  %530 = vst [vmem:[#allocation2 + $0x18] sm:$0xff] (!%p18239_p6), %v526_v3 }
  0xe7   : > { %535 = vst [vmem:[#allocation3] sm:$0xff] (!%p18239_p6), %v531_v4  ;;  %536 = vst [vmem:[#allocation3 + $0x8] sm:$0xff] (!%p18239_p6), %v532_v5  ;;  %v533_v6 = vld [vmem:[#allocation10 + $0x10] sm:$0xff] (!%p18239_p6)  ;;  %v534_v7 = vld [vmem:[#allocation10 + $0x18] sm:$0xff] (!%p18239_p6) }
  0xe8   : > { %537 = vst [vmem:[#allocation3 + $0x10] sm:$0xff] (!%p18239_p6), %v533_v6  ;;  %538 = vst [vmem:[#allocation3 + $0x18] sm:$0xff] (!%p18239_p6), %v534_v7 }
  0xec PF: > { %v657_v8 = vld [vmem:[#allocation13] sm:$0xff]  ;;  %v658_v10 = vld [vmem:[#allocation13 + $0x8] sm:$0xff]  ;;  %s18240_s17 = sld [smem:[#allocation30_spill]]  ;;  %p15890_p5 = scmp.ne.s32.totalorder %s17066_s27, 3 }
  0xed   : > { %v661_v9 = vld [vmem:[#allocation13 + $0x20] sm:$0xff]  ;;  %v662_v12 = vld [vmem:[#allocation13 + $0x28] sm:$0xff]  ;;  %v584_v62 = vld [vmem:[#allocation2 + $0x18] sm:$0xff] }
  0xee   : > { %v14284_v11 = vcombine.high %v657_v8, %v661_v9  ;;  %v14283_v13 = vcombine.low %v657_v8, %v661_v9  ;;  %v665_v14 = vld [vmem:[#allocation13 + $0x40] sm:$0xff]  ;;  %v14286_v16 = vcombine.high %v658_v10, %v662_v12  ;;  %v14285_v17 = vcombine.low %v658_v10, %v662_v12  ;;  %v666_v19 = vld [vmem:[#allocation13 + $0x48] sm:$0xff] }
  0xef   : > { %v669_v15 = vld [vmem:[#allocation13 + $0x60] sm:$0xff]  ;;  %v670_v20 = vld [vmem:[#allocation13 + $0x68] sm:$0xff] }
  0xf0   : > { %v14292_v18 = vcombine.high %v665_v14, %v669_v15  ;;  %v673_v21 = vld [vmem:[#allocation13 + $0x80] sm:$0xff]  ;;  %1425 = vmatprep.subr.bf16.mxu0 %v14284_v11  ;;  %v14294_v22 = vcombine.high %v666_v19, %v670_v20  ;;  %v674_v24 = vld [vmem:[#allocation13 + $0x88] sm:$0xff]  ;;  %1468 = vmatprep.subr.bf16.mxu1 %v14286_v16  ;;  %v14291_v26 = vcombine.low %v665_v14, %v669_v15 }
  0xf1   : > { %v677_v23 = vld [vmem:[#allocation13 + $0xa0] sm:$0xff]  ;;  %v678_v25 = vld [vmem:[#allocation13 + $0xa8] sm:$0xff]  ;;  %1426 = vmatpush1.bf16.msra.mxu0 %v14283_v13  ;;  %1469 = vmatpush1.bf16.msra.mxu1 %v14285_v17  ;;  %v14293_v27 = vcombine.low %v666_v19, %v670_v20 }
  0xf2   : > { %1427 = vmatprep.subr.bf16.mxu0 %v14292_v18  ;;  %v14300_v28 = vcombine.high %v673_v21, %v677_v23  ;;  %1470 = vmatprep.subr.bf16.mxu1 %v14294_v22  ;;  %v14302_v29 = vcombine.high %v674_v24, %v678_v25  ;;  %v681_v30 = vld [vmem:[#allocation13 + $0xc0] sm:$0xff]  ;;  %v682_v32 = vld [vmem:[#allocation13 + $0xc8] sm:$0xff]  ;;  %v14299_v34 = vcombine.low %v673_v21, %v677_v23 }
  0xf3   : > { %v685_v31 = vld [vmem:[#allocation13 + $0xe0] sm:$0xff]  ;;  %v686_v33 = vld [vmem:[#allocation13 + $0xe8] sm:$0xff]  ;;  %v14301_v35 = vcombine.low %v674_v24, %v678_v25 }
  0xf4   : > { %v14308_v36 = vcombine.high %v681_v30, %v685_v31  ;;  %v14310_v37 = vcombine.high %v682_v32, %v686_v33  ;;  %v689_v38 = vld [vmem:[#allocation13 + $0x100] sm:$0xff]  ;;  %v690_v40 = vld [vmem:[#allocation13 + $0x108] sm:$0xff]  ;;  %v14307_v42 = vcombine.low %v681_v30, %v685_v31  ;;  %v14309_v43 = vcombine.low %v682_v32, %v686_v33 }
  0xf5   : > { %1428 = vmatpush1.bf16.msra.mxu0 %v14291_v26  ;;  %1471 = vmatpush1.bf16.msra.mxu1 %v14293_v27  ;;  %v693_v39 = vld [vmem:[#allocation13 + $0x120] sm:$0xff]  ;;  %v694_v41 = vld [vmem:[#allocation13 + $0x128] sm:$0xff] }
  0xf6   : > { %1429 = vmatprep.subr.bf16.mxu0 %v14300_v28  ;;  %1472 = vmatprep.subr.bf16.mxu1 %v14302_v29  ;;  %v14316_v44 = vcombine.high %v689_v38, %v693_v39  ;;  %v14318_v45 = vcombine.high %v690_v40, %v694_v41  ;;  %v697_v46 = vld [vmem:[#allocation13 + $0x140] sm:$0xff]  ;;  %v698_v48 = vld [vmem:[#allocation13 + $0x148] sm:$0xff]  ;;  %v14315_v50 = vcombine.low %v689_v38, %v693_v39 }
  0xf7   : > { %v701_v47 = vld [vmem:[#allocation13 + $0x160] sm:$0xff]  ;;  %v702_v49 = vld [vmem:[#allocation13 + $0x168] sm:$0xff]  ;;  %v14317_v51 = vcombine.low %v690_v40, %v694_v41 }
  0xf8   : > { %v14324_v52 = vcombine.high %v697_v46, %v701_v47  ;;  %v14326_v53 = vcombine.high %v698_v48, %v702_v49  ;;  %v705_v54 = vld [vmem:[#allocation13 + $0x180] sm:$0xff]  ;;  %v706_v56 = vld [vmem:[#allocation13 + $0x188] sm:$0xff]  ;;  %v14323_v58 = vcombine.low %v697_v46, %v701_v47  ;;  %v14325_v59 = vcombine.low %v698_v48, %v702_v49 }
  0xf9   : > { %1430 = vmatpush1.bf16.msra.mxu0 %v14299_v34  ;;  %1473 = vmatpush1.bf16.msra.mxu1 %v14301_v35  ;;  %v709_v55 = vld [vmem:[#allocation13 + $0x1a0] sm:$0xff]  ;;  %v710_v57 = vld [vmem:[#allocation13 + $0x1a8] sm:$0xff] }
  0xfa   : > { %1431 = vmatprep.subr.bf16.mxu0 %v14308_v36  ;;  %1474 = vmatprep.subr.bf16.mxu1 %v14310_v37  ;;  %v14332_v60 = vcombine.high %v705_v54, %v709_v55  ;;  %v582_v61 = vld [vmem:[#allocation2 + $0x8] sm:$0xff]  ;;  %v14334_v63 = vcombine.high %v706_v56, %v710_v57  ;;  %v713_v0 = vld [vmem:[#allocation13 + $0x1c0] sm:$0xff]  ;;  %v14331_v5 = vcombine.low %v705_v54, %v709_v55 }
  0xfb   : > { %v717_v1 = vld [vmem:[#allocation13 + $0x1e0] sm:$0xff]  ;;  %v17343_v2 = vpack.c.bf16 %v584_v62, %v582_v61  ;;  %v714_v3 = vld [vmem:[#allocation13 + $0x1c8] sm:$0xff]  ;;  %v14333_v6 = vcombine.low %v706_v56, %v710_v57 }
  0xfc   : > { %v718_v4 = vld [vmem:[#allocation13 + $0x1e8] sm:$0xff]  ;;  %v14340_v7 = vcombine.high %v713_v0, %v717_v1  ;;  %v721_v9 = vld [vmem:[#allocation13 + $0x200] sm:$0xff]  ;;  %v14339_v13 = vcombine.low %v713_v0, %v717_v1 }
  0xfd   : > { %1432 = vmatpush1.bf16.msra.mxu0 %v14307_v42  ;;  %1475 = vmatpush1.bf16.msra.mxu1 %v14309_v43  ;;  %v14342_v8 = vcombine.high %v714_v3, %v718_v4  ;;  %v725_v10 = vld [vmem:[#allocation13 + $0x220] sm:$0xff]  ;;  %v722_v11 = vld [vmem:[#allocation13 + $0x208] sm:$0xff]  ;;  %v14341_v14 = vcombine.low %v714_v3, %v718_v4 }
  0xfe   : > { %1433 = vmatprep.subr.bf16.mxu0 %v14316_v44  ;;  %1476 = vmatprep.subr.bf16.mxu1 %v14318_v45  ;;  %v726_v12 = vld [vmem:[#allocation13 + $0x228] sm:$0xff]  ;;  %v14348_v15 = vcombine.high %v721_v9, %v725_v10  ;;  %v729_v17 = vld [vmem:[#allocation13 + $0x240] sm:$0xff]  ;;  %v14347_v21 = vcombine.low %v721_v9, %v725_v10  ;;  %v659_v10 = vld [vmem:[#allocation13 + $0x10] sm:$0xff] }
  0xff   : > { %1457 = vmatprep.mubr.bf16.mxu0 %v17343_v2  ;;  %1500 = vmatprep.mubr.bf16.mxu1 %v17343_v2  ;;  %v14350_v16 = vcombine.high %v722_v11, %v726_v12  ;;  %v733_v18 = vld [vmem:[#allocation13 + $0x260] sm:$0xff]  ;;  %v730_v19 = vld [vmem:[#allocation13 + $0x248] sm:$0xff]  ;;  %v14349_v22 = vcombine.low %v722_v11, %v726_v12  ;;  %v663_v11 = vld [vmem:[#allocation13 + $0x30] sm:$0xff] }
 0x100   : > { %v734_v20 = vld [vmem:[#allocation13 + $0x268] sm:$0xff]  ;;  %v14356_v23 = vcombine.high %v729_v17, %v733_v18  ;;  %v737_v25 = vld [vmem:[#allocation13 + $0x280] sm:$0xff]  ;;  %v14355_v29 = vcombine.low %v729_v17, %v733_v18  ;;  %v660_v12 = vld [vmem:[#allocation13 + $0x18] sm:$0xff]  ;;  %v14288_v18 = vcombine.high %v659_v10, %v663_v11 }
 0x101   : > { %1434 = vmatpush1.bf16.msra.mxu0 %v14315_v50  ;;  %1477 = vmatpush1.bf16.msra.mxu1 %v14317_v51  ;;  %v14358_v24 = vcombine.high %v730_v19, %v734_v20  ;;  %v741_v26 = vld [vmem:[#allocation13 + $0x2a0] sm:$0xff]  ;;  %v738_v27 = vld [vmem:[#allocation13 + $0x288] sm:$0xff]  ;;  %v14357_v30 = vcombine.low %v730_v19, %v734_v20  ;;  %v667_v20 = vld [vmem:[#allocation13 + $0x50] sm:$0xff] }
 0x102   : > { %1435 = vmatprep.subr.bf16.mxu0 %v14324_v52  ;;  %1478 = vmatprep.subr.bf16.mxu1 %v14326_v53  ;;  %v742_v28 = vld [vmem:[#allocation13 + $0x2a8] sm:$0xff]  ;;  %v14364_v31 = vcombine.high %v737_v25, %v741_v26  ;;  %v745_v33 = vld [vmem:[#allocation13 + $0x2c0] sm:$0xff]  ;;  %v14363_v37 = vcombine.low %v737_v25, %v741_v26  ;;  %v14287_v25 = vcombine.low %v659_v10, %v663_v11  ;;  %v723_v10 = vld [vmem:[#allocation13 + $0x210] sm:$0xff] }
 0x103   : > { %v14366_v32 = vcombine.high %v738_v27, %v742_v28  ;;  %v749_v34 = vld [vmem:[#allocation13 + $0x2e0] sm:$0xff]  ;;  %v746_v35 = vld [vmem:[#allocation13 + $0x2c8] sm:$0xff]  ;;  %v14365_v38 = vcombine.low %v738_v27, %v742_v28  ;;  %v675_v28 = vld [vmem:[#allocation13 + $0x90] sm:$0xff] }
 0x104   : > { %v750_v36 = vld [vmem:[#allocation13 + $0x2e8] sm:$0xff]  ;;  %v14372_v39 = vcombine.high %v745_v33, %v749_v34  ;;  %v753_v41 = vld [vmem:[#allocation13 + $0x300] sm:$0xff]  ;;  %v14371_v45 = vcombine.low %v745_v33, %v749_v34  ;;  %v683_v34 = vld [vmem:[#allocation13 + $0xd0] sm:$0xff] }
 0x105   : > { %1436 = vmatpush1.bf16.msra.mxu0 %v14323_v58  ;;  %1479 = vmatpush1.bf16.msra.mxu1 %v14325_v59  ;;  %v14374_v40 = vcombine.high %v746_v35, %v750_v36  ;;  %v757_v42 = vld [vmem:[#allocation13 + $0x320] sm:$0xff]  ;;  %v754_v43 = vld [vmem:[#allocation13 + $0x308] sm:$0xff]  ;;  %v14373_v46 = vcombine.low %v746_v35, %v750_v36  ;;  %v687_v35 = vld [vmem:[#allocation13 + $0xf0] sm:$0xff] }
 0x106   : > { %1437 = vmatprep.subr.bf16.mxu0 %v14332_v60  ;;  %1480 = vmatprep.subr.bf16.mxu1 %v14334_v63  ;;  %v758_v44 = vld [vmem:[#allocation13 + $0x328] sm:$0xff]  ;;  %v14380_v47 = vcombine.high %v753_v41, %v757_v42  ;;  %v761_v49 = vld [vmem:[#allocation13 + $0x340] sm:$0xff]  ;;  %v14379_v53 = vcombine.low %v753_v41, %v757_v42  ;;  %v691_v42 = vld [vmem:[#allocation13 + $0x110] sm:$0xff] }
 0x107   : > { %v14382_v48 = vcombine.high %v754_v43, %v758_v44  ;;  %v765_v50 = vld [vmem:[#allocation13 + $0x360] sm:$0xff]  ;;  %v762_v51 = vld [vmem:[#allocation13 + $0x348] sm:$0xff]  ;;  %v14381_v54 = vcombine.low %v754_v43, %v758_v44  ;;  %v695_v43 = vld [vmem:[#allocation13 + $0x130] sm:$0xff] }
 0x108   : > { %v766_v52 = vld [vmem:[#allocation13 + $0x368] sm:$0xff]  ;;  %v14388_v55 = vcombine.high %v761_v49, %v765_v50  ;;  %v769_v57 = vld [vmem:[#allocation13 + $0x380] sm:$0xff]  ;;  %v14387_v61 = vcombine.low %v761_v49, %v765_v50  ;;  %v14311_v49 = vcombine.low %v683_v34, %v687_v35  ;;  %v699_v50 = vld [vmem:[#allocation13 + $0x150] sm:$0xff] }
 0x109   : > { %1438 = vmatpush1.bf16.msra.mxu0 %v14331_v5  ;;  %1481 = vmatpush1.bf16.msra.mxu1 %v14333_v6  ;;  %v14390_v56 = vcombine.high %v762_v51, %v766_v52  ;;  %v773_v58 = vld [vmem:[#allocation13 + $0x3a0] sm:$0xff]  ;;  %v770_v59 = vld [vmem:[#allocation13 + $0x388] sm:$0xff]  ;;  %v14389_v62 = vcombine.low %v762_v51, %v766_v52  ;;  %v703_v51 = vld [vmem:[#allocation13 + $0x170] sm:$0xff] }
 0x10a   : > { %1439 = vmatprep.subr.bf16.mxu0 %v14340_v7  ;;  %1482 = vmatprep.subr.bf16.mxu1 %v14342_v8  ;;  %v774_v60 = vld [vmem:[#allocation13 + $0x3a8] sm:$0xff]  ;;  %v14396_v63 = vcombine.high %v769_v57, %v773_v58  ;;  %v777_v1 = vld [vmem:[#allocation13 + $0x3c0] sm:$0xff]  ;;  %v14395_v6 = vcombine.low %v769_v57, %v773_v58  ;;  %v707_v57 = vld [vmem:[#allocation13 + $0x190] sm:$0xff] }
 0x10b   : > { %v14398_v0 = vcombine.high %v770_v59, %v774_v60  ;;  %v781_v3 = vld [vmem:[#allocation13 + $0x3e0] sm:$0xff]  ;;  %v778_v4 = vld [vmem:[#allocation13 + $0x3c8] sm:$0xff]  ;;  %v14397_v7 = vcombine.low %v770_v59, %v774_v60  ;;  %v711_v58 = vld [vmem:[#allocation13 + $0x1b0] sm:$0xff]  ;;  %v14328_v60 = vcombine.high %v699_v50, %v703_v51 }
 0x10c   : > { %v782_v5 = vld [vmem:[#allocation13 + $0x3e8] sm:$0xff]  ;;  %v14404_v8 = vcombine.high %v777_v1, %v781_v3  ;;  %v727_v11 = vld [vmem:[#allocation13 + $0x230] sm:$0xff] }
 0x10d   : > { %1440 = vmatpush1.bf16.msra.mxu0 %v14339_v13  ;;  %1483 = vmatpush1.bf16.msra.mxu1 %v14341_v14  ;;  %v14406_v9 = vcombine.high %v778_v4, %v782_v5  ;;  %v664_v13 = vld [vmem:[#allocation13 + $0x38] sm:$0xff]  ;;  %v14403_v14 = vcombine.low %v777_v1, %v781_v3  ;;  %v14405_v17 = vcombine.low %v778_v4, %v782_v5  ;;  %v715_v1 = vld [vmem:[#allocation13 + $0x1d0] sm:$0xff] }
 0x10e   : > { %1441 = vmatprep.subr.bf16.mxu0 %v14348_v15  ;;  %1484 = vmatprep.subr.bf16.mxu1 %v14350_v16  ;;  %v581_v15 = vld [vmem:[#allocation2] sm:$0xff]  ;;  %v583_v16 = vld [vmem:[#allocation2 + $0x10] sm:$0xff]  ;;  %v14290_v19 = vcombine.high %v660_v12, %v664_v13  ;;  %v14289_v26 = vcombine.low %v660_v12, %v664_v13  ;;  %v14336_v5 = vcombine.high %v707_v57, %v711_v58 }
 0x10f   : > { %v719_v3 = vld [vmem:[#allocation13 + $0x1f0] sm:$0xff] }
 0x110   : > { %v14344_v13 = vcombine.high %v715_v1, %v719_v3 }
 0x111   : > { %1442 = vmatpush1.bf16.msra.mxu0 %v14347_v21  ;;  %1485 = vmatpush1.bf16.msra.mxu1 %v14349_v22  ;;  %v671_v21 = vld [vmem:[#allocation13 + $0x70] sm:$0xff]  ;;  %v17347_v22 = vpack.c.bf16 %v583_v16, %v581_v15  ;;  %v728_v15 = vld [vmem:[#allocation13 + $0x238] sm:$0xff] }
 0x112   : > { %1443 = vmatprep.subr.bf16.mxu0 %v14356_v23  ;;  %1486 = vmatprep.subr.bf16.mxu1 %v14358_v24  ;;  %v668_v23 = vld [vmem:[#allocation13 + $0x58] sm:$0xff]  ;;  %v14296_v27 = vcombine.high %v667_v20, %v671_v21  ;;  %v14295_v33 = vcombine.low %v667_v20, %v671_v21  ;;  %v731_v21 = vld [vmem:[#allocation13 + $0x250] sm:$0xff] }
 0x113   : > { %v672_v24 = vld [vmem:[#allocation13 + $0x78] sm:$0xff] }
 0x114   : > { %v14297_v36 = vcombine.low %v668_v23, %v672_v24 }
 0x115   : > { %1444 = vmatpush1.bf16.msra.mxu0 %v14355_v29  ;;  %1487 = vmatpush1.bf16.msra.mxu1 %v14357_v30  ;;  %v679_v29 = vld [vmem:[#allocation13 + $0xb0] sm:$0xff]  ;;  %v676_v30 = vld [vmem:[#allocation13 + $0x98] sm:$0xff] }
 0x116   : > { %1445 = vmatprep.subr.bf16.mxu0 %v14364_v31  ;;  %1488 = vmatprep.subr.bf16.mxu1 %v14366_v32  ;;  %v14298_v31 = vcombine.high %v668_v23, %v672_v24  ;;  %v680_v32 = vld [vmem:[#allocation13 + $0xb8] sm:$0xff]  ;;  %v14303_v41 = vcombine.low %v675_v28, %v679_v29  ;;  %v735_v23 = vld [vmem:[#allocation13 + $0x270] sm:$0xff] }
 0x117   : > { %v14305_v44 = vcombine.low %v676_v30, %v680_v32  ;;  %v732_v24 = vld [vmem:[#allocation13 + $0x258] sm:$0xff] }
 0x119   : > { %1446 = vmatpush1.bf16.msra.mxu0 %v14363_v37  ;;  %1489 = vmatpush1.bf16.msra.mxu1 %v14365_v38  ;;  %v14304_v37 = vcombine.high %v675_v28, %v679_v29  ;;  %v684_v38 = vld [vmem:[#allocation13 + $0xd8] sm:$0xff]  ;;  %v14360_v28 = vcombine.high %v731_v21, %v735_v23 }
 0x11a   : > { %1447 = vmatprep.subr.bf16.mxu0 %v14372_v39  ;;  %1490 = vmatprep.subr.bf16.mxu1 %v14374_v40  ;;  %v688_v39 = vld [vmem:[#allocation13 + $0xf8] sm:$0xff]  ;;  %v14306_v40 = vcombine.high %v676_v30, %v680_v32  ;;  %v739_v30 = vld [vmem:[#allocation13 + $0x290] sm:$0xff] }
 0x11b   : > { %v14313_v52 = vcombine.low %v684_v38, %v688_v39  ;;  %v740_v32 = vld [vmem:[#allocation13 + $0x298] sm:$0xff] }
 0x11d   : > { %1448 = vmatpush1.bf16.msra.mxu0 %v14371_v45  ;;  %1491 = vmatpush1.bf16.msra.mxu1 %v14373_v46  ;;  %v14312_v45 = vcombine.high %v683_v34, %v687_v35  ;;  %v692_v46 = vld [vmem:[#allocation13 + $0x118] sm:$0xff]  ;;  %v14359_v34 = vcombine.low %v731_v21, %v735_v23  ;;  %v599_v23 = vld [vmem:[#allocation11 + $0x40] sm:$0xff] }
 0x11e   : > { %1449 = vmatprep.subr.bf16.mxu0 %v14380_v47  ;;  %1492 = vmatprep.subr.bf16.mxu1 %v14382_v48  ;;  %v696_v47 = vld [vmem:[#allocation13 + $0x138] sm:$0xff]  ;;  %v14314_v48 = vcombine.high %v684_v38, %v688_v39  ;;  %v747_v38 = vld [vmem:[#allocation13 + $0x2d0] sm:$0xff] }
 0x11f   : > { %v14321_v59 = vcombine.low %v692_v46, %v696_v47  ;;  %v751_v39 = vld [vmem:[#allocation13 + $0x2f0] sm:$0xff] }
 0x121   : > { %1450 = vmatpush1.bf16.msra.mxu0 %v14379_v53  ;;  %1493 = vmatpush1.bf16.msra.mxu1 %v14381_v54  ;;  %v700_v53 = vld [vmem:[#allocation13 + $0x158] sm:$0xff] }
 0x122   : > { %1451 = vmatprep.subr.bf16.mxu0 %v14388_v55  ;;  %1494 = vmatprep.subr.bf16.mxu1 %v14390_v56  ;;  %v704_v54 = vld [vmem:[#allocation13 + $0x178] sm:$0xff]  ;;  %v14322_v55 = vcombine.high %v692_v46, %v696_v47  ;;  %v14319_v56 = vcombine.low %v691_v42, %v695_v43  ;;  %v755_v46 = vld [vmem:[#allocation13 + $0x310] sm:$0xff] }
 0x123   : > { %v14329_v4 = vcombine.low %v700_v53, %v704_v54  ;;  %v759_v47 = vld [vmem:[#allocation13 + $0x330] sm:$0xff] }
 0x125   : > { %1452 = vmatpush1.bf16.msra.mxu0 %v14387_v61  ;;  %1495 = vmatpush1.bf16.msra.mxu1 %v14389_v62  ;;  %v708_v61 = vld [vmem:[#allocation13 + $0x198] sm:$0xff] }
 0x126   : > { %1453 = vmatprep.subr.bf16.mxu0 %v14396_v63  ;;  %1496 = vmatprep.subr.bf16.mxu1 %v14398_v0  ;;  %v712_v62 = vld [vmem:[#allocation13 + $0x1b8] sm:$0xff]  ;;  %v14330_v63 = vcombine.high %v700_v53, %v704_v54  ;;  %v14327_v0 = vcombine.low %v699_v50, %v703_v51  ;;  %v14375_v50 = vcombine.low %v747_v38, %v751_v39  ;;  %v763_v53 = vld [vmem:[#allocation13 + $0x350] sm:$0xff] }
 0x127   : > { %v14337_v12 = vcombine.low %v708_v61, %v712_v62  ;;  %v767_v54 = vld [vmem:[#allocation13 + $0x370] sm:$0xff] }
 0x129   : > { %1454 = vmatpush1.bf16.msra.mxu0 %v14395_v6  ;;  %1497 = vmatpush1.bf16.msra.mxu1 %v14397_v7  ;;  %v716_v6 = vld [vmem:[#allocation13 + $0x1d8] sm:$0xff] }
 0x12a   : > { %1455 = vmatprep.subr.bf16.mxu0 %v14404_v8  ;;  %1498 = vmatprep.subr.bf16.mxu1 %v14406_v9  ;;  %v720_v7 = vld [vmem:[#allocation13 + $0x1f8] sm:$0xff]  ;;  %v14338_v8 = vcombine.high %v708_v61, %v712_v62  ;;  %v14335_v9 = vcombine.low %v707_v57, %v711_v58  ;;  %v14383_v57 = vcombine.low %v755_v46, %v759_v47  ;;  %v771_v61 = vld [vmem:[#allocation13 + $0x390] sm:$0xff] }
 0x12b   : > { %v14346_v16 = vcombine.high %v716_v6, %v720_v7  ;;  %v775_v62 = vld [vmem:[#allocation13 + $0x3b0] sm:$0xff] }
 0x12d   : > { %1456 = vmatpush1.bf16.msra.mxu0 %v14403_v14  ;;  %1499 = vmatpush1.bf16.msra.mxu1 %v14405_v17  ;;  %v724_v14 = vld [vmem:[#allocation13 + $0x218] sm:$0xff]  ;;  %v14343_v17 = vcombine.low %v715_v1, %v719_v3  ;;  %v14391_v1 = vcombine.low %v763_v53, %v767_v54 }
 0x12e   : > { %1511 = vmatprep.subr.bf16.mxu0 %v14288_v18  ;;  %1554 = vmatprep.subr.bf16.mxu1 %v14290_v19  ;;  %v14345_v18 = vcombine.low %v716_v6, %v720_v7  ;;  %v14352_v19 = vcombine.high %v723_v10, %v727_v11  ;;  %v14354_v20 = vcombine.high %v724_v14, %v728_v15  ;;  %v779_v6 = vld [vmem:[#allocation13 + $0x3d0] sm:$0xff] }
 0x12f   : > { %v783_v7 = vld [vmem:[#allocation13 + $0x3f0] sm:$0xff] }
 0x130   : > { %1458 = vmatmul.mubr.bf16.vlgmr.msra.gmra.mrb[0].mxu0 %v17347_v22  ;;  %1501 = vmatmul.mubr.bf16.vlgmr.msra.gmra.mrb[0].mxu1 %v17347_v22 }
 0x131   : > { %1512 = vmatpush1.bf16.msra.mxu0 %v14287_v25  ;;  %1555 = vmatpush1.bf16.msra.mxu1 %v14289_v26  ;;  %v736_v25 = vld [vmem:[#allocation13 + $0x278] sm:$0xff]  ;;  %v14351_v26 = vcombine.low %v723_v10, %v727_v11  ;;  %v14399_v10 = vcombine.low %v771_v61, %v775_v62 }
 0x132   : > { %1513 = vmatprep.subr.bf16.mxu0 %v14296_v27  ;;  %1556 = vmatprep.subr.bf16.mxu1 %v14298_v31  ;;  %v14353_v27 = vcombine.low %v724_v14, %v728_v15  ;;  %v14362_v29 = vcombine.high %v732_v24, %v736_v25  ;;  %v743_v31 = vld [vmem:[#allocation13 + $0x2b0] sm:$0xff]  ;;  %v14361_v35 = vcombine.low %v732_v24, %v736_v25  ;;  %v591_v14 = vld [vmem:[#allocation11] sm:$0xff]  ;;  %v600_v25 = vld [vmem:[#allocation11 + $0x48] sm:$0xff] }
 0x133   : > { %1543 = vmatprep.mubr.bf16.mxu0 %v17343_v2  ;;  %1586 = vmatprep.mubr.bf16.mxu1 %v17343_v2  ;;  %v14320_v2 = vcombine.high %v691_v42, %v695_v43  ;;  %v14367_v42 = vcombine.low %v739_v30, %v743_v31  ;;  %v595_v15 = vld [vmem:[#allocation11 + $0x20] sm:$0xff] }
 0x134   : > { %v603_v24 = vld [vmem:[#allocation11 + $0x60] sm:$0xff] }
 0x135   : > { %1514 = vmatpush1.bf16.msra.mxu0 %v14295_v33  ;;  %1557 = vmatpush1.bf16.msra.mxu1 %v14297_v36  ;;  %v744_v33 = vld [vmem:[#allocation13 + $0x2b8] sm:$0xff]  ;;  %v14368_v36 = vcombine.high %v739_v30, %v743_v31  ;;  %v607_v31 = vld [vmem:[#allocation11 + $0x80] sm:$0xff] }
 0x136   : > { %1515 = vmatprep.subr.bf16.mxu0 %v14304_v37  ;;  %1558 = vmatprep.subr.bf16.mxu1 %v14306_v40  ;;  %v14370_v37 = vcombine.high %v740_v32, %v744_v33  ;;  %v748_v40 = vld [vmem:[#allocation13 + $0x2d8] sm:$0xff]  ;;  %v14369_v43 = vcombine.low %v740_v32, %v744_v33  ;;  %v611_v32 = vld [vmem:[#allocation11 + $0xa0] sm:$0xff]  ;;  %v608_v33 = vld [vmem:[#allocation11 + $0x88] sm:$0xff] }
 0x139   : > { %1516 = vmatpush1.bf16.msra.mxu0 %v14303_v41  ;;  %1559 = vmatpush1.bf16.msra.mxu1 %v14305_v44  ;;  %v752_v41 = vld [vmem:[#allocation13 + $0x2f8] sm:$0xff]  ;;  %v14376_v44 = vcombine.high %v747_v38, %v751_v39  ;;  %v615_v39 = vld [vmem:[#allocation11 + $0xc0] sm:$0xff] }
 0x13a   : > { %1517 = vmatprep.subr.bf16.mxu0 %v14312_v45  ;;  %1560 = vmatprep.subr.bf16.mxu1 %v14314_v48  ;;  %v14378_v45 = vcombine.high %v748_v40, %v752_v41  ;;  %v756_v48 = vld [vmem:[#allocation13 + $0x318] sm:$0xff]  ;;  %v14377_v51 = vcombine.low %v748_v40, %v752_v41  ;;  %v619_v40 = vld [vmem:[#allocation11 + $0xe0] sm:$0xff]  ;;  %v16972_v41 = vmov 0  }
 0x13d   : > { %1518 = vmatpush1.bf16.msra.mxu0 %v14311_v49  ;;  %1561 = vmatpush1.bf16.msra.mxu1 %v14313_v52  ;;  %v760_v49 = vld [vmem:[#allocation13 + $0x338] sm:$0xff]  ;;  %v14384_v52 = vcombine.high %v755_v46, %v759_v47  ;;  %v623_v47 = vld [vmem:[#allocation11 + $0x100] sm:$0xff] }
 0x13e   : > { %1519 = vmatprep.subr.bf16.mxu0 %v14320_v2  ;;  %1562 = vmatprep.subr.bf16.mxu1 %v14322_v55  ;;  %v14386_v2 = vcombine.high %v756_v48, %v760_v49  ;;  %v764_v55 = vld [vmem:[#allocation13 + $0x358] sm:$0xff]  ;;  %v14385_v58 = vcombine.low %v756_v48, %v760_v49  ;;  %v627_v48 = vld [vmem:[#allocation11 + $0x120] sm:$0xff]  ;;  %v624_v49 = vld [vmem:[#allocation11 + $0x108] sm:$0xff] }
 0x141   : > { %1520 = vmatpush1.bf16.msra.mxu0 %v14319_v56  ;;  %1563 = vmatpush1.bf16.msra.mxu1 %v14321_v59  ;;  %v768_v56 = vld [vmem:[#allocation13 + $0x378] sm:$0xff]  ;;  %v14392_v59 = vcombine.high %v763_v53, %v767_v54  ;;  %v631_v54 = vld [vmem:[#allocation11 + $0x140] sm:$0xff] }
 0x142   : > { %1521 = vmatprep.subr.bf16.mxu0 %v14328_v60  ;;  %1564 = vmatprep.subr.bf16.mxu1 %v14330_v63  ;;  %v14394_v60 = vcombine.high %v764_v55, %v768_v56  ;;  %v772_v63 = vld [vmem:[#allocation13 + $0x398] sm:$0xff]  ;;  %v14393_v3 = vcombine.low %v764_v55, %v768_v56  ;;  %v635_v55 = vld [vmem:[#allocation11 + $0x160] sm:$0xff]  ;;  %v632_v56 = vld [vmem:[#allocation11 + $0x148] sm:$0xff] }
 0x145   : > { %1522 = vmatpush1.bf16.msra.mxu0 %v14327_v0  ;;  %1565 = vmatpush1.bf16.msra.mxu1 %v14329_v4  ;;  %v776_v0 = vld [vmem:[#allocation13 + $0x3b8] sm:$0xff]  ;;  %v14400_v4 = vcombine.high %v771_v61, %v775_v62  ;;  %v639_v62 = vld [vmem:[#allocation11 + $0x180] sm:$0xff] }
 0x146   : > { %1523 = vmatprep.subr.bf16.mxu0 %v14336_v5  ;;  %1566 = vmatprep.subr.bf16.mxu1 %v14338_v8  ;;  %v14402_v5 = vcombine.high %v772_v63, %v776_v0  ;;  %v780_v8 = vld [vmem:[#allocation13 + $0x3d8] sm:$0xff]  ;;  %v14401_v11 = vcombine.low %v772_v63, %v776_v0  ;;  %v643_v63 = vld [vmem:[#allocation11 + $0x1a0] sm:$0xff]  ;;  %v640_v0 = vld [vmem:[#allocation11 + $0x188] sm:$0xff] }
 0x149   : > { %1524 = vmatpush1.bf16.msra.mxu0 %v14335_v9  ;;  %1567 = vmatpush1.bf16.msra.mxu1 %v14337_v12  ;;  %v784_v9 = vld [vmem:[#allocation13 + $0x3f8] sm:$0xff]  ;;  %v14408_v12 = vcombine.high %v779_v6, %v783_v7 }
 0x14a   : > { %1525 = vmatprep.subr.bf16.mxu0 %v14344_v13  ;;  %1568 = vmatprep.subr.bf16.mxu1 %v14346_v16  ;;  %v14410_v13 = vcombine.high %v780_v8, %v784_v9  ;;  %v592_v16 = vld [vmem:[#allocation11 + $0x8] sm:$0xff] }
 0x14d   : > { %1526 = vmatpush1.bf16.msra.mxu0 %v14343_v17  ;;  %1569 = vmatpush1.bf16.msra.mxu1 %v14345_v18  ;;  %v596_v17 = vld [vmem:[#allocation11 + $0x28] sm:$0xff]  ;;  %v14407_v18 = vcombine.low %v779_v6, %v783_v7  ;;  %v647_v7 = vld [vmem:[#allocation11 + $0x1c0] sm:$0xff] }
 0x14e   : > { %1527 = vmatprep.subr.bf16.mxu0 %v14352_v19  ;;  %1570 = vmatprep.subr.bf16.mxu1 %v14354_v20  ;;  %v14409_v19 = vcombine.low %v780_v8, %v784_v9  ;;  %v14413_v20 = vcombine.high %v591_v14, %v595_v15  ;;  %v14415_v21 = vcombine.high %v592_v16, %v596_v17  ;;  %v651_v8 = vld [vmem:[#allocation11 + $0x1e0] sm:$0xff]  ;;  %v648_v9 = vld [vmem:[#allocation11 + $0x1c8] sm:$0xff] }
 0x151   : > { %1528 = vmatpush1.bf16.msra.mxu0 %v14351_v26  ;;  %1571 = vmatpush1.bf16.msra.mxu1 %v14353_v27  ;;  %v604_v26 = vld [vmem:[#allocation11 + $0x68] sm:$0xff]  ;;  %v14412_v27 = vcombine.low %v591_v14, %v595_v15  ;;  %v593_v15 = vld [vmem:[#allocation11 + $0x10] sm:$0xff] }
 0x152   : > { %1529 = vmatprep.subr.bf16.mxu0 %v14360_v28  ;;  %1572 = vmatprep.subr.bf16.mxu1 %v14362_v29  ;;  %v14414_v28 = vcombine.low %v592_v16, %v596_v17  ;;  %v14421_v29 = vcombine.high %v599_v23, %v603_v24  ;;  %v14423_v30 = vcombine.high %v600_v25, %v604_v26  ;;  %v597_v16 = vld [vmem:[#allocation11 + $0x30] sm:$0xff]  ;;  %v594_v17 = vld [vmem:[#allocation11 + $0x18] sm:$0xff] }
 0x155   : > { %1530 = vmatpush1.bf16.msra.mxu0 %v14359_v34  ;;  %1573 = vmatpush1.bf16.msra.mxu1 %v14361_v35  ;;  %v612_v34 = vld [vmem:[#allocation11 + $0xa8] sm:$0xff]  ;;  %v14420_v35 = vcombine.low %v599_v23, %v603_v24  ;;  %v601_v24 = vld [vmem:[#allocation11 + $0x50] sm:$0xff] }
 0x156   : > { %1531 = vmatprep.subr.bf16.mxu0 %v14368_v36  ;;  %1574 = vmatprep.subr.bf16.mxu1 %v14370_v37  ;;  %v14422_v36 = vcombine.low %v600_v25, %v604_v26  ;;  %v14429_v37 = vcombine.high %v607_v31, %v611_v32  ;;  %v14431_v38 = vcombine.high %v608_v33, %v612_v34  ;;  %v605_v25 = vld [vmem:[#allocation11 + $0x70] sm:$0xff]  ;;  %v17358_v26 = vld [vmem:[%s17320_s9] sm:$0xff]  }
 0x159   : > { %1532 = vmatpush1.bf16.msra.mxu0 %v14367_v42  ;;  %1575 = vmatpush1.bf16.msra.mxu1 %v14369_v43  ;;  %v616_v42 = vld [vmem:[#allocation11 + $0xc8] sm:$0xff] }
 0x15a   : > { %1533 = vmatprep.subr.bf16.mxu0 %v14376_v44  ;;  %1576 = vmatprep.subr.bf16.mxu1 %v14378_v45  ;;  %v620_v43 = vld [vmem:[#allocation11 + $0xe8] sm:$0xff]  ;;  %v14428_v44 = vcombine.low %v607_v31, %v611_v32  ;;  %v14437_v45 = vcombine.high %v615_v39, %v619_v40  ;;  %v14425_v31 = vcombine.high %v601_v24, %v605_v25 }
 0x15b   : > { %v14439_v46 = vcombine.high %v616_v42, %v620_v43 }
 0x15d   : > { %1534 = vmatpush1.bf16.msra.mxu0 %v14375_v50  ;;  %1577 = vmatpush1.bf16.msra.mxu1 %v14377_v51  ;;  %v628_v50 = vld [vmem:[#allocation11 + $0x128] sm:$0xff]  ;;  %v14436_v51 = vcombine.low %v615_v39, %v619_v40 }
 0x15e   : > { %1535 = vmatprep.subr.bf16.mxu0 %v14384_v52  ;;  %1578 = vmatprep.subr.bf16.mxu1 %v14386_v2  ;;  %v14438_v52 = vcombine.low %v616_v42, %v620_v43  ;;  %v14445_v2 = vcombine.high %v623_v47, %v627_v48  ;;  %v14447_v53 = vcombine.high %v624_v49, %v628_v50  ;;  %v617_v42 = vld [vmem:[#allocation11 + $0xd0] sm:$0xff] }
 0x15f   : > { %v621_v43 = vld [vmem:[#allocation11 + $0xf0] sm:$0xff] }
 0x161   : > { %1536 = vmatpush1.bf16.msra.mxu0 %v14383_v57  ;;  %1579 = vmatpush1.bf16.msra.mxu1 %v14385_v58  ;;  %v636_v57 = vld [vmem:[#allocation11 + $0x168] sm:$0xff]  ;;  %v14444_v58 = vcombine.low %v623_v47, %v627_v48  ;;  %v14441_v47 = vcombine.high %v617_v42, %v621_v43 }
 0x162   : > { %1537 = vmatprep.subr.bf16.mxu0 %v14392_v59  ;;  %1580 = vmatprep.subr.bf16.mxu1 %v14394_v60  ;;  %v14446_v59 = vcombine.low %v624_v49, %v628_v50  ;;  %v14453_v60 = vcombine.high %v631_v54, %v635_v55  ;;  %v14455_v61 = vcombine.high %v632_v56, %v636_v57  ;;  %v625_v49 = vld [vmem:[#allocation11 + $0x110] sm:$0xff] }
 0x163   : > { %v629_v50 = vld [vmem:[#allocation11 + $0x130] sm:$0xff] }
 0x165   : > { %1538 = vmatpush1.bf16.msra.mxu0 %v14391_v1  ;;  %1581 = vmatpush1.bf16.msra.mxu1 %v14393_v3  ;;  %v644_v1 = vld [vmem:[#allocation11 + $0x1a8] sm:$0xff]  ;;  %v14452_v3 = vcombine.low %v631_v54, %v635_v55  ;;  %v14449_v54 = vcombine.high %v625_v49, %v629_v50 }
 0x166   : > { %1539 = vmatprep.subr.bf16.mxu0 %v14400_v4  ;;  %1582 = vmatprep.subr.bf16.mxu1 %v14402_v5  ;;  %v14454_v4 = vcombine.low %v632_v56, %v636_v57  ;;  %v14461_v5 = vcombine.high %v639_v62, %v643_v63  ;;  %v14463_v6 = vcombine.high %v640_v0, %v644_v1  ;;  %v633_v56 = vld [vmem:[#allocation11 + $0x150] sm:$0xff] }
 0x167   : > { %v637_v57 = vld [vmem:[#allocation11 + $0x170] sm:$0xff] }
 0x169   : > { %1540 = vmatpush1.bf16.msra.mxu0 %v14399_v10  ;;  %1583 = vmatpush1.bf16.msra.mxu1 %v14401_v11  ;;  %v652_v10 = vld [vmem:[#allocation11 + $0x1e8] sm:$0xff]  ;;  %v14460_v11 = vcombine.low %v639_v62, %v643_v63  ;;  %v14457_v62 = vcombine.high %v633_v56, %v637_v57 }
 0x16a   : > { %1541 = vmatprep.subr.bf16.mxu0 %v14408_v12  ;;  %1584 = vmatprep.subr.bf16.mxu1 %v14410_v13  ;;  %v14462_v12 = vcombine.low %v640_v0, %v644_v1  ;;  %v14469_v13 = vcombine.high %v647_v7, %v651_v8  ;;  %v14471_v14 = vcombine.high %v648_v9, %v652_v10  ;;  %v641_v0 = vld [vmem:[#allocation11 + $0x190] sm:$0xff] }
 0x16b   : > { %v645_v1 = vld [vmem:[#allocation11 + $0x1b0] sm:$0xff] }
 0x16d   : > { %1542 = vmatpush1.bf16.msra.mxu0 %v14407_v18  ;;  %1585 = vmatpush1.bf16.msra.mxu1 %v14409_v19  ;;  %v598_v18 = vld [vmem:[#allocation11 + $0x38] sm:$0xff]  ;;  %v14468_v19 = vcombine.low %v647_v7, %v651_v8  ;;  %v14465_v7 = vcombine.high %v641_v0, %v645_v1 }
 0x16e   : > { %1923 = vmatprep.subr.bf16.mxu0 %v14413_v20  ;;  %1966 = vmatprep.subr.bf16.mxu1 %v14415_v21  ;;  %v14470_v20 = vcombine.low %v648_v9, %v652_v10  ;;  %v14417_v21 = vcombine.high %v593_v15, %v597_v16  ;;  %v14419_v23 = vcombine.high %v594_v17, %v598_v18  ;;  %v649_v9 = vld [vmem:[#allocation11 + $0x1d0] sm:$0xff] }
 0x16f   : > { %v653_v10 = vld [vmem:[#allocation11 + $0x1f0] sm:$0xff] }
 0x170   : > { %1544 = vmatmul.mubr.bf16.vlgmr.msra.gmra.mrb[4].mxu0 %v17347_v22  ;;  %1587 = vmatmul.mubr.bf16.vlgmr.msra.gmra.mrb[4].mxu1 %v17347_v22  ;;  %v14430_v22 = vcombine.low %v608_v33, %v612_v34  ;;  %v609_v33 = vld [vmem:[#allocation11 + $0x90] sm:$0xff] }
 0x171   : > { %1924 = vmatpush1.bf16.msra.mxu0 %v14412_v27  ;;  %1967 = vmatpush1.bf16.msra.mxu1 %v14414_v28  ;;  %v602_v27 = vld [vmem:[#allocation11 + $0x58] sm:$0xff]  ;;  %v613_v34 = vld [vmem:[#allocation11 + $0xb0] sm:$0xff] }
 0x172   : > { %1925 = vmatprep.subr.bf16.mxu0 %v14421_v29  ;;  %1968 = vmatprep.subr.bf16.mxu1 %v14423_v30  ;;  %v606_v28 = vld [vmem:[#allocation11 + $0x78] sm:$0xff]  ;;  %v14416_v29 = vcombine.low %v593_v15, %v597_v16  ;;  %v14418_v30 = vcombine.low %v594_v17, %v598_v18  ;;  %v14433_v39 = vcombine.high %v609_v33, %v613_v34 }
 0x173   : > { %1955 = vmatprep.mubr.bf16.mxu0 %v16972_v41  ;;  %1998 = vmatprep.mubr.bf16.mxu1 %v16972_v41  ;;  %v14427_v32 = vcombine.high %v602_v27, %v606_v28  ;;  %v14473_v15 = vcombine.high %v649_v9, %v653_v10  ;;  %v14472_v17 = vcombine.low %v649_v9, %v653_v10 }
 0x175   : > { %1926 = vmatpush1.bf16.msra.mxu0 %v14420_v35  ;;  %1969 = vmatpush1.bf16.msra.mxu1 %v14422_v36  ;;  %v610_v35 = vld [vmem:[#allocation11 + $0x98] sm:$0xff] }
 0x176   : > { %1927 = vmatprep.subr.bf16.mxu0 %v14429_v37  ;;  %1970 = vmatprep.subr.bf16.mxu1 %v14431_v38  ;;  %v614_v36 = vld [vmem:[#allocation11 + $0xb8] sm:$0xff]  ;;  %v14424_v37 = vcombine.low %v601_v24, %v605_v25  ;;  %v14426_v38 = vcombine.low %v602_v27, %v606_v28  ;;  %v2261_v24 = vld [vmem:[#allocation13 + $0x28] sm:$0xff] }
 0x177   : > { %v14435_v40 = vcombine.high %v610_v35, %v614_v36 }
 0x179   : > { %1928 = vmatpush1.bf16.msra.mxu0 %v14428_v44  ;;  %1971 = vmatpush1.bf16.msra.mxu1 %v14430_v22  ;;  %v618_v44 = vld [vmem:[#allocation11 + $0xd8] sm:$0xff] }
 0x17a   : > { %1929 = vmatprep.subr.bf16.mxu0 %v14437_v45  ;;  %1972 = vmatprep.subr.bf16.mxu1 %v14439_v46  ;;  %v622_v22 = vld [vmem:[#allocation11 + $0xf8] sm:$0xff]  ;;  %v14432_v45 = vcombine.low %v609_v33, %v613_v34  ;;  %v14434_v46 = vcombine.low %v610_v35, %v614_v36  ;;  %v2269_v33 = vld [vmem:[#allocation13 + $0x68] sm:$0xff]  ;;  %v2272_v36 = vld [vmem:[#allocation13 + $0x80] sm:$0xff] }
 0x17b   : > { %v14443_v48 = vcombine.high %v618_v44, %v622_v22 }
 0x17d   : > { %1930 = vmatpush1.bf16.msra.mxu0 %v14436_v51  ;;  %1973 = vmatpush1.bf16.msra.mxu1 %v14438_v52  ;;  %v626_v51 = vld [vmem:[#allocation11 + $0x118] sm:$0xff] }
 0x17e   : > { %1931 = vmatprep.subr.bf16.mxu0 %v14445_v2  ;;  %1974 = vmatprep.subr.bf16.mxu1 %v14447_v53  ;;  %v630_v52 = vld [vmem:[#allocation11 + $0x138] sm:$0xff]  ;;  %v14440_v2 = vcombine.low %v617_v42, %v621_v43  ;;  %v14442_v53 = vcombine.low %v618_v44, %v622_v22  ;;  %v2280_v22 = vld [vmem:[#allocation13 + $0xc0] sm:$0xff] }
 0x17f   : > { %v14451_v55 = vcombine.high %v626_v51, %v630_v52 }
 0x181   : > { %1932 = vmatpush1.bf16.msra.mxu0 %v14444_v58  ;;  %1975 = vmatpush1.bf16.msra.mxu1 %v14446_v59  ;;  %v634_v58 = vld [vmem:[#allocation11 + $0x158] sm:$0xff] }
 0x182   : > { %1933 = vmatprep.subr.bf16.mxu0 %v14453_v60  ;;  %1976 = vmatprep.subr.bf16.mxu1 %v14455_v61  ;;  %v638_v59 = vld [vmem:[#allocation11 + $0x178] sm:$0xff]  ;;  %v14448_v60 = vcombine.low %v625_v49, %v629_v50  ;;  %v14450_v61 = vcombine.low %v626_v51, %v630_v52  ;;  %v2288_v52 = vld [vmem:[#allocation13 + $0x100] sm:$0xff] }
 0x183   : > { %v14459_v63 = vcombine.high %v634_v58, %v638_v59 }
 0x185   : > { %1934 = vmatpush1.bf16.msra.mxu0 %v14452_v3  ;;  %1977 = vmatpush1.bf16.msra.mxu1 %v14454_v4  ;;  %v642_v3 = vld [vmem:[#allocation11 + $0x198] sm:$0xff] }
 0x186   : > { %1935 = vmatprep.subr.bf16.mxu0 %v14461_v5  ;;  %1978 = vmatprep.subr.bf16.mxu1 %v14463_v6  ;;  %v646_v4 = vld [vmem:[#allocation11 + $0x1b8] sm:$0xff]  ;;  %v14456_v5 = vcombine.low %v633_v56, %v637_v57  ;;  %v14458_v6 = vcombine.low %v634_v58, %v638_v59  ;;  %v2296_v59 = vld [vmem:[#allocation13 + $0x140] sm:$0xff] }
 0x187   : > { %v14467_v8 = vcombine.high %v642_v3, %v646_v4 }
 0x189   : > { %1936 = vmatpush1.bf16.msra.mxu0 %v14460_v11  ;;  %1979 = vmatpush1.bf16.msra.mxu1 %v14462_v12  ;;  %v650_v11 = vld [vmem:[#allocation11 + $0x1d8] sm:$0xff] }
 0x18a   : > { %1937 = vmatprep.subr.bf16.mxu0 %v14469_v13  ;;  %1980 = vmatprep.subr.bf16.mxu1 %v14471_v14  ;;  %v654_v12 = vld [vmem:[#allocation11 + $0x1f8] sm:$0xff]  ;;  %v14464_v13 = vcombine.low %v641_v0, %v645_v1  ;;  %v14466_v14 = vcombine.low %v642_v3, %v646_v4  ;;  %v2304_v4 = vld [vmem:[#allocation13 + $0x180] sm:$0xff] }
 0x18b   : > { %v14475_v16 = vcombine.high %v650_v11, %v654_v12  ;;  %v14474_v18 = vcombine.low %v650_v11, %v654_v12  ;;  %v2312_v12 = vld [vmem:[#allocation13 + $0x1c0] sm:$0xff] }
 0x18d   : > { %1938 = vmatpush1.bf16.msra.mxu0 %v14468_v19  ;;  %1981 = vmatpush1.bf16.msra.mxu1 %v14470_v20  ;;  %v2256_v19 = vld [vmem:[#allocation13] sm:$0xff] }
 0x18e   : > { %2009 = vmatprep.subr.bf16.mxu0 %v14417_v21  ;;  %2052 = vmatprep.subr.bf16.mxu1 %v14419_v23  ;;  %v2260_v20 = vld [vmem:[#allocation13 + $0x20] sm:$0xff]  ;;  %v2257_v21 = vld [vmem:[#allocation13 + $0x8] sm:$0xff] }
 0x18f   : > { %v14479_v23 = vcombine.high %v2256_v19, %v2260_v20  ;;  %v14478_v25 = vcombine.low %v2256_v19, %v2260_v20  ;;  %v14480_v27 = vcombine.low %v2257_v21, %v2261_v24  ;;  %v14481_v28 = vcombine.high %v2257_v21, %v2261_v24  ;;  %v2320_v20 = vld [vmem:[#allocation13 + $0x200] sm:$0xff] }
 0x190   : > { %1956 = vmatmul.mubr.bf16.vlgmr.msra.gmra.mrb[0].mxu0 %v17358_v26  ;;  %1999 = vmatmul.mubr.bf16.vlgmr.msra.gmra.mrb[0].mxu1 %v17358_v26  ;;  %v2324_v21 = vld [vmem:[#allocation13 + $0x220] sm:$0xff] }
 0x191   : > { %2010 = vmatpush1.bf16.msra.mxu0 %v14416_v29  ;;  %2053 = vmatpush1.bf16.msra.mxu1 %v14418_v30  ;;  %v2264_v29 = vld [vmem:[#allocation13 + $0x40] sm:$0xff]  ;;  %v14543_v24 = vcombine.high %v2320_v20, %v2324_v21 }
 0x192   : > { %2011 = vmatprep.subr.bf16.mxu0 %v14425_v31  ;;  %2054 = vmatprep.subr.bf16.mxu1 %v14427_v32  ;;  %v2268_v30 = vld [vmem:[#allocation13 + $0x60] sm:$0xff]  ;;  %v2265_v31 = vld [vmem:[#allocation13 + $0x48] sm:$0xff] }
 0x193   : > { %2041 = vmatprep.mubr.bf16.mxu0 %v16972_v41  ;;  %2084 = vmatprep.mubr.bf16.mxu1 %v16972_v41  ;;  %v14487_v32 = vcombine.high %v2264_v29, %v2268_v30  ;;  %v14486_v34 = vcombine.low %v2264_v29, %v2268_v30  ;;  %v14488_v35 = vcombine.low %v2265_v31, %v2269_v33  ;;  %v2328_v30 = vld [vmem:[#allocation13 + $0x240] sm:$0xff] }
 0x195   : > { %2012 = vmatpush1.bf16.msra.mxu0 %v14424_v37  ;;  %2055 = vmatpush1.bf16.msra.mxu1 %v14426_v38  ;;  %v2276_v37 = vld [vmem:[#allocation13 + $0xa0] sm:$0xff]  ;;  %v2273_v38 = vld [vmem:[#allocation13 + $0x88] sm:$0xff] }
 0x196   : > { %2013 = vmatprep.subr.bf16.mxu0 %v14433_v39  ;;  %2056 = vmatprep.subr.bf16.mxu1 %v14435_v40  ;;  %v14495_v39 = vcombine.high %v2272_v36, %v2276_v37  ;;  %v2277_v40 = vld [vmem:[#allocation13 + $0xa8] sm:$0xff]  ;;  %v14494_v42 = vcombine.low %v2272_v36, %v2276_v37  ;;  %v2336_v37 = vld [vmem:[#allocation13 + $0x280] sm:$0xff] }
 0x197   : > { %v14496_v43 = vcombine.low %v2273_v38, %v2277_v40  ;;  %v14497_v44 = vcombine.high %v2273_v38, %v2277_v40  ;;  %v2340_v38 = vld [vmem:[#allocation13 + $0x2a0] sm:$0xff] }
 0x198   : > { %v14559_v40 = vcombine.high %v2336_v37, %v2340_v38 }
 0x199   : > { %2014 = vmatpush1.bf16.msra.mxu0 %v14432_v45  ;;  %2057 = vmatpush1.bf16.msra.mxu1 %v14434_v46  ;;  %v2284_v45 = vld [vmem:[#allocation13 + $0xe0] sm:$0xff]  ;;  %v2281_v46 = vld [vmem:[#allocation13 + $0xc8] sm:$0xff] }
 0x19a   : > { %2015 = vmatprep.subr.bf16.mxu0 %v14441_v47  ;;  %2058 = vmatprep.subr.bf16.mxu1 %v14443_v48  ;;  %v14503_v47 = vcombine.high %v2280_v22, %v2284_v45  ;;  %v2285_v48 = vld [vmem:[#allocation13 + $0xe8] sm:$0xff]  ;;  %v14502_v49 = vcombine.low %v2280_v22, %v2284_v45  ;;  %v2344_v45 = vld [vmem:[#allocation13 + $0x2c0] sm:$0xff] }
 0x19b   : > { %v14504_v50 = vcombine.low %v2281_v46, %v2285_v48  ;;  %v14505_v51 = vcombine.high %v2281_v46, %v2285_v48  ;;  %v2348_v46 = vld [vmem:[#allocation13 + $0x2e0] sm:$0xff] }
 0x19c   : > { %v14567_v48 = vcombine.high %v2344_v45, %v2348_v46 }
 0x19d   : > { %2016 = vmatpush1.bf16.msra.mxu0 %v14440_v2  ;;  %2059 = vmatpush1.bf16.msra.mxu1 %v14442_v53  ;;  %v2292_v2 = vld [vmem:[#allocation13 + $0x120] sm:$0xff] }
 0x19e   : > { %2017 = vmatprep.subr.bf16.mxu0 %v14449_v54  ;;  %2060 = vmatprep.subr.bf16.mxu1 %v14451_v55  ;;  %v14511_v53 = vcombine.high %v2288_v52, %v2292_v2  ;;  %v2289_v54 = vld [vmem:[#allocation13 + $0x108] sm:$0xff]  ;;  %v14510_v56 = vcombine.low %v2288_v52, %v2292_v2  ;;  %v2352_v2 = vld [vmem:[#allocation13 + $0x300] sm:$0xff] }
 0x19f   : > { %v2293_v55 = vld [vmem:[#allocation13 + $0x128] sm:$0xff] }
 0x1a0   : > { %v14512_v57 = vcombine.low %v2289_v54, %v2293_v55  ;;  %v14513_v58 = vcombine.high %v2289_v54, %v2293_v55  ;;  %v2353_v54 = vld [vmem:[#allocation13 + $0x308] sm:$0xff] }
 0x1a1   : > { %2018 = vmatpush1.bf16.msra.mxu0 %v14448_v60  ;;  %2061 = vmatpush1.bf16.msra.mxu1 %v14450_v61  ;;  %v2300_v60 = vld [vmem:[#allocation13 + $0x160] sm:$0xff] }
 0x1a2   : > { %2019 = vmatprep.subr.bf16.mxu0 %v14457_v62  ;;  %2062 = vmatprep.subr.bf16.mxu1 %v14459_v63  ;;  %v14519_v61 = vcombine.high %v2296_v59, %v2300_v60  ;;  %v2297_v62 = vld [vmem:[#allocation13 + $0x148] sm:$0xff]  ;;  %v14518_v0 = vcombine.low %v2296_v59, %v2300_v60  ;;  %v2360_v60 = vld [vmem:[#allocation13 + $0x340] sm:$0xff] }
 0x1a3   : > { %v2301_v63 = vld [vmem:[#allocation13 + $0x168] sm:$0xff] }
 0x1a4   : > { %v14520_v1 = vcombine.low %v2297_v62, %v2301_v63  ;;  %v14521_v3 = vcombine.high %v2297_v62, %v2301_v63  ;;  %v2361_v62 = vld [vmem:[#allocation13 + $0x348] sm:$0xff] }
 0x1a5   : > { %2020 = vmatpush1.bf16.msra.mxu0 %v14456_v5  ;;  %2063 = vmatpush1.bf16.msra.mxu1 %v14458_v6  ;;  %v2308_v5 = vld [vmem:[#allocation13 + $0x1a0] sm:$0xff]  ;;  %v2305_v6 = vld [vmem:[#allocation13 + $0x188] sm:$0xff] }
 0x1a6   : > { %2021 = vmatprep.subr.bf16.mxu0 %v14465_v7  ;;  %2064 = vmatprep.subr.bf16.mxu1 %v14467_v8  ;;  %v14527_v7 = vcombine.high %v2304_v4, %v2308_v5  ;;  %v2309_v8 = vld [vmem:[#allocation13 + $0x1a8] sm:$0xff]  ;;  %v14526_v9 = vcombine.low %v2304_v4, %v2308_v5  ;;  %v2368_v5 = vld [vmem:[#allocation13 + $0x380] sm:$0xff] }
 0x1a7   : > { %v14529_v10 = vcombine.high %v2305_v6, %v2309_v8  ;;  %v14528_v11 = vcombine.low %v2305_v6, %v2309_v8  ;;  %v2372_v6 = vld [vmem:[#allocation13 + $0x3a0] sm:$0xff] }
 0x1a8   : > { %v14591_v8 = vcombine.high %v2368_v5, %v2372_v6 }
 0x1a9   : > { %2022 = vmatpush1.bf16.msra.mxu0 %v14464_v13  ;;  %2065 = vmatpush1.bf16.msra.mxu1 %v14466_v14  ;;  %v2316_v13 = vld [vmem:[#allocation13 + $0x1e0] sm:$0xff]  ;;  %v2313_v14 = vld [vmem:[#allocation13 + $0x1c8] sm:$0xff] }
 0x1aa   : > { %2023 = vmatprep.subr.bf16.mxu0 %v14473_v15  ;;  %2066 = vmatprep.subr.bf16.mxu1 %v14475_v16  ;;  %v14535_v15 = vcombine.high %v2312_v12, %v2316_v13  ;;  %v2317_v16 = vld [vmem:[#allocation13 + $0x1e8] sm:$0xff] }
 0x1ab   : > { %v14537_v19 = vcombine.high %v2313_v14, %v2317_v16 }
 0x1ad   : > { %2024 = vmatpush1.bf16.msra.mxu0 %v14472_v17  ;;  %2067 = vmatpush1.bf16.msra.mxu1 %v14474_v18  ;;  %v14534_v17 = vcombine.low %v2312_v12, %v2316_v13  ;;  %v14536_v18 = vcombine.low %v2313_v14, %v2317_v16  ;;  %v2376_v13 = vld [vmem:[#allocation13 + $0x3c0] sm:$0xff] }
 0x1ae   : > { %3024 = vmatprep.subr.bf16.mxu0 %v14479_v23  ;;  %3067 = vmatprep.subr.bf16.mxu1 %v14481_v28  ;;  %v2321_v23 = vld [vmem:[#allocation13 + $0x208] sm:$0xff]  ;;  %v2380_v14 = vld [vmem:[#allocation13 + $0x3e0] sm:$0xff] }
 0x1af   : > { %v14599_v16 = vcombine.high %v2376_v13, %v2380_v14 }
 0x1b0   : > { %2042 = vmatmul.mubr.bf16.vlgmr.msra.gmra.mrb[4].mxu0 %v17358_v26  ;;  %2085 = vmatmul.mubr.bf16.vlgmr.msra.gmra.mrb[4].mxu1 %v17358_v26  ;;  %v14489_v26 = vcombine.high %v2265_v31, %v2269_v33  ;;  %v2332_v31 = vld [vmem:[#allocation13 + $0x260] sm:$0xff] }
 0x1b1   : > { %3025 = vmatpush1.bf16.msra.mxu0 %v14478_v25  ;;  %3068 = vmatpush1.bf16.msra.mxu1 %v14480_v27  ;;  %v2325_v25 = vld [vmem:[#allocation13 + $0x228] sm:$0xff]  ;;  %v14542_v27 = vcombine.low %v2320_v20, %v2324_v21  ;;  %v14551_v33 = vcombine.high %v2328_v30, %v2332_v31  ;;  %v17366_v21 = vld [vmem:[#allocation13 + $0x10] sm:$0xff] }
 0x1b2   : > { %3026 = vmatprep.subr.bf16.mxu0 %v14487_v32  ;;  %3069 = vmatprep.subr.bf16.mxu1 %v14489_v26  ;;  %v14544_v28 = vcombine.low %v2321_v23, %v2325_v25  ;;  %v14545_v29 = vcombine.high %v2321_v23, %v2325_v25  ;;  %v2329_v32 = vld [vmem:[#allocation13 + $0x248] sm:$0xff]  ;;  %v17368_v23 = vld [vmem:[#allocation13 + $0x30] sm:$0xff] }
 0x1b3   : > { %v14483_v25 = vcombine.high %v17366_v21, %v17368_v23 }
 0x1b5   : > { %3027 = vmatpush1.bf16.msra.mxu0 %v14486_v34  ;;  %3070 = vmatpush1.bf16.msra.mxu1 %v14488_v35  ;;  %v2333_v34 = vld [vmem:[#allocation13 + $0x268] sm:$0xff]  ;;  %v14550_v35 = vcombine.low %v2328_v30, %v2332_v31  ;;  %v541_v31 = vlaneseq }
 0x1b6   : > { %3028 = vmatprep.subr.bf16.mxu0 %v14495_v39  ;;  %3071 = vmatprep.subr.bf16.mxu1 %v14497_v44  ;;  %v14552_v26 = vcombine.low %v2329_v32, %v2333_v34  ;;  %v14553_v36 = vcombine.high %v2329_v32, %v2333_v34  ;;  %v2337_v39 = vld [vmem:[#allocation13 + $0x288] sm:$0xff] }
 0x1b9   : > { %3029 = vmatpush1.bf16.msra.mxu0 %v14494_v42  ;;  %3072 = vmatpush1.bf16.msra.mxu1 %v14496_v43  ;;  %v2341_v42 = vld [vmem:[#allocation13 + $0x2a8] sm:$0xff]  ;;  %v14558_v43 = vcombine.low %v2336_v37, %v2340_v38  ;;  %v17382_v38 = vshrl.u32 %v541_v31, 7 }
 0x1ba   : > { %3030 = vmatprep.subr.bf16.mxu0 %v14503_v47  ;;  %3073 = vmatprep.subr.bf16.mxu1 %v14505_v51  ;;  %v14560_v44 = vcombine.low %v2337_v39, %v2341_v42  ;;  %v14561_v22 = vcombine.high %v2337_v39, %v2341_v42  ;;  %v2345_v47 = vld [vmem:[#allocation13 + $0x2c8] sm:$0xff]  ;;  %v539_v42 = vld [vmem:[%s18190_s5] sm:$0xff] }
 0x1bd   : > { %3031 = vmatpush1.bf16.msra.mxu0 %v14502_v49  ;;  %3074 = vmatpush1.bf16.msra.mxu1 %v14504_v50  ;;  %v2349_v49 = vld [vmem:[#allocation13 + $0x2e8] sm:$0xff]  ;;  %v14566_v50 = vcombine.low %v2344_v45, %v2348_v46  ;;  %v547_v45 = vsub.s32 1, %v17382_v38 }
 0x1be   : > { %3032 = vmatprep.subr.bf16.mxu0 %v14511_v53  ;;  %3075 = vmatprep.subr.bf16.mxu1 %v14513_v58  ;;  %v14568_v51 = vcombine.low %v2345_v47, %v2349_v49  ;;  %v14569_v52 = vcombine.high %v2345_v47, %v2349_v49  ;;  %v2356_v53 = vld [vmem:[#allocation13 + $0x320] sm:$0xff] }
 0x1bf   : > { %v14575_v55 = vcombine.high %v2352_v2, %v2356_v53  ;;  %v17402_v49 = vrot.slane %v539_v42, %v547_v45 }
 0x1c1   : > { %3033 = vmatpush1.bf16.msra.mxu0 %v14510_v56  ;;  %3076 = vmatpush1.bf16.msra.mxu1 %v14512_v57  ;;  %v2357_v56 = vld [vmem:[#allocation13 + $0x328] sm:$0xff]  ;;  %v14574_v57 = vcombine.low %v2352_v2, %v2356_v53 }
 0x1c2   : > { %3034 = vmatprep.subr.bf16.mxu0 %v14519_v61  ;;  %3077 = vmatprep.subr.bf16.mxu1 %v14521_v3  ;;  %v14576_v58 = vcombine.low %v2353_v54, %v2357_v56  ;;  %v14577_v59 = vcombine.high %v2353_v54, %v2357_v56  ;;  %v2364_v61 = vld [vmem:[#allocation13 + $0x360] sm:$0xff] }
 0x1c3   : > { %v14583_v63 = vcombine.high %v2360_v60, %v2364_v61 }
 0x1c5   : > { %3035 = vmatpush1.bf16.msra.mxu0 %v14518_v0  ;;  %3078 = vmatpush1.bf16.msra.mxu1 %v14520_v1  ;;  %v2365_v0 = vld [vmem:[#allocation13 + $0x368] sm:$0xff]  ;;  %v14582_v1 = vcombine.low %v2360_v60, %v2364_v61 }
 0x1c6   : > { %3036 = vmatprep.subr.bf16.mxu0 %v14527_v7  ;;  %3079 = vmatprep.subr.bf16.mxu1 %v14529_v10  ;;  %v14584_v3 = vcombine.low %v2361_v62, %v2365_v0  ;;  %v14585_v4 = vcombine.high %v2361_v62, %v2365_v0  ;;  %v2369_v7 = vld [vmem:[#allocation13 + $0x388] sm:$0xff]  ;;  %v14590_v10 = vcombine.low %v2368_v5, %v2372_v6  ;;  %v559_v62 = vsub.s32 4, %v17382_v38 }
 0x1c9   : > { %3037 = vmatpush1.bf16.msra.mxu0 %v14526_v9  ;;  %3080 = vmatpush1.bf16.msra.mxu1 %v14528_v11  ;;  %v2373_v9 = vld [vmem:[#allocation13 + $0x3a8] sm:$0xff] }
 0x1ca   : > { %3038 = vmatprep.subr.bf16.mxu0 %v14535_v15  ;;  %3081 = vmatprep.subr.bf16.mxu1 %v14537_v19  ;;  %v14592_v11 = vcombine.low %v2369_v7, %v2373_v9  ;;  %v14593_v12 = vcombine.high %v2369_v7, %v2373_v9  ;;  %v2377_v15 = vld [vmem:[#allocation13 + $0x3c8] sm:$0xff]  ;;  %v571_v7 = vsub.s32 7, %v17382_v38 }
 0x1cd   : > { %3039 = vmatpush1.bf16.msra.mxu0 %v14534_v17  ;;  %3082 = vmatpush1.bf16.msra.mxu1 %v14536_v18  ;;  %v2381_v17 = vld [vmem:[#allocation13 + $0x3e8] sm:$0xff]  ;;  %v14598_v18 = vcombine.low %v2376_v13, %v2380_v14 }
 0x1ce   : > { %3040 = vmatprep.subr.bf16.mxu0 %v14543_v24  ;;  %3083 = vmatprep.subr.bf16.mxu1 %v14545_v29  ;;  %v14600_v19 = vcombine.low %v2377_v15, %v2381_v17  ;;  %v14601_v20 = vcombine.high %v2377_v15, %v2381_v17  ;;  %v17370_v24 = vld [vmem:[#allocation13 + $0x18] sm:$0xff] }
 0x1d1   : > { %3041 = vmatpush1.bf16.msra.mxu0 %v14542_v27  ;;  %3084 = vmatpush1.bf16.msra.mxu1 %v14544_v28  ;;  %v17374_v27 = vld [vmem:[#allocation13 + $0x38] sm:$0xff]  ;;  %v14482_v28 = vcombine.low %v17366_v21, %v17368_v23 }
 0x1d2   : > { %3042 = vmatprep.subr.bf16.mxu0 %v14551_v33  ;;  %3085 = vmatprep.subr.bf16.mxu1 %v14553_v36  ;;  %v14484_v29 = vcombine.low %v17370_v24, %v17374_v27  ;;  %v14485_v30 = vcombine.high %v17370_v24, %v17374_v27 }
 0x1d5   : > { %3043 = vmatpush1.bf16.msra.mxu0 %v14550_v35  ;;  %3086 = vmatpush1.bf16.msra.mxu1 %v14552_v26 }
 0x1d6   : > { %3044 = vmatprep.subr.bf16.mxu0 %v14559_v40  ;;  %3087 = vmatprep.subr.bf16.mxu1 %v14561_v22  ;;  %v551_v40 = vsub.s32 2, %v17382_v38 }
 0x1d8   : > { %v17390_v22 = vrot.slane %v539_v42, %v551_v40 }
 0x1d9   : > { %3045 = vmatpush1.bf16.msra.mxu0 %v14558_v43  ;;  %3088 = vmatpush1.bf16.msra.mxu1 %v14560_v44  ;;  %v555_v43 = vsub.s32 3, %v17382_v38  ;;  %v543_v44 = vsub.s32 0, %v17382_v38 }
 0x1da   : > { %3046 = vmatprep.subr.bf16.mxu0 %v14567_v48  ;;  %3089 = vmatprep.subr.bf16.mxu1 %v14569_v52 }
 0x1db   : > { %v17393_v46 = vrot.slane %v539_v42, %v555_v43  ;;  %v17397_v47 = vrot.slane %v539_v42, %v543_v44 }
 0x1dd   : > { %3047 = vmatpush1.bf16.msra.mxu0 %v14566_v50  ;;  %3090 = vmatpush1.bf16.msra.mxu1 %v14568_v51 }
 0x1de   : > { %3048 = vmatprep.subr.bf16.mxu0 %v14575_v55  ;;  %3091 = vmatprep.subr.bf16.mxu1 %v14577_v59 }
 0x1e1   : > { %3049 = vmatpush1.bf16.msra.mxu0 %v14574_v57  ;;  %3092 = vmatpush1.bf16.msra.mxu1 %v14576_v58 }
 0x1e2   : > { %3050 = vmatprep.subr.bf16.mxu0 %v14583_v63  ;;  %3093 = vmatprep.subr.bf16.mxu1 %v14585_v4  ;;  %v563_v63 = vsub.s32 5, %v17382_v38  ;;  %v17414_v4 = vrot.slane %v539_v42, %v559_v62 }
 0x1e4   : > { %v17416_v5 = vrot.slane %v539_v42, %v563_v63 }
 0x1e5   : > { %3051 = vmatpush1.bf16.msra.mxu0 %v14582_v1  ;;  %3094 = vmatpush1.bf16.msra.mxu1 %v14584_v3  ;;  %v567_v1 = vsub.s32 6, %v17382_v38 }
 0x1e6   : > { %3052 = vmatprep.subr.bf16.mxu0 %v14591_v8  ;;  %3095 = vmatprep.subr.bf16.mxu1 %v14593_v12 }
 0x1e7   : > { %v17418_v6 = vrot.slane %v539_v42, %v567_v1 }
 0x1e9   : > { %3053 = vmatpush1.bf16.msra.mxu0 %v14590_v10  ;;  %3096 = vmatpush1.bf16.msra.mxu1 %v14592_v11 }
 0x1ea   : > { %3054 = vmatprep.subr.bf16.mxu0 %v14599_v16  ;;  %3097 = vmatprep.subr.bf16.mxu1 %v14601_v20 }
 0x1ed   : > { %3055 = vmatpush1.bf16.msra.mxu0 %v14598_v18  ;;  %3098 = vmatpush1.bf16.msra.mxu1 %v14600_v19  ;;  %v17424_v18 = vrot.slane %v539_v42, %v571_v7 }
 0x1ee   : > { %3110 = vmatprep.subr.bf16.mxu0 %v14483_v25  ;;  %3153 = vmatprep.subr.bf16.mxu1 %v14485_v30 }
 0x263   : > { %v1957_v32 = vpop.f32.mrb[0].mxu0  ;;  %v2000_v33 = vpop.f32.mrb[0].mxu1 }
 0x264   : > { %v1959_v34 = vpop.f32.mrb[1].mxu0  ;;  %v2002_v35 = vpop.f32.mrb[1].mxu1  ;;  %v2097_v48 = vadd.f32 %v2000_v33, %v17390_v22  ;;  %v2095_v52 = vadd.f32 %v1957_v32, %v17397_v47 }
 0x265   : > { %v1961_v26 = vpop.f32.mrb[2].mxu0  ;;  %v2004_v36 = vpop.f32.mrb[2].mxu1  ;;  %v2098_v50 = vadd.f32 %v2002_v35, %v17393_v46  ;;  %v2096_v53 = vadd.f32 %v1959_v34, %v17402_v49 }
 0x266   : > { %v1963_v37 = vpop.f32.mrb[3].mxu0  ;;  %v2006_v39 = vpop.f32.mrb[3].mxu1  ;;  %v2105_v51 = vadd.f32 %v2004_v36, %v17390_v22  ;;  %v2127_v2 = vmul.f32 0.5, %v2097_v48  ;;  %v2103_v55 = vadd.f32 %v1961_v26, %v17397_v47  ;;  %v2111_v57 = vmul.f32 0.5, %v2095_v52 }
 0x267   : > { %v2128_v54 = vmul.f32 0.5, %v2098_v50  ;;  %v2106_v58 = vadd.f32 %v2006_v39, %v17393_v46  ;;  %v2112_v59 = vmul.f32 0.5, %v2096_v53  ;;  %v2104_v61 = vadd.f32 %v1963_v37, %v17402_v49 }
 0x268   : > { %v2129_v56 = vmul.f32 0.5, %v2105_v51  ;;  %16303 = vtanh.f32 %v2127_v2  ;;  %v2113_v60 = vmul.f32 0.5, %v2103_v55  ;;  %v585_v55 = vld [vmem:[#allocation3] sm:$0xff] }
 0x269   : > { %16305 = vtanh.f32 %v2128_v54  ;;  %v2130_v0 = vmul.f32 0.5, %v2106_v58  ;;  %v2114_v3 = vmul.f32 0.5, %v2104_v61  ;;  %v587_v61 = vld [vmem:[#allocation3 + $0x10] sm:$0xff] }
 0x26a   : > { %16307 = vtanh.f32 %v2129_v56 }
 0x26b   : > { %16309 = vtanh.f32 %v2111_v57 }
 0x26c   : > { %16311 = vtanh.f32 %v2112_v59 }
 0x26d   : > { %16313 = vtanh.f32 %v2113_v60  ;;  %v586_v60 = vld [vmem:[#allocation3 + $0x8] sm:$0xff] }
 0x26e   : > { %16315 = vtanh.f32 %v2130_v0 }
 0x26f   : > { %16317 = vtanh.f32 %v2114_v3 }
 0x272   : > { %v16304_v12 = vpop.eup %16303 }
 0x273   : > { %v16306_v16 = vpop.eup %16305  ;;  %v2135_v26 = vmul.f32 0.5, %v16304_v12 }
 0x274   : > { %v16308_v30 = vpop.eup %16307  ;;  %v2136_v37 = vmul.f32 0.5, %v16306_v16 }
 0x275   : > { %v16310_v33 = vpop.eup %16309  ;;  %v2137_v39 = vmul.f32 0.5, %v16308_v30  ;;  %v2139_v2 = vadd.f32 0.5, %v2135_v26 }
 0x276   : > { %v16312_v35 = vpop.eup %16311  ;;  %v2119_v43 = vmul.f32 0.5, %v16310_v33  ;;  %v2140_v56 = vadd.f32 0.5, %v2136_v37 }
 0x277   : > { %v16314_v36 = vpop.eup %16313  ;;  %v2120_v52 = vmul.f32 0.5, %v16312_v35  ;;  %v2141_v57 = vadd.f32 0.5, %v2137_v39  ;;  %v2163_v7 = vmul.f32 %v2139_v2, %v585_v55 }
 0x278   : > { %v16316_v51 = vpop.eup %16315  ;;  %v2121_v53 = vmul.f32 0.5, %v16314_v36  ;;  %v2123_v59 = vadd.f32 0.5, %v2119_v43  ;;  %v2164_v12 = vmul.f32 %v2140_v56, %v586_v60 }
 0x279   : > { %v16318_v54 = vpop.eup %16317  ;;  %v2138_v62 = vmul.f32 0.5, %v16316_v51  ;;  %v2124_v1 = vadd.f32 0.5, %v2120_v52 }
 0x283   : > { %v2043_v8 = vpop.f32.mrb[4].mxu0  ;;  %v2086_v10 = vpop.f32.mrb[4].mxu1 }
 0x284   : > { %v2099_v9 = vadd.f32 %v2043_v8, %v17414_v4  ;;  %v2045_v11 = vpop.f32.mrb[5].mxu0  ;;  %v2088_v14 = vpop.f32.mrb[5].mxu1  ;;  %v2101_v17 = vadd.f32 %v2086_v10, %v17418_v6  ;;  %v2125_v8 = vadd.f32 0.5, %v2121_v53 }
 0x285   : > { %v2100_v13 = vadd.f32 %v2045_v11, %v17416_v5  ;;  %v2047_v15 = vpop.f32.mrb[6].mxu0  ;;  %v2090_v20 = vpop.f32.mrb[6].mxu1  ;;  %v2102_v42 = vadd.f32 %v2088_v14, %v17424_v18 }
 0x286   : > { %16319 = vtanh.f32 %v2099_v9  ;;  %v2107_v19 = vadd.f32 %v2047_v15, %v17414_v4  ;;  %v2049_v25 = vpop.f32.mrb[7].mxu0  ;;  %v2109_v31 = vadd.f32 %v2090_v20, %v17418_v6  ;;  %v2092_v32 = vpop.f32.mrb[7].mxu1  ;;  %v2147_v40 = vmul.f32 0.5, %v2101_v17 }
 0x287   : > { %16321 = vtanh.f32 %v2100_v13  ;;  %v2108_v34 = vadd.f32 %v2049_v25, %v17416_v5  ;;  %v2110_v50 = vadd.f32 %v2092_v32, %v17424_v18  ;;  %v2148_v58 = vmul.f32 0.5, %v2102_v42 }
 0x288   : > { %16323 = vtanh.f32 %v2107_v19  ;;  %v2149_v48 = vmul.f32 0.5, %v2109_v31  ;;  %v2122_v9 = vmul.f32 0.5, %v16318_v54  ;;  %v2165_v13 = vmul.f32 %v2141_v57, %v587_v61  ;;  %v588_v19 = vld [vmem:[#allocation3 + $0x18] sm:$0xff]  ;;  %v2266_v61 = vld [vmem:[#allocation13 + $0x50] sm:$0xff] }
 0x289   : > { %16325 = vtanh.f32 %v2108_v34  ;;  %v2150_v63 = vmul.f32 0.5, %v2110_v50  ;;  %v2142_v15 = vadd.f32 0.5, %v2138_v62  ;;  %v2270_v62 = vld [vmem:[#allocation13 + $0x70] sm:$0xff] }
 0x28a   : > { %16327 = vtanh.f32 %v2147_v40  ;;  %v2126_v25 = vadd.f32 0.5, %v2122_v9  ;;  %v2278_v9 = vld [vmem:[#allocation13 + $0xb0] sm:$0xff] }
 0x28b   : > { %16329 = vtanh.f32 %v2149_v48  ;;  %v2166_v32 = vmul.f32 %v2142_v15, %v588_v19  ;;  %v2286_v19 = vld [vmem:[#allocation13 + $0xf0] sm:$0xff] }
 0x28c   : > { %16331 = vtanh.f32 %v2148_v58 }
 0x28d   : > { %16333 = vtanh.f32 %v2150_v63  ;;  %v2267_v63 = vld [vmem:[#allocation13 + $0x58] sm:$0xff] }
 0x290   : > { %v16320_v0 = vpop.eup %16319 }
 0x291   : > { %v16322_v3 = vpop.eup %16321  ;;  %v2167_v10 = vmul.f32 %v16320_v0, %v2123_v59  ;;  %v2271_v0 = vld [vmem:[#allocation13 + $0x78] sm:$0xff] }
 0x292   : > { %v16324_v11 = vpop.eup %16323  ;;  %v2168_v14 = vmul.f32 %v16322_v3, %v2124_v1  ;;  %v2274_v3 = vld [vmem:[#allocation13 + $0x90] sm:$0xff] }
 0x293   : > { %v17431_v16 = vadd.f32 %v2167_v10, %v2163_v7  ;;  %v2169_v17 = vmul.f32 %v16324_v11, %v2125_v8  ;;  %v16326_v31 = vpop.eup %16325  ;;  %v14491_v7 = vcombine.high %v2266_v61, %v2270_v62  ;;  %v14493_v8 = vcombine.high %v2267_v63, %v2271_v0  ;;  %v2275_v10 = vld [vmem:[#allocation13 + $0x98] sm:$0xff] }
 0x294   : > { %v17433_v20 = vadd.f32 %v2168_v14, %v2164_v12  ;;  %v2170_v33 = vmul.f32 %v16326_v31, %v2126_v25  ;;  %v16328_v34 = vpop.eup %16327  ;;  %v2279_v11 = vld [vmem:[#allocation13 + $0xb8] sm:$0xff]  ;;  %v14490_v12 = vcombine.low %v2266_v61, %v2270_v62  ;;  %v14499_v14 = vcombine.high %v2274_v3, %v2278_v9  ;;  %v2314_v61 = vld [vmem:[#allocation13 + $0x1d0] sm:$0xff] }
 0x295   : > { %16335 = vtanh.f32 %v17431_v16  ;;  %v17436_v30 = vadd.f32 %v2169_v17, %v2165_v13  ;;  %v16330_v35 = vpop.eup %16329  ;;  %v2155_v37 = vmul.f32 0.5, %v16328_v34  ;;  %v14492_v13 = vcombine.low %v2267_v63, %v2271_v0  ;;  %v2282_v17 = vld [vmem:[#allocation13 + $0xd0] sm:$0xff]  ;;  %v2283_v25 = vld [vmem:[#allocation13 + $0xd8] sm:$0xff] }
 0x296   : > { %v17440_v26 = vadd.f32 %v2170_v33, %v2166_v32  ;;  %v16332_v36 = vpop.eup %16331  ;;  %v2157_v39 = vmul.f32 0.5, %v16330_v35  ;;  %v14501_v15 = vcombine.high %v2275_v10, %v2279_v11  ;;  %v2287_v31 = vld [vmem:[#allocation13 + $0xf8] sm:$0xff]  ;;  %v14498_v21 = vcombine.low %v2274_v3, %v2278_v9  ;;  %v2318_v62 = vld [vmem:[#allocation13 + $0x1f0] sm:$0xff] }
 0x297   : > { %16337 = vtanh.f32 %v17436_v30  ;;  %v16334_v40 = vpop.eup %16333  ;;  %v2159_v43 = vadd.f32 0.5, %v2155_v37  ;;  %v2156_v48 = vmul.f32 0.5, %v16332_v36  ;;  %v14500_v23 = vcombine.low %v2275_v10, %v2279_v11  ;;  %v2291_v32 = vld [vmem:[#allocation13 + $0x118] sm:$0xff]  ;;  %v2322_v10 = vld [vmem:[#allocation13 + $0x210] sm:$0xff] }
 0x298   : > { %16339 = vtanh.f32 %v17433_v20  ;;  %v2161_v50 = vadd.f32 0.5, %v2157_v39  ;;  %v2158_v51 = vmul.f32 0.5, %v16334_v40  ;;  %v14507_v24 = vcombine.high %v2282_v17, %v2286_v19  ;;  %v2295_v33 = vld [vmem:[#allocation13 + $0x138] sm:$0xff]  ;;  %v2298_v39 = vld [vmem:[#allocation13 + $0x150] sm:$0xff] }
 0x299   : > { %16341 = vtanh.f32 %v17440_v26  ;;  %v2160_v55 = vadd.f32 0.5, %v2156_v48  ;;  %v14509_v27 = vcombine.high %v2283_v25, %v2287_v31  ;;  %v14506_v34 = vcombine.low %v2282_v17, %v2286_v19  ;;  %v2302_v40 = vld [vmem:[#allocation13 + $0x170] sm:$0xff]  ;;  %v2315_v63 = vld [vmem:[#allocation13 + $0x1d8] sm:$0xff] }
 0x29a   : > { %v2162_v57 = vadd.f32 0.5, %v2158_v51  ;;  %v14508_v35 = vcombine.low %v2283_v25, %v2287_v31  ;;  %v14517_v37 = vcombine.high %v2291_v32, %v2295_v33  ;;  %v14523_v51 = vcombine.high %v2298_v39, %v2302_v40  ;;  %v2319_v0 = vld [vmem:[#allocation13 + $0x1f8] sm:$0xff]  ;;  %v2326_v11 = vld [vmem:[#allocation13 + $0x230] sm:$0xff] }
 0x29b   : > { %v14541_v9 = vcombine.high %v2315_v63, %v2319_v0  ;;  %v14547_v17 = vcombine.high %v2322_v10, %v2326_v11  ;;  %v2330_v25 = vld [vmem:[#allocation13 + $0x250] sm:$0xff] }
 0x29c   : > { %v2334_v31 = vld [vmem:[#allocation13 + $0x270] sm:$0xff] }
 0x29f   : > { %v16336_v42 = vpop.eup %16335 }
 0x2a0   : > { %v2179_v2 = vmul.f32 %v16336_v42, %v2159_v43  ;;  %v2299_v42 = vld [vmem:[#allocation13 + $0x158] sm:$0xff] }
 0x2a1   : > { %v16338_v52 = vpop.eup %16337  ;;  %v2303_v43 = vld [vmem:[#allocation13 + $0x178] sm:$0xff] }
 0x2a2   : > { %v2181_v53 = vmul.f32 %v16338_v52, %v2161_v50  ;;  %v16340_v54 = vpop.eup %16339  ;;  %v14516_v50 = vcombine.low %v2291_v32, %v2295_v33  ;;  %v14525_v52 = vcombine.high %v2299_v42, %v2303_v43  ;;  %v2338_v32 = vld [vmem:[#allocation13 + $0x290] sm:$0xff] }
 0x2a3   : > { %v16342_v58 = vpop.eup %16341  ;;  %v2180_v59 = vmul.f32 %v16340_v54, %v2160_v55  ;;  %v2307_v54 = vld [vmem:[#allocation13 + $0x198] sm:$0xff]  ;;  %v2342_v33 = vld [vmem:[#allocation13 + $0x2b0] sm:$0xff] }
 0x2a4   : > { %v17443_v56 = vpack.c.bf16 %v2181_v53, %v2179_v2  ;;  %v2182_v60 = vmul.f32 %v16342_v58, %v2162_v57  ;;  %v2306_v2 = vld [vmem:[#allocation13 + $0x190] sm:$0xff]  ;;  %v2311_v55 = vld [vmem:[#allocation13 + $0x1b8] sm:$0xff]  ;;  %v14522_v57 = vcombine.low %v2298_v39, %v2302_v40  ;;  %v14524_v58 = vcombine.low %v2299_v42, %v2303_v43 }
 0x2a5   : > { %v2310_v53 = vld [vmem:[#allocation13 + $0x1b0] sm:$0xff]  ;;  %v14563_v39 = vcombine.high %v2338_v32, %v2342_v33 }
 0x2a6   : > { %v17445_v1 = vpack.c.bf16 %v2182_v60, %v2180_v59  ;;  %v14531_v59 = vcombine.high %v2306_v2, %v2310_v53  ;;  %v14533_v60 = vcombine.high %v2307_v54, %v2311_v55  ;;  %v14530_v3 = vcombine.low %v2306_v2, %v2310_v53  ;;  %v2346_v42 = vld [vmem:[#allocation13 + $0x2d0] sm:$0xff] }
 0x2a7   : > { %v2350_v43 = vld [vmem:[#allocation13 + $0x2f0] sm:$0xff] }
 0x2a8   : > { %3056 = vmatprep.mubr.bf16.mxu0 %v17445_v1  ;;  %3099 = vmatprep.mubr.bf16.mxu1 %v17445_v1  ;;  %v14571_v2 = vcombine.high %v2346_v42, %v2350_v43 }
 0x2a9   : > { %3057 = vmatmul.mubr.bf16.vlgmr.msra.gmra.mrb[8].mxu0 %v17443_v56  ;;  %3100 = vmatmul.mubr.bf16.vlgmr.msra.gmra.mrb[8].mxu1 %v17443_v56 }
 0x2aa   : > { %3111 = vmatpush1.bf16.msra.mxu0 %v14482_v28  ;;  %3154 = vmatpush1.bf16.msra.mxu1 %v14484_v29  ;;  %v2290_v28 = vld [vmem:[#allocation13 + $0x110] sm:$0xff] }
 0x2ab   : > { %3142 = vmatprep.mubr.bf16.mxu0 %v17445_v1  ;;  %3185 = vmatprep.mubr.bf16.mxu1 %v17445_v1  ;;  %v2294_v29 = vld [vmem:[#allocation13 + $0x130] sm:$0xff] }
 0x2ac   : > { %3112 = vmatprep.subr.bf16.mxu0 %v14491_v7  ;;  %3155 = vmatprep.subr.bf16.mxu1 %v14493_v8  ;;  %v14515_v36 = vcombine.high %v2290_v28, %v2294_v29  ;;  %v14514_v48 = vcombine.low %v2290_v28, %v2294_v29  ;;  %v14532_v7 = vcombine.low %v2307_v54, %v2311_v55  ;;  %v2354_v54 = vld [vmem:[#allocation13 + $0x310] sm:$0xff] }
 0x2ad   : > { %v14539_v8 = vcombine.high %v2314_v61, %v2318_v62  ;;  %v14555_v28 = vcombine.high %v2330_v25, %v2334_v31  ;;  %v2358_v55 = vld [vmem:[#allocation13 + $0x330] sm:$0xff] }
 0x2ae   : > { %3113 = vmatpush1.bf16.msra.mxu0 %v14490_v12  ;;  %3156 = vmatpush1.bf16.msra.mxu1 %v14492_v13  ;;  %v2323_v12 = vld [vmem:[#allocation13 + $0x218] sm:$0xff] }
 0x2af   : > { %3114 = vmatprep.subr.bf16.mxu0 %v14499_v14  ;;  %3157 = vmatprep.subr.bf16.mxu1 %v14501_v15  ;;  %v2327_v13 = vld [vmem:[#allocation13 + $0x238] sm:$0xff]  ;;  %v14538_v14 = vcombine.low %v2314_v61, %v2318_v62  ;;  %v14540_v15 = vcombine.low %v2315_v63, %v2319_v0  ;;  %v14579_v61 = vcombine.high %v2354_v54, %v2358_v55  ;;  %v2362_v63 = vld [vmem:[#allocation13 + $0x350] sm:$0xff] }
 0x2b0   : > { %v14549_v19 = vcombine.high %v2323_v12, %v2327_v13  ;;  %v2366_v0 = vld [vmem:[#allocation13 + $0x370] sm:$0xff] }
 0x2b2   : > { %3115 = vmatpush1.bf16.msra.mxu0 %v14498_v21  ;;  %3158 = vmatpush1.bf16.msra.mxu1 %v14500_v23  ;;  %v2331_v21 = vld [vmem:[#allocation13 + $0x258] sm:$0xff] }
 0x2b3   : > { %3116 = vmatprep.subr.bf16.mxu0 %v14507_v24  ;;  %3159 = vmatprep.subr.bf16.mxu1 %v14509_v27  ;;  %v2335_v23 = vld [vmem:[#allocation13 + $0x278] sm:$0xff]  ;;  %v14546_v24 = vcombine.low %v2322_v10, %v2326_v11  ;;  %v14548_v27 = vcombine.low %v2323_v12, %v2327_v13  ;;  %v14587_v10 = vcombine.high %v2362_v63, %v2366_v0  ;;  %v2370_v12 = vld [vmem:[#allocation13 + $0x390] sm:$0xff] }
 0x2b4   : > { %v14557_v29 = vcombine.high %v2331_v21, %v2335_v23  ;;  %v2374_v13 = vld [vmem:[#allocation13 + $0x3b0] sm:$0xff] }
 0x2b6   : > { %3117 = vmatpush1.bf16.msra.mxu0 %v14506_v34  ;;  %3160 = vmatpush1.bf16.msra.mxu1 %v14508_v35  ;;  %v2339_v34 = vld [vmem:[#allocation13 + $0x298] sm:$0xff] }
 0x2b7   : > { %3118 = vmatprep.subr.bf16.mxu0 %v14515_v36  ;;  %3161 = vmatprep.subr.bf16.mxu1 %v14517_v37  ;;  %v2343_v35 = vld [vmem:[#allocation13 + $0x2b8] sm:$0xff]  ;;  %v14554_v36 = vcombine.low %v2330_v25, %v2334_v31  ;;  %v14556_v37 = vcombine.low %v2331_v21, %v2335_v23  ;;  %v14595_v25 = vcombine.high %v2370_v12, %v2374_v13  ;;  %v2378_v21 = vld [vmem:[#allocation13 + $0x3d0] sm:$0xff] }
 0x2b8   : > { %v14565_v40 = vcombine.high %v2339_v34, %v2343_v35  ;;  %v2382_v23 = vld [vmem:[#allocation13 + $0x3f0] sm:$0xff] }
 0x2ba   : > { %3119 = vmatpush1.bf16.msra.mxu0 %v14514_v48  ;;  %3162 = vmatpush1.bf16.msra.mxu1 %v14516_v50  ;;  %v2347_v48 = vld [vmem:[#allocation13 + $0x2d8] sm:$0xff] }
 0x2bb   : > { %3120 = vmatprep.subr.bf16.mxu0 %v14523_v51  ;;  %3163 = vmatprep.subr.bf16.mxu1 %v14525_v52  ;;  %v2351_v50 = vld [vmem:[#allocation13 + $0x2f8] sm:$0xff]  ;;  %v14562_v51 = vcombine.low %v2338_v32, %v2342_v33  ;;  %v14564_v52 = vcombine.low %v2339_v34, %v2343_v35  ;;  %v14603_v32 = vcombine.high %v2378_v21, %v2382_v23  ;;  %v2190_v34 = vld [vmem:[#allocation11] sm:$0xff] }
 0x2bc   : > { %v14573_v53 = vcombine.high %v2347_v48, %v2351_v50  ;;  %v2194_v35 = vld [vmem:[#allocation11 + $0x20] sm:$0xff] }
 0x2be   : > { %3121 = vmatpush1.bf16.msra.mxu0 %v14522_v57  ;;  %3164 = vmatpush1.bf16.msra.mxu1 %v14524_v58  ;;  %v2355_v57 = vld [vmem:[#allocation13 + $0x318] sm:$0xff] }
 0x2bf   : > { %3122 = vmatprep.subr.bf16.mxu0 %v14531_v59  ;;  %3165 = vmatprep.subr.bf16.mxu1 %v14533_v60  ;;  %v2359_v58 = vld [vmem:[#allocation13 + $0x338] sm:$0xff]  ;;  %v14570_v59 = vcombine.low %v2346_v42, %v2350_v43  ;;  %v14572_v60 = vcombine.low %v2347_v48, %v2351_v50  ;;  %v14608_v42 = vcombine.high %v2190_v34, %v2194_v35  ;;  %v2198_v48 = vld [vmem:[#allocation11 + $0x40] sm:$0xff] }
 0x2c0   : > { %v14581_v62 = vcombine.high %v2355_v57, %v2359_v58  ;;  %v2202_v50 = vld [vmem:[#allocation11 + $0x60] sm:$0xff] }
 0x2c2   : > { %3123 = vmatpush1.bf16.msra.mxu0 %v14530_v3  ;;  %3166 = vmatpush1.bf16.msra.mxu1 %v14532_v7  ;;  %v2363_v3 = vld [vmem:[#allocation13 + $0x358] sm:$0xff] }
 0x2c3   : > { %3124 = vmatprep.subr.bf16.mxu0 %v14539_v8  ;;  %3167 = vmatprep.subr.bf16.mxu1 %v14541_v9  ;;  %v2367_v7 = vld [vmem:[#allocation13 + $0x378] sm:$0xff]  ;;  %v14578_v8 = vcombine.low %v2354_v54, %v2358_v55  ;;  %v14580_v9 = vcombine.low %v2355_v57, %v2359_v58  ;;  %v14616_v54 = vcombine.high %v2198_v48, %v2202_v50  ;;  %v2206_v57 = vld [vmem:[#allocation11 + $0x80] sm:$0xff] }
 0x2c4   : > { %v14589_v11 = vcombine.high %v2363_v3, %v2367_v7  ;;  %v2210_v58 = vld [vmem:[#allocation11 + $0xa0] sm:$0xff] }
 0x2c6   : > { %3125 = vmatpush1.bf16.msra.mxu0 %v14538_v14  ;;  %3168 = vmatpush1.bf16.msra.mxu1 %v14540_v15  ;;  %v2371_v14 = vld [vmem:[#allocation13 + $0x398] sm:$0xff] }
 0x2c7   : > { %3126 = vmatprep.subr.bf16.mxu0 %v14547_v17  ;;  %3169 = vmatprep.subr.bf16.mxu1 %v14549_v19  ;;  %v2375_v15 = vld [vmem:[#allocation13 + $0x3b8] sm:$0xff]  ;;  %v14586_v17 = vcombine.low %v2362_v63, %v2366_v0  ;;  %v14588_v19 = vcombine.low %v2363_v3, %v2367_v7  ;;  %v14624_v63 = vcombine.high %v2206_v57, %v2210_v58  ;;  %v2214_v3 = vld [vmem:[#allocation11 + $0xc0] sm:$0xff] }
 0x2c8   : > { %v14597_v31 = vcombine.high %v2371_v14, %v2375_v15  ;;  %v2218_v7 = vld [vmem:[#allocation11 + $0xe0] sm:$0xff] }
 0x2ca   : > { %3127 = vmatpush1.bf16.msra.mxu0 %v14546_v24  ;;  %3170 = vmatpush1.bf16.msra.mxu1 %v14548_v27  ;;  %v2379_v24 = vld [vmem:[#allocation13 + $0x3d8] sm:$0xff] }
 0x2cb   : > { %3128 = vmatprep.subr.bf16.mxu0 %v14555_v28  ;;  %3171 = vmatprep.subr.bf16.mxu1 %v14557_v29  ;;  %v2383_v27 = vld [vmem:[#allocation13 + $0x3f8] sm:$0xff]  ;;  %v14594_v28 = vcombine.low %v2370_v12, %v2374_v13  ;;  %v14596_v29 = vcombine.low %v2371_v14, %v2375_v15  ;;  %v14632_v12 = vcombine.high %v2214_v3, %v2218_v7  ;;  %v2222_v14 = vld [vmem:[#allocation11 + $0x100] sm:$0xff] }
 0x2cc   : > { %v14605_v33 = vcombine.high %v2379_v24, %v2383_v27  ;;  %v2226_v15 = vld [vmem:[#allocation11 + $0x120] sm:$0xff] }
 0x2ce   : > { %3129 = vmatpush1.bf16.msra.mxu0 %v14554_v36  ;;  %3172 = vmatpush1.bf16.msra.mxu1 %v14556_v37  ;;  %v2191_v36 = vld [vmem:[#allocation11 + $0x8] sm:$0xff] }
 0x2cf   : > { %3130 = vmatprep.subr.bf16.mxu0 %v14563_v39  ;;  %3173 = vmatprep.subr.bf16.mxu1 %v14565_v40  ;;  %v2195_v37 = vld [vmem:[#allocation11 + $0x28] sm:$0xff]  ;;  %v14602_v39 = vcombine.low %v2378_v21, %v2382_v23  ;;  %v14604_v40 = vcombine.low %v2379_v24, %v2383_v27  ;;  %v14640_v21 = vcombine.high %v2222_v14, %v2226_v15  ;;  %v2230_v24 = vld [vmem:[#allocation11 + $0x140] sm:$0xff] }
 0x2d0   : > { %v14610_v43 = vcombine.high %v2191_v36, %v2195_v37  ;;  %v2234_v27 = vld [vmem:[#allocation11 + $0x160] sm:$0xff] }
 0x2d2   : > { %3131 = vmatpush1.bf16.msra.mxu0 %v14562_v51  ;;  %3174 = vmatpush1.bf16.msra.mxu1 %v14564_v52  ;;  %v2199_v51 = vld [vmem:[#allocation11 + $0x48] sm:$0xff] }
 0x2d3   : > { %3132 = vmatprep.subr.bf16.mxu0 %v14571_v2  ;;  %3175 = vmatprep.subr.bf16.mxu1 %v14573_v53  ;;  %v2203_v52 = vld [vmem:[#allocation11 + $0x68] sm:$0xff]  ;;  %v14607_v2 = vcombine.low %v2190_v34, %v2194_v35  ;;  %v14609_v53 = vcombine.low %v2191_v36, %v2195_v37  ;;  %v14648_v34 = vcombine.high %v2230_v24, %v2234_v27  ;;  %v2238_v36 = vld [vmem:[#allocation11 + $0x180] sm:$0xff] }
 0x2d4   : > { %v14618_v55 = vcombine.high %v2199_v51, %v2203_v52  ;;  %v2242_v37 = vld [vmem:[#allocation11 + $0x1a0] sm:$0xff] }
 0x2d6   : > { %3133 = vmatpush1.bf16.msra.mxu0 %v14570_v59  ;;  %3176 = vmatpush1.bf16.msra.mxu1 %v14572_v60  ;;  %v2207_v59 = vld [vmem:[#allocation11 + $0x88] sm:$0xff] }
 0x2d7   : > { %3134 = vmatprep.subr.bf16.mxu0 %v14579_v61  ;;  %3177 = vmatprep.subr.bf16.mxu1 %v14581_v62  ;;  %v2211_v60 = vld [vmem:[#allocation11 + $0xa8] sm:$0xff]  ;;  %v14615_v61 = vcombine.low %v2198_v48, %v2202_v50  ;;  %v14617_v62 = vcombine.low %v2199_v51, %v2203_v52  ;;  %v14656_v48 = vcombine.high %v2238_v36, %v2242_v37  ;;  %v2246_v51 = vld [vmem:[#allocation11 + $0x1c0] sm:$0xff] }
 0x2d8   : > { %v14626_v0 = vcombine.high %v2207_v59, %v2211_v60  ;;  %v2250_v52 = vld [vmem:[#allocation11 + $0x1e0] sm:$0xff] }
 0x2da   : > { %3135 = vmatpush1.bf16.msra.mxu0 %v14578_v8  ;;  %3178 = vmatpush1.bf16.msra.mxu1 %v14580_v9  ;;  %v2215_v8 = vld [vmem:[#allocation11 + $0xc8] sm:$0xff] }
 0x2db   : > { %3136 = vmatprep.subr.bf16.mxu0 %v14587_v10  ;;  %3179 = vmatprep.subr.bf16.mxu1 %v14589_v11  ;;  %v2219_v9 = vld [vmem:[#allocation11 + $0xe8] sm:$0xff]  ;;  %v14623_v10 = vcombine.low %v2206_v57, %v2210_v58  ;;  %v14625_v11 = vcombine.low %v2207_v59, %v2211_v60  ;;  %v14664_v57 = vcombine.high %v2246_v51, %v2250_v52  ;;  %v2192_v59 = vld [vmem:[#allocation11 + $0x10] sm:$0xff] }
 0x2dc   : > { %v14634_v13 = vcombine.high %v2215_v8, %v2219_v9  ;;  %v2196_v60 = vld [vmem:[#allocation11 + $0x30] sm:$0xff] }
 0x2de   : > { %3137 = vmatpush1.bf16.msra.mxu0 %v14586_v17  ;;  %3180 = vmatpush1.bf16.msra.mxu1 %v14588_v19  ;;  %v2223_v17 = vld [vmem:[#allocation11 + $0x108] sm:$0xff] }
 0x2df   : > { %3138 = vmatprep.subr.bf16.mxu0 %v14595_v25  ;;  %3181 = vmatprep.subr.bf16.mxu1 %v14597_v31  ;;  %v2227_v19 = vld [vmem:[#allocation11 + $0x128] sm:$0xff]  ;;  %v14631_v25 = vcombine.low %v2214_v3, %v2218_v7  ;;  %v14633_v31 = vcombine.low %v2215_v8, %v2219_v9  ;;  %v14612_v3 = vcombine.high %v2192_v59, %v2196_v60  ;;  %v2200_v8 = vld [vmem:[#allocation11 + $0x50] sm:$0xff] }
 0x2e0   : > { %v14642_v23 = vcombine.high %v2223_v17, %v2227_v19  ;;  %v2204_v9 = vld [vmem:[#allocation11 + $0x70] sm:$0xff] }
 0x2e2   : > { %3139 = vmatpush1.bf16.msra.mxu0 %v14594_v28  ;;  %3182 = vmatpush1.bf16.msra.mxu1 %v14596_v29  ;;  %v2231_v28 = vld [vmem:[#allocation11 + $0x148] sm:$0xff] }
 0x2e3   : > { %3140 = vmatprep.subr.bf16.mxu0 %v14603_v32  ;;  %3183 = vmatprep.subr.bf16.mxu1 %v14605_v33  ;;  %v2235_v29 = vld [vmem:[#allocation11 + $0x168] sm:$0xff]  ;;  %v14639_v32 = vcombine.low %v2222_v14, %v2226_v15  ;;  %v14641_v33 = vcombine.low %v2223_v17, %v2227_v19  ;;  %v14620_v15 = vcombine.high %v2200_v8, %v2204_v9  ;;  %v2208_v19 = vld [vmem:[#allocation11 + $0x90] sm:$0xff] }
 0x2e4   : > { %v14650_v35 = vcombine.high %v2231_v28, %v2235_v29 }
 0x2e6   : > { %3141 = vmatpush1.bf16.msra.mxu0 %v14602_v39  ;;  %3184 = vmatpush1.bf16.msra.mxu1 %v14604_v40  ;;  %v2239_v39 = vld [vmem:[#allocation11 + $0x188] sm:$0xff] }
 0x2e7   : > { %3522 = vmatprep.subr.bf16.mxu0 %v14608_v42  ;;  %3565 = vmatprep.subr.bf16.mxu1 %v14610_v43  ;;  %v2243_v40 = vld [vmem:[#allocation11 + $0x1a8] sm:$0xff]  ;;  %v14647_v42 = vcombine.low %v2230_v24, %v2234_v27  ;;  %v14649_v43 = vcombine.low %v2231_v28, %v2235_v29  ;;  %v2216_v29 = vld [vmem:[#allocation11 + $0xd0] sm:$0xff] }
 0x2e8   : > { %v14658_v50 = vcombine.high %v2239_v39, %v2243_v40 }
 0x2e9   : > { %3143 = vmatmul.mubr.bf16.vlgmr.msra.gmra.mrb[12].mxu0 %v17443_v56  ;;  %3186 = vmatmul.mubr.bf16.vlgmr.msra.gmra.mrb[12].mxu1 %v17443_v56 }
 0x2ea   : > { %3523 = vmatpush1.bf16.msra.mxu0 %v14607_v2  ;;  %3566 = vmatpush1.bf16.msra.mxu1 %v14609_v53  ;;  %v2247_v2 = vld [vmem:[#allocation11 + $0x1c8] sm:$0xff] }
 0x2eb   : > { %3524 = vmatprep.subr.bf16.mxu0 %v14616_v54  ;;  %3567 = vmatprep.subr.bf16.mxu1 %v14618_v55  ;;  %v2251_v53 = vld [vmem:[#allocation11 + $0x1e8] sm:$0xff]  ;;  %v14655_v54 = vcombine.low %v2238_v36, %v2242_v37  ;;  %v14657_v55 = vcombine.low %v2239_v39, %v2243_v40  ;;  %v2224_v40 = vld [vmem:[#allocation11 + $0x110] sm:$0xff] }
 0x2ec   : > { %3554 = vmatprep.mubr.bf16.mxu0 %v16972_v41  ;;  %3597 = vmatprep.mubr.bf16.mxu1 %v16972_v41  ;;  %v14666_v58 = vcombine.high %v2247_v2, %v2251_v53 }
 0x2ee   : > { %3525 = vmatpush1.bf16.msra.mxu0 %v14615_v61  ;;  %3568 = vmatpush1.bf16.msra.mxu1 %v14617_v62  ;;  %v2193_v61 = vld [vmem:[#allocation11 + $0x18] sm:$0xff] }
 0x2ef   : > { %3526 = vmatprep.subr.bf16.mxu0 %v14624_v63  ;;  %3569 = vmatprep.subr.bf16.mxu1 %v14626_v0  ;;  %v2197_v62 = vld [vmem:[#allocation11 + $0x38] sm:$0xff]  ;;  %v14663_v63 = vcombine.low %v2246_v51, %v2250_v52  ;;  %v14665_v0 = vcombine.low %v2247_v2, %v2251_v53  ;;  %v2232_v53 = vld [vmem:[#allocation11 + $0x150] sm:$0xff] }
 0x2f0   : > { %v14614_v7 = vcombine.high %v2193_v61, %v2197_v62  ;;  %v14613_v14 = vcombine.low %v2193_v61, %v2197_v62  ;;  %v2240_v62 = vld [vmem:[#allocation11 + $0x190] sm:$0xff] }
 0x2f2   : > { %3527 = vmatpush1.bf16.msra.mxu0 %v14623_v10  ;;  %3570 = vmatpush1.bf16.msra.mxu1 %v14625_v11  ;;  %v2201_v10 = vld [vmem:[#allocation11 + $0x58] sm:$0xff] }
 0x2f3   : > { %3528 = vmatprep.subr.bf16.mxu0 %v14632_v12  ;;  %3571 = vmatprep.subr.bf16.mxu1 %v14634_v13  ;;  %v2205_v11 = vld [vmem:[#allocation11 + $0x78] sm:$0xff]  ;;  %v17464_v12 = vld [vmem:[%s17320_s9 + $0x8] sm:$0xff]   ;;  %v14611_v13 = vcombine.low %v2192_v59, %v2196_v60 }
 0x2f4   : > { %v14622_v17 = vcombine.high %v2201_v10, %v2205_v11  ;;  %v14621_v24 = vcombine.low %v2201_v10, %v2205_v11  ;;  %v2248_v11 = vld [vmem:[#allocation11 + $0x1d0] sm:$0xff] }
 0x2f6   : > { %3529 = vmatpush1.bf16.msra.mxu0 %v14631_v25  ;;  %3572 = vmatpush1.bf16.msra.mxu1 %v14633_v31  ;;  %v2212_v25 = vld [vmem:[#allocation11 + $0xb0] sm:$0xff]  ;;  %v2209_v31 = vld [vmem:[#allocation11 + $0x98] sm:$0xff] }
 0x2f7   : > { %3530 = vmatprep.subr.bf16.mxu0 %v14640_v21  ;;  %3573 = vmatprep.subr.bf16.mxu1 %v14642_v23  ;;  %v2213_v21 = vld [vmem:[#allocation11 + $0xb8] sm:$0xff]  ;;  %v14619_v23 = vcombine.low %v2200_v8, %v2204_v9  ;;  %v14628_v27 = vcombine.high %v2208_v19, %v2212_v25 }
 0x2f8   : > { %v14630_v28 = vcombine.high %v2209_v31, %v2213_v21  ;;  %v14629_v36 = vcombine.low %v2209_v31, %v2213_v21 }
 0x2fa   : > { %3531 = vmatpush1.bf16.msra.mxu0 %v14639_v32  ;;  %3574 = vmatpush1.bf16.msra.mxu1 %v14641_v33  ;;  %v2220_v32 = vld [vmem:[#allocation11 + $0xf0] sm:$0xff]  ;;  %v2217_v33 = vld [vmem:[#allocation11 + $0xd8] sm:$0xff] }
 0x2fb   : > { %3532 = vmatprep.subr.bf16.mxu0 %v14648_v34  ;;  %3575 = vmatprep.subr.bf16.mxu1 %v14650_v35  ;;  %v2221_v34 = vld [vmem:[#allocation11 + $0xf8] sm:$0xff]  ;;  %v14627_v35 = vcombine.low %v2208_v19, %v2212_v25  ;;  %v14636_v37 = vcombine.high %v2216_v29, %v2220_v32 }
 0x2fc   : > { %v14638_v39 = vcombine.high %v2217_v33, %v2221_v34  ;;  %v14637_v51 = vcombine.low %v2217_v33, %v2221_v34 }
 0x2fe   : > { %3533 = vmatpush1.bf16.msra.mxu0 %v14647_v42  ;;  %3576 = vmatpush1.bf16.msra.mxu1 %v14649_v43  ;;  %v2228_v42 = vld [vmem:[#allocation11 + $0x130] sm:$0xff]  ;;  %v2225_v43 = vld [vmem:[#allocation11 + $0x118] sm:$0xff] }
 0x2ff   : > { %3534 = vmatprep.subr.bf16.mxu0 %v14656_v48  ;;  %3577 = vmatprep.subr.bf16.mxu1 %v14658_v50  ;;  %v2229_v48 = vld [vmem:[#allocation11 + $0x138] sm:$0xff]  ;;  %v14635_v50 = vcombine.low %v2216_v29, %v2220_v32  ;;  %v14644_v52 = vcombine.high %v2224_v40, %v2228_v42  ;;  %v3861_v32 = vld [vmem:[#allocation13 + $0x28] sm:$0xff] }
 0x300   : > { %v14646_v2 = vcombine.high %v2225_v43, %v2229_v48  ;;  %v14645_v59 = vcombine.low %v2225_v43, %v2229_v48 }
 0x302   : > { %3535 = vmatpush1.bf16.msra.mxu0 %v14655_v54  ;;  %3578 = vmatpush1.bf16.msra.mxu1 %v14657_v55  ;;  %v2236_v54 = vld [vmem:[#allocation11 + $0x170] sm:$0xff]  ;;  %v2233_v55 = vld [vmem:[#allocation11 + $0x158] sm:$0xff] }
 0x303   : > { %3536 = vmatprep.subr.bf16.mxu0 %v14664_v57  ;;  %3579 = vmatprep.subr.bf16.mxu1 %v14666_v58  ;;  %v2237_v57 = vld [vmem:[#allocation11 + $0x178] sm:$0xff]  ;;  %v14643_v58 = vcombine.low %v2224_v40, %v2228_v42  ;;  %v14652_v60 = vcombine.high %v2232_v53, %v2236_v54  ;;  %v3869_v42 = vld [vmem:[#allocation13 + $0x68] sm:$0xff] }
 0x304   : > { %v14654_v61 = vcombine.high %v2233_v55, %v2237_v57  ;;  %v14653_v8 = vcombine.low %v2233_v55, %v2237_v57 }
 0x306   : > { %3537 = vmatpush1.bf16.msra.mxu0 %v14663_v63  ;;  %3580 = vmatpush1.bf16.msra.mxu1 %v14665_v0  ;;  %v2244_v63 = vld [vmem:[#allocation11 + $0x1b0] sm:$0xff]  ;;  %v2241_v0 = vld [vmem:[#allocation11 + $0x198] sm:$0xff] }
 0x307   : > { %3608 = vmatprep.subr.bf16.mxu0 %v14612_v3  ;;  %3651 = vmatprep.subr.bf16.mxu1 %v14614_v7  ;;  %v2245_v3 = vld [vmem:[#allocation11 + $0x1b8] sm:$0xff]  ;;  %v14651_v7 = vcombine.low %v2232_v53, %v2236_v54  ;;  %v14660_v9 = vcombine.high %v2240_v62, %v2244_v63  ;;  %v3877_v53 = vld [vmem:[#allocation13 + $0xa8] sm:$0xff] }
 0x308   : > { %v14662_v10 = vcombine.high %v2241_v0, %v2245_v3  ;;  %v14661_v19 = vcombine.low %v2241_v0, %v2245_v3 }
 0x309   : > { %3555 = vmatmul.mubr.bf16.vlgmr.msra.gmra.mrb[8].mxu0 %v17464_v12  ;;  %3598 = vmatmul.mubr.bf16.vlgmr.msra.gmra.mrb[8].mxu1 %v17464_v12 }
 0x30a   : > { %3609 = vmatpush1.bf16.msra.mxu0 %v14611_v13  ;;  %3652 = vmatpush1.bf16.msra.mxu1 %v14613_v14  ;;  %v2252_v13 = vld [vmem:[#allocation11 + $0x1f0] sm:$0xff]  ;;  %v2249_v14 = vld [vmem:[#allocation11 + $0x1d8] sm:$0xff] }
 0x30b   : > { %3610 = vmatprep.subr.bf16.mxu0 %v14620_v15  ;;  %3653 = vmatprep.subr.bf16.mxu1 %v14622_v17  ;;  %v2253_v15 = vld [vmem:[#allocation11 + $0x1f8] sm:$0xff]  ;;  %v14659_v17 = vcombine.low %v2240_v62, %v2244_v63  ;;  %v14668_v25 = vcombine.high %v2248_v11, %v2252_v13  ;;  %v14667_v21 = vcombine.low %v2248_v11, %v2252_v13  ;;  %v3885_v62 = vld [vmem:[#allocation13 + $0xe8] sm:$0xff] }
 0x30c   : > { %3640 = vmatprep.mubr.bf16.mxu0 %v16972_v41  ;;  %3683 = vmatprep.mubr.bf16.mxu1 %v16972_v41  ;;  %v14670_v31 = vcombine.high %v2249_v14, %v2253_v15  ;;  %v3893_v11 = vld [vmem:[#allocation13 + $0x128] sm:$0xff] }
 0x30e   : > { %3611 = vmatpush1.bf16.msra.mxu0 %v14619_v23  ;;  %3654 = vmatpush1.bf16.msra.mxu1 %v14621_v24  ;;  %v14669_v23 = vcombine.low %v2249_v14, %v2253_v15  ;;  %v3856_v24 = vld [vmem:[#allocation13] sm:$0xff] }
 0x30f   : > { %3612 = vmatprep.subr.bf16.mxu0 %v14628_v27  ;;  %3655 = vmatprep.subr.bf16.mxu1 %v14630_v28  ;;  %v3860_v27 = vld [vmem:[#allocation13 + $0x20] sm:$0xff]  ;;  %v3857_v28 = vld [vmem:[#allocation13 + $0x8] sm:$0xff] }
 0x310   : > { %v14674_v29 = vcombine.high %v3856_v24, %v3860_v27  ;;  %v14673_v33 = vcombine.low %v3856_v24, %v3860_v27  ;;  %v14675_v34 = vcombine.low %v3857_v28, %v3861_v32 }
 0x312   : > { %3613 = vmatpush1.bf16.msra.mxu0 %v14627_v35  ;;  %3656 = vmatpush1.bf16.msra.mxu1 %v14629_v36  ;;  %v14676_v35 = vcombine.high %v3857_v28, %v3861_v32  ;;  %v3864_v36 = vld [vmem:[#allocation13 + $0x40] sm:$0xff]  ;;  %v3905_v32 = vld [vmem:[#allocation13 + $0x188] sm:$0xff] }
 0x313   : > { %3614 = vmatprep.subr.bf16.mxu0 %v14636_v37  ;;  %3657 = vmatprep.subr.bf16.mxu1 %v14638_v39  ;;  %v3868_v37 = vld [vmem:[#allocation13 + $0x60] sm:$0xff]  ;;  %v3865_v39 = vld [vmem:[#allocation13 + $0x48] sm:$0xff] }
 0x314   : > { %v14682_v40 = vcombine.high %v3864_v36, %v3868_v37  ;;  %v14681_v43 = vcombine.low %v3864_v36, %v3868_v37  ;;  %v14683_v48 = vcombine.low %v3865_v39, %v3869_v42  ;;  %v3904_v28 = vld [vmem:[#allocation13 + $0x180] sm:$0xff] }
 0x316   : > { %3615 = vmatpush1.bf16.msra.mxu0 %v14635_v50  ;;  %3658 = vmatpush1.bf16.msra.mxu1 %v14637_v51  ;;  %v3872_v50 = vld [vmem:[#allocation13 + $0x80] sm:$0xff] }
 0x317   : > { %3616 = vmatprep.subr.bf16.mxu0 %v14644_v52  ;;  %3659 = vmatprep.subr.bf16.mxu1 %v14646_v2  ;;  %v3876_v51 = vld [vmem:[#allocation13 + $0xa0] sm:$0xff]  ;;  %v3873_v52 = vld [vmem:[#allocation13 + $0x88] sm:$0xff] }
 0x318   : > { %v14690_v2 = vcombine.high %v3872_v50, %v3876_v51  ;;  %v14689_v54 = vcombine.low %v3872_v50, %v3876_v51  ;;  %v14691_v55 = vcombine.low %v3873_v52, %v3877_v53  ;;  %v14692_v57 = vcombine.high %v3873_v52, %v3877_v53  ;;  %v3920_v52 = vld [vmem:[#allocation13 + $0x200] sm:$0xff]  ;;  %v3921_v53 = vld [vmem:[#allocation13 + $0x208] sm:$0xff] }
 0x31a   : > { %3617 = vmatpush1.bf16.msra.mxu0 %v14643_v58  ;;  %3660 = vmatpush1.bf16.msra.mxu1 %v14645_v59  ;;  %v3880_v58 = vld [vmem:[#allocation13 + $0xc0] sm:$0xff] }
 0x31b   : > { %3618 = vmatprep.subr.bf16.mxu0 %v14652_v60  ;;  %3661 = vmatprep.subr.bf16.mxu1 %v14654_v61  ;;  %v3884_v59 = vld [vmem:[#allocation13 + $0xe0] sm:$0xff]  ;;  %v3881_v60 = vld [vmem:[#allocation13 + $0xc8] sm:$0xff] }
 0x31c   : > { %v14698_v61 = vcombine.high %v3880_v58, %v3884_v59  ;;  %v14697_v63 = vcombine.low %v3880_v58, %v3884_v59  ;;  %v14699_v0 = vcombine.low %v3881_v60, %v3885_v62  ;;  %v14700_v3 = vcombine.high %v3881_v60, %v3885_v62  ;;  %v3928_v60 = vld [vmem:[#allocation13 + $0x240] sm:$0xff]  ;;  %v3929_v62 = vld [vmem:[#allocation13 + $0x248] sm:$0xff] }
 0x31e   : > { %3619 = vmatpush1.bf16.msra.mxu0 %v14651_v7  ;;  %3662 = vmatpush1.bf16.msra.mxu1 %v14653_v8  ;;  %v3888_v7 = vld [vmem:[#allocation13 + $0x100] sm:$0xff] }
 0x31f   : > { %3620 = vmatprep.subr.bf16.mxu0 %v14660_v9  ;;  %3663 = vmatprep.subr.bf16.mxu1 %v14662_v10  ;;  %v3892_v8 = vld [vmem:[#allocation13 + $0x120] sm:$0xff]  ;;  %v3889_v9 = vld [vmem:[#allocation13 + $0x108] sm:$0xff] }
 0x320   : > { %v14706_v10 = vcombine.high %v3888_v7, %v3892_v8  ;;  %v14705_v13 = vcombine.low %v3888_v7, %v3892_v8  ;;  %v14707_v14 = vcombine.low %v3889_v9, %v3893_v11  ;;  %v14708_v15 = vcombine.high %v3889_v9, %v3893_v11  ;;  %v3936_v9 = vld [vmem:[#allocation13 + $0x280] sm:$0xff]  ;;  %v3937_v11 = vld [vmem:[#allocation13 + $0x288] sm:$0xff] }
 0x322   : > { %3621 = vmatpush1.bf16.msra.mxu0 %v14659_v17  ;;  %3664 = vmatpush1.bf16.msra.mxu1 %v14661_v19  ;;  %v3896_v17 = vld [vmem:[#allocation13 + $0x140] sm:$0xff] }
 0x323   : > { %3622 = vmatprep.subr.bf16.mxu0 %v14668_v25  ;;  %3665 = vmatprep.subr.bf16.mxu1 %v14670_v31  ;;  %v3900_v19 = vld [vmem:[#allocation13 + $0x160] sm:$0xff]  ;;  %v3897_v25 = vld [vmem:[#allocation13 + $0x148] sm:$0xff] }
 0x324   : > { %v14714_v31 = vcombine.high %v3896_v17, %v3900_v19 }
 0x326   : > { %3623 = vmatpush1.bf16.msra.mxu0 %v14667_v21  ;;  %3666 = vmatpush1.bf16.msra.mxu1 %v14669_v23  ;;  %v3901_v21 = vld [vmem:[#allocation13 + $0x168] sm:$0xff]  ;;  %v14713_v23 = vcombine.low %v3896_v17, %v3900_v19 }
 0x327   : > { %4624 = vmatprep.subr.bf16.mxu0 %v14674_v29  ;;  %4667 = vmatprep.subr.bf16.mxu1 %v14676_v35  ;;  %v14715_v24 = vcombine.low %v3897_v25, %v3901_v21  ;;  %v14716_v27 = vcombine.high %v3897_v25, %v3901_v21  ;;  %v3908_v29 = vld [vmem:[#allocation13 + $0x1a0] sm:$0xff]  ;;  %v3945_v21 = vld [vmem:[#allocation13 + $0x2c8] sm:$0xff] }
 0x328   : > { %v14721_v35 = vcombine.low %v3904_v28, %v3908_v29  ;;  %v3944_v25 = vld [vmem:[#allocation13 + $0x2c0] sm:$0xff] }
 0x329   : > { %3641 = vmatmul.mubr.bf16.vlgmr.msra.gmra.mrb[12].mxu0 %v17464_v12  ;;  %3684 = vmatmul.mubr.bf16.vlgmr.msra.gmra.mrb[12].mxu1 %v17464_v12  ;;  %v14684_v12 = vcombine.high %v3865_v39, %v3869_v42  ;;  %v3912_v39 = vld [vmem:[#allocation13 + $0x1c0] sm:$0xff]  ;;  %v3913_v42 = vld [vmem:[#allocation13 + $0x1c8] sm:$0xff] }
 0x32a   : > { %4625 = vmatpush1.bf16.msra.mxu0 %v14673_v33  ;;  %4668 = vmatpush1.bf16.msra.mxu1 %v14675_v34  ;;  %v14722_v33 = vcombine.high %v3904_v28, %v3908_v29  ;;  %v3909_v34 = vld [vmem:[#allocation13 + $0x1a8] sm:$0xff] }
 0x32b   : > { %4626 = vmatprep.subr.bf16.mxu0 %v14682_v40  ;;  %4669 = vmatprep.subr.bf16.mxu1 %v14684_v12  ;;  %v14724_v36 = vcombine.high %v3905_v32, %v3909_v34  ;;  %v14723_v37 = vcombine.low %v3905_v32, %v3909_v34  ;;  %v3916_v40 = vld [vmem:[#allocation13 + $0x1e0] sm:$0xff]  ;;  %v3953_v34 = vld [vmem:[#allocation13 + $0x308] sm:$0xff] }
 0x32c   : > { %v14729_v12 = vcombine.low %v3912_v39, %v3916_v40  ;;  %v3952_v32 = vld [vmem:[#allocation13 + $0x300] sm:$0xff] }
 0x32e   : > { %4627 = vmatpush1.bf16.msra.mxu0 %v14681_v43  ;;  %4670 = vmatpush1.bf16.msra.mxu1 %v14683_v48  ;;  %v14730_v43 = vcombine.high %v3912_v39, %v3916_v40  ;;  %v3917_v48 = vld [vmem:[#allocation13 + $0x1e8] sm:$0xff] }
 0x32f   : > { %4628 = vmatprep.subr.bf16.mxu0 %v14690_v2  ;;  %4671 = vmatprep.subr.bf16.mxu1 %v14692_v57  ;;  %v14731_v50 = vcombine.low %v3913_v42, %v3917_v48  ;;  %v14732_v51 = vcombine.high %v3913_v42, %v3917_v48  ;;  %v3924_v2 = vld [vmem:[#allocation13 + $0x220] sm:$0xff]  ;;  %v3961_v48 = vld [vmem:[#allocation13 + $0x348] sm:$0xff] }
 0x330   : > { %v14737_v57 = vcombine.low %v3920_v52, %v3924_v2  ;;  %v3960_v42 = vld [vmem:[#allocation13 + $0x340] sm:$0xff] }
 0x332   : > { %4629 = vmatpush1.bf16.msra.mxu0 %v14689_v54  ;;  %4672 = vmatpush1.bf16.msra.mxu1 %v14691_v55  ;;  %v14738_v54 = vcombine.high %v3920_v52, %v3924_v2  ;;  %v3925_v55 = vld [vmem:[#allocation13 + $0x228] sm:$0xff] }
 0x333   : > { %4630 = vmatprep.subr.bf16.mxu0 %v14698_v61  ;;  %4673 = vmatprep.subr.bf16.mxu1 %v14700_v3  ;;  %v14739_v58 = vcombine.low %v3921_v53, %v3925_v55  ;;  %v14740_v59 = vcombine.high %v3921_v53, %v3925_v55  ;;  %v3932_v61 = vld [vmem:[#allocation13 + $0x260] sm:$0xff]  ;;  %v3969_v55 = vld [vmem:[#allocation13 + $0x388] sm:$0xff] }
 0x334   : > { %v14745_v3 = vcombine.low %v3928_v60, %v3932_v61  ;;  %v3968_v53 = vld [vmem:[#allocation13 + $0x380] sm:$0xff] }
 0x336   : > { %4631 = vmatpush1.bf16.msra.mxu0 %v14697_v63  ;;  %4674 = vmatpush1.bf16.msra.mxu1 %v14699_v0  ;;  %v14746_v63 = vcombine.high %v3928_v60, %v3932_v61  ;;  %v3933_v0 = vld [vmem:[#allocation13 + $0x268] sm:$0xff] }
 0x337   : > { %4632 = vmatprep.subr.bf16.mxu0 %v14706_v10  ;;  %4675 = vmatprep.subr.bf16.mxu1 %v14708_v15  ;;  %v14747_v7 = vcombine.low %v3929_v62, %v3933_v0  ;;  %v14748_v8 = vcombine.high %v3929_v62, %v3933_v0  ;;  %v3940_v10 = vld [vmem:[#allocation13 + $0x2a0] sm:$0xff]  ;;  %v3977_v0 = vld [vmem:[#allocation13 + $0x3c8] sm:$0xff] }
 0x338   : > { %v14753_v15 = vcombine.low %v3936_v9, %v3940_v10  ;;  %v3976_v62 = vld [vmem:[#allocation13 + $0x3c0] sm:$0xff] }
 0x33a   : > { %4633 = vmatpush1.bf16.msra.mxu0 %v14705_v13  ;;  %4676 = vmatpush1.bf16.msra.mxu1 %v14707_v14  ;;  %v14754_v13 = vcombine.high %v3936_v9, %v3940_v10  ;;  %v3941_v14 = vld [vmem:[#allocation13 + $0x2a8] sm:$0xff] }
 0x33b   : > { %4634 = vmatprep.subr.bf16.mxu0 %v14714_v31  ;;  %4677 = vmatprep.subr.bf16.mxu1 %v14716_v27  ;;  %v14755_v17 = vcombine.low %v3937_v11, %v3941_v14  ;;  %v14756_v19 = vcombine.high %v3937_v11, %v3941_v14  ;;  %v3948_v31 = vld [vmem:[#allocation13 + $0x2e0] sm:$0xff]  ;;  %v17472_v11 = vld [vmem:[#allocation13 + $0x10] sm:$0xff]  ;;  %v17476_v14 = vld [vmem:[#allocation13 + $0x18] sm:$0xff] }
 0x33c   : > { %v14761_v27 = vcombine.low %v3944_v25, %v3948_v31 }
 0x33e   : > { %4635 = vmatpush1.bf16.msra.mxu0 %v14713_v23  ;;  %4678 = vmatpush1.bf16.msra.mxu1 %v14715_v24  ;;  %v14762_v23 = vcombine.high %v3944_v25, %v3948_v31  ;;  %v3949_v24 = vld [vmem:[#allocation13 + $0x2e8] sm:$0xff] }
 0x33f   : > { %4636 = vmatprep.subr.bf16.mxu0 %v14722_v33  ;;  %4679 = vmatprep.subr.bf16.mxu1 %v14724_v36  ;;  %v14763_v28 = vcombine.low %v3945_v21, %v3949_v24  ;;  %v14764_v29 = vcombine.high %v3945_v21, %v3949_v24  ;;  %v3956_v33 = vld [vmem:[#allocation13 + $0x320] sm:$0xff]  ;;  %v3957_v36 = vld [vmem:[#allocation13 + $0x328] sm:$0xff] }
 0x340   : > { %v14771_v39 = vcombine.low %v3953_v34, %v3957_v36  ;;  %v14772_v40 = vcombine.high %v3953_v34, %v3957_v36 }
 0x342   : > { %4637 = vmatpush1.bf16.msra.mxu0 %v14721_v35  ;;  %4680 = vmatpush1.bf16.msra.mxu1 %v14723_v37  ;;  %v14770_v35 = vcombine.high %v3952_v32, %v3956_v33  ;;  %v14769_v37 = vcombine.low %v3952_v32, %v3956_v33 }
 0x343   : > { %4638 = vmatprep.subr.bf16.mxu0 %v14730_v43  ;;  %4681 = vmatprep.subr.bf16.mxu1 %v14732_v51  ;;  %v3964_v43 = vld [vmem:[#allocation13 + $0x360] sm:$0xff] }
 0x344   : > { %v14777_v51 = vcombine.low %v3960_v42, %v3964_v43 }
 0x346   : > { %4639 = vmatpush1.bf16.msra.mxu0 %v14729_v12  ;;  %4682 = vmatpush1.bf16.msra.mxu1 %v14731_v50  ;;  %v14778_v12 = vcombine.high %v3960_v42, %v3964_v43  ;;  %v3965_v50 = vld [vmem:[#allocation13 + $0x368] sm:$0xff] }
 0x347   : > { %4640 = vmatprep.subr.bf16.mxu0 %v14738_v54  ;;  %4683 = vmatprep.subr.bf16.mxu1 %v14740_v59  ;;  %v14779_v52 = vcombine.low %v3961_v48, %v3965_v50  ;;  %v14780_v2 = vcombine.high %v3961_v48, %v3965_v50  ;;  %v3972_v54 = vld [vmem:[#allocation13 + $0x3a0] sm:$0xff] }
 0x348   : > { %v14785_v59 = vcombine.low %v3968_v53, %v3972_v54 }
 0x34a   : > { %4641 = vmatpush1.bf16.msra.mxu0 %v14737_v57  ;;  %4684 = vmatpush1.bf16.msra.mxu1 %v14739_v58  ;;  %v14786_v57 = vcombine.high %v3968_v53, %v3972_v54  ;;  %v3973_v58 = vld [vmem:[#allocation13 + $0x3a8] sm:$0xff] }
 0x34b   : > { %4642 = vmatprep.subr.bf16.mxu0 %v14746_v63  ;;  %4685 = vmatprep.subr.bf16.mxu1 %v14748_v8  ;;  %v14787_v60 = vcombine.low %v3969_v55, %v3973_v58  ;;  %v14788_v61 = vcombine.high %v3969_v55, %v3973_v58  ;;  %v3980_v63 = vld [vmem:[#allocation13 + $0x3e0] sm:$0xff] }
 0x34c   : > { %v14793_v8 = vcombine.low %v3976_v62, %v3980_v63 }
 0x34e   : > { %4643 = vmatpush1.bf16.msra.mxu0 %v14745_v3  ;;  %4686 = vmatpush1.bf16.msra.mxu1 %v14747_v7  ;;  %v14794_v3 = vcombine.high %v3976_v62, %v3980_v63  ;;  %v3981_v7 = vld [vmem:[#allocation13 + $0x3e8] sm:$0xff] }
 0x34f   : > { %4644 = vmatprep.subr.bf16.mxu0 %v14754_v13  ;;  %4687 = vmatprep.subr.bf16.mxu1 %v14756_v19  ;;  %v14795_v9 = vcombine.low %v3977_v0, %v3981_v7  ;;  %v14796_v10 = vcombine.high %v3977_v0, %v3981_v7  ;;  %v17474_v13 = vld [vmem:[#allocation13 + $0x30] sm:$0xff] }
 0x350   : > { %v14677_v19 = vcombine.low %v17472_v11, %v17474_v13 }
 0x352   : > { %4645 = vmatpush1.bf16.msra.mxu0 %v14753_v15  ;;  %4688 = vmatpush1.bf16.msra.mxu1 %v14755_v17  ;;  %v14678_v15 = vcombine.high %v17472_v11, %v17474_v13  ;;  %v17480_v17 = vld [vmem:[#allocation13 + $0x38] sm:$0xff] }
 0x353   : > { %4646 = vmatprep.subr.bf16.mxu0 %v14762_v23  ;;  %4689 = vmatprep.subr.bf16.mxu1 %v14764_v29  ;;  %v14679_v25 = vcombine.low %v17476_v14, %v17480_v17  ;;  %v14680_v31 = vcombine.high %v17476_v14, %v17480_v17 }
 0x356   : > { %4647 = vmatpush1.bf16.msra.mxu0 %v14761_v27  ;;  %4690 = vmatpush1.bf16.msra.mxu1 %v14763_v28 }
 0x357   : > { %4648 = vmatprep.subr.bf16.mxu0 %v14770_v35  ;;  %4691 = vmatprep.subr.bf16.mxu1 %v14772_v40 }
 0x35a   : > { %4649 = vmatpush1.bf16.msra.mxu0 %v14769_v37  ;;  %4692 = vmatpush1.bf16.msra.mxu1 %v14771_v39 }
 0x35b   : > { %4650 = vmatprep.subr.bf16.mxu0 %v14778_v12  ;;  %4693 = vmatprep.subr.bf16.mxu1 %v14780_v2 }
 0x35e   : > { %4651 = vmatpush1.bf16.msra.mxu0 %v14777_v51  ;;  %4694 = vmatpush1.bf16.msra.mxu1 %v14779_v52 }
 0x35f   : > { %4652 = vmatprep.subr.bf16.mxu0 %v14786_v57  ;;  %4695 = vmatprep.subr.bf16.mxu1 %v14788_v61 }
 0x362   : > { %4653 = vmatpush1.bf16.msra.mxu0 %v14785_v59  ;;  %4696 = vmatpush1.bf16.msra.mxu1 %v14787_v60 }
 0x363   : > { %4654 = vmatprep.subr.bf16.mxu0 %v14794_v3  ;;  %4697 = vmatprep.subr.bf16.mxu1 %v14796_v10 }
 0x366   : > { %4655 = vmatpush1.bf16.msra.mxu0 %v14793_v8  ;;  %4698 = vmatpush1.bf16.msra.mxu1 %v14795_v9 }
 0x367   : > { %4710 = vmatprep.subr.bf16.mxu0 %v14678_v15  ;;  %4753 = vmatprep.subr.bf16.mxu1 %v14680_v31 }
 0x3dc   : > { %v3556_v21 = vpop.f32.mrb[8].mxu0  ;;  %v3599_v23 = vpop.f32.mrb[8].mxu1 }
 0x3dd   : > { %v3558_v24 = vpop.f32.mrb[9].mxu0  ;;  %v3601_v27 = vpop.f32.mrb[9].mxu1  ;;  %v3696_v34 = vadd.f32 %v3599_v23, %v17390_v22  ;;  %v3694_v36 = vadd.f32 %v3556_v21, %v17397_v47 }
 0x3de   : > { %v3560_v28 = vpop.f32.mrb[10].mxu0  ;;  %v3603_v29 = vpop.f32.mrb[10].mxu1  ;;  %v3697_v35 = vadd.f32 %v3601_v27, %v17393_v46  ;;  %v3695_v39 = vadd.f32 %v3558_v24, %v17402_v49 }
 0x3df   : > { %v3562_v32 = vpop.f32.mrb[11].mxu0  ;;  %v3605_v33 = vpop.f32.mrb[11].mxu1  ;;  %v3726_v37 = vmul.f32 0.5, %v3696_v34  ;;  %v3704_v40 = vadd.f32 %v3603_v29, %v17390_v22  ;;  %v3702_v43 = vadd.f32 %v3560_v28, %v17397_v47  ;;  %v3710_v48 = vmul.f32 0.5, %v3694_v36 }
 0x3e0   : > { %v3727_v42 = vmul.f32 0.5, %v3697_v35  ;;  %v3705_v12 = vadd.f32 %v3605_v33, %v17393_v46  ;;  %v3711_v50 = vmul.f32 0.5, %v3695_v39  ;;  %v3703_v52 = vadd.f32 %v3562_v32, %v17402_v49 }
 0x3e1   : > { %16343 = vtanh.f32 %v3726_v37  ;;  %v3728_v51 = vmul.f32 0.5, %v3704_v40  ;;  %v3712_v2 = vmul.f32 0.5, %v3702_v43 }
 0x3e2   : > { %16345 = vtanh.f32 %v3727_v42  ;;  %v3729_v53 = vmul.f32 0.5, %v3705_v12  ;;  %v3713_v54 = vmul.f32 0.5, %v3703_v52 }
 0x3e3   : > { %16347 = vtanh.f32 %v3710_v48 }
 0x3e4   : > { %16349 = vtanh.f32 %v3711_v50 }
 0x3e5   : > { %16351 = vtanh.f32 %v3728_v51 }
 0x3e6   : > { %16353 = vtanh.f32 %v3712_v2 }
 0x3e7   : > { %16355 = vtanh.f32 %v3729_v53 }
 0x3e8   : > { %16357 = vtanh.f32 %v3713_v54 }
 0x3eb   : > { %v16344_v61 = vpop.eup %16343 }
 0x3ec   : > { %v16346_v9 = vpop.eup %16345  ;;  %v3734_v15 = vmul.f32 0.5, %v16344_v61 }
 0x3ed   : > { %v16348_v10 = vpop.eup %16347  ;;  %v3735_v28 = vmul.f32 0.5, %v16346_v9 }
 0x3ee   : > { %v16350_v23 = vpop.eup %16349  ;;  %v3718_v33 = vmul.f32 0.5, %v16348_v10  ;;  %v3738_v36 = vadd.f32 0.5, %v3734_v15 }
 0x3ef   : > { %v16352_v27 = vpop.eup %16351  ;;  %v3719_v37 = vmul.f32 0.5, %v16350_v23  ;;  %v3739_v48 = vadd.f32 0.5, %v3735_v28 }
 0x3f0   : > { %v16354_v32 = vpop.eup %16353  ;;  %v3736_v40 = vmul.f32 0.5, %v16352_v27  ;;  %v3722_v50 = vadd.f32 0.5, %v3718_v33  ;;  %v3762_v54 = vmul.f32 %v3738_v36, %v17431_v16 }
 0x3f1   : > { %v16356_v35 = vpop.eup %16355  ;;  %v3720_v51 = vmul.f32 0.5, %v16354_v32  ;;  %v3763_v61 = vmul.f32 %v3739_v48, %v17433_v20 }
 0x3f2   : > { %v16358_v43 = vpop.eup %16357  ;;  %v3737_v52 = vmul.f32 0.5, %v16356_v35 }
 0x3fc   : > { %v3642_v55 = vpop.f32.mrb[12].mxu0  ;;  %v3685_v57 = vpop.f32.mrb[12].mxu1 }
 0x3fd   : > { %v3698_v58 = vadd.f32 %v3642_v55, %v17414_v4  ;;  %v3644_v59 = vpop.f32.mrb[13].mxu0  ;;  %v3687_v60 = vpop.f32.mrb[13].mxu1  ;;  %v3700_v31 = vadd.f32 %v3685_v57, %v17418_v6  ;;  %v3723_v55 = vadd.f32 0.5, %v3719_v37 }
 0x3fe   : > { %v3699_v62 = vadd.f32 %v3644_v59, %v17416_v5  ;;  %v3646_v63 = vpop.f32.mrb[14].mxu0  ;;  %v3689_v0 = vpop.f32.mrb[14].mxu1  ;;  %v3701_v29 = vadd.f32 %v3687_v60, %v17424_v18  ;;  %v3721_v59 = vmul.f32 0.5, %v16358_v43 }
 0x3ff   : > { %16359 = vtanh.f32 %v3698_v58  ;;  %v3706_v3 = vadd.f32 %v3646_v63, %v17414_v4  ;;  %v3648_v7 = vpop.f32.mrb[15].mxu0  ;;  %v3691_v8 = vpop.f32.mrb[15].mxu1  ;;  %v3708_v24 = vadd.f32 %v3689_v0, %v17418_v6  ;;  %v3746_v39 = vmul.f32 0.5, %v3700_v31 }
 0x400   : > { %16361 = vtanh.f32 %v3699_v62  ;;  %v3707_v21 = vadd.f32 %v3648_v7, %v17416_v5  ;;  %v3709_v34 = vadd.f32 %v3691_v8, %v17424_v18  ;;  %v3747_v12 = vmul.f32 0.5, %v3701_v29 }
 0x401   : > { %16363 = vtanh.f32 %v3706_v3  ;;  %v3748_v42 = vmul.f32 0.5, %v3708_v24  ;;  %v3740_v58 = vadd.f32 0.5, %v3736_v40  ;;  %v3724_v63 = vadd.f32 0.5, %v3720_v51 }
 0x402   : > { %16365 = vtanh.f32 %v3707_v21  ;;  %v3749_v2 = vmul.f32 0.5, %v3709_v34  ;;  %v3741_v0 = vadd.f32 0.5, %v3737_v52  ;;  %v3725_v9 = vadd.f32 0.5, %v3721_v59 }
 0x403   : > { %16367 = vtanh.f32 %v3746_v39  ;;  %v3764_v16 = vmul.f32 %v3740_v58, %v17436_v30  ;;  %v3874_v58 = vld [vmem:[#allocation13 + $0x90] sm:$0xff] }
 0x404   : > { %16369 = vtanh.f32 %v3748_v42  ;;  %v3765_v31 = vmul.f32 %v3741_v0, %v17440_v26 }
 0x405   : > { %16371 = vtanh.f32 %v3747_v12 }
 0x406   : > { %16373 = vtanh.f32 %v3749_v2  ;;  %v3866_v2 = vld [vmem:[#allocation13 + $0x50] sm:$0xff] }
 0x409   : > { %v16360_v53 = vpop.eup %16359 }
 0x40a   : > { %v16362_v57 = vpop.eup %16361  ;;  %v3766_v60 = vmul.f32 %v16360_v53, %v3722_v50  ;;  %v3870_v53 = vld [vmem:[#allocation13 + $0x70] sm:$0xff] }
 0x40b   : > { %v3767_v62 = vmul.f32 %v16362_v57, %v3723_v55  ;;  %v16364_v7 = vpop.eup %16363  ;;  %v3871_v55 = vld [vmem:[#allocation13 + $0x78] sm:$0xff]  ;;  %v14686_v59 = vcombine.high %v3866_v2, %v3870_v53  ;;  %v14685_v0 = vcombine.low %v3866_v2, %v3870_v53 }
 0x40c   : > { %v17506_v3 = vadd.f32 %v3766_v60, %v3762_v54  ;;  %v3768_v10 = vmul.f32 %v16364_v7, %v3724_v63  ;;  %v16366_v15 = vpop.eup %16365  ;;  %v3867_v54 = vld [vmem:[#allocation13 + $0x58] sm:$0xff] }
 0x40d   : > { %v17508_v8 = vadd.f32 %v3767_v62, %v3763_v61  ;;  %v3769_v21 = vmul.f32 %v16366_v15, %v3725_v9  ;;  %v16368_v24 = vpop.eup %16367  ;;  %v14688_v60 = vcombine.high %v3867_v54, %v3871_v55  ;;  %v3878_v61 = vld [vmem:[#allocation13 + $0xb0] sm:$0xff]  ;;  %v3875_v62 = vld [vmem:[#allocation13 + $0x98] sm:$0xff]  ;;  %v14687_v7 = vcombine.low %v3867_v54, %v3871_v55 }
 0x40e   : > { %16375 = vtanh.f32 %v17506_v3  ;;  %v17513_v20 = vadd.f32 %v3768_v10, %v3764_v16  ;;  %v16370_v27 = vpop.eup %16369  ;;  %v3754_v29 = vmul.f32 0.5, %v16368_v24  ;;  %v3879_v63 = vld [vmem:[#allocation13 + $0xb8] sm:$0xff]  ;;  %v14694_v16 = vcombine.high %v3874_v58, %v3878_v61  ;;  %v3882_v10 = vld [vmem:[#allocation13 + $0xd0] sm:$0xff] }
 0x40f   : > { %16377 = vtanh.f32 %v17508_v8  ;;  %v17517_v23 = vadd.f32 %v3769_v21, %v3765_v31  ;;  %v16372_v30 = vpop.eup %16371  ;;  %v3756_v32 = vmul.f32 0.5, %v16370_v27  ;;  %v14696_v9 = vcombine.high %v3875_v62, %v3879_v63  ;;  %v3886_v15 = vld [vmem:[#allocation13 + $0xf0] sm:$0xff]  ;;  %v3883_v31 = vld [vmem:[#allocation13 + $0xd8] sm:$0xff] }
 0x410   : > { %16379 = vtanh.f32 %v17513_v20  ;;  %v16374_v28 = vpop.eup %16373  ;;  %v3755_v26 = vmul.f32 0.5, %v16372_v30  ;;  %v3758_v36 = vadd.f32 0.5, %v3754_v29  ;;  %v3887_v21 = vld [vmem:[#allocation13 + $0xf8] sm:$0xff]  ;;  %v14693_v11 = vcombine.low %v3874_v58, %v3878_v61  ;;  %v3914_v54 = vld [vmem:[#allocation13 + $0x1d0] sm:$0xff] }
 0x411   : > { %16381 = vtanh.f32 %v17517_v23  ;;  %v3757_v33 = vmul.f32 0.5, %v16374_v28  ;;  %v3760_v37 = vadd.f32 0.5, %v3756_v32  ;;  %v14695_v13 = vcombine.low %v3875_v62, %v3879_v63  ;;  %v3891_v24 = vld [vmem:[#allocation13 + $0x118] sm:$0xff]  ;;  %v3918_v55 = vld [vmem:[#allocation13 + $0x1f0] sm:$0xff] }
 0x412   : > { %v3759_v42 = vadd.f32 0.5, %v3755_v26  ;;  %v14702_v14 = vcombine.high %v3882_v10, %v3886_v15  ;;  %v14704_v17 = vcombine.high %v3883_v31, %v3887_v21  ;;  %v3895_v27 = vld [vmem:[#allocation13 + $0x138] sm:$0xff]  ;;  %v14701_v30 = vcombine.low %v3882_v10, %v3886_v15  ;;  %v3898_v26 = vld [vmem:[#allocation13 + $0x150] sm:$0xff] }
 0x413   : > { %v3761_v48 = vadd.f32 0.5, %v3757_v33  ;;  %v14703_v28 = vcombine.low %v3883_v31, %v3887_v21  ;;  %v14712_v32 = vcombine.high %v3891_v24, %v3895_v27  ;;  %v3902_v33 = vld [vmem:[#allocation13 + $0x170] sm:$0xff]  ;;  %v3915_v58 = vld [vmem:[#allocation13 + $0x1d8] sm:$0xff]  ;;  %v14734_v62 = vcombine.high %v3914_v54, %v3918_v55 }
 0x414   : > { %v14733_v10 = vcombine.low %v3914_v54, %v3918_v55 }
 0x418   : > { %v16376_v34 = vpop.eup %16375 }
 0x419   : > { %v16378_v35 = vpop.eup %16377  ;;  %v3778_v40 = vmul.f32 %v16376_v34, %v3758_v36  ;;  %v3899_v34 = vld [vmem:[#allocation13 + $0x158] sm:$0xff] }
 0x41a   : > { %v16380_v39 = vpop.eup %16379  ;;  %v3779_v50 = vmul.f32 %v16378_v35, %v3759_v42  ;;  %v3903_v35 = vld [vmem:[#allocation13 + $0x178] sm:$0xff]  ;;  %v3906_v42 = vld [vmem:[#allocation13 + $0x190] sm:$0xff] }
 0x41b   : > { %v3780_v43 = vmul.f32 %v16380_v39, %v3760_v37  ;;  %v16382_v12 = vpop.eup %16381  ;;  %v14711_v37 = vcombine.low %v3891_v24, %v3895_v27  ;;  %v14718_v39 = vcombine.high %v3898_v26, %v3902_v33 }
 0x41c   : > { %v3781_v52 = vmul.f32 %v16382_v12, %v3761_v48  ;;  %v3907_v48 = vld [vmem:[#allocation13 + $0x198] sm:$0xff] }
 0x41d   : > { %v17520_v51 = vpack.c.bf16 %v3780_v43, %v3778_v40  ;;  %v14720_v40 = vcombine.high %v3899_v34, %v3903_v35  ;;  %v3910_v43 = vld [vmem:[#allocation13 + $0x1b0] sm:$0xff]  ;;  %v3911_v12 = vld [vmem:[#allocation13 + $0x1b8] sm:$0xff] }
 0x41e   : > { %v17522_v57 = vpack.c.bf16 %v3781_v52, %v3779_v50  ;;  %v14717_v50 = vcombine.low %v3898_v26, %v3902_v33  ;;  %v14719_v52 = vcombine.low %v3899_v34, %v3903_v35  ;;  %v14726_v2 = vcombine.high %v3906_v42, %v3910_v43 }
 0x41f   : > { %v14728_v53 = vcombine.high %v3907_v48, %v3911_v12  ;;  %v14727_v61 = vcombine.low %v3907_v48, %v3911_v12 }
 0x420   : > { %4656 = vmatprep.mubr.bf16.mxu0 %v17522_v57  ;;  %4699 = vmatprep.mubr.bf16.mxu1 %v17522_v57 }
 0x421   : > { %4657 = vmatmul.mubr.bf16.vlgmr.msra.gmra.mrb[16].mxu0 %v17520_v51  ;;  %4700 = vmatmul.mubr.bf16.vlgmr.msra.gmra.mrb[16].mxu1 %v17520_v51 }
 0x422   : > { %4711 = vmatpush1.bf16.msra.mxu0 %v14677_v19  ;;  %4754 = vmatpush1.bf16.msra.mxu1 %v14679_v25  ;;  %v3890_v19 = vld [vmem:[#allocation13 + $0x110] sm:$0xff] }
 0x423   : > { %4742 = vmatprep.mubr.bf16.mxu0 %v17522_v57  ;;  %4785 = vmatprep.mubr.bf16.mxu1 %v17522_v57  ;;  %v3894_v25 = vld [vmem:[#allocation13 + $0x130] sm:$0xff] }
 0x424   : > { %4712 = vmatprep.subr.bf16.mxu0 %v14686_v59  ;;  %4755 = vmatprep.subr.bf16.mxu1 %v14688_v60  ;;  %v14710_v29 = vcombine.high %v3890_v19, %v3894_v25  ;;  %v14709_v36 = vcombine.low %v3890_v19, %v3894_v25  ;;  %v3919_v59 = vld [vmem:[#allocation13 + $0x1f8] sm:$0xff]  ;;  %v14725_v60 = vcombine.low %v3906_v42, %v3910_v43 }
 0x425   : > { %v14736_v63 = vcombine.high %v3915_v58, %v3919_v59  ;;  %v14735_v15 = vcombine.low %v3915_v58, %v3919_v59 }
 0x426   : > { %4713 = vmatpush1.bf16.msra.mxu0 %v14685_v0  ;;  %4756 = vmatpush1.bf16.msra.mxu1 %v14687_v7  ;;  %v3922_v0 = vld [vmem:[#allocation13 + $0x210] sm:$0xff] }
 0x427   : > { %4714 = vmatprep.subr.bf16.mxu0 %v14694_v16  ;;  %4757 = vmatprep.subr.bf16.mxu1 %v14696_v9  ;;  %v3926_v7 = vld [vmem:[#allocation13 + $0x230] sm:$0xff]  ;;  %v3923_v16 = vld [vmem:[#allocation13 + $0x218] sm:$0xff] }
 0x428   : > { %v3927_v9 = vld [vmem:[#allocation13 + $0x238] sm:$0xff]  ;;  %v14742_v31 = vcombine.high %v3922_v0, %v3926_v7  ;;  %v14741_v19 = vcombine.low %v3922_v0, %v3926_v7 }
 0x429   : > { %v14744_v21 = vcombine.high %v3923_v16, %v3927_v9  ;;  %v14743_v25 = vcombine.low %v3923_v16, %v3927_v9 }
 0x42a   : > { %4715 = vmatpush1.bf16.msra.mxu0 %v14693_v11  ;;  %4758 = vmatpush1.bf16.msra.mxu1 %v14695_v13  ;;  %v3930_v11 = vld [vmem:[#allocation13 + $0x250] sm:$0xff] }
 0x42b   : > { %4716 = vmatprep.subr.bf16.mxu0 %v14702_v14  ;;  %4759 = vmatprep.subr.bf16.mxu1 %v14704_v17  ;;  %v3934_v13 = vld [vmem:[#allocation13 + $0x270] sm:$0xff]  ;;  %v3931_v14 = vld [vmem:[#allocation13 + $0x258] sm:$0xff] }
 0x42c   : > { %v3935_v17 = vld [vmem:[#allocation13 + $0x278] sm:$0xff]  ;;  %v14750_v24 = vcombine.high %v3930_v11, %v3934_v13  ;;  %v14749_v26 = vcombine.low %v3930_v11, %v3934_v13 }
 0x42d   : > { %v14752_v27 = vcombine.high %v3931_v14, %v3935_v17  ;;  %v14751_v33 = vcombine.low %v3931_v14, %v3935_v17 }
 0x42e   : > { %4717 = vmatpush1.bf16.msra.mxu0 %v14701_v30  ;;  %4760 = vmatpush1.bf16.msra.mxu1 %v14703_v28  ;;  %v3938_v30 = vld [vmem:[#allocation13 + $0x290] sm:$0xff] }
 0x42f   : > { %4718 = vmatprep.subr.bf16.mxu0 %v14710_v29  ;;  %4761 = vmatprep.subr.bf16.mxu1 %v14712_v32  ;;  %v3942_v28 = vld [vmem:[#allocation13 + $0x2b0] sm:$0xff]  ;;  %v3939_v29 = vld [vmem:[#allocation13 + $0x298] sm:$0xff] }
 0x430   : > { %v3943_v32 = vld [vmem:[#allocation13 + $0x2b8] sm:$0xff]  ;;  %v14758_v34 = vcombine.high %v3938_v30, %v3942_v28  ;;  %v14757_v42 = vcombine.low %v3938_v30, %v3942_v28 }
 0x431   : > { %v14760_v35 = vcombine.high %v3939_v29, %v3943_v32  ;;  %v14759_v43 = vcombine.low %v3939_v29, %v3943_v32 }
 0x432   : > { %4719 = vmatpush1.bf16.msra.mxu0 %v14709_v36  ;;  %4762 = vmatpush1.bf16.msra.mxu1 %v14711_v37  ;;  %v3946_v36 = vld [vmem:[#allocation13 + $0x2d0] sm:$0xff] }
 0x433   : > { %4720 = vmatprep.subr.bf16.mxu0 %v14718_v39  ;;  %4763 = vmatprep.subr.bf16.mxu1 %v14720_v40  ;;  %v3950_v37 = vld [vmem:[#allocation13 + $0x2f0] sm:$0xff]  ;;  %v3947_v39 = vld [vmem:[#allocation13 + $0x2d8] sm:$0xff] }
 0x434   : > { %v3951_v40 = vld [vmem:[#allocation13 + $0x2f8] sm:$0xff]  ;;  %v14766_v48 = vcombine.high %v3946_v36, %v3950_v37  ;;  %v14765_v54 = vcombine.low %v3946_v36, %v3950_v37 }
 0x435   : > { %v14768_v12 = vcombine.high %v3947_v39, %v3951_v40  ;;  %v14767_v55 = vcombine.low %v3947_v39, %v3951_v40 }
 0x436   : > { %4721 = vmatpush1.bf16.msra.mxu0 %v14717_v50  ;;  %4764 = vmatpush1.bf16.msra.mxu1 %v14719_v52  ;;  %v3954_v50 = vld [vmem:[#allocation13 + $0x310] sm:$0xff] }
 0x437   : > { %4722 = vmatprep.subr.bf16.mxu0 %v14726_v2  ;;  %4765 = vmatprep.subr.bf16.mxu1 %v14728_v53  ;;  %v3958_v52 = vld [vmem:[#allocation13 + $0x330] sm:$0xff]  ;;  %v3955_v2 = vld [vmem:[#allocation13 + $0x318] sm:$0xff] }
 0x438   : > { %v3959_v53 = vld [vmem:[#allocation13 + $0x338] sm:$0xff]  ;;  %v14774_v58 = vcombine.high %v3954_v50, %v3958_v52  ;;  %v14773_v0 = vcombine.low %v3954_v50, %v3958_v52 }
 0x439   : > { %v14776_v59 = vcombine.high %v3955_v2, %v3959_v53  ;;  %v14775_v7 = vcombine.low %v3955_v2, %v3959_v53 }
 0x43a   : > { %4723 = vmatpush1.bf16.msra.mxu0 %v14725_v60  ;;  %4766 = vmatpush1.bf16.msra.mxu1 %v14727_v61  ;;  %v3962_v60 = vld [vmem:[#allocation13 + $0x350] sm:$0xff] }
 0x43b   : > { %4724 = vmatprep.subr.bf16.mxu0 %v14734_v62  ;;  %4767 = vmatprep.subr.bf16.mxu1 %v14736_v63  ;;  %v3966_v61 = vld [vmem:[#allocation13 + $0x370] sm:$0xff]  ;;  %v3963_v62 = vld [vmem:[#allocation13 + $0x358] sm:$0xff] }
 0x43c   : > { %v3967_v63 = vld [vmem:[#allocation13 + $0x378] sm:$0xff]  ;;  %v14782_v16 = vcombine.high %v3962_v60, %v3966_v61  ;;  %v14781_v11 = vcombine.low %v3962_v60, %v3966_v61 }
 0x43d   : > { %v14784_v9 = vcombine.high %v3963_v62, %v3967_v63  ;;  %v14783_v13 = vcombine.low %v3963_v62, %v3967_v63 }
 0x43e   : > { %4725 = vmatpush1.bf16.msra.mxu0 %v14733_v10  ;;  %4768 = vmatpush1.bf16.msra.mxu1 %v14735_v15  ;;  %v3970_v10 = vld [vmem:[#allocation13 + $0x390] sm:$0xff] }
 0x43f   : > { %4726 = vmatprep.subr.bf16.mxu0 %v14742_v31  ;;  %4769 = vmatprep.subr.bf16.mxu1 %v14744_v21  ;;  %v3974_v15 = vld [vmem:[#allocation13 + $0x3b0] sm:$0xff]  ;;  %v3971_v31 = vld [vmem:[#allocation13 + $0x398] sm:$0xff] }
 0x440   : > { %v3975_v21 = vld [vmem:[#allocation13 + $0x3b8] sm:$0xff]  ;;  %v14790_v14 = vcombine.high %v3970_v10, %v3974_v15  ;;  %v14789_v30 = vcombine.low %v3970_v10, %v3974_v15 }
 0x441   : > { %v14792_v17 = vcombine.high %v3971_v31, %v3975_v21  ;;  %v14791_v28 = vcombine.low %v3971_v31, %v3975_v21 }
 0x442   : > { %4727 = vmatpush1.bf16.msra.mxu0 %v14741_v19  ;;  %4770 = vmatpush1.bf16.msra.mxu1 %v14743_v25  ;;  %v3978_v19 = vld [vmem:[#allocation13 + $0x3d0] sm:$0xff] }
 0x443   : > { %4728 = vmatprep.subr.bf16.mxu0 %v14750_v24  ;;  %4771 = vmatprep.subr.bf16.mxu1 %v14752_v27  ;;  %v3982_v25 = vld [vmem:[#allocation13 + $0x3f0] sm:$0xff]  ;;  %v3979_v24 = vld [vmem:[#allocation13 + $0x3d8] sm:$0xff] }
 0x444   : > { %v3983_v27 = vld [vmem:[#allocation13 + $0x3f8] sm:$0xff]  ;;  %v14798_v29 = vcombine.high %v3978_v19, %v3982_v25  ;;  %v14797_v36 = vcombine.low %v3978_v19, %v3982_v25 }
 0x445   : > { %v14800_v32 = vcombine.high %v3979_v24, %v3983_v27  ;;  %v14799_v37 = vcombine.low %v3979_v24, %v3983_v27 }
 0x446   : > { %4729 = vmatpush1.bf16.msra.mxu0 %v14749_v26  ;;  %4772 = vmatpush1.bf16.msra.mxu1 %v14751_v33  ;;  %v3790_v26 = vld [vmem:[#allocation11] sm:$0xff] }
 0x447   : > { %4730 = vmatprep.subr.bf16.mxu0 %v14758_v34  ;;  %4773 = vmatprep.subr.bf16.mxu1 %v14760_v35  ;;  %v3794_v33 = vld [vmem:[#allocation11 + $0x20] sm:$0xff]  ;;  %v3791_v34 = vld [vmem:[#allocation11 + $0x8] sm:$0xff] }
 0x448   : > { %v3795_v35 = vld [vmem:[#allocation11 + $0x28] sm:$0xff]  ;;  %v14803_v39 = vcombine.high %v3790_v26, %v3794_v33  ;;  %v14802_v50 = vcombine.low %v3790_v26, %v3794_v33 }
 0x449   : > { %v14805_v40 = vcombine.high %v3791_v34, %v3795_v35  ;;  %v14804_v52 = vcombine.low %v3791_v34, %v3795_v35 }
 0x44a   : > { %4731 = vmatpush1.bf16.msra.mxu0 %v14757_v42  ;;  %4774 = vmatpush1.bf16.msra.mxu1 %v14759_v43  ;;  %v3798_v42 = vld [vmem:[#allocation11 + $0x40] sm:$0xff] }
 0x44b   : > { %4732 = vmatprep.subr.bf16.mxu0 %v14766_v48  ;;  %4775 = vmatprep.subr.bf16.mxu1 %v14768_v12  ;;  %v3802_v43 = vld [vmem:[#allocation11 + $0x60] sm:$0xff]  ;;  %v3799_v48 = vld [vmem:[#allocation11 + $0x48] sm:$0xff] }
 0x44c   : > { %v3803_v12 = vld [vmem:[#allocation11 + $0x68] sm:$0xff]  ;;  %v14811_v2 = vcombine.high %v3798_v42, %v3802_v43  ;;  %v14810_v60 = vcombine.low %v3798_v42, %v3802_v43 }
 0x44d   : > { %v14813_v53 = vcombine.high %v3799_v48, %v3803_v12  ;;  %v14812_v61 = vcombine.low %v3799_v48, %v3803_v12 }
 0x44e   : > { %4733 = vmatpush1.bf16.msra.mxu0 %v14765_v54  ;;  %4776 = vmatpush1.bf16.msra.mxu1 %v14767_v55  ;;  %v3806_v54 = vld [vmem:[#allocation11 + $0x80] sm:$0xff] }
 0x44f   : > { %4734 = vmatprep.subr.bf16.mxu0 %v14774_v58  ;;  %4777 = vmatprep.subr.bf16.mxu1 %v14776_v59  ;;  %v3810_v55 = vld [vmem:[#allocation11 + $0xa0] sm:$0xff]  ;;  %v3807_v58 = vld [vmem:[#allocation11 + $0x88] sm:$0xff] }
 0x450   : > { %v3811_v59 = vld [vmem:[#allocation11 + $0xa8] sm:$0xff]  ;;  %v14819_v62 = vcombine.high %v3806_v54, %v3810_v55  ;;  %v14818_v10 = vcombine.low %v3806_v54, %v3810_v55 }
 0x451   : > { %v14821_v63 = vcombine.high %v3807_v58, %v3811_v59  ;;  %v14820_v15 = vcombine.low %v3807_v58, %v3811_v59 }
 0x452   : > { %4735 = vmatpush1.bf16.msra.mxu0 %v14773_v0  ;;  %4778 = vmatpush1.bf16.msra.mxu1 %v14775_v7  ;;  %v3814_v0 = vld [vmem:[#allocation11 + $0xc0] sm:$0xff] }
 0x453   : > { %4736 = vmatprep.subr.bf16.mxu0 %v14782_v16  ;;  %4779 = vmatprep.subr.bf16.mxu1 %v14784_v9  ;;  %v3818_v7 = vld [vmem:[#allocation11 + $0xe0] sm:$0xff]  ;;  %v3815_v16 = vld [vmem:[#allocation11 + $0xc8] sm:$0xff] }
 0x454   : > { %v3819_v9 = vld [vmem:[#allocation11 + $0xe8] sm:$0xff]  ;;  %v14827_v31 = vcombine.high %v3814_v0, %v3818_v7  ;;  %v14826_v19 = vcombine.low %v3814_v0, %v3818_v7 }
 0x455   : > { %v14829_v21 = vcombine.high %v3815_v16, %v3819_v9  ;;  %v14828_v25 = vcombine.low %v3815_v16, %v3819_v9 }
 0x456   : > { %4737 = vmatpush1.bf16.msra.mxu0 %v14781_v11  ;;  %4780 = vmatpush1.bf16.msra.mxu1 %v14783_v13  ;;  %v3822_v11 = vld [vmem:[#allocation11 + $0x100] sm:$0xff] }
 0x457   : > { %4738 = vmatprep.subr.bf16.mxu0 %v14790_v14  ;;  %4781 = vmatprep.subr.bf16.mxu1 %v14792_v17  ;;  %v3826_v13 = vld [vmem:[#allocation11 + $0x120] sm:$0xff]  ;;  %v3823_v14 = vld [vmem:[#allocation11 + $0x108] sm:$0xff] }
 0x458   : > { %v3827_v17 = vld [vmem:[#allocation11 + $0x128] sm:$0xff]  ;;  %v14835_v24 = vcombine.high %v3822_v11, %v3826_v13  ;;  %v14834_v26 = vcombine.low %v3822_v11, %v3826_v13  ;;  %v17541_v11 = vld [vmem:[%s17320_s9 + $0x10] sm:$0xff]  }
 0x459   : > { %v14837_v27 = vcombine.high %v3823_v14, %v3827_v17  ;;  %v14836_v33 = vcombine.low %v3823_v14, %v3827_v17 }
 0x45a   : > { %4739 = vmatpush1.bf16.msra.mxu0 %v14789_v30  ;;  %4782 = vmatpush1.bf16.msra.mxu1 %v14791_v28  ;;  %v3830_v30 = vld [vmem:[#allocation11 + $0x140] sm:$0xff] }
 0x45b   : > { %4740 = vmatprep.subr.bf16.mxu0 %v14798_v29  ;;  %4783 = vmatprep.subr.bf16.mxu1 %v14800_v32  ;;  %v3834_v28 = vld [vmem:[#allocation11 + $0x160] sm:$0xff]  ;;  %v3831_v29 = vld [vmem:[#allocation11 + $0x148] sm:$0xff] }
 0x45c   : > { %v3835_v32 = vld [vmem:[#allocation11 + $0x168] sm:$0xff]  ;;  %v14843_v34 = vcombine.high %v3830_v30, %v3834_v28  ;;  %v14842_v42 = vcombine.low %v3830_v30, %v3834_v28  ;;  %v3813_v30 = vld [vmem:[#allocation11 + $0xb8] sm:$0xff] }
 0x45d   : > { %v14845_v35 = vcombine.high %v3831_v29, %v3835_v32  ;;  %v14844_v43 = vcombine.low %v3831_v29, %v3835_v32 }
 0x45e   : > { %4741 = vmatpush1.bf16.msra.mxu0 %v14797_v36  ;;  %4784 = vmatpush1.bf16.msra.mxu1 %v14799_v37  ;;  %v3838_v36 = vld [vmem:[#allocation11 + $0x180] sm:$0xff] }
 0x45f   : > { %5122 = vmatprep.subr.bf16.mxu0 %v14803_v39  ;;  %5165 = vmatprep.subr.bf16.mxu1 %v14805_v40  ;;  %v3842_v37 = vld [vmem:[#allocation11 + $0x1a0] sm:$0xff]  ;;  %v3839_v39 = vld [vmem:[#allocation11 + $0x188] sm:$0xff] }
 0x460   : > { %v3843_v40 = vld [vmem:[#allocation11 + $0x1a8] sm:$0xff]  ;;  %v14851_v48 = vcombine.high %v3838_v36, %v3842_v37  ;;  %v14850_v54 = vcombine.low %v3838_v36, %v3842_v37  ;;  %v3821_v36 = vld [vmem:[#allocation11 + $0xf8] sm:$0xff] }
 0x461   : > { %4743 = vmatmul.mubr.bf16.vlgmr.msra.gmra.mrb[20].mxu0 %v17520_v51  ;;  %4786 = vmatmul.mubr.bf16.vlgmr.msra.gmra.mrb[20].mxu1 %v17520_v51  ;;  %v14853_v12 = vcombine.high %v3839_v39, %v3843_v40  ;;  %v14852_v55 = vcombine.low %v3839_v39, %v3843_v40 }
 0x462   : > { %5123 = vmatpush1.bf16.msra.mxu0 %v14802_v50  ;;  %5166 = vmatpush1.bf16.msra.mxu1 %v14804_v52  ;;  %v3846_v50 = vld [vmem:[#allocation11 + $0x1c0] sm:$0xff] }
 0x463   : > { %5124 = vmatprep.subr.bf16.mxu0 %v14811_v2  ;;  %5167 = vmatprep.subr.bf16.mxu1 %v14813_v53  ;;  %v3850_v52 = vld [vmem:[#allocation11 + $0x1e0] sm:$0xff]  ;;  %v3847_v2 = vld [vmem:[#allocation11 + $0x1c8] sm:$0xff] }
 0x464   : > { %5154 = vmatprep.mubr.bf16.mxu0 %v16972_v41  ;;  %5197 = vmatprep.mubr.bf16.mxu1 %v16972_v41  ;;  %v3851_v53 = vld [vmem:[#allocation11 + $0x1e8] sm:$0xff]  ;;  %v14859_v58 = vcombine.high %v3846_v50, %v3850_v52  ;;  %v14858_v0 = vcombine.low %v3846_v50, %v3850_v52  ;;  %v3829_v50 = vld [vmem:[#allocation11 + $0x138] sm:$0xff] }
 0x465   : > { %v14861_v59 = vcombine.high %v3847_v2, %v3851_v53  ;;  %v14860_v7 = vcombine.low %v3847_v2, %v3851_v53 }
 0x466   : > { %5125 = vmatpush1.bf16.msra.mxu0 %v14810_v60  ;;  %5168 = vmatpush1.bf16.msra.mxu1 %v14812_v61  ;;  %v3792_v60 = vld [vmem:[#allocation11 + $0x10] sm:$0xff] }
 0x467   : > { %5126 = vmatprep.subr.bf16.mxu0 %v14819_v62  ;;  %5169 = vmatprep.subr.bf16.mxu1 %v14821_v63  ;;  %v3796_v61 = vld [vmem:[#allocation11 + $0x30] sm:$0xff]  ;;  %v3793_v62 = vld [vmem:[#allocation11 + $0x18] sm:$0xff] }
 0x468   : > { %v3797_v63 = vld [vmem:[#allocation11 + $0x38] sm:$0xff]  ;;  %v14807_v16 = vcombine.high %v3792_v60, %v3796_v61  ;;  %v14806_v13 = vcombine.low %v3792_v60, %v3796_v61 }
 0x469   : > { %v14809_v9 = vcombine.high %v3793_v62, %v3797_v63  ;;  %v14808_v14 = vcombine.low %v3793_v62, %v3797_v63  ;;  %v3837_v60 = vld [vmem:[#allocation11 + $0x178] sm:$0xff] }
 0x46a   : > { %5127 = vmatpush1.bf16.msra.mxu0 %v14818_v10  ;;  %5170 = vmatpush1.bf16.msra.mxu1 %v14820_v15  ;;  %v3800_v10 = vld [vmem:[#allocation11 + $0x50] sm:$0xff] }
 0x46b   : > { %5128 = vmatprep.subr.bf16.mxu0 %v14827_v31  ;;  %5171 = vmatprep.subr.bf16.mxu1 %v14829_v21  ;;  %v3804_v15 = vld [vmem:[#allocation11 + $0x70] sm:$0xff]  ;;  %v3801_v31 = vld [vmem:[#allocation11 + $0x58] sm:$0xff] }
 0x46c   : > { %v3805_v21 = vld [vmem:[#allocation11 + $0x78] sm:$0xff]  ;;  %v14815_v17 = vcombine.high %v3800_v10, %v3804_v15  ;;  %v14814_v28 = vcombine.low %v3800_v10, %v3804_v15 }
 0x46d   : > { %v14816_v29 = vcombine.low %v3801_v31, %v3805_v21  ;;  %v3845_v10 = vld [vmem:[#allocation11 + $0x1b8] sm:$0xff] }
 0x46e   : > { %5129 = vmatpush1.bf16.msra.mxu0 %v14826_v19  ;;  %5172 = vmatpush1.bf16.msra.mxu1 %v14828_v25  ;;  %v14817_v19 = vcombine.high %v3801_v31, %v3805_v21  ;;  %v3808_v25 = vld [vmem:[#allocation11 + $0x90] sm:$0xff] }
 0x46f   : > { %5130 = vmatprep.subr.bf16.mxu0 %v14835_v24  ;;  %5173 = vmatprep.subr.bf16.mxu1 %v14837_v27  ;;  %v3812_v24 = vld [vmem:[#allocation11 + $0xb0] sm:$0xff]  ;;  %v3809_v27 = vld [vmem:[#allocation11 + $0x98] sm:$0xff] }
 0x470   : > { %v14823_v32 = vcombine.high %v3808_v25, %v3812_v24  ;;  %v14822_v37 = vcombine.low %v3808_v25, %v3812_v24  ;;  %v14824_v39 = vcombine.low %v3809_v27, %v3813_v30  ;;  %v3853_v25 = vld [vmem:[#allocation11 + $0x1f8] sm:$0xff] }
 0x472   : > { %5131 = vmatpush1.bf16.msra.mxu0 %v14834_v26  ;;  %5174 = vmatpush1.bf16.msra.mxu1 %v14836_v33  ;;  %v14825_v26 = vcombine.high %v3809_v27, %v3813_v30  ;;  %v3816_v33 = vld [vmem:[#allocation11 + $0xd0] sm:$0xff] }
 0x473   : > { %5132 = vmatprep.subr.bf16.mxu0 %v14843_v34  ;;  %5175 = vmatprep.subr.bf16.mxu1 %v14845_v35  ;;  %v3820_v34 = vld [vmem:[#allocation11 + $0xf0] sm:$0xff]  ;;  %v3817_v35 = vld [vmem:[#allocation11 + $0xd8] sm:$0xff] }
 0x474   : > { %v14831_v40 = vcombine.high %v3816_v33, %v3820_v34  ;;  %v14830_v52 = vcombine.low %v3816_v33, %v3820_v34  ;;  %v14832_v2 = vcombine.low %v3817_v35, %v3821_v36  ;;  %v5460_v33 = vld [vmem:[#allocation13 + $0x20] sm:$0xff]  ;;  %v5457_v34 = vld [vmem:[#allocation13 + $0x8] sm:$0xff] }
 0x476   : > { %5133 = vmatpush1.bf16.msra.mxu0 %v14842_v42  ;;  %5176 = vmatpush1.bf16.msra.mxu1 %v14844_v43  ;;  %v14833_v42 = vcombine.high %v3817_v35, %v3821_v36  ;;  %v3824_v43 = vld [vmem:[#allocation11 + $0x110] sm:$0xff]  ;;  %v5461_v36 = vld [vmem:[#allocation13 + $0x28] sm:$0xff] }
 0x477   : > { %5134 = vmatprep.subr.bf16.mxu0 %v14851_v48  ;;  %5177 = vmatprep.subr.bf16.mxu1 %v14853_v12  ;;  %v3828_v48 = vld [vmem:[#allocation11 + $0x130] sm:$0xff]  ;;  %v3825_v12 = vld [vmem:[#allocation11 + $0x118] sm:$0xff] }
 0x478   : > { %v14839_v53 = vcombine.high %v3824_v43, %v3828_v48  ;;  %v14838_v61 = vcombine.low %v3824_v43, %v3828_v48  ;;  %v14840_v62 = vcombine.low %v3825_v12, %v3829_v50  ;;  %v5468_v43 = vld [vmem:[#allocation13 + $0x60] sm:$0xff]  ;;  %v5465_v48 = vld [vmem:[#allocation13 + $0x48] sm:$0xff] }
 0x47a   : > { %5135 = vmatpush1.bf16.msra.mxu0 %v14850_v54  ;;  %5178 = vmatpush1.bf16.msra.mxu1 %v14852_v55  ;;  %v14841_v54 = vcombine.high %v3825_v12, %v3829_v50  ;;  %v3832_v55 = vld [vmem:[#allocation11 + $0x150] sm:$0xff]  ;;  %v5469_v50 = vld [vmem:[#allocation13 + $0x68] sm:$0xff] }
 0x47b   : > { %5136 = vmatprep.subr.bf16.mxu0 %v14859_v58  ;;  %5179 = vmatprep.subr.bf16.mxu1 %v14861_v59  ;;  %v3836_v58 = vld [vmem:[#allocation11 + $0x170] sm:$0xff]  ;;  %v3833_v59 = vld [vmem:[#allocation11 + $0x158] sm:$0xff] }
 0x47c   : > { %v14847_v63 = vcombine.high %v3832_v55, %v3836_v58  ;;  %v14846_v15 = vcombine.low %v3832_v55, %v3836_v58  ;;  %v14848_v31 = vcombine.low %v3833_v59, %v3837_v60  ;;  %v5473_v55 = vld [vmem:[#allocation13 + $0x88] sm:$0xff] }
 0x47e   : > { %5137 = vmatpush1.bf16.msra.mxu0 %v14858_v0  ;;  %5180 = vmatpush1.bf16.msra.mxu1 %v14860_v7  ;;  %v14849_v0 = vcombine.high %v3833_v59, %v3837_v60  ;;  %v3840_v7 = vld [vmem:[#allocation11 + $0x190] sm:$0xff]  ;;  %v5477_v59 = vld [vmem:[#allocation13 + $0xa8] sm:$0xff] }
 0x47f   : > { %5208 = vmatprep.subr.bf16.mxu0 %v14807_v16  ;;  %5251 = vmatprep.subr.bf16.mxu1 %v14809_v9  ;;  %v3844_v16 = vld [vmem:[#allocation11 + $0x1b0] sm:$0xff]  ;;  %v3841_v9 = vld [vmem:[#allocation11 + $0x198] sm:$0xff] }
 0x480   : > { %v14855_v21 = vcombine.high %v3840_v7, %v3844_v16  ;;  %v14854_v24 = vcombine.low %v3840_v7, %v3844_v16  ;;  %v14856_v27 = vcombine.low %v3841_v9, %v3845_v10  ;;  %v5481_v7 = vld [vmem:[#allocation13 + $0xc8] sm:$0xff] }
 0x481   : > { %5155 = vmatmul.mubr.bf16.vlgmr.msra.gmra.mrb[16].mxu0 %v17541_v11  ;;  %5198 = vmatmul.mubr.bf16.vlgmr.msra.gmra.mrb[16].mxu1 %v17541_v11 }
 0x482   : > { %5209 = vmatpush1.bf16.msra.mxu0 %v14806_v13  ;;  %5252 = vmatpush1.bf16.msra.mxu1 %v14808_v14  ;;  %v14857_v13 = vcombine.high %v3841_v9, %v3845_v10  ;;  %v3848_v14 = vld [vmem:[#allocation11 + $0x1d0] sm:$0xff]  ;;  %v5485_v9 = vld [vmem:[#allocation13 + $0xe8] sm:$0xff] }
 0x483   : > { %5210 = vmatprep.subr.bf16.mxu0 %v14815_v17  ;;  %5253 = vmatprep.subr.bf16.mxu1 %v14817_v19  ;;  %v3852_v17 = vld [vmem:[#allocation11 + $0x1f0] sm:$0xff]  ;;  %v3849_v19 = vld [vmem:[#allocation11 + $0x1d8] sm:$0xff] }
 0x484   : > { %5240 = vmatprep.mubr.bf16.mxu0 %v16972_v41  ;;  %5283 = vmatprep.mubr.bf16.mxu1 %v16972_v41  ;;  %v14863_v30 = vcombine.high %v3848_v14, %v3852_v17 }
 0x486   : > { %5211 = vmatpush1.bf16.msra.mxu0 %v14814_v28  ;;  %5254 = vmatpush1.bf16.msra.mxu1 %v14816_v29  ;;  %v14865_v28 = vcombine.high %v3849_v19, %v3853_v25  ;;  %v14862_v29 = vcombine.low %v3848_v14, %v3852_v17  ;;  %v5489_v14 = vld [vmem:[#allocation13 + $0x108] sm:$0xff] }
 0x487   : > { %5212 = vmatprep.subr.bf16.mxu0 %v14823_v32  ;;  %5255 = vmatprep.subr.bf16.mxu1 %v14825_v26  ;;  %v14864_v32 = vcombine.low %v3849_v19, %v3853_v25  ;;  %v5456_v26 = vld [vmem:[#allocation13] sm:$0xff]  ;;  %v5493_v19 = vld [vmem:[#allocation13 + $0x128] sm:$0xff] }
 0x488   : > { %v14869_v35 = vcombine.high %v5456_v26, %v5460_v33 }
 0x48a   : > { %5213 = vmatpush1.bf16.msra.mxu0 %v14822_v37  ;;  %5256 = vmatpush1.bf16.msra.mxu1 %v14824_v39  ;;  %v14868_v37 = vcombine.low %v5456_v26, %v5460_v33  ;;  %v14870_v39 = vcombine.low %v5457_v34, %v5461_v36  ;;  %v5501_v26 = vld [vmem:[#allocation13 + $0x168] sm:$0xff] }
 0x48b   : > { %5214 = vmatprep.subr.bf16.mxu0 %v14831_v40  ;;  %5257 = vmatprep.subr.bf16.mxu1 %v14833_v42  ;;  %v14871_v40 = vcombine.high %v5457_v34, %v5461_v36  ;;  %v5464_v42 = vld [vmem:[#allocation13 + $0x40] sm:$0xff] }
 0x48c   : > { %v14877_v12 = vcombine.high %v5464_v42, %v5468_v43  ;;  %v5504_v36 = vld [vmem:[#allocation13 + $0x180] sm:$0xff] }
 0x48e   : > { %5215 = vmatpush1.bf16.msra.mxu0 %v14830_v52  ;;  %5258 = vmatpush1.bf16.msra.mxu1 %v14832_v2  ;;  %v14876_v52 = vcombine.low %v5464_v42, %v5468_v43  ;;  %v14878_v2 = vcombine.low %v5465_v48, %v5469_v50  ;;  %v5509_v42 = vld [vmem:[#allocation13 + $0x1a8] sm:$0xff] }
 0x48f   : > { %5216 = vmatprep.subr.bf16.mxu0 %v14839_v53  ;;  %5259 = vmatprep.subr.bf16.mxu1 %v14841_v54  ;;  %v5472_v53 = vld [vmem:[#allocation13 + $0x80] sm:$0xff] }
 0x490   : > { %v5476_v54 = vld [vmem:[#allocation13 + $0xa0] sm:$0xff] }
 0x491   : > { %v14885_v58 = vcombine.high %v5472_v53, %v5476_v54  ;;  %v14884_v60 = vcombine.low %v5472_v53, %v5476_v54  ;;  %v5517_v53 = vld [vmem:[#allocation13 + $0x1e8] sm:$0xff] }
 0x492   : > { %5217 = vmatpush1.bf16.msra.mxu0 %v14838_v61  ;;  %5260 = vmatpush1.bf16.msra.mxu1 %v14840_v62  ;;  %v14886_v61 = vcombine.low %v5473_v55, %v5477_v59  ;;  %v14887_v62 = vcombine.high %v5473_v55, %v5477_v59  ;;  %v5520_v59 = vld [vmem:[#allocation13 + $0x200] sm:$0xff] }
 0x493   : > { %5218 = vmatprep.subr.bf16.mxu0 %v14847_v63  ;;  %5261 = vmatprep.subr.bf16.mxu1 %v14849_v0  ;;  %v5480_v63 = vld [vmem:[#allocation13 + $0xc0] sm:$0xff] }
 0x494   : > { %v5484_v0 = vld [vmem:[#allocation13 + $0xe0] sm:$0xff] }
 0x495   : > { %v14893_v16 = vcombine.high %v5480_v63, %v5484_v0  ;;  %v14892_v10 = vcombine.low %v5480_v63, %v5484_v0  ;;  %v5525_v63 = vld [vmem:[#allocation13 + $0x228] sm:$0xff] }
 0x496   : > { %5219 = vmatpush1.bf16.msra.mxu0 %v14846_v15  ;;  %5262 = vmatpush1.bf16.msra.mxu1 %v14848_v31  ;;  %v14894_v15 = vcombine.low %v5481_v7, %v5485_v9  ;;  %v14895_v31 = vcombine.high %v5481_v7, %v5485_v9  ;;  %v5528_v9 = vld [vmem:[#allocation13 + $0x240] sm:$0xff] }
 0x497   : > { %5220 = vmatprep.subr.bf16.mxu0 %v14855_v21  ;;  %5263 = vmatprep.subr.bf16.mxu1 %v14857_v13  ;;  %v5488_v21 = vld [vmem:[#allocation13 + $0x100] sm:$0xff] }
 0x498   : > { %v5492_v13 = vld [vmem:[#allocation13 + $0x120] sm:$0xff] }
 0x499   : > { %v14901_v17 = vcombine.high %v5488_v21, %v5492_v13  ;;  %v14900_v25 = vcombine.low %v5488_v21, %v5492_v13  ;;  %v5533_v21 = vld [vmem:[#allocation13 + $0x268] sm:$0xff] }
 0x49a   : > { %5221 = vmatpush1.bf16.msra.mxu0 %v14854_v24  ;;  %5264 = vmatpush1.bf16.msra.mxu1 %v14856_v27  ;;  %v14902_v24 = vcombine.low %v5489_v14, %v5493_v19  ;;  %v14903_v27 = vcombine.high %v5489_v14, %v5493_v19  ;;  %v5536_v19 = vld [vmem:[#allocation13 + $0x280] sm:$0xff] }
 0x49b   : > { %5222 = vmatprep.subr.bf16.mxu0 %v14863_v30  ;;  %5265 = vmatprep.subr.bf16.mxu1 %v14865_v28  ;;  %v5496_v30 = vld [vmem:[#allocation13 + $0x140] sm:$0xff] }
 0x49c   : > { %v5500_v28 = vld [vmem:[#allocation13 + $0x160] sm:$0xff] }
 0x49d   : > { %v14908_v33 = vcombine.low %v5496_v30, %v5500_v28 }
 0x49e   : > { %5223 = vmatpush1.bf16.msra.mxu0 %v14862_v29  ;;  %5266 = vmatpush1.bf16.msra.mxu1 %v14864_v32  ;;  %v5497_v29 = vld [vmem:[#allocation13 + $0x148] sm:$0xff]  ;;  %v14909_v32 = vcombine.high %v5496_v30, %v5500_v28 }
 0x49f   : > { %6224 = vmatprep.subr.bf16.mxu0 %v14869_v35  ;;  %6267 = vmatprep.subr.bf16.mxu1 %v14871_v40  ;;  %v14910_v34 = vcombine.low %v5497_v29, %v5501_v26  ;;  %v14911_v35 = vcombine.high %v5497_v29, %v5501_v26  ;;  %v5541_v30 = vld [vmem:[#allocation13 + $0x2a8] sm:$0xff]  ;;  %v5544_v26 = vld [vmem:[#allocation13 + $0x2c0] sm:$0xff] }
 0x4a1   : > { %5241 = vmatmul.mubr.bf16.vlgmr.msra.gmra.mrb[20].mxu0 %v17541_v11  ;;  %5284 = vmatmul.mubr.bf16.vlgmr.msra.gmra.mrb[20].mxu1 %v17541_v11  ;;  %v14879_v11 = vcombine.high %v5465_v48, %v5469_v50  ;;  %v5512_v50 = vld [vmem:[#allocation13 + $0x1c0] sm:$0xff] }
 0x4a2   : > { %6225 = vmatpush1.bf16.msra.mxu0 %v14868_v37  ;;  %6268 = vmatpush1.bf16.msra.mxu1 %v14870_v39  ;;  %v5508_v37 = vld [vmem:[#allocation13 + $0x1a0] sm:$0xff]  ;;  %v5505_v39 = vld [vmem:[#allocation13 + $0x188] sm:$0xff] }
 0x4a3   : > { %6226 = vmatprep.subr.bf16.mxu0 %v14877_v12  ;;  %6269 = vmatprep.subr.bf16.mxu1 %v14879_v11  ;;  %v14917_v40 = vcombine.high %v5504_v36, %v5508_v37  ;;  %v14916_v43 = vcombine.low %v5504_v36, %v5508_v37  ;;  %v14919_v48 = vcombine.high %v5505_v39, %v5509_v42  ;;  %v5549_v36 = vld [vmem:[#allocation13 + $0x2e8] sm:$0xff] }
 0x4a4   : > { %v14918_v12 = vcombine.low %v5505_v39, %v5509_v42  ;;  %v5552_v42 = vld [vmem:[#allocation13 + $0x300] sm:$0xff] }
 0x4a6   : > { %6227 = vmatpush1.bf16.msra.mxu0 %v14876_v52  ;;  %6270 = vmatpush1.bf16.msra.mxu1 %v14878_v2  ;;  %v5516_v52 = vld [vmem:[#allocation13 + $0x1e0] sm:$0xff]  ;;  %v5513_v2 = vld [vmem:[#allocation13 + $0x1c8] sm:$0xff] }
 0x4a7   : > { %6228 = vmatprep.subr.bf16.mxu0 %v14885_v58  ;;  %6271 = vmatprep.subr.bf16.mxu1 %v14887_v62  ;;  %v14925_v11 = vcombine.high %v5512_v50, %v5516_v52  ;;  %v14924_v54 = vcombine.low %v5512_v50, %v5516_v52  ;;  %v14926_v55 = vcombine.low %v5513_v2, %v5517_v53  ;;  %v5557_v50 = vld [vmem:[#allocation13 + $0x328] sm:$0xff] }
 0x4a8   : > { %v14927_v58 = vcombine.high %v5513_v2, %v5517_v53  ;;  %v5560_v53 = vld [vmem:[#allocation13 + $0x340] sm:$0xff] }
 0x4aa   : > { %6229 = vmatpush1.bf16.msra.mxu0 %v14884_v60  ;;  %6272 = vmatpush1.bf16.msra.mxu1 %v14886_v61  ;;  %v5524_v60 = vld [vmem:[#allocation13 + $0x220] sm:$0xff]  ;;  %v5521_v61 = vld [vmem:[#allocation13 + $0x208] sm:$0xff] }
 0x4ab   : > { %6230 = vmatprep.subr.bf16.mxu0 %v14893_v16  ;;  %6273 = vmatprep.subr.bf16.mxu1 %v14895_v31  ;;  %v14933_v62 = vcombine.high %v5520_v59, %v5524_v60  ;;  %v14932_v0 = vcombine.low %v5520_v59, %v5524_v60  ;;  %v14934_v7 = vcombine.low %v5521_v61, %v5525_v63  ;;  %v5565_v59 = vld [vmem:[#allocation13 + $0x368] sm:$0xff] }
 0x4ac   : > { %v14935_v16 = vcombine.high %v5521_v61, %v5525_v63  ;;  %v5568_v63 = vld [vmem:[#allocation13 + $0x380] sm:$0xff] }
 0x4ae   : > { %6231 = vmatpush1.bf16.msra.mxu0 %v14892_v10  ;;  %6274 = vmatpush1.bf16.msra.mxu1 %v14894_v15  ;;  %v5532_v10 = vld [vmem:[#allocation13 + $0x260] sm:$0xff]  ;;  %v5529_v15 = vld [vmem:[#allocation13 + $0x248] sm:$0xff] }
 0x4af   : > { %6232 = vmatprep.subr.bf16.mxu0 %v14901_v17  ;;  %6275 = vmatprep.subr.bf16.mxu1 %v14903_v27  ;;  %v14941_v31 = vcombine.high %v5528_v9, %v5532_v10  ;;  %v14940_v13 = vcombine.low %v5528_v9, %v5532_v10  ;;  %v14942_v14 = vcombine.low %v5529_v15, %v5533_v21  ;;  %v5573_v9 = vld [vmem:[#allocation13 + $0x3a8] sm:$0xff] }
 0x4b0   : > { %v14943_v17 = vcombine.high %v5529_v15, %v5533_v21  ;;  %v5576_v21 = vld [vmem:[#allocation13 + $0x3c0] sm:$0xff] }
 0x4b2   : > { %6233 = vmatpush1.bf16.msra.mxu0 %v14900_v25  ;;  %6276 = vmatpush1.bf16.msra.mxu1 %v14902_v24  ;;  %v5540_v25 = vld [vmem:[#allocation13 + $0x2a0] sm:$0xff]  ;;  %v5537_v24 = vld [vmem:[#allocation13 + $0x288] sm:$0xff] }
 0x4b3   : > { %6234 = vmatprep.subr.bf16.mxu0 %v14909_v32  ;;  %6277 = vmatprep.subr.bf16.mxu1 %v14911_v35  ;;  %v14949_v27 = vcombine.high %v5536_v19, %v5540_v25  ;;  %v14948_v28 = vcombine.low %v5536_v19, %v5540_v25  ;;  %v14950_v29 = vcombine.low %v5537_v24, %v5541_v30  ;;  %v5581_v19 = vld [vmem:[#allocation13 + $0x3e8] sm:$0xff] }
 0x4b4   : > { %v14951_v32 = vcombine.high %v5537_v24, %v5541_v30  ;;  %v17549_v30 = vld [vmem:[#allocation13 + $0x10] sm:$0xff] }
 0x4b6   : > { %6235 = vmatpush1.bf16.msra.mxu0 %v14908_v33  ;;  %6278 = vmatpush1.bf16.msra.mxu1 %v14910_v34  ;;  %v5548_v33 = vld [vmem:[#allocation13 + $0x2e0] sm:$0xff]  ;;  %v5545_v34 = vld [vmem:[#allocation13 + $0x2c8] sm:$0xff] }
 0x4b7   : > { %6236 = vmatprep.subr.bf16.mxu0 %v14917_v40  ;;  %6279 = vmatprep.subr.bf16.mxu1 %v14919_v48  ;;  %v14957_v35 = vcombine.high %v5544_v26, %v5548_v33  ;;  %v14956_v37 = vcombine.low %v5544_v26, %v5548_v33  ;;  %v14958_v39 = vcombine.low %v5545_v34, %v5549_v36  ;;  %v5553_v48 = vld [vmem:[#allocation13 + $0x308] sm:$0xff]  ;;  %v17557_v26 = vld [vmem:[#allocation13 + $0x38] sm:$0xff] }
 0x4b8   : > { %v14959_v40 = vcombine.high %v5545_v34, %v5549_v36  ;;  %v14966_v2 = vcombine.low %v5553_v48, %v5557_v50 }
 0x4ba   : > { %6237 = vmatpush1.bf16.msra.mxu0 %v14916_v43  ;;  %6280 = vmatpush1.bf16.msra.mxu1 %v14918_v12  ;;  %v5556_v43 = vld [vmem:[#allocation13 + $0x320] sm:$0xff] }
 0x4bb   : > { %6238 = vmatprep.subr.bf16.mxu0 %v14925_v11  ;;  %6281 = vmatprep.subr.bf16.mxu1 %v14927_v58  ;;  %v14965_v12 = vcombine.high %v5552_v42, %v5556_v43  ;;  %v14964_v52 = vcombine.low %v5552_v42, %v5556_v43  ;;  %v14967_v11 = vcombine.high %v5553_v48, %v5557_v50 }
 0x4be   : > { %6239 = vmatpush1.bf16.msra.mxu0 %v14924_v54  ;;  %6282 = vmatpush1.bf16.msra.mxu1 %v14926_v55  ;;  %v5564_v54 = vld [vmem:[#allocation13 + $0x360] sm:$0xff]  ;;  %v5561_v55 = vld [vmem:[#allocation13 + $0x348] sm:$0xff] }
 0x4bf   : > { %6240 = vmatprep.subr.bf16.mxu0 %v14933_v62  ;;  %6283 = vmatprep.subr.bf16.mxu1 %v14935_v16  ;;  %v14973_v58 = vcombine.high %v5560_v53, %v5564_v54  ;;  %v14972_v60 = vcombine.low %v5560_v53, %v5564_v54  ;;  %v14974_v61 = vcombine.low %v5561_v55, %v5565_v59 }
 0x4c0   : > { %v14975_v62 = vcombine.high %v5561_v55, %v5565_v59 }
 0x4c2   : > { %6241 = vmatpush1.bf16.msra.mxu0 %v14932_v0  ;;  %6284 = vmatpush1.bf16.msra.mxu1 %v14934_v7  ;;  %v5572_v0 = vld [vmem:[#allocation13 + $0x3a0] sm:$0xff]  ;;  %v5569_v7 = vld [vmem:[#allocation13 + $0x388] sm:$0xff] }
 0x4c3   : > { %6242 = vmatprep.subr.bf16.mxu0 %v14941_v31  ;;  %6285 = vmatprep.subr.bf16.mxu1 %v14943_v17  ;;  %v14981_v16 = vcombine.high %v5568_v63, %v5572_v0  ;;  %v14980_v10 = vcombine.low %v5568_v63, %v5572_v0  ;;  %v14982_v15 = vcombine.low %v5569_v7, %v5573_v9 }
 0x4c4   : > { %v14983_v31 = vcombine.high %v5569_v7, %v5573_v9 }
 0x4c6   : > { %6243 = vmatpush1.bf16.msra.mxu0 %v14940_v13  ;;  %6286 = vmatpush1.bf16.msra.mxu1 %v14942_v14  ;;  %v5580_v13 = vld [vmem:[#allocation13 + $0x3e0] sm:$0xff]  ;;  %v5577_v14 = vld [vmem:[#allocation13 + $0x3c8] sm:$0xff] }
 0x4c7   : > { %6244 = vmatprep.subr.bf16.mxu0 %v14949_v27  ;;  %6287 = vmatprep.subr.bf16.mxu1 %v14951_v32  ;;  %v14989_v17 = vcombine.high %v5576_v21, %v5580_v13  ;;  %v14988_v25 = vcombine.low %v5576_v21, %v5580_v13  ;;  %v14990_v24 = vcombine.low %v5577_v14, %v5581_v19 }
 0x4c8   : > { %v14991_v27 = vcombine.high %v5577_v14, %v5581_v19 }
 0x4ca   : > { %6245 = vmatpush1.bf16.msra.mxu0 %v14948_v28  ;;  %6288 = vmatpush1.bf16.msra.mxu1 %v14950_v29  ;;  %v17551_v28 = vld [vmem:[#allocation13 + $0x30] sm:$0xff]  ;;  %v17553_v29 = vld [vmem:[#allocation13 + $0x18] sm:$0xff] }
 0x4cb   : > { %6246 = vmatprep.subr.bf16.mxu0 %v14957_v35  ;;  %6289 = vmatprep.subr.bf16.mxu1 %v14959_v40  ;;  %v14873_v32 = vcombine.high %v17549_v30, %v17551_v28  ;;  %v14872_v33 = vcombine.low %v17549_v30, %v17551_v28  ;;  %v14874_v34 = vcombine.low %v17553_v29, %v17557_v26 }
 0x4cc   : > { %v14875_v35 = vcombine.high %v17553_v29, %v17557_v26 }
 0x4ce   : > { %6247 = vmatpush1.bf16.msra.mxu0 %v14956_v37  ;;  %6290 = vmatpush1.bf16.msra.mxu1 %v14958_v39 }
 0x4cf   : > { %6248 = vmatprep.subr.bf16.mxu0 %v14965_v12  ;;  %6291 = vmatprep.subr.bf16.mxu1 %v14967_v11 }
 0x4d2   : > { %6249 = vmatpush1.bf16.msra.mxu0 %v14964_v52  ;;  %6292 = vmatpush1.bf16.msra.mxu1 %v14966_v2 }
 0x4d3   : > { %6250 = vmatprep.subr.bf16.mxu0 %v14973_v58  ;;  %6293 = vmatprep.subr.bf16.mxu1 %v14975_v62 }
 0x4d6   : > { %6251 = vmatpush1.bf16.msra.mxu0 %v14972_v60  ;;  %6294 = vmatpush1.bf16.msra.mxu1 %v14974_v61 }
 0x4d7   : > { %6252 = vmatprep.subr.bf16.mxu0 %v14981_v16  ;;  %6295 = vmatprep.subr.bf16.mxu1 %v14983_v31 }
 0x4da   : > { %6253 = vmatpush1.bf16.msra.mxu0 %v14980_v10  ;;  %6296 = vmatpush1.bf16.msra.mxu1 %v14982_v15 }
 0x4db   : > { %6254 = vmatprep.subr.bf16.mxu0 %v14989_v17  ;;  %6297 = vmatprep.subr.bf16.mxu1 %v14991_v27 }
 0x4de   : > { %6255 = vmatpush1.bf16.msra.mxu0 %v14988_v25  ;;  %6298 = vmatpush1.bf16.msra.mxu1 %v14990_v24 }
 0x4df   : > { %6310 = vmatprep.subr.bf16.mxu0 %v14873_v32  ;;  %6353 = vmatprep.subr.bf16.mxu1 %v14875_v35 }
 0x554   : > { %v5156_v36 = vpop.f32.mrb[16].mxu0  ;;  %v5199_v37 = vpop.f32.mrb[16].mxu1 }
 0x555   : > { %v5158_v39 = vpop.f32.mrb[17].mxu0  ;;  %v5201_v40 = vpop.f32.mrb[17].mxu1  ;;  %v5296_v50 = vadd.f32 %v5199_v37, %v17390_v22  ;;  %v5294_v2 = vadd.f32 %v5156_v36, %v17397_v47 }
 0x556   : > { %v5160_v42 = vpop.f32.mrb[18].mxu0  ;;  %v5203_v43 = vpop.f32.mrb[18].mxu1  ;;  %v5297_v52 = vadd.f32 %v5201_v40, %v17393_v46  ;;  %v5295_v53 = vadd.f32 %v5158_v39, %v17402_v49 }
 0x557   : > { %v5162_v48 = vpop.f32.mrb[19].mxu0  ;;  %v5205_v12 = vpop.f32.mrb[19].mxu1  ;;  %v5326_v11 = vmul.f32 0.5, %v5296_v50  ;;  %v5304_v54 = vadd.f32 %v5203_v43, %v17390_v22  ;;  %v5302_v58 = vadd.f32 %v5160_v42, %v17397_v47  ;;  %v5310_v59 = vmul.f32 0.5, %v5294_v2 }
 0x558   : > { %v5327_v55 = vmul.f32 0.5, %v5297_v52  ;;  %v5305_v60 = vadd.f32 %v5205_v12, %v17393_v46  ;;  %v5311_v61 = vmul.f32 0.5, %v5295_v53  ;;  %v5303_v63 = vadd.f32 %v5162_v48, %v17402_v49 }
 0x559   : > { %16383 = vtanh.f32 %v5326_v11  ;;  %v5328_v62 = vmul.f32 0.5, %v5304_v54  ;;  %v5312_v0 = vmul.f32 0.5, %v5302_v58 }
 0x55a   : > { %16385 = vtanh.f32 %v5327_v55  ;;  %v5329_v7 = vmul.f32 0.5, %v5305_v60  ;;  %v5313_v16 = vmul.f32 0.5, %v5303_v63 }
 0x55b   : > { %16387 = vtanh.f32 %v5310_v59 }
 0x55c   : > { %16389 = vtanh.f32 %v5311_v61 }
 0x55d   : > { %16391 = vtanh.f32 %v5328_v62 }
 0x55e   : > { %16393 = vtanh.f32 %v5312_v0 }
 0x55f   : > { %16395 = vtanh.f32 %v5329_v7 }
 0x560   : > { %16397 = vtanh.f32 %v5313_v16 }
 0x563   : > { %v16384_v13 = vpop.eup %16383 }
 0x564   : > { %v16386_v32 = vpop.eup %16385  ;;  %v5334_v36 = vmul.f32 0.5, %v16384_v13 }
 0x565   : > { %v16388_v35 = vpop.eup %16387  ;;  %v5335_v48 = vmul.f32 0.5, %v16386_v32 }
 0x566   : > { %v16390_v40 = vpop.eup %16389  ;;  %v5318_v52 = vmul.f32 0.5, %v16388_v35  ;;  %v5338_v53 = vadd.f32 0.5, %v5334_v36 }
 0x567   : > { %v16392_v43 = vpop.eup %16391  ;;  %v5319_v54 = vmul.f32 0.5, %v16390_v40  ;;  %v5339_v61 = vadd.f32 0.5, %v5335_v48 }
 0x568   : > { %v16394_v50 = vpop.eup %16393  ;;  %v5336_v58 = vmul.f32 0.5, %v16392_v43  ;;  %v5322_v63 = vadd.f32 0.5, %v5318_v52 }
 0x569   : > { %v16396_v11 = vpop.eup %16395  ;;  %v5320_v0 = vmul.f32 0.5, %v16394_v50 }
 0x56a   : > { %v16398_v60 = vpop.eup %16397  ;;  %v5337_v7 = vmul.f32 0.5, %v16396_v11 }
 0x56b   : > { %v5321_v13 = vmul.f32 0.5, %v16398_v60 }
 0x56d   : > { %v5325_v36 = vadd.f32 0.5, %v5321_v13 }
 0x574   : > { %v5242_v9 = vpop.f32.mrb[20].mxu0  ;;  %v5285_v10 = vpop.f32.mrb[20].mxu1 }
 0x575   : > { %v5298_v15 = vadd.f32 %v5242_v9, %v17414_v4  ;;  %v5244_v31 = vpop.f32.mrb[21].mxu0  ;;  %v5287_v21 = vpop.f32.mrb[21].mxu1  ;;  %v5300_v37 = vadd.f32 %v5285_v10, %v17418_v6  ;;  %v5362_v10 = vmul.f32 %v5338_v53, %v17506_v3 }
 0x576   : > { %v5299_v14 = vadd.f32 %v5244_v31, %v17416_v5  ;;  %v5246_v17 = vpop.f32.mrb[22].mxu0  ;;  %v5289_v19 = vpop.f32.mrb[22].mxu1  ;;  %v5301_v12 = vadd.f32 %v5287_v21, %v17424_v18  ;;  %v5340_v21 = vadd.f32 0.5, %v5336_v58 }
 0x577   : > { %16399 = vtanh.f32 %v5298_v15  ;;  %v5306_v25 = vadd.f32 %v5246_v17, %v17414_v4  ;;  %v5248_v24 = vpop.f32.mrb[23].mxu0  ;;  %v5291_v27 = vpop.f32.mrb[23].mxu1  ;;  %v5308_v42 = vadd.f32 %v5289_v19, %v17418_v6  ;;  %v5346_v55 = vmul.f32 0.5, %v5300_v37 }
 0x578   : > { %16401 = vtanh.f32 %v5299_v14  ;;  %v5307_v39 = vadd.f32 %v5248_v24, %v17416_v5  ;;  %v5309_v2 = vadd.f32 %v5291_v27, %v17424_v18  ;;  %v5347_v62 = vmul.f32 0.5, %v5301_v12 }
 0x579   : > { %16403 = vtanh.f32 %v5306_v25  ;;  %v5348_v59 = vmul.f32 0.5, %v5308_v42  ;;  %v5323_v15 = vadd.f32 0.5, %v5319_v54  ;;  %v5363_v17 = vmul.f32 %v5339_v61, %v17508_v8 }
 0x57a   : > { %16405 = vtanh.f32 %v5307_v39  ;;  %v5349_v16 = vmul.f32 0.5, %v5309_v2  ;;  %v5324_v25 = vadd.f32 0.5, %v5320_v0  ;;  %v5341_v24 = vadd.f32 0.5, %v5337_v7 }
 0x57b   : > { %16407 = vtanh.f32 %v5346_v55  ;;  %v5364_v3 = vmul.f32 %v5340_v21, %v17513_v20  ;;  %v5471_v21 = vld [vmem:[#allocation13 + $0x78] sm:$0xff] }
 0x57c   : > { %16409 = vtanh.f32 %v5348_v59  ;;  %v5365_v40 = vmul.f32 %v5341_v24, %v17517_v23  ;;  %v5475_v24 = vld [vmem:[#allocation13 + $0x98] sm:$0xff] }
 0x57d   : > { %16411 = vtanh.f32 %v5347_v62 }
 0x57e   : > { %16413 = vtanh.f32 %v5349_v16 }
 0x581   : > { %v16400_v9 = vpop.eup %16399 }
 0x582   : > { %v16402_v31 = vpop.eup %16401  ;;  %v5366_v14 = vmul.f32 %v16400_v9, %v5322_v63 }
 0x583   : > { %v5367_v19 = vmul.f32 %v16402_v31, %v5323_v15  ;;  %v16404_v32 = vpop.eup %16403  ;;  %v5470_v15 = vld [vmem:[#allocation13 + $0x70] sm:$0xff]  ;;  %v5467_v31 = vld [vmem:[#allocation13 + $0x58] sm:$0xff] }
 0x584   : > { %v17583_v27 = vadd.f32 %v5366_v14, %v5362_v10  ;;  %v5368_v37 = vmul.f32 %v16404_v32, %v5324_v25  ;;  %v16406_v39 = vpop.eup %16405  ;;  %v5466_v10 = vld [vmem:[#allocation13 + $0x50] sm:$0xff]  ;;  %v5479_v32 = vld [vmem:[#allocation13 + $0xb8] sm:$0xff] }
 0x585   : > { %v17585_v35 = vadd.f32 %v5367_v19, %v5363_v17  ;;  %v5369_v42 = vmul.f32 %v16406_v39, %v5325_v36  ;;  %v16408_v48 = vpop.eup %16407  ;;  %v5474_v14 = vld [vmem:[#allocation13 + $0x90] sm:$0xff]  ;;  %v14881_v17 = vcombine.high %v5466_v10, %v5470_v15  ;;  %v14883_v19 = vcombine.high %v5467_v31, %v5471_v21 }
 0x586   : > { %16415 = vtanh.f32 %v17583_v27  ;;  %v17590_v8 = vadd.f32 %v5368_v37, %v5364_v3  ;;  %v16410_v12 = vpop.eup %16409  ;;  %v5354_v52 = vmul.f32 0.5, %v16408_v48  ;;  %v5478_v25 = vld [vmem:[#allocation13 + $0xb0] sm:$0xff]  ;;  %v14880_v3 = vcombine.low %v5466_v10, %v5470_v15  ;;  %v5483_v48 = vld [vmem:[#allocation13 + $0xd8] sm:$0xff] }
 0x587   : > { %16417 = vtanh.f32 %v17585_v35  ;;  %v17594_v43 = vadd.f32 %v5369_v42, %v5365_v40  ;;  %v16412_v20 = vpop.eup %16411  ;;  %v5356_v2 = vmul.f32 0.5, %v16410_v12  ;;  %v14882_v36 = vcombine.low %v5467_v31, %v5471_v21  ;;  %v5482_v40 = vld [vmem:[#allocation13 + $0xd0] sm:$0xff]  ;;  %v5487_v12 = vld [vmem:[#allocation13 + $0xf8] sm:$0xff] }
 0x588   : > { %16419 = vtanh.f32 %v17590_v8  ;;  %v16414_v50 = vpop.eup %16413  ;;  %v5355_v23 = vmul.f32 0.5, %v16412_v20  ;;  %v5358_v55 = vadd.f32 0.5, %v5354_v52  ;;  %v14889_v37 = vcombine.high %v5474_v14, %v5478_v25  ;;  %v5486_v42 = vld [vmem:[#allocation13 + $0xf0] sm:$0xff]  ;;  %v5491_v20 = vld [vmem:[#allocation13 + $0x118] sm:$0xff] }
 0x589   : > { %16421 = vtanh.f32 %v17594_v43  ;;  %v5357_v11 = vmul.f32 0.5, %v16414_v50  ;;  %v5360_v58 = vadd.f32 0.5, %v5356_v2  ;;  %v14891_v39 = vcombine.high %v5475_v24, %v5479_v32  ;;  %v5495_v50 = vld [vmem:[#allocation13 + $0x138] sm:$0xff] }
 0x58a   : > { %v5359_v61 = vadd.f32 0.5, %v5355_v23  ;;  %v14888_v30 = vcombine.low %v5474_v14, %v5478_v25  ;;  %v14890_v28 = vcombine.low %v5475_v24, %v5479_v32  ;;  %v14897_v29 = vcombine.high %v5482_v40, %v5486_v42  ;;  %v5514_v14 = vld [vmem:[#allocation13 + $0x1d0] sm:$0xff]  ;;  %v5519_v25 = vld [vmem:[#allocation13 + $0x1f8] sm:$0xff] }
 0x58b   : > { %v5361_v63 = vadd.f32 0.5, %v5357_v11  ;;  %v14899_v26 = vcombine.high %v5483_v48, %v5487_v12  ;;  %v14896_v52 = vcombine.low %v5482_v40, %v5486_v42  ;;  %v14898_v2 = vcombine.low %v5483_v48, %v5487_v12  ;;  %v5523_v40 = vld [vmem:[#allocation13 + $0x218] sm:$0xff] }
 0x58c   : > { %v14907_v11 = vcombine.high %v5491_v20, %v5495_v50  ;;  %v5527_v42 = vld [vmem:[#allocation13 + $0x238] sm:$0xff] }
 0x590   : > { %v16416_v53 = vpop.eup %16415 }
 0x591   : > { %v16418_v54 = vpop.eup %16417  ;;  %v5378_v60 = vmul.f32 %v16416_v53, %v5358_v55  ;;  %v5498_v53 = vld [vmem:[#allocation13 + $0x150] sm:$0xff]  ;;  %v5499_v55 = vld [vmem:[#allocation13 + $0x158] sm:$0xff] }
 0x592   : > { %v16420_v59 = vpop.eup %16419  ;;  %v5379_v7 = vmul.f32 %v16418_v54, %v5359_v61  ;;  %v5502_v54 = vld [vmem:[#allocation13 + $0x170] sm:$0xff] }
 0x593   : > { %v5380_v62 = vmul.f32 %v16420_v59, %v5360_v58  ;;  %v16422_v0 = vpop.eup %16421  ;;  %v5503_v58 = vld [vmem:[#allocation13 + $0x178] sm:$0xff]  ;;  %v14913_v61 = vcombine.high %v5498_v53, %v5502_v54  ;;  %v14912_v10 = vcombine.low %v5498_v53, %v5502_v54 }
 0x594   : > { %v5381_v9 = vmul.f32 %v16422_v0, %v5361_v63  ;;  %v5506_v63 = vld [vmem:[#allocation13 + $0x190] sm:$0xff]  ;;  %v14914_v15 = vcombine.low %v5499_v55, %v5503_v58  ;;  %v5539_v53 = vld [vmem:[#allocation13 + $0x298] sm:$0xff] }
 0x595   : > { %v17597_v16 = vpack.c.bf16 %v5380_v62, %v5378_v60  ;;  %v14906_v60 = vcombine.low %v5491_v20, %v5495_v50  ;;  %v14915_v62 = vcombine.high %v5499_v55, %v5503_v58  ;;  %v5510_v0 = vld [vmem:[#allocation13 + $0x1b0] sm:$0xff]  ;;  %v14938_v50 = vcombine.low %v5523_v40, %v5527_v42  ;;  %v5543_v54 = vld [vmem:[#allocation13 + $0x2b8] sm:$0xff] }
 0x596   : > { %v17599_v13 = vpack.c.bf16 %v5381_v9, %v5379_v7  ;;  %v5507_v7 = vld [vmem:[#allocation13 + $0x198] sm:$0xff]  ;;  %v14921_v31 = vcombine.high %v5506_v63, %v5510_v0  ;;  %v14920_v24 = vcombine.low %v5506_v63, %v5510_v0 }
 0x597   : > { %v5511_v9 = vld [vmem:[#allocation13 + $0x1b8] sm:$0xff] }
 0x598   : > { %6256 = vmatprep.mubr.bf16.mxu0 %v17599_v13  ;;  %6299 = vmatprep.mubr.bf16.mxu1 %v17599_v13  ;;  %v14923_v21 = vcombine.high %v5507_v7, %v5511_v9  ;;  %v14922_v32 = vcombine.low %v5507_v7, %v5511_v9  ;;  %v5547_v63 = vld [vmem:[#allocation13 + $0x2d8] sm:$0xff]  ;;  %v14954_v9 = vcombine.low %v5539_v53, %v5543_v54 }
 0x599   : > { %6257 = vmatmul.mubr.bf16.vlgmr.msra.gmra.mrb[24].mxu0 %v17597_v16  ;;  %6300 = vmatmul.mubr.bf16.vlgmr.msra.gmra.mrb[24].mxu1 %v17597_v16  ;;  %v5551_v0 = vld [vmem:[#allocation13 + $0x2f8] sm:$0xff] }
 0x59a   : > { %6311 = vmatpush1.bf16.msra.mxu0 %v14872_v33  ;;  %6354 = vmatpush1.bf16.msra.mxu1 %v14874_v34  ;;  %v5490_v33 = vld [vmem:[#allocation13 + $0x110] sm:$0xff] }
 0x59b   : > { %6342 = vmatprep.mubr.bf16.mxu0 %v17599_v13  ;;  %6385 = vmatprep.mubr.bf16.mxu1 %v17599_v13  ;;  %v5494_v34 = vld [vmem:[#allocation13 + $0x130] sm:$0xff] }
 0x59c   : > { %6312 = vmatprep.subr.bf16.mxu0 %v14881_v17  ;;  %6355 = vmatprep.subr.bf16.mxu1 %v14883_v19  ;;  %v14905_v23 = vcombine.high %v5490_v33, %v5494_v34  ;;  %v14904_v59 = vcombine.low %v5490_v33, %v5494_v34  ;;  %v5518_v17 = vld [vmem:[#allocation13 + $0x1f0] sm:$0xff]  ;;  %v5515_v19 = vld [vmem:[#allocation13 + $0x1d8] sm:$0xff] }
 0x59d   : > { %v14928_v48 = vcombine.low %v5514_v14, %v5518_v17  ;;  %v14930_v12 = vcombine.low %v5515_v19, %v5519_v25  ;;  %v5531_v33 = vld [vmem:[#allocation13 + $0x258] sm:$0xff] }
 0x59e   : > { %6313 = vmatpush1.bf16.msra.mxu0 %v14880_v3  ;;  %6356 = vmatpush1.bf16.msra.mxu1 %v14882_v36  ;;  %v14929_v3 = vcombine.high %v5514_v14, %v5518_v17  ;;  %v14931_v36 = vcombine.high %v5515_v19, %v5519_v25  ;;  %v5535_v34 = vld [vmem:[#allocation13 + $0x278] sm:$0xff]  ;;  %v14962_v25 = vcombine.low %v5547_v63, %v5551_v0 }
 0x59f   : > { %6314 = vmatprep.subr.bf16.mxu0 %v14889_v37  ;;  %6357 = vmatprep.subr.bf16.mxu1 %v14891_v39  ;;  %v5522_v37 = vld [vmem:[#allocation13 + $0x210] sm:$0xff]  ;;  %v14946_v58 = vcombine.low %v5531_v33, %v5535_v34  ;;  %v5555_v14 = vld [vmem:[#allocation13 + $0x318] sm:$0xff] }
 0x5a0   : > { %v5526_v39 = vld [vmem:[#allocation13 + $0x230] sm:$0xff]  ;;  %v5559_v17 = vld [vmem:[#allocation13 + $0x338] sm:$0xff] }
 0x5a1   : > { %v14936_v20 = vcombine.low %v5522_v37, %v5526_v39 }
 0x5a2   : > { %6315 = vmatpush1.bf16.msra.mxu0 %v14888_v30  ;;  %6358 = vmatpush1.bf16.msra.mxu1 %v14890_v28  ;;  %v14937_v30 = vcombine.high %v5522_v37, %v5526_v39  ;;  %v14939_v28 = vcombine.high %v5523_v40, %v5527_v42  ;;  %v5563_v37 = vld [vmem:[#allocation13 + $0x358] sm:$0xff]  ;;  %v14970_v42 = vcombine.low %v5555_v14, %v5559_v17 }
 0x5a3   : > { %6316 = vmatprep.subr.bf16.mxu0 %v14897_v29  ;;  %6359 = vmatprep.subr.bf16.mxu1 %v14899_v26  ;;  %v5530_v29 = vld [vmem:[#allocation13 + $0x250] sm:$0xff]  ;;  %v5567_v39 = vld [vmem:[#allocation13 + $0x378] sm:$0xff] }
 0x5a4   : > { %v5534_v26 = vld [vmem:[#allocation13 + $0x270] sm:$0xff] }
 0x5a5   : > { %v14944_v55 = vcombine.low %v5530_v29, %v5534_v26 }
 0x5a6   : > { %6317 = vmatpush1.bf16.msra.mxu0 %v14896_v52  ;;  %6360 = vmatpush1.bf16.msra.mxu1 %v14898_v2  ;;  %v14945_v52 = vcombine.high %v5530_v29, %v5534_v26  ;;  %v14947_v2 = vcombine.high %v5531_v33, %v5535_v34  ;;  %v5571_v29 = vld [vmem:[#allocation13 + $0x398] sm:$0xff]  ;;  %v14978_v34 = vcombine.low %v5563_v37, %v5567_v39 }
 0x5a7   : > { %6318 = vmatprep.subr.bf16.mxu0 %v14905_v23  ;;  %6361 = vmatprep.subr.bf16.mxu1 %v14907_v11  ;;  %v5538_v23 = vld [vmem:[#allocation13 + $0x290] sm:$0xff]  ;;  %v5575_v26 = vld [vmem:[#allocation13 + $0x3b8] sm:$0xff] }
 0x5a8   : > { %v5542_v11 = vld [vmem:[#allocation13 + $0x2b0] sm:$0xff] }
 0x5a9   : > { %v14952_v7 = vcombine.low %v5538_v23, %v5542_v11 }
 0x5aa   : > { %6319 = vmatpush1.bf16.msra.mxu0 %v14904_v59  ;;  %6362 = vmatpush1.bf16.msra.mxu1 %v14906_v60  ;;  %v14953_v59 = vcombine.high %v5538_v23, %v5542_v11  ;;  %v14955_v60 = vcombine.high %v5539_v53, %v5543_v54  ;;  %v5579_v23 = vld [vmem:[#allocation13 + $0x3d8] sm:$0xff]  ;;  %v14986_v54 = vcombine.low %v5571_v29, %v5575_v26 }
 0x5ab   : > { %6320 = vmatprep.subr.bf16.mxu0 %v14913_v61  ;;  %6363 = vmatprep.subr.bf16.mxu1 %v14915_v62  ;;  %v5546_v61 = vld [vmem:[#allocation13 + $0x2d0] sm:$0xff]  ;;  %v5583_v11 = vld [vmem:[#allocation13 + $0x3f8] sm:$0xff] }
 0x5ac   : > { %v5550_v62 = vld [vmem:[#allocation13 + $0x2f0] sm:$0xff] }
 0x5ad   : > { %v14960_v19 = vcombine.low %v5546_v61, %v5550_v62 }
 0x5ae   : > { %6321 = vmatpush1.bf16.msra.mxu0 %v14912_v10  ;;  %6364 = vmatpush1.bf16.msra.mxu1 %v14914_v15  ;;  %v14961_v10 = vcombine.high %v5546_v61, %v5550_v62  ;;  %v14963_v15 = vcombine.high %v5547_v63, %v5551_v0  ;;  %v5391_v61 = vld [vmem:[#allocation11 + $0x8] sm:$0xff]  ;;  %v14994_v0 = vcombine.low %v5579_v23, %v5583_v11 }
 0x5af   : > { %6322 = vmatprep.subr.bf16.mxu0 %v14921_v31  ;;  %6365 = vmatprep.subr.bf16.mxu1 %v14923_v21  ;;  %v5554_v31 = vld [vmem:[#allocation13 + $0x310] sm:$0xff]  ;;  %v5395_v62 = vld [vmem:[#allocation11 + $0x28] sm:$0xff] }
 0x5b0   : > { %v5558_v21 = vld [vmem:[#allocation13 + $0x330] sm:$0xff] }
 0x5b1   : > { %v14968_v40 = vcombine.low %v5554_v31, %v5558_v21 }
 0x5b2   : > { %6323 = vmatpush1.bf16.msra.mxu0 %v14920_v24  ;;  %6366 = vmatpush1.bf16.msra.mxu1 %v14922_v32  ;;  %v14969_v24 = vcombine.high %v5554_v31, %v5558_v21  ;;  %v14971_v32 = vcombine.high %v5555_v14, %v5559_v17  ;;  %v5399_v31 = vld [vmem:[#allocation11 + $0x48] sm:$0xff]  ;;  %v14999_v17 = vcombine.low %v5391_v61, %v5395_v62 }
 0x5b3   : > { %6324 = vmatprep.subr.bf16.mxu0 %v14929_v3  ;;  %6367 = vmatprep.subr.bf16.mxu1 %v14931_v36  ;;  %v5562_v3 = vld [vmem:[#allocation13 + $0x350] sm:$0xff]  ;;  %v5403_v21 = vld [vmem:[#allocation11 + $0x68] sm:$0xff] }
 0x5b4   : > { %v5566_v36 = vld [vmem:[#allocation13 + $0x370] sm:$0xff] }
 0x5b5   : > { %v14976_v33 = vcombine.low %v5562_v3, %v5566_v36 }
 0x5b6   : > { %6325 = vmatpush1.bf16.msra.mxu0 %v14928_v48  ;;  %6368 = vmatpush1.bf16.msra.mxu1 %v14930_v12  ;;  %v14977_v48 = vcombine.high %v5562_v3, %v5566_v36  ;;  %v14979_v12 = vcombine.high %v5563_v37, %v5567_v39  ;;  %v5407_v3 = vld [vmem:[#allocation11 + $0x88] sm:$0xff]  ;;  %v15007_v39 = vcombine.low %v5399_v31, %v5403_v21 }
 0x5b7   : > { %6326 = vmatprep.subr.bf16.mxu0 %v14937_v30  ;;  %6369 = vmatprep.subr.bf16.mxu1 %v14939_v28  ;;  %v5570_v30 = vld [vmem:[#allocation13 + $0x390] sm:$0xff]  ;;  %v5411_v36 = vld [vmem:[#allocation11 + $0xa8] sm:$0xff] }
 0x5b8   : > { %v5574_v28 = vld [vmem:[#allocation13 + $0x3b0] sm:$0xff] }
 0x5b9   : > { %v14984_v53 = vcombine.low %v5570_v30, %v5574_v28 }
 0x5ba   : > { %6327 = vmatpush1.bf16.msra.mxu0 %v14936_v20  ;;  %6370 = vmatpush1.bf16.msra.mxu1 %v14938_v50  ;;  %v14985_v20 = vcombine.high %v5570_v30, %v5574_v28  ;;  %v14987_v50 = vcombine.high %v5571_v29, %v5575_v26  ;;  %v5415_v30 = vld [vmem:[#allocation11 + $0xc8] sm:$0xff]  ;;  %v15015_v26 = vcombine.low %v5407_v3, %v5411_v36 }
 0x5bb   : > { %6328 = vmatprep.subr.bf16.mxu0 %v14945_v52  ;;  %6371 = vmatprep.subr.bf16.mxu1 %v14947_v2  ;;  %v5578_v52 = vld [vmem:[#allocation13 + $0x3d0] sm:$0xff]  ;;  %v5419_v28 = vld [vmem:[#allocation11 + $0xe8] sm:$0xff] }
 0x5bc   : > { %v5582_v2 = vld [vmem:[#allocation13 + $0x3f0] sm:$0xff] }
 0x5bd   : > { %v14992_v63 = vcombine.low %v5578_v52, %v5582_v2 }
 0x5be   : > { %6329 = vmatpush1.bf16.msra.mxu0 %v14944_v55  ;;  %6372 = vmatpush1.bf16.msra.mxu1 %v14946_v58  ;;  %v14993_v55 = vcombine.high %v5578_v52, %v5582_v2  ;;  %v14995_v58 = vcombine.high %v5579_v23, %v5583_v11  ;;  %v5423_v52 = vld [vmem:[#allocation11 + $0x108] sm:$0xff]  ;;  %v15023_v11 = vcombine.low %v5415_v30, %v5419_v28 }
 0x5bf   : > { %6330 = vmatprep.subr.bf16.mxu0 %v14953_v59  ;;  %6373 = vmatprep.subr.bf16.mxu1 %v14955_v60  ;;  %v5390_v59 = vld [vmem:[#allocation11] sm:$0xff]  ;;  %v5427_v2 = vld [vmem:[#allocation11 + $0x128] sm:$0xff] }
 0x5c0   : > { %v5394_v60 = vld [vmem:[#allocation11 + $0x20] sm:$0xff] }
 0x5c1   : > { %v14997_v14 = vcombine.low %v5390_v59, %v5394_v60 }
 0x5c2   : > { %6331 = vmatpush1.bf16.msra.mxu0 %v14952_v7  ;;  %6374 = vmatpush1.bf16.msra.mxu1 %v14954_v9  ;;  %v14998_v7 = vcombine.high %v5390_v59, %v5394_v60  ;;  %v15000_v9 = vcombine.high %v5391_v61, %v5395_v62  ;;  %v5431_v59 = vld [vmem:[#allocation11 + $0x148] sm:$0xff]  ;;  %v15031_v62 = vcombine.low %v5423_v52, %v5427_v2 }
 0x5c3   : > { %6332 = vmatprep.subr.bf16.mxu0 %v14961_v10  ;;  %6375 = vmatprep.subr.bf16.mxu1 %v14963_v15  ;;  %v5398_v10 = vld [vmem:[#allocation11 + $0x40] sm:$0xff]  ;;  %v5435_v60 = vld [vmem:[#allocation11 + $0x168] sm:$0xff] }
 0x5c4   : > { %v5402_v15 = vld [vmem:[#allocation11 + $0x60] sm:$0xff] }
 0x5c5   : > { %v15005_v37 = vcombine.low %v5398_v10, %v5402_v15 }
 0x5c6   : > { %6333 = vmatpush1.bf16.msra.mxu0 %v14960_v19  ;;  %6376 = vmatpush1.bf16.msra.mxu1 %v14962_v25  ;;  %v15006_v19 = vcombine.high %v5398_v10, %v5402_v15  ;;  %v15008_v25 = vcombine.high %v5399_v31, %v5403_v21  ;;  %v5439_v10 = vld [vmem:[#allocation11 + $0x188] sm:$0xff]  ;;  %v15039_v21 = vcombine.low %v5431_v59, %v5435_v60 }
 0x5c7   : > { %6334 = vmatprep.subr.bf16.mxu0 %v14969_v24  ;;  %6377 = vmatprep.subr.bf16.mxu1 %v14971_v32  ;;  %v5406_v24 = vld [vmem:[#allocation11 + $0x80] sm:$0xff]  ;;  %v5443_v15 = vld [vmem:[#allocation11 + $0x1a8] sm:$0xff] }
 0x5c8   : > { %v5410_v32 = vld [vmem:[#allocation11 + $0xa0] sm:$0xff] }
 0x5c9   : > { %v15013_v29 = vcombine.low %v5406_v24, %v5410_v32 }
 0x5ca   : > { %6335 = vmatpush1.bf16.msra.mxu0 %v14968_v40  ;;  %6378 = vmatpush1.bf16.msra.mxu1 %v14970_v42  ;;  %v15014_v40 = vcombine.high %v5406_v24, %v5410_v32  ;;  %v15016_v42 = vcombine.high %v5407_v3, %v5411_v36  ;;  %v5447_v24 = vld [vmem:[#allocation11 + $0x1c8] sm:$0xff]  ;;  %v15047_v36 = vcombine.low %v5439_v10, %v5443_v15 }
 0x5cb   : > { %6336 = vmatprep.subr.bf16.mxu0 %v14977_v48  ;;  %6379 = vmatprep.subr.bf16.mxu1 %v14979_v12  ;;  %v5414_v48 = vld [vmem:[#allocation11 + $0xc0] sm:$0xff]  ;;  %v5451_v32 = vld [vmem:[#allocation11 + $0x1e8] sm:$0xff] }
 0x5cc   : > { %v5418_v12 = vld [vmem:[#allocation11 + $0xe0] sm:$0xff] }
 0x5cd   : > { %v15021_v23 = vcombine.low %v5414_v48, %v5418_v12 }
 0x5ce   : > { %6337 = vmatpush1.bf16.msra.mxu0 %v14976_v33  ;;  %6380 = vmatpush1.bf16.msra.mxu1 %v14978_v34  ;;  %v15022_v33 = vcombine.high %v5414_v48, %v5418_v12  ;;  %v15024_v34 = vcombine.high %v5415_v30, %v5419_v28  ;;  %v5393_v48 = vld [vmem:[#allocation11 + $0x18] sm:$0xff]  ;;  %v15055_v28 = vcombine.low %v5447_v24, %v5451_v32 }
 0x5cf   : > { %6338 = vmatprep.subr.bf16.mxu0 %v14985_v20  ;;  %6381 = vmatprep.subr.bf16.mxu1 %v14987_v50  ;;  %v5422_v20 = vld [vmem:[#allocation11 + $0x100] sm:$0xff]  ;;  %v5397_v12 = vld [vmem:[#allocation11 + $0x38] sm:$0xff] }
 0x5d0   : > { %v5426_v50 = vld [vmem:[#allocation11 + $0x120] sm:$0xff] }
 0x5d1   : > { %v15029_v61 = vcombine.low %v5422_v20, %v5426_v50 }
 0x5d2   : > { %6339 = vmatpush1.bf16.msra.mxu0 %v14984_v53  ;;  %6382 = vmatpush1.bf16.msra.mxu1 %v14986_v54  ;;  %v15030_v53 = vcombine.high %v5422_v20, %v5426_v50  ;;  %v15032_v54 = vcombine.high %v5423_v52, %v5427_v2  ;;  %v5401_v20 = vld [vmem:[#allocation11 + $0x58] sm:$0xff] }
 0x5d3   : > { %6340 = vmatprep.subr.bf16.mxu0 %v14993_v55  ;;  %6383 = vmatprep.subr.bf16.mxu1 %v14995_v58  ;;  %v5430_v55 = vld [vmem:[#allocation11 + $0x140] sm:$0xff]  ;;  %v5405_v50 = vld [vmem:[#allocation11 + $0x78] sm:$0xff] }
 0x5d4   : > { %v5434_v58 = vld [vmem:[#allocation11 + $0x160] sm:$0xff]  ;;  %v17618_v52 = vld [vmem:[%s17320_s9 + $0x18] sm:$0xff]  }
 0x5d5   : > { %v15037_v31 = vcombine.low %v5430_v55, %v5434_v58 }
 0x5d6   : > { %6341 = vmatpush1.bf16.msra.mxu0 %v14992_v63  ;;  %6384 = vmatpush1.bf16.msra.mxu1 %v14994_v0  ;;  %v15038_v63 = vcombine.high %v5430_v55, %v5434_v58  ;;  %v15040_v0 = vcombine.high %v5431_v59, %v5435_v60  ;;  %v5412_v55 = vld [vmem:[#allocation11 + $0xb0] sm:$0xff]  ;;  %v5409_v58 = vld [vmem:[#allocation11 + $0x98] sm:$0xff] }
 0x5d7   : > { %6722 = vmatprep.subr.bf16.mxu0 %v14998_v7  ;;  %6765 = vmatprep.subr.bf16.mxu1 %v15000_v9  ;;  %v5438_v7 = vld [vmem:[#allocation11 + $0x180] sm:$0xff]  ;;  %v5413_v59 = vld [vmem:[#allocation11 + $0xb8] sm:$0xff] }
 0x5d8   : > { %v5442_v9 = vld [vmem:[#allocation11 + $0x1a0] sm:$0xff] }
 0x5d9   : > { %6343 = vmatmul.mubr.bf16.vlgmr.msra.gmra.mrb[28].mxu0 %v17597_v16  ;;  %6386 = vmatmul.mubr.bf16.vlgmr.msra.gmra.mrb[28].mxu1 %v17597_v16  ;;  %v15045_v3 = vcombine.low %v5438_v7, %v5442_v9 }
 0x5da   : > { %6723 = vmatpush1.bf16.msra.mxu0 %v14997_v14  ;;  %6766 = vmatpush1.bf16.msra.mxu1 %v14999_v17  ;;  %v15046_v14 = vcombine.high %v5438_v7, %v5442_v9  ;;  %v15048_v17 = vcombine.high %v5439_v10, %v5443_v15  ;;  %v5420_v7 = vld [vmem:[#allocation11 + $0xf0] sm:$0xff]  ;;  %v5417_v9 = vld [vmem:[#allocation11 + $0xd8] sm:$0xff] }
 0x5db   : > { %6724 = vmatprep.subr.bf16.mxu0 %v15006_v19  ;;  %6767 = vmatprep.subr.bf16.mxu1 %v15008_v25  ;;  %v5446_v19 = vld [vmem:[#allocation11 + $0x1c0] sm:$0xff]  ;;  %v5421_v10 = vld [vmem:[#allocation11 + $0xf8] sm:$0xff] }
 0x5dc   : > { %6754 = vmatprep.mubr.bf16.mxu0 %v16972_v41  ;;  %6797 = vmatprep.mubr.bf16.mxu1 %v16972_v41  ;;  %v5450_v25 = vld [vmem:[#allocation11 + $0x1e0] sm:$0xff] }
 0x5dd   : > { %v15053_v30 = vcombine.low %v5446_v19, %v5450_v25 }
 0x5de   : > { %6725 = vmatpush1.bf16.msra.mxu0 %v15005_v37  ;;  %6768 = vmatpush1.bf16.msra.mxu1 %v15007_v39  ;;  %v15054_v37 = vcombine.high %v5446_v19, %v5450_v25  ;;  %v15056_v39 = vcombine.high %v5447_v24, %v5451_v32  ;;  %v5428_v19 = vld [vmem:[#allocation11 + $0x130] sm:$0xff]  ;;  %v5425_v25 = vld [vmem:[#allocation11 + $0x118] sm:$0xff] }
 0x5df   : > { %6726 = vmatprep.subr.bf16.mxu0 %v15014_v40  ;;  %6769 = vmatprep.subr.bf16.mxu1 %v15016_v42  ;;  %v5392_v40 = vld [vmem:[#allocation11 + $0x10] sm:$0xff]  ;;  %v5429_v24 = vld [vmem:[#allocation11 + $0x138] sm:$0xff] }
 0x5e0   : > { %v5396_v42 = vld [vmem:[#allocation11 + $0x30] sm:$0xff] }
 0x5e1   : > { %v15001_v2 = vcombine.low %v5392_v40, %v5396_v42 }
 0x5e2   : > { %6727 = vmatpush1.bf16.msra.mxu0 %v15013_v29  ;;  %6770 = vmatpush1.bf16.msra.mxu1 %v15015_v26  ;;  %v15002_v29 = vcombine.high %v5392_v40, %v5396_v42  ;;  %v15004_v26 = vcombine.high %v5393_v48, %v5397_v12  ;;  %v5436_v40 = vld [vmem:[#allocation11 + $0x170] sm:$0xff]  ;;  %v5433_v42 = vld [vmem:[#allocation11 + $0x158] sm:$0xff] }
 0x5e3   : > { %6728 = vmatprep.subr.bf16.mxu0 %v15022_v33  ;;  %6771 = vmatprep.subr.bf16.mxu1 %v15024_v34  ;;  %v5400_v33 = vld [vmem:[#allocation11 + $0x50] sm:$0xff] }
 0x5e4   : > { %v5404_v34 = vld [vmem:[#allocation11 + $0x70] sm:$0xff] }
 0x5e5   : > { %v15009_v60 = vcombine.low %v5400_v33, %v5404_v34 }
 0x5e6   : > { %6729 = vmatpush1.bf16.msra.mxu0 %v15021_v23  ;;  %6772 = vmatpush1.bf16.msra.mxu1 %v15023_v11  ;;  %v15003_v23 = vcombine.low %v5393_v48, %v5397_v12  ;;  %v15010_v11 = vcombine.high %v5400_v33, %v5404_v34  ;;  %v5437_v48 = vld [vmem:[#allocation11 + $0x178] sm:$0xff]  ;;  %v5444_v33 = vld [vmem:[#allocation11 + $0x1b0] sm:$0xff] }
 0x5e7   : > { %6730 = vmatprep.subr.bf16.mxu0 %v15030_v53  ;;  %6773 = vmatprep.subr.bf16.mxu1 %v15032_v54  ;;  %v15012_v53 = vcombine.high %v5401_v20, %v5405_v50  ;;  %v5408_v54 = vld [vmem:[#allocation11 + $0x90] sm:$0xff]  ;;  %v5441_v34 = vld [vmem:[#allocation11 + $0x198] sm:$0xff] }
 0x5e8   : > { %v15017_v15 = vcombine.low %v5408_v54, %v5412_v55 }
 0x5ea   : > { %6731 = vmatpush1.bf16.msra.mxu0 %v15029_v61  ;;  %6774 = vmatpush1.bf16.msra.mxu1 %v15031_v62  ;;  %v15011_v61 = vcombine.low %v5401_v20, %v5405_v50  ;;  %v15018_v62 = vcombine.high %v5408_v54, %v5412_v55  ;;  %v5445_v20 = vld [vmem:[#allocation11 + $0x1b8] sm:$0xff]  ;;  %v5452_v54 = vld [vmem:[#allocation11 + $0x1f0] sm:$0xff] }
 0x5eb   : > { %6732 = vmatprep.subr.bf16.mxu0 %v15038_v63  ;;  %6775 = vmatprep.subr.bf16.mxu1 %v15040_v0  ;;  %v15020_v63 = vcombine.high %v5409_v58, %v5413_v59  ;;  %v5416_v0 = vld [vmem:[#allocation11 + $0xd0] sm:$0xff]  ;;  %v5449_v55 = vld [vmem:[#allocation11 + $0x1d8] sm:$0xff] }
 0x5ec   : > { %v15025_v32 = vcombine.low %v5416_v0, %v5420_v7 }
 0x5ee   : > { %6733 = vmatpush1.bf16.msra.mxu0 %v15037_v31  ;;  %6776 = vmatpush1.bf16.msra.mxu1 %v15039_v21  ;;  %v15019_v31 = vcombine.low %v5409_v58, %v5413_v59  ;;  %v15026_v21 = vcombine.high %v5416_v0, %v5420_v7  ;;  %v5453_v58 = vld [vmem:[#allocation11 + $0x1f8] sm:$0xff]  ;;  %v7056_v7 = vld [vmem:[#allocation13] sm:$0xff] }
 0x5ef   : > { %6734 = vmatprep.subr.bf16.mxu0 %v15046_v14  ;;  %6777 = vmatprep.subr.bf16.mxu1 %v15048_v17  ;;  %v15028_v14 = vcombine.high %v5417_v9, %v5421_v10  ;;  %v5424_v17 = vld [vmem:[#allocation11 + $0x110] sm:$0xff]  ;;  %v15059_v0 = vcombine.low %v5449_v55, %v5453_v58 }
 0x5f0   : > { %v15033_v12 = vcombine.low %v5424_v17, %v5428_v19 }
 0x5f2   : > { %6735 = vmatpush1.bf16.msra.mxu0 %v15045_v3  ;;  %6778 = vmatpush1.bf16.msra.mxu1 %v15047_v36  ;;  %v15027_v3 = vcombine.low %v5417_v9, %v5421_v10  ;;  %v15034_v36 = vcombine.high %v5424_v17, %v5428_v19  ;;  %v7060_v9 = vld [vmem:[#allocation13 + $0x20] sm:$0xff]  ;;  %v7057_v10 = vld [vmem:[#allocation13 + $0x8] sm:$0xff] }
 0x5f3   : > { %6736 = vmatprep.subr.bf16.mxu0 %v15054_v37  ;;  %6779 = vmatprep.subr.bf16.mxu1 %v15056_v39  ;;  %v15036_v37 = vcombine.high %v5425_v25, %v5429_v24  ;;  %v5432_v39 = vld [vmem:[#allocation11 + $0x150] sm:$0xff]  ;;  %v7064_v19 = vld [vmem:[#allocation13 + $0x40] sm:$0xff] }
 0x5f4   : > { %v15041_v50 = vcombine.low %v5432_v39, %v5436_v40 }
 0x5f6   : > { %6737 = vmatpush1.bf16.msra.mxu0 %v15053_v30  ;;  %6780 = vmatpush1.bf16.msra.mxu1 %v15055_v28  ;;  %v15035_v30 = vcombine.low %v5425_v25, %v5429_v24  ;;  %v15042_v28 = vcombine.high %v5432_v39, %v5436_v40  ;;  %v7068_v25 = vld [vmem:[#allocation13 + $0x60] sm:$0xff]  ;;  %v7065_v24 = vld [vmem:[#allocation13 + $0x48] sm:$0xff] }
 0x5f7   : > { %6808 = vmatprep.subr.bf16.mxu0 %v15002_v29  ;;  %6851 = vmatprep.subr.bf16.mxu1 %v15004_v26  ;;  %v15044_v29 = vcombine.high %v5433_v42, %v5437_v48  ;;  %v5440_v26 = vld [vmem:[#allocation11 + $0x190] sm:$0xff]  ;;  %v7072_v39 = vld [vmem:[#allocation13 + $0x80] sm:$0xff] }
 0x5f8   : > { %v15049_v59 = vcombine.low %v5440_v26, %v5444_v33  ;;  %v7076_v40 = vld [vmem:[#allocation13 + $0xa0] sm:$0xff] }
 0x5f9   : > { %6755 = vmatmul.mubr.bf16.vlgmr.msra.gmra.mrb[24].mxu0 %v17618_v52  ;;  %6798 = vmatmul.mubr.bf16.vlgmr.msra.gmra.mrb[24].mxu1 %v17618_v52 }
 0x5fa   : > { %6809 = vmatpush1.bf16.msra.mxu0 %v15001_v2  ;;  %6852 = vmatpush1.bf16.msra.mxu1 %v15003_v23  ;;  %v15043_v2 = vcombine.low %v5433_v42, %v5437_v48  ;;  %v15050_v23 = vcombine.high %v5440_v26, %v5444_v33  ;;  %v7073_v42 = vld [vmem:[#allocation13 + $0x88] sm:$0xff]  ;;  %v15080_v48 = vcombine.high %v7072_v39, %v7076_v40  ;;  %v7080_v26 = vld [vmem:[#allocation13 + $0xc0] sm:$0xff] }
 0x5fb   : > { %6810 = vmatprep.subr.bf16.mxu0 %v15010_v11  ;;  %6853 = vmatprep.subr.bf16.mxu1 %v15012_v53  ;;  %v15052_v11 = vcombine.high %v5441_v34, %v5445_v20  ;;  %v5448_v53 = vld [vmem:[#allocation11 + $0x1d0] sm:$0xff]  ;;  %v7084_v33 = vld [vmem:[#allocation13 + $0xe0] sm:$0xff] }
 0x5fc   : > { %6840 = vmatprep.mubr.bf16.mxu0 %v16972_v41  ;;  %6883 = vmatprep.mubr.bf16.mxu1 %v16972_v41 }
 0x5fe   : > { %6811 = vmatpush1.bf16.msra.mxu0 %v15009_v60  ;;  %6854 = vmatpush1.bf16.msra.mxu1 %v15011_v61  ;;  %v15051_v60 = vcombine.low %v5441_v34, %v5445_v20  ;;  %v15058_v61 = vcombine.high %v5448_v53, %v5452_v54  ;;  %v7081_v34 = vld [vmem:[#allocation13 + $0xc8] sm:$0xff]  ;;  %v15088_v20 = vcombine.high %v7080_v26, %v7084_v33 }
 0x5ff   : > { %6812 = vmatprep.subr.bf16.mxu0 %v15018_v62  ;;  %6855 = vmatprep.subr.bf16.mxu1 %v15020_v63  ;;  %v15060_v62 = vcombine.high %v5449_v55, %v5453_v58  ;;  %v15057_v63 = vcombine.low %v5448_v53, %v5452_v54  ;;  %v7088_v53 = vld [vmem:[#allocation13 + $0x100] sm:$0xff]  ;;  %v7089_v55 = vld [vmem:[#allocation13 + $0x108] sm:$0xff] }
 0x600   : > { %v7092_v54 = vld [vmem:[#allocation13 + $0x120] sm:$0xff] }
 0x601   : > { %v15096_v58 = vcombine.high %v7088_v53, %v7092_v54 }
 0x602   : > { %6813 = vmatpush1.bf16.msra.mxu0 %v15017_v15  ;;  %6856 = vmatpush1.bf16.msra.mxu1 %v15019_v31  ;;  %v15064_v15 = vcombine.high %v7056_v7, %v7060_v9  ;;  %v7061_v31 = vld [vmem:[#allocation13 + $0x28] sm:$0xff] }
 0x603   : > { %6814 = vmatprep.subr.bf16.mxu0 %v15026_v21  ;;  %6857 = vmatprep.subr.bf16.mxu1 %v15028_v14  ;;  %v15063_v21 = vcombine.low %v7056_v7, %v7060_v9  ;;  %v15065_v14 = vcombine.low %v7057_v10, %v7061_v31  ;;  %v15066_v17 = vcombine.high %v7057_v10, %v7061_v31  ;;  %v7097_v7 = vld [vmem:[#allocation13 + $0x148] sm:$0xff] }
 0x604   : > { %v7101_v10 = vld [vmem:[#allocation13 + $0x168] sm:$0xff] }
 0x605   : > { %v15105_v31 = vcombine.low %v7097_v7, %v7101_v10 }
 0x606   : > { %6815 = vmatpush1.bf16.msra.mxu0 %v15025_v32  ;;  %6858 = vmatpush1.bf16.msra.mxu1 %v15027_v3  ;;  %v15072_v32 = vcombine.high %v7064_v19, %v7068_v25  ;;  %v7069_v3 = vld [vmem:[#allocation13 + $0x68] sm:$0xff] }
 0x607   : > { %6816 = vmatprep.subr.bf16.mxu0 %v15034_v36  ;;  %6859 = vmatprep.subr.bf16.mxu1 %v15036_v37  ;;  %v15071_v36 = vcombine.low %v7064_v19, %v7068_v25  ;;  %v15073_v37 = vcombine.low %v7065_v24, %v7069_v3  ;;  %v7105_v19 = vld [vmem:[#allocation13 + $0x188] sm:$0xff] }
 0x60a   : > { %6817 = vmatpush1.bf16.msra.mxu0 %v15033_v12  ;;  %6860 = vmatpush1.bf16.msra.mxu1 %v15035_v30  ;;  %v7077_v12 = vld [vmem:[#allocation13 + $0xa8] sm:$0xff]  ;;  %v15079_v30 = vcombine.low %v7072_v39, %v7076_v40 }
 0x60b   : > { %6818 = vmatprep.subr.bf16.mxu0 %v15042_v28  ;;  %6861 = vmatprep.subr.bf16.mxu1 %v15044_v29  ;;  %v15081_v28 = vcombine.low %v7073_v42, %v7077_v12  ;;  %v15082_v29 = vcombine.high %v7073_v42, %v7077_v12  ;;  %v7113_v39 = vld [vmem:[#allocation13 + $0x1c8] sm:$0xff] }
 0x60c   : > { %v7117_v42 = vld [vmem:[#allocation13 + $0x1e8] sm:$0xff] }
 0x60d   : > { %v15121_v12 = vcombine.low %v7113_v39, %v7117_v42 }
 0x60e   : > { %6819 = vmatpush1.bf16.msra.mxu0 %v15041_v50  ;;  %6862 = vmatpush1.bf16.msra.mxu1 %v15043_v2  ;;  %v7085_v50 = vld [vmem:[#allocation13 + $0xe8] sm:$0xff]  ;;  %v15087_v2 = vcombine.low %v7080_v26, %v7084_v33 }
 0x60f   : > { %6820 = vmatprep.subr.bf16.mxu0 %v15050_v23  ;;  %6863 = vmatprep.subr.bf16.mxu1 %v15052_v11  ;;  %v15089_v23 = vcombine.low %v7081_v34, %v7085_v50  ;;  %v15090_v11 = vcombine.high %v7081_v34, %v7085_v50  ;;  %v7121_v26 = vld [vmem:[#allocation13 + $0x208] sm:$0xff] }
 0x610   : > { %v7125_v34 = vld [vmem:[#allocation13 + $0x228] sm:$0xff] }
 0x611   : > { %v15129_v50 = vcombine.low %v7121_v26, %v7125_v34 }
 0x612   : > { %6821 = vmatpush1.bf16.msra.mxu0 %v15049_v59  ;;  %6864 = vmatpush1.bf16.msra.mxu1 %v15051_v60  ;;  %v7093_v59 = vld [vmem:[#allocation13 + $0x128] sm:$0xff]  ;;  %v15095_v60 = vcombine.low %v7088_v53, %v7092_v54 }
 0x613   : > { %6822 = vmatprep.subr.bf16.mxu0 %v15058_v61  ;;  %6865 = vmatprep.subr.bf16.mxu1 %v15060_v62  ;;  %v15097_v61 = vcombine.low %v7089_v55, %v7093_v59  ;;  %v15098_v62 = vcombine.high %v7089_v55, %v7093_v59  ;;  %v7129_v53 = vld [vmem:[#allocation13 + $0x248] sm:$0xff] }
 0x614   : > { %v7133_v55 = vld [vmem:[#allocation13 + $0x268] sm:$0xff] }
 0x615   : > { %v15137_v59 = vcombine.low %v7129_v53, %v7133_v55 }
 0x616   : > { %6823 = vmatpush1.bf16.msra.mxu0 %v15057_v63  ;;  %6866 = vmatpush1.bf16.msra.mxu1 %v15059_v0  ;;  %v7096_v63 = vld [vmem:[#allocation13 + $0x140] sm:$0xff] }
 0x617   : > { %7824 = vmatprep.subr.bf16.mxu0 %v15064_v15  ;;  %7867 = vmatprep.subr.bf16.mxu1 %v15066_v17  ;;  %v7100_v0 = vld [vmem:[#allocation13 + $0x160] sm:$0xff] }
 0x618   : > { %v15104_v9 = vcombine.high %v7096_v63, %v7100_v0  ;;  %v15103_v15 = vcombine.low %v7096_v63, %v7100_v0  ;;  %v7108_v17 = vld [vmem:[#allocation13 + $0x1a0] sm:$0xff]  ;;  %v7137_v63 = vld [vmem:[#allocation13 + $0x288] sm:$0xff] }
 0x619   : > { %6841 = vmatmul.mubr.bf16.vlgmr.msra.gmra.mrb[28].mxu0 %v17618_v52  ;;  %6884 = vmatmul.mubr.bf16.vlgmr.msra.gmra.mrb[28].mxu1 %v17618_v52  ;;  %v15074_v52 = vcombine.high %v7065_v24, %v7069_v3  ;;  %v7109_v24 = vld [vmem:[#allocation13 + $0x1a8] sm:$0xff] }
 0x61a   : > { %7825 = vmatpush1.bf16.msra.mxu0 %v15063_v21  ;;  %7868 = vmatpush1.bf16.msra.mxu1 %v15065_v14  ;;  %v15106_v21 = vcombine.high %v7097_v7, %v7101_v10  ;;  %v7104_v14 = vld [vmem:[#allocation13 + $0x180] sm:$0xff]  ;;  %v15114_v3 = vcombine.high %v7105_v19, %v7109_v24  ;;  %v7141_v7 = vld [vmem:[#allocation13 + $0x2a8] sm:$0xff] }
 0x61b   : > { %7826 = vmatprep.subr.bf16.mxu0 %v15072_v32  ;;  %7869 = vmatprep.subr.bf16.mxu1 %v15074_v52  ;;  %v15112_v25 = vcombine.high %v7104_v14, %v7108_v17  ;;  %v15111_v32 = vcombine.low %v7104_v14, %v7108_v17  ;;  %v7116_v52 = vld [vmem:[#allocation13 + $0x1e0] sm:$0xff]  ;;  %v15145_v10 = vcombine.low %v7137_v63, %v7141_v7  ;;  %v7145_v14 = vld [vmem:[#allocation13 + $0x2c8] sm:$0xff] }
 0x61e   : > { %7827 = vmatpush1.bf16.msra.mxu0 %v15071_v36  ;;  %7870 = vmatpush1.bf16.msra.mxu1 %v15073_v37  ;;  %v15113_v36 = vcombine.low %v7105_v19, %v7109_v24  ;;  %v7112_v37 = vld [vmem:[#allocation13 + $0x1c0] sm:$0xff]  ;;  %v7149_v19 = vld [vmem:[#allocation13 + $0x2e8] sm:$0xff] }
 0x61f   : > { %7828 = vmatprep.subr.bf16.mxu0 %v15080_v48  ;;  %7871 = vmatprep.subr.bf16.mxu1 %v15082_v29  ;;  %v15120_v40 = vcombine.high %v7112_v37, %v7116_v52  ;;  %v15119_v48 = vcombine.low %v7112_v37, %v7116_v52  ;;  %v7124_v29 = vld [vmem:[#allocation13 + $0x220] sm:$0xff]  ;;  %v15153_v24 = vcombine.low %v7145_v14, %v7149_v19  ;;  %v7153_v37 = vld [vmem:[#allocation13 + $0x308] sm:$0xff] }
 0x622   : > { %7829 = vmatpush1.bf16.msra.mxu0 %v15079_v30  ;;  %7872 = vmatpush1.bf16.msra.mxu1 %v15081_v28  ;;  %v15122_v30 = vcombine.high %v7113_v39, %v7117_v42  ;;  %v7120_v28 = vld [vmem:[#allocation13 + $0x200] sm:$0xff]  ;;  %v7157_v39 = vld [vmem:[#allocation13 + $0x328] sm:$0xff] }
 0x623   : > { %7830 = vmatprep.subr.bf16.mxu0 %v15088_v20  ;;  %7873 = vmatprep.subr.bf16.mxu1 %v15090_v11  ;;  %v15128_v33 = vcombine.high %v7120_v28, %v7124_v29  ;;  %v15127_v20 = vcombine.low %v7120_v28, %v7124_v29  ;;  %v7132_v11 = vld [vmem:[#allocation13 + $0x260] sm:$0xff]  ;;  %v15161_v42 = vcombine.low %v7153_v37, %v7157_v39  ;;  %v7161_v28 = vld [vmem:[#allocation13 + $0x348] sm:$0xff] }
 0x626   : > { %7831 = vmatpush1.bf16.msra.mxu0 %v15087_v2  ;;  %7874 = vmatpush1.bf16.msra.mxu1 %v15089_v23  ;;  %v15130_v2 = vcombine.high %v7121_v26, %v7125_v34  ;;  %v7128_v23 = vld [vmem:[#allocation13 + $0x240] sm:$0xff]  ;;  %v7165_v26 = vld [vmem:[#allocation13 + $0x368] sm:$0xff] }
 0x627   : > { %7832 = vmatprep.subr.bf16.mxu0 %v15096_v58  ;;  %7875 = vmatprep.subr.bf16.mxu1 %v15098_v62  ;;  %v15136_v54 = vcombine.high %v7128_v23, %v7132_v11  ;;  %v15135_v58 = vcombine.low %v7128_v23, %v7132_v11  ;;  %v7140_v62 = vld [vmem:[#allocation13 + $0x2a0] sm:$0xff]  ;;  %v15169_v34 = vcombine.low %v7161_v28, %v7165_v26  ;;  %v7169_v23 = vld [vmem:[#allocation13 + $0x388] sm:$0xff] }
 0x62a   : > { %7833 = vmatpush1.bf16.msra.mxu0 %v15095_v60  ;;  %7876 = vmatpush1.bf16.msra.mxu1 %v15097_v61  ;;  %v15138_v60 = vcombine.high %v7129_v53, %v7133_v55  ;;  %v7136_v61 = vld [vmem:[#allocation13 + $0x280] sm:$0xff]  ;;  %v7173_v53 = vld [vmem:[#allocation13 + $0x3a8] sm:$0xff] }
 0x62b   : > { %7834 = vmatprep.subr.bf16.mxu0 %v15104_v9  ;;  %7877 = vmatprep.subr.bf16.mxu1 %v15106_v21  ;;  %v15144_v0 = vcombine.high %v7136_v61, %v7140_v62  ;;  %v15143_v9 = vcombine.low %v7136_v61, %v7140_v62  ;;  %v7148_v21 = vld [vmem:[#allocation13 + $0x2e0] sm:$0xff]  ;;  %v15177_v55 = vcombine.low %v7169_v23, %v7173_v53  ;;  %v7177_v61 = vld [vmem:[#allocation13 + $0x3c8] sm:$0xff] }
 0x62e   : > { %7835 = vmatpush1.bf16.msra.mxu0 %v15103_v15  ;;  %7878 = vmatpush1.bf16.msra.mxu1 %v15105_v31  ;;  %v15146_v15 = vcombine.high %v7137_v63, %v7141_v7  ;;  %v7144_v31 = vld [vmem:[#allocation13 + $0x2c0] sm:$0xff]  ;;  %v7181_v63 = vld [vmem:[#allocation13 + $0x3e8] sm:$0xff] }
 0x62f   : > { %7836 = vmatprep.subr.bf16.mxu0 %v15112_v25  ;;  %7879 = vmatprep.subr.bf16.mxu1 %v15114_v3  ;;  %v15152_v17 = vcombine.high %v7144_v31, %v7148_v21  ;;  %v15151_v25 = vcombine.low %v7144_v31, %v7148_v21  ;;  %v7152_v3 = vld [vmem:[#allocation13 + $0x300] sm:$0xff]  ;;  %v15185_v7 = vcombine.low %v7177_v61, %v7181_v63  ;;  %v17630_v31 = vld [vmem:[#allocation13 + $0x18] sm:$0xff] }
 0x632   : > { %7837 = vmatpush1.bf16.msra.mxu0 %v15111_v32  ;;  %7880 = vmatpush1.bf16.msra.mxu1 %v15113_v36  ;;  %v15154_v32 = vcombine.high %v7145_v14, %v7149_v19  ;;  %v7156_v36 = vld [vmem:[#allocation13 + $0x320] sm:$0xff]  ;;  %v17634_v14 = vld [vmem:[#allocation13 + $0x38] sm:$0xff] }
 0x633   : > { %7838 = vmatprep.subr.bf16.mxu0 %v15120_v40  ;;  %7881 = vmatprep.subr.bf16.mxu1 %v15122_v30  ;;  %v15160_v52 = vcombine.high %v7152_v3, %v7156_v36  ;;  %v15159_v40 = vcombine.low %v7152_v3, %v7156_v36  ;;  %v7164_v30 = vld [vmem:[#allocation13 + $0x360] sm:$0xff]  ;;  %v15069_v19 = vcombine.low %v17630_v31, %v17634_v14 }
 0x636   : > { %7839 = vmatpush1.bf16.msra.mxu0 %v15119_v48  ;;  %7882 = vmatpush1.bf16.msra.mxu1 %v15121_v12  ;;  %v15162_v48 = vcombine.high %v7153_v37, %v7157_v39  ;;  %v7160_v12 = vld [vmem:[#allocation13 + $0x340] sm:$0xff] }
 0x637   : > { %7840 = vmatprep.subr.bf16.mxu0 %v15128_v33  ;;  %7883 = vmatprep.subr.bf16.mxu1 %v15130_v2  ;;  %v15168_v29 = vcombine.high %v7160_v12, %v7164_v30  ;;  %v15167_v33 = vcombine.low %v7160_v12, %v7164_v30  ;;  %v7172_v2 = vld [vmem:[#allocation13 + $0x3a0] sm:$0xff] }
 0x63a   : > { %7841 = vmatpush1.bf16.msra.mxu0 %v15127_v20  ;;  %7884 = vmatpush1.bf16.msra.mxu1 %v15129_v50  ;;  %v15170_v20 = vcombine.high %v7161_v28, %v7165_v26  ;;  %v7168_v50 = vld [vmem:[#allocation13 + $0x380] sm:$0xff] }
 0x63b   : > { %7842 = vmatprep.subr.bf16.mxu0 %v15136_v54  ;;  %7885 = vmatprep.subr.bf16.mxu1 %v15138_v60  ;;  %v15176_v11 = vcombine.high %v7168_v50, %v7172_v2  ;;  %v15175_v54 = vcombine.low %v7168_v50, %v7172_v2  ;;  %v7180_v60 = vld [vmem:[#allocation13 + $0x3e0] sm:$0xff] }
 0x63e   : > { %7843 = vmatpush1.bf16.msra.mxu0 %v15135_v58  ;;  %7886 = vmatpush1.bf16.msra.mxu1 %v15137_v59  ;;  %v15178_v58 = vcombine.high %v7169_v23, %v7173_v53  ;;  %v7176_v59 = vld [vmem:[#allocation13 + $0x3c0] sm:$0xff] }
 0x63f   : > { %7844 = vmatprep.subr.bf16.mxu0 %v15144_v0  ;;  %7887 = vmatprep.subr.bf16.mxu1 %v15146_v15  ;;  %v15184_v62 = vcombine.high %v7176_v59, %v7180_v60  ;;  %v15183_v0 = vcombine.low %v7176_v59, %v7180_v60  ;;  %v17628_v15 = vld [vmem:[#allocation13 + $0x30] sm:$0xff] }
 0x642   : > { %7845 = vmatpush1.bf16.msra.mxu0 %v15143_v9  ;;  %7888 = vmatpush1.bf16.msra.mxu1 %v15145_v10  ;;  %v15186_v9 = vcombine.high %v7177_v61, %v7181_v63  ;;  %v17626_v10 = vld [vmem:[#allocation13 + $0x10] sm:$0xff] }
 0x643   : > { %7846 = vmatprep.subr.bf16.mxu0 %v15152_v17  ;;  %7889 = vmatprep.subr.bf16.mxu1 %v15154_v32  ;;  %v15068_v21 = vcombine.high %v17626_v10, %v17628_v15  ;;  %v15067_v17 = vcombine.low %v17626_v10, %v17628_v15 }
 0x646   : > { %7847 = vmatpush1.bf16.msra.mxu0 %v15151_v25  ;;  %7890 = vmatpush1.bf16.msra.mxu1 %v15153_v24  ;;  %v15070_v25 = vcombine.high %v17630_v31, %v17634_v14 }
 0x647   : > { %7848 = vmatprep.subr.bf16.mxu0 %v15160_v52  ;;  %7891 = vmatprep.subr.bf16.mxu1 %v15162_v48 }
 0x64a   : > { %7849 = vmatpush1.bf16.msra.mxu0 %v15159_v40  ;;  %7892 = vmatpush1.bf16.msra.mxu1 %v15161_v42 }
 0x64b   : > { %7850 = vmatprep.subr.bf16.mxu0 %v15168_v29  ;;  %7893 = vmatprep.subr.bf16.mxu1 %v15170_v20 }
 0x64e   : > { %7851 = vmatpush1.bf16.msra.mxu0 %v15167_v33  ;;  %7894 = vmatpush1.bf16.msra.mxu1 %v15169_v34 }
 0x64f   : > { %7852 = vmatprep.subr.bf16.mxu0 %v15176_v11  ;;  %7895 = vmatprep.subr.bf16.mxu1 %v15178_v58 }
 0x652   : > { %7853 = vmatpush1.bf16.msra.mxu0 %v15175_v54  ;;  %7896 = vmatpush1.bf16.msra.mxu1 %v15177_v55 }
 0x653   : > { %7854 = vmatprep.subr.bf16.mxu0 %v15184_v62  ;;  %7897 = vmatprep.subr.bf16.mxu1 %v15186_v9 }
 0x656   : > { %7855 = vmatpush1.bf16.msra.mxu0 %v15183_v0  ;;  %7898 = vmatpush1.bf16.msra.mxu1 %v15185_v7 }
 0x657   : > { %7910 = vmatprep.subr.bf16.mxu0 %v15068_v21  ;;  %7953 = vmatprep.subr.bf16.mxu1 %v15070_v25 }
 0x6cc   : > { %v6756_v24 = vpop.f32.mrb[24].mxu0  ;;  %v6799_v32 = vpop.f32.mrb[24].mxu1 }
 0x6cd   : > { %v6758_v3 = vpop.f32.mrb[25].mxu0  ;;  %v6801_v36 = vpop.f32.mrb[25].mxu1  ;;  %v6896_v42 = vadd.f32 %v6799_v32, %v17390_v22  ;;  %v6894_v12 = vadd.f32 %v6756_v24, %v17397_v47 }
 0x6ce   : > { %v6760_v37 = vpop.f32.mrb[26].mxu0  ;;  %v6803_v52 = vpop.f32.mrb[26].mxu1  ;;  %v6897_v48 = vadd.f32 %v6801_v36, %v17393_v46  ;;  %v6895_v28 = vadd.f32 %v6758_v3, %v17402_v49 }
 0x6cf   : > { %v6762_v39 = vpop.f32.mrb[27].mxu0  ;;  %v6805_v40 = vpop.f32.mrb[27].mxu1  ;;  %v6926_v30 = vmul.f32 0.5, %v6896_v42  ;;  %v6904_v29 = vadd.f32 %v6803_v52, %v17390_v22  ;;  %v6902_v33 = vadd.f32 %v6760_v37, %v17397_v47  ;;  %v6910_v34 = vmul.f32 0.5, %v6894_v12 }
 0x6d0   : > { %v6927_v26 = vmul.f32 0.5, %v6897_v48  ;;  %v6905_v20 = vadd.f32 %v6805_v40, %v17393_v46  ;;  %v6911_v50 = vmul.f32 0.5, %v6895_v28  ;;  %v6903_v23 = vadd.f32 %v6762_v39, %v17402_v49 }
 0x6d1   : > { %16423 = vtanh.f32 %v6926_v30  ;;  %v6928_v2 = vmul.f32 0.5, %v6904_v29  ;;  %v6912_v11 = vmul.f32 0.5, %v6902_v33 }
 0x6d2   : > { %16425 = vtanh.f32 %v6927_v26  ;;  %v6929_v53 = vmul.f32 0.5, %v6905_v20  ;;  %v6913_v54 = vmul.f32 0.5, %v6903_v23 }
 0x6d3   : > { %16427 = vtanh.f32 %v6910_v34 }
 0x6d4   : > { %16429 = vtanh.f32 %v6911_v50 }
 0x6d5   : > { %16431 = vtanh.f32 %v6928_v2 }
 0x6d6   : > { %16433 = vtanh.f32 %v6912_v11 }
 0x6d7   : > { %16435 = vtanh.f32 %v6929_v53 }
 0x6d8   : > { %16437 = vtanh.f32 %v6913_v54 }
 0x6db   : > { %v16424_v62 = vpop.eup %16423 }
 0x6dc   : > { %v16426_v24 = vpop.eup %16425  ;;  %v6934_v3 = vmul.f32 0.5, %v16424_v62 }
 0x6dd   : > { %v16428_v32 = vpop.eup %16427  ;;  %v6935_v42 = vmul.f32 0.5, %v16426_v24 }
 0x6de   : > { %v16430_v52 = vpop.eup %16429  ;;  %v6918_v30 = vmul.f32 0.5, %v16428_v32  ;;  %v6938_v26 = vadd.f32 0.5, %v6934_v3 }
 0x6df   : > { %v16432_v40 = vpop.eup %16431  ;;  %v6919_v33 = vmul.f32 0.5, %v16430_v52  ;;  %v6939_v23 = vadd.f32 0.5, %v6935_v42 }
 0x6e0   : > { %v16434_v12 = vpop.eup %16433  ;;  %v6936_v20 = vmul.f32 0.5, %v16432_v40  ;;  %v6922_v53 = vadd.f32 0.5, %v6918_v30 }
 0x6e1   : > { %v16436_v29 = vpop.eup %16435  ;;  %v6920_v54 = vmul.f32 0.5, %v16434_v12 }
 0x6e2   : > { %v16438_v2 = vpop.eup %16437 }
 0x6ec   : > { %v6842_v55 = vpop.f32.mrb[28].mxu0  ;;  %v6885_v58 = vpop.f32.mrb[28].mxu1 }
 0x6ed   : > { %v6898_v59 = vadd.f32 %v6842_v55, %v17414_v4  ;;  %v6844_v60 = vpop.f32.mrb[29].mxu0  ;;  %v6887_v61 = vpop.f32.mrb[29].mxu1  ;;  %v6900_v36 = vadd.f32 %v6885_v58, %v17418_v6  ;;  %v6937_v55 = vmul.f32 0.5, %v16436_v29 }
 0x6ee   : > { %v6899_v63 = vadd.f32 %v6844_v60, %v17416_v5  ;;  %v6846_v0 = vpop.f32.mrb[30].mxu0  ;;  %v6889_v7 = vpop.f32.mrb[30].mxu1  ;;  %v6901_v48 = vadd.f32 %v6887_v61, %v17424_v18  ;;  %v6962_v60 = vmul.f32 %v6938_v26, %v17583_v27  ;;  %v6923_v61 = vadd.f32 0.5, %v6919_v33 }
 0x6ef   : > { %16439 = vtanh.f32 %v6898_v59  ;;  %v6906_v9 = vadd.f32 %v6846_v0, %v17414_v4  ;;  %v6848_v21 = vpop.f32.mrb[31].mxu0  ;;  %v6891_v25 = vpop.f32.mrb[31].mxu1  ;;  %v6908_v39 = vadd.f32 %v6889_v7, %v17418_v6  ;;  %v6946_v34 = vmul.f32 0.5, %v6900_v36 }
 0x6f0   : > { %16441 = vtanh.f32 %v6899_v63  ;;  %v6907_v37 = vadd.f32 %v6848_v21, %v17416_v5  ;;  %v6909_v28 = vadd.f32 %v6891_v25, %v17424_v18  ;;  %v6947_v11 = vmul.f32 0.5, %v6901_v48 }
 0x6f1   : > { %16443 = vtanh.f32 %v6906_v9  ;;  %v6948_v50 = vmul.f32 0.5, %v6908_v39  ;;  %v6940_v63 = vadd.f32 0.5, %v6936_v20  ;;  %v6921_v0 = vmul.f32 0.5, %v16438_v2 }
 0x6f2   : > { %16445 = vtanh.f32 %v6907_v37  ;;  %v6949_v58 = vmul.f32 0.5, %v6909_v28  ;;  %v6963_v9 = vmul.f32 %v6939_v23, %v17585_v35  ;;  %v6924_v25 = vadd.f32 0.5, %v6920_v54 }
 0x6f3   : > { %16447 = vtanh.f32 %v6946_v34  ;;  %v6941_v24 = vadd.f32 0.5, %v6937_v55  ;;  %v6964_v27 = vmul.f32 %v6940_v63, %v17590_v8  ;;  %v6925_v37 = vadd.f32 0.5, %v6921_v0  ;;  %v7070_v63 = vld [vmem:[#allocation13 + $0x70] sm:$0xff]  ;;  %v7067_v0 = vld [vmem:[#allocation13 + $0x58] sm:$0xff] }
 0x6f4   : > { %16449 = vtanh.f32 %v6948_v50 }
 0x6f5   : > { %16451 = vtanh.f32 %v6947_v11  ;;  %v6965_v40 = vmul.f32 %v6941_v24, %v17594_v43 }
 0x6f6   : > { %16453 = vtanh.f32 %v6949_v58 }
 0x6f9   : > { %v16440_v59 = vpop.eup %16439 }
 0x6fa   : > { %v16442_v62 = vpop.eup %16441  ;;  %v6966_v7 = vmul.f32 %v16440_v59, %v6922_v53 }
 0x6fb   : > { %v6967_v21 = vmul.f32 %v16442_v62, %v6923_v61  ;;  %v16444_v3 = vpop.eup %16443  ;;  %v7066_v62 = vld [vmem:[#allocation13 + $0x50] sm:$0xff] }
 0x6fc   : > { %v17660_v32 = vadd.f32 %v6966_v7, %v6962_v60  ;;  %v6968_v52 = vmul.f32 %v16444_v3, %v6924_v25  ;;  %v16446_v39 = vpop.eup %16445  ;;  %v7071_v7 = vld [vmem:[#allocation13 + $0x78] sm:$0xff]  ;;  %v15076_v25 = vcombine.high %v7066_v62, %v7070_v63  ;;  %v7078_v3 = vld [vmem:[#allocation13 + $0xb0] sm:$0xff] }
 0x6fd   : > { %v17662_v36 = vadd.f32 %v6967_v21, %v6963_v9  ;;  %v6969_v42 = vmul.f32 %v16446_v39, %v6925_v37  ;;  %v16448_v12 = vpop.eup %16447  ;;  %v7074_v21 = vld [vmem:[#allocation13 + $0x90] sm:$0xff]  ;;  %v15078_v24 = vcombine.high %v7067_v0, %v7071_v7  ;;  %v7079_v37 = vld [vmem:[#allocation13 + $0xb8] sm:$0xff]  ;;  %v15077_v39 = vcombine.low %v7067_v0, %v7071_v7 }
 0x6fe   : > { %16455 = vtanh.f32 %v17660_v32  ;;  %v17667_v35 = vadd.f32 %v6968_v52, %v6964_v27  ;;  %v16450_v30 = vpop.eup %16449  ;;  %v6954_v29 = vmul.f32 0.5, %v16448_v12  ;;  %v7075_v27 = vld [vmem:[#allocation13 + $0x98] sm:$0xff]  ;;  %v15075_v52 = vcombine.low %v7066_v62, %v7070_v63  ;;  %v7082_v12 = vld [vmem:[#allocation13 + $0xd0] sm:$0xff] }
 0x6ff   : > { %16457 = vtanh.f32 %v17662_v36  ;;  %v17671_v48 = vadd.f32 %v6969_v42, %v6965_v40  ;;  %v16452_v8 = vpop.eup %16451  ;;  %v6956_v26 = vmul.f32 0.5, %v16450_v30  ;;  %v15084_v40 = vcombine.high %v7074_v21, %v7078_v3  ;;  %v7086_v30 = vld [vmem:[#allocation13 + $0xf0] sm:$0xff]  ;;  %v7107_v62 = vld [vmem:[#allocation13 + $0x198] sm:$0xff] }
 0x700   : > { %16459 = vtanh.f32 %v17667_v35  ;;  %v16454_v28 = vpop.eup %16453  ;;  %v6955_v43 = vmul.f32 0.5, %v16452_v8  ;;  %v6958_v50 = vadd.f32 0.5, %v6954_v29  ;;  %v15086_v42 = vcombine.high %v7075_v27, %v7079_v37  ;;  %v7083_v8 = vld [vmem:[#allocation13 + $0xd8] sm:$0xff] }
 0x701   : > { %16461 = vtanh.f32 %v17671_v48  ;;  %v6957_v33 = vmul.f32 0.5, %v16454_v28  ;;  %v6960_v2 = vadd.f32 0.5, %v6956_v26  ;;  %v7087_v28 = vld [vmem:[#allocation13 + $0xf8] sm:$0xff]  ;;  %v15083_v10 = vcombine.low %v7074_v21, %v7078_v3  ;;  %v7118_v3 = vld [vmem:[#allocation13 + $0x1f0] sm:$0xff] }
 0x702   : > { %v6959_v53 = vadd.f32 0.5, %v6955_v43  ;;  %v15085_v15 = vcombine.low %v7075_v27, %v7079_v37  ;;  %v15092_v31 = vcombine.high %v7082_v12, %v7086_v30  ;;  %v15094_v14 = vcombine.high %v7083_v8, %v7087_v28  ;;  %v7091_v29 = vld [vmem:[#allocation13 + $0x118] sm:$0xff] }
 0x703   : > { %v6961_v55 = vadd.f32 0.5, %v6957_v33  ;;  %v7095_v26 = vld [vmem:[#allocation13 + $0x138] sm:$0xff]  ;;  %v15091_v43 = vcombine.low %v7082_v12, %v7086_v30  ;;  %v15093_v33 = vcombine.low %v7083_v8, %v7087_v28  ;;  %v7122_v12 = vld [vmem:[#allocation13 + $0x210] sm:$0xff] }
 0x704   : > { %v7111_v63 = vld [vmem:[#allocation13 + $0x1b8] sm:$0xff]  ;;  %v7126_v30 = vld [vmem:[#allocation13 + $0x230] sm:$0xff] }
 0x705   : > { %v7115_v27 = vld [vmem:[#allocation13 + $0x1d8] sm:$0xff] }
 0x706   : > { %v7119_v37 = vld [vmem:[#allocation13 + $0x1f8] sm:$0xff] }
 0x707   : > { %v7123_v8 = vld [vmem:[#allocation13 + $0x218] sm:$0xff] }
 0x708   : > { %v16456_v34 = vpop.eup %16455  ;;  %v7127_v28 = vld [vmem:[#allocation13 + $0x238] sm:$0xff] }
 0x709   : > { %v16458_v20 = vpop.eup %16457  ;;  %v6978_v11 = vmul.f32 %v16456_v34, %v6958_v50  ;;  %v7098_v50 = vld [vmem:[#allocation13 + $0x150] sm:$0xff] }
 0x70a   : > { %v16460_v23 = vpop.eup %16459  ;;  %v6979_v59 = vmul.f32 %v16458_v20, %v6959_v53  ;;  %v15102_v20 = vcombine.high %v7091_v29, %v7095_v26 }
 0x70b   : > { %v6980_v54 = vmul.f32 %v16460_v23, %v6960_v2  ;;  %v16462_v58 = vpop.eup %16461  ;;  %v7102_v2 = vld [vmem:[#allocation13 + $0x170] sm:$0xff]  ;;  %v7099_v23 = vld [vmem:[#allocation13 + $0x158] sm:$0xff] }
 0x70c   : > { %v6981_v61 = vmul.f32 %v16462_v58, %v6961_v55  ;;  %v15108_v55 = vcombine.high %v7098_v50, %v7102_v2  ;;  %v15107_v0 = vcombine.low %v7098_v50, %v7102_v2  ;;  %v7138_v50 = vld [vmem:[#allocation13 + $0x290] sm:$0xff] }
 0x70d   : > { %v17674_v60 = vpack.c.bf16 %v6980_v54, %v6978_v11  ;;  %v7103_v11 = vld [vmem:[#allocation13 + $0x178] sm:$0xff]  ;;  %v15101_v54 = vcombine.low %v7091_v29, %v7095_v26  ;;  %v7142_v2 = vld [vmem:[#allocation13 + $0x2b0] sm:$0xff] }
 0x70e   : > { %v17676_v9 = vpack.c.bf16 %v6981_v61, %v6979_v59  ;;  %v15110_v58 = vcombine.high %v7099_v23, %v7103_v11  ;;  %v7106_v59 = vld [vmem:[#allocation13 + $0x190] sm:$0xff]  ;;  %v15109_v7 = vcombine.low %v7099_v23, %v7103_v11  ;;  %v7131_v29 = vld [vmem:[#allocation13 + $0x258] sm:$0xff] }
 0x70f   : > { %v7110_v61 = vld [vmem:[#allocation13 + $0x1b0] sm:$0xff]  ;;  %v7135_v26 = vld [vmem:[#allocation13 + $0x278] sm:$0xff] }
 0x710   : > { %7856 = vmatprep.mubr.bf16.mxu0 %v17676_v9  ;;  %7899 = vmatprep.mubr.bf16.mxu1 %v17676_v9  ;;  %v15116_v21 = vcombine.high %v7106_v59, %v7110_v61  ;;  %v7139_v23 = vld [vmem:[#allocation13 + $0x298] sm:$0xff] }
 0x711   : > { %7857 = vmatmul.mubr.bf16.vlgmr.msra.gmra.mrb[32].mxu0 %v17674_v60  ;;  %7900 = vmatmul.mubr.bf16.vlgmr.msra.gmra.mrb[32].mxu1 %v17674_v60  ;;  %v7143_v11 = vld [vmem:[#allocation13 + $0x2b8] sm:$0xff] }
 0x712   : > { %7911 = vmatpush1.bf16.msra.mxu0 %v15067_v17  ;;  %7954 = vmatpush1.bf16.msra.mxu1 %v15069_v19  ;;  %v7090_v17 = vld [vmem:[#allocation13 + $0x110] sm:$0xff] }
 0x713   : > { %7942 = vmatprep.mubr.bf16.mxu0 %v17676_v9  ;;  %7985 = vmatprep.mubr.bf16.mxu1 %v17676_v9  ;;  %v7094_v19 = vld [vmem:[#allocation13 + $0x130] sm:$0xff] }
 0x714   : > { %7912 = vmatprep.subr.bf16.mxu0 %v15076_v25  ;;  %7955 = vmatprep.subr.bf16.mxu1 %v15078_v24  ;;  %v15100_v34 = vcombine.high %v7090_v17, %v7094_v19  ;;  %v15099_v53 = vcombine.low %v7090_v17, %v7094_v19  ;;  %v15118_v25 = vcombine.high %v7107_v62, %v7111_v63  ;;  %v7114_v24 = vld [vmem:[#allocation13 + $0x1d0] sm:$0xff] }
 0x715   : > { %v7130_v17 = vld [vmem:[#allocation13 + $0x250] sm:$0xff] }
 0x716   : > { %7913 = vmatpush1.bf16.msra.mxu0 %v15075_v52  ;;  %7956 = vmatpush1.bf16.msra.mxu1 %v15077_v39  ;;  %v15115_v52 = vcombine.low %v7106_v59, %v7110_v61  ;;  %v15117_v39 = vcombine.low %v7107_v62, %v7111_v63  ;;  %v7134_v19 = vld [vmem:[#allocation13 + $0x270] sm:$0xff]  ;;  %v7147_v62 = vld [vmem:[#allocation13 + $0x2d8] sm:$0xff] }
 0x717   : > { %7914 = vmatprep.subr.bf16.mxu0 %v15084_v40  ;;  %7957 = vmatprep.subr.bf16.mxu1 %v15086_v42  ;;  %v15124_v40 = vcombine.high %v7114_v24, %v7118_v3  ;;  %v15126_v42 = vcombine.high %v7115_v27, %v7119_v37  ;;  %v7146_v59 = vld [vmem:[#allocation13 + $0x2d0] sm:$0xff]  ;;  %v7151_v63 = vld [vmem:[#allocation13 + $0x2f8] sm:$0xff] }
 0x718   : > { %v7150_v61 = vld [vmem:[#allocation13 + $0x2f0] sm:$0xff] }
 0x71a   : > { %7915 = vmatpush1.bf16.msra.mxu0 %v15083_v10  ;;  %7958 = vmatpush1.bf16.msra.mxu1 %v15085_v15  ;;  %v15123_v10 = vcombine.low %v7114_v24, %v7118_v3  ;;  %v15125_v15 = vcombine.low %v7115_v27, %v7119_v37  ;;  %v7154_v24 = vld [vmem:[#allocation13 + $0x310] sm:$0xff]  ;;  %v7155_v27 = vld [vmem:[#allocation13 + $0x318] sm:$0xff] }
 0x71b   : > { %7916 = vmatprep.subr.bf16.mxu0 %v15092_v31  ;;  %7959 = vmatprep.subr.bf16.mxu1 %v15094_v14  ;;  %v15132_v31 = vcombine.high %v7122_v12, %v7126_v30  ;;  %v15134_v14 = vcombine.high %v7123_v8, %v7127_v28  ;;  %v7158_v3 = vld [vmem:[#allocation13 + $0x330] sm:$0xff]  ;;  %v7159_v37 = vld [vmem:[#allocation13 + $0x338] sm:$0xff] }
 0x71e   : > { %7917 = vmatpush1.bf16.msra.mxu0 %v15091_v43  ;;  %7960 = vmatpush1.bf16.msra.mxu1 %v15093_v33  ;;  %v15131_v43 = vcombine.low %v7122_v12, %v7126_v30  ;;  %v15133_v33 = vcombine.low %v7123_v8, %v7127_v28  ;;  %v7162_v12 = vld [vmem:[#allocation13 + $0x350] sm:$0xff]  ;;  %v7163_v8 = vld [vmem:[#allocation13 + $0x358] sm:$0xff] }
 0x71f   : > { %7918 = vmatprep.subr.bf16.mxu0 %v15100_v34  ;;  %7961 = vmatprep.subr.bf16.mxu1 %v15102_v20  ;;  %v15140_v34 = vcombine.high %v7130_v17, %v7134_v19  ;;  %v15142_v20 = vcombine.high %v7131_v29, %v7135_v26  ;;  %v7166_v30 = vld [vmem:[#allocation13 + $0x370] sm:$0xff]  ;;  %v7167_v28 = vld [vmem:[#allocation13 + $0x378] sm:$0xff] }
 0x722   : > { %7919 = vmatpush1.bf16.msra.mxu0 %v15099_v53  ;;  %7962 = vmatpush1.bf16.msra.mxu1 %v15101_v54  ;;  %v15139_v53 = vcombine.low %v7130_v17, %v7134_v19  ;;  %v15141_v54 = vcombine.low %v7131_v29, %v7135_v26  ;;  %v7170_v17 = vld [vmem:[#allocation13 + $0x390] sm:$0xff]  ;;  %v7171_v29 = vld [vmem:[#allocation13 + $0x398] sm:$0xff] }
 0x723   : > { %7920 = vmatprep.subr.bf16.mxu0 %v15108_v55  ;;  %7963 = vmatprep.subr.bf16.mxu1 %v15110_v58  ;;  %v15148_v55 = vcombine.high %v7138_v50, %v7142_v2  ;;  %v15150_v58 = vcombine.high %v7139_v23, %v7143_v11  ;;  %v7174_v19 = vld [vmem:[#allocation13 + $0x3b0] sm:$0xff]  ;;  %v7175_v26 = vld [vmem:[#allocation13 + $0x3b8] sm:$0xff] }
 0x726   : > { %7921 = vmatpush1.bf16.msra.mxu0 %v15107_v0  ;;  %7964 = vmatpush1.bf16.msra.mxu1 %v15109_v7  ;;  %v15147_v0 = vcombine.low %v7138_v50, %v7142_v2  ;;  %v15149_v7 = vcombine.low %v7139_v23, %v7143_v11  ;;  %v7178_v50 = vld [vmem:[#allocation13 + $0x3d0] sm:$0xff]  ;;  %v7179_v23 = vld [vmem:[#allocation13 + $0x3d8] sm:$0xff] }
 0x727   : > { %7922 = vmatprep.subr.bf16.mxu0 %v15116_v21  ;;  %7965 = vmatprep.subr.bf16.mxu1 %v15118_v25  ;;  %v15156_v21 = vcombine.high %v7146_v59, %v7150_v61  ;;  %v15158_v25 = vcombine.high %v7147_v62, %v7151_v63  ;;  %v7182_v2 = vld [vmem:[#allocation13 + $0x3f0] sm:$0xff]  ;;  %v7183_v11 = vld [vmem:[#allocation13 + $0x3f8] sm:$0xff] }
 0x72a   : > { %7923 = vmatpush1.bf16.msra.mxu0 %v15115_v52  ;;  %7966 = vmatpush1.bf16.msra.mxu1 %v15117_v39  ;;  %v15155_v52 = vcombine.low %v7146_v59, %v7150_v61  ;;  %v15157_v39 = vcombine.low %v7147_v62, %v7151_v63  ;;  %v6990_v59 = vld [vmem:[#allocation11] sm:$0xff]  ;;  %v6991_v62 = vld [vmem:[#allocation11 + $0x8] sm:$0xff] }
 0x72b   : > { %7924 = vmatprep.subr.bf16.mxu0 %v15124_v40  ;;  %7967 = vmatprep.subr.bf16.mxu1 %v15126_v42  ;;  %v15164_v40 = vcombine.high %v7154_v24, %v7158_v3  ;;  %v15166_v42 = vcombine.high %v7155_v27, %v7159_v37  ;;  %v6994_v61 = vld [vmem:[#allocation11 + $0x20] sm:$0xff]  ;;  %v6995_v63 = vld [vmem:[#allocation11 + $0x28] sm:$0xff] }
 0x72e   : > { %7925 = vmatpush1.bf16.msra.mxu0 %v15123_v10  ;;  %7968 = vmatpush1.bf16.msra.mxu1 %v15125_v15  ;;  %v15163_v10 = vcombine.low %v7154_v24, %v7158_v3  ;;  %v15165_v15 = vcombine.low %v7155_v27, %v7159_v37  ;;  %v6998_v24 = vld [vmem:[#allocation11 + $0x40] sm:$0xff]  ;;  %v6999_v27 = vld [vmem:[#allocation11 + $0x48] sm:$0xff] }
 0x72f   : > { %7926 = vmatprep.subr.bf16.mxu0 %v15132_v31  ;;  %7969 = vmatprep.subr.bf16.mxu1 %v15134_v14  ;;  %v15172_v31 = vcombine.high %v7162_v12, %v7166_v30  ;;  %v15174_v14 = vcombine.high %v7163_v8, %v7167_v28  ;;  %v7002_v3 = vld [vmem:[#allocation11 + $0x60] sm:$0xff]  ;;  %v7003_v37 = vld [vmem:[#allocation11 + $0x68] sm:$0xff] }
 0x732   : > { %7927 = vmatpush1.bf16.msra.mxu0 %v15131_v43  ;;  %7970 = vmatpush1.bf16.msra.mxu1 %v15133_v33  ;;  %v15171_v43 = vcombine.low %v7162_v12, %v7166_v30  ;;  %v15173_v33 = vcombine.low %v7163_v8, %v7167_v28  ;;  %v7006_v12 = vld [vmem:[#allocation11 + $0x80] sm:$0xff]  ;;  %v7007_v8 = vld [vmem:[#allocation11 + $0x88] sm:$0xff] }
 0x733   : > { %7928 = vmatprep.subr.bf16.mxu0 %v15140_v34  ;;  %7971 = vmatprep.subr.bf16.mxu1 %v15142_v20  ;;  %v15180_v34 = vcombine.high %v7170_v17, %v7174_v19  ;;  %v15182_v20 = vcombine.high %v7171_v29, %v7175_v26  ;;  %v7010_v30 = vld [vmem:[#allocation11 + $0xa0] sm:$0xff]  ;;  %v7011_v28 = vld [vmem:[#allocation11 + $0xa8] sm:$0xff] }
 0x736   : > { %7929 = vmatpush1.bf16.msra.mxu0 %v15139_v53  ;;  %7972 = vmatpush1.bf16.msra.mxu1 %v15141_v54  ;;  %v15179_v53 = vcombine.low %v7170_v17, %v7174_v19  ;;  %v15181_v54 = vcombine.low %v7171_v29, %v7175_v26  ;;  %v7014_v17 = vld [vmem:[#allocation11 + $0xc0] sm:$0xff]  ;;  %v7015_v29 = vld [vmem:[#allocation11 + $0xc8] sm:$0xff] }
 0x737   : > { %7930 = vmatprep.subr.bf16.mxu0 %v15148_v55  ;;  %7973 = vmatprep.subr.bf16.mxu1 %v15150_v58  ;;  %v15188_v55 = vcombine.high %v7178_v50, %v7182_v2  ;;  %v15190_v58 = vcombine.high %v7179_v23, %v7183_v11  ;;  %v7018_v19 = vld [vmem:[#allocation11 + $0xe0] sm:$0xff]  ;;  %v7019_v26 = vld [vmem:[#allocation11 + $0xe8] sm:$0xff] }
 0x73a   : > { %7931 = vmatpush1.bf16.msra.mxu0 %v15147_v0  ;;  %7974 = vmatpush1.bf16.msra.mxu1 %v15149_v7  ;;  %v15187_v0 = vcombine.low %v7178_v50, %v7182_v2  ;;  %v15189_v7 = vcombine.low %v7179_v23, %v7183_v11  ;;  %v7022_v50 = vld [vmem:[#allocation11 + $0x100] sm:$0xff]  ;;  %v7023_v23 = vld [vmem:[#allocation11 + $0x108] sm:$0xff] }
 0x73b   : > { %7932 = vmatprep.subr.bf16.mxu0 %v15156_v21  ;;  %7975 = vmatprep.subr.bf16.mxu1 %v15158_v25  ;;  %v15193_v21 = vcombine.high %v6990_v59, %v6994_v61  ;;  %v15195_v25 = vcombine.high %v6991_v62, %v6995_v63  ;;  %v7026_v2 = vld [vmem:[#allocation11 + $0x120] sm:$0xff]  ;;  %v7027_v11 = vld [vmem:[#allocation11 + $0x128] sm:$0xff] }
 0x73e   : > { %7933 = vmatpush1.bf16.msra.mxu0 %v15155_v52  ;;  %7976 = vmatpush1.bf16.msra.mxu1 %v15157_v39  ;;  %v15192_v52 = vcombine.low %v6990_v59, %v6994_v61  ;;  %v15194_v39 = vcombine.low %v6991_v62, %v6995_v63  ;;  %v7030_v59 = vld [vmem:[#allocation11 + $0x140] sm:$0xff]  ;;  %v7031_v62 = vld [vmem:[#allocation11 + $0x148] sm:$0xff] }
 0x73f   : > { %7934 = vmatprep.subr.bf16.mxu0 %v15164_v40  ;;  %7977 = vmatprep.subr.bf16.mxu1 %v15166_v42  ;;  %v15201_v40 = vcombine.high %v6998_v24, %v7002_v3  ;;  %v15203_v42 = vcombine.high %v6999_v27, %v7003_v37  ;;  %v7034_v61 = vld [vmem:[#allocation11 + $0x160] sm:$0xff]  ;;  %v7035_v63 = vld [vmem:[#allocation11 + $0x168] sm:$0xff] }
 0x742   : > { %7935 = vmatpush1.bf16.msra.mxu0 %v15163_v10  ;;  %7978 = vmatpush1.bf16.msra.mxu1 %v15165_v15  ;;  %v15200_v10 = vcombine.low %v6998_v24, %v7002_v3  ;;  %v15202_v15 = vcombine.low %v6999_v27, %v7003_v37  ;;  %v7038_v24 = vld [vmem:[#allocation11 + $0x180] sm:$0xff]  ;;  %v7039_v27 = vld [vmem:[#allocation11 + $0x188] sm:$0xff] }
 0x743   : > { %7936 = vmatprep.subr.bf16.mxu0 %v15172_v31  ;;  %7979 = vmatprep.subr.bf16.mxu1 %v15174_v14  ;;  %v15209_v31 = vcombine.high %v7006_v12, %v7010_v30  ;;  %v15211_v14 = vcombine.high %v7007_v8, %v7011_v28  ;;  %v7042_v3 = vld [vmem:[#allocation11 + $0x1a0] sm:$0xff]  ;;  %v7043_v37 = vld [vmem:[#allocation11 + $0x1a8] sm:$0xff] }
 0x746   : > { %7937 = vmatpush1.bf16.msra.mxu0 %v15171_v43  ;;  %7980 = vmatpush1.bf16.msra.mxu1 %v15173_v33  ;;  %v15208_v43 = vcombine.low %v7006_v12, %v7010_v30  ;;  %v15210_v33 = vcombine.low %v7007_v8, %v7011_v28  ;;  %v7046_v12 = vld [vmem:[#allocation11 + $0x1c0] sm:$0xff]  ;;  %v7047_v8 = vld [vmem:[#allocation11 + $0x1c8] sm:$0xff] }
 0x747   : > { %7938 = vmatprep.subr.bf16.mxu0 %v15180_v34  ;;  %7981 = vmatprep.subr.bf16.mxu1 %v15182_v20  ;;  %v15217_v34 = vcombine.high %v7014_v17, %v7018_v19  ;;  %v15219_v20 = vcombine.high %v7015_v29, %v7019_v26  ;;  %v7050_v30 = vld [vmem:[#allocation11 + $0x1e0] sm:$0xff]  ;;  %v7051_v28 = vld [vmem:[#allocation11 + $0x1e8] sm:$0xff] }
 0x74a   : > { %7939 = vmatpush1.bf16.msra.mxu0 %v15179_v53  ;;  %7982 = vmatpush1.bf16.msra.mxu1 %v15181_v54  ;;  %v15216_v53 = vcombine.low %v7014_v17, %v7018_v19  ;;  %v15218_v54 = vcombine.low %v7015_v29, %v7019_v26  ;;  %v6992_v17 = vld [vmem:[#allocation11 + $0x10] sm:$0xff]  ;;  %v6993_v29 = vld [vmem:[#allocation11 + $0x18] sm:$0xff] }
 0x74b   : > { %7940 = vmatprep.subr.bf16.mxu0 %v15188_v55  ;;  %7983 = vmatprep.subr.bf16.mxu1 %v15190_v58  ;;  %v15225_v55 = vcombine.high %v7022_v50, %v7026_v2  ;;  %v15227_v58 = vcombine.high %v7023_v23, %v7027_v11  ;;  %v6996_v19 = vld [vmem:[#allocation11 + $0x30] sm:$0xff]  ;;  %v6997_v26 = vld [vmem:[#allocation11 + $0x38] sm:$0xff] }
 0x74e   : > { %7941 = vmatpush1.bf16.msra.mxu0 %v15187_v0  ;;  %7984 = vmatpush1.bf16.msra.mxu1 %v15189_v7  ;;  %v15224_v0 = vcombine.low %v7022_v50, %v7026_v2  ;;  %v15226_v7 = vcombine.low %v7023_v23, %v7027_v11  ;;  %v7000_v50 = vld [vmem:[#allocation11 + $0x50] sm:$0xff]  ;;  %v7001_v23 = vld [vmem:[#allocation11 + $0x58] sm:$0xff] }
 0x74f   : > { %8322 = vmatprep.subr.bf16.mxu0 %v15193_v21  ;;  %8365 = vmatprep.subr.bf16.mxu1 %v15195_v25  ;;  %v15233_v21 = vcombine.high %v7030_v59, %v7034_v61  ;;  %v15235_v25 = vcombine.high %v7031_v62, %v7035_v63  ;;  %v7004_v2 = vld [vmem:[#allocation11 + $0x70] sm:$0xff]  ;;  %v7005_v11 = vld [vmem:[#allocation11 + $0x78] sm:$0xff] }
 0x751   : > { %7943 = vmatmul.mubr.bf16.vlgmr.msra.gmra.mrb[36].mxu0 %v17674_v60  ;;  %7986 = vmatmul.mubr.bf16.vlgmr.msra.gmra.mrb[36].mxu1 %v17674_v60 }
 0x752   : > { %8323 = vmatpush1.bf16.msra.mxu0 %v15192_v52  ;;  %8366 = vmatpush1.bf16.msra.mxu1 %v15194_v39  ;;  %v15232_v52 = vcombine.low %v7030_v59, %v7034_v61  ;;  %v15234_v39 = vcombine.low %v7031_v62, %v7035_v63  ;;  %v15207_v59 = vcombine.high %v7001_v23, %v7005_v11  ;;  %v7008_v61 = vld [vmem:[#allocation11 + $0x90] sm:$0xff]  ;;  %v7009_v63 = vld [vmem:[#allocation11 + $0x98] sm:$0xff] }
 0x753   : > { %8324 = vmatprep.subr.bf16.mxu0 %v15201_v40  ;;  %8367 = vmatprep.subr.bf16.mxu1 %v15203_v42  ;;  %v15241_v40 = vcombine.high %v7038_v24, %v7042_v3  ;;  %v15243_v42 = vcombine.high %v7039_v27, %v7043_v37  ;;  %v7012_v62 = vld [vmem:[#allocation11 + $0xb0] sm:$0xff] }
 0x754   : > { %8354 = vmatprep.mubr.bf16.mxu0 %v16972_v41  ;;  %8397 = vmatprep.mubr.bf16.mxu1 %v16972_v41 }
 0x756   : > { %8325 = vmatpush1.bf16.msra.mxu0 %v15200_v10  ;;  %8368 = vmatpush1.bf16.msra.mxu1 %v15202_v15  ;;  %v15240_v10 = vcombine.low %v7038_v24, %v7042_v3  ;;  %v15242_v15 = vcombine.low %v7039_v27, %v7043_v37  ;;  %v7016_v3 = vld [vmem:[#allocation11 + $0xd0] sm:$0xff]  ;;  %v7017_v37 = vld [vmem:[#allocation11 + $0xd8] sm:$0xff] }
 0x757   : > { %8326 = vmatprep.subr.bf16.mxu0 %v15209_v31  ;;  %8369 = vmatprep.subr.bf16.mxu1 %v15211_v14  ;;  %v15249_v31 = vcombine.high %v7046_v12, %v7050_v30  ;;  %v15251_v14 = vcombine.high %v7047_v8, %v7051_v28  ;;  %v7020_v27 = vld [vmem:[#allocation11 + $0xf0] sm:$0xff] }
 0x75a   : > { %8327 = vmatpush1.bf16.msra.mxu0 %v15208_v43  ;;  %8370 = vmatpush1.bf16.msra.mxu1 %v15210_v33  ;;  %v15248_v43 = vcombine.low %v7046_v12, %v7050_v30  ;;  %v15250_v33 = vcombine.low %v7047_v8, %v7051_v28  ;;  %v7024_v30 = vld [vmem:[#allocation11 + $0x110] sm:$0xff]  ;;  %v7025_v28 = vld [vmem:[#allocation11 + $0x118] sm:$0xff] }
 0x75b   : > { %8328 = vmatprep.subr.bf16.mxu0 %v15217_v34  ;;  %8371 = vmatprep.subr.bf16.mxu1 %v15219_v20  ;;  %v15197_v34 = vcombine.high %v6992_v17, %v6996_v19  ;;  %v15199_v20 = vcombine.high %v6993_v29, %v6997_v26  ;;  %v7028_v8 = vld [vmem:[#allocation11 + $0x130] sm:$0xff] }
 0x75e   : > { %8329 = vmatpush1.bf16.msra.mxu0 %v15216_v53  ;;  %8372 = vmatpush1.bf16.msra.mxu1 %v15218_v54  ;;  %v17695_v53 = vld [vmem:[%s17320_s9 + $0x20] sm:$0xff]   ;;  %v15196_v54 = vcombine.low %v6992_v17, %v6996_v19  ;;  %v7032_v19 = vld [vmem:[#allocation11 + $0x150] sm:$0xff] }
 0x75f   : > { %8330 = vmatprep.subr.bf16.mxu0 %v15225_v55  ;;  %8373 = vmatprep.subr.bf16.mxu1 %v15227_v58  ;;  %v15198_v55 = vcombine.low %v6993_v29, %v6997_v26  ;;  %v15205_v58 = vcombine.high %v7000_v50, %v7004_v2  ;;  %v7036_v29 = vld [vmem:[#allocation11 + $0x170] sm:$0xff]  ;;  %v7033_v26 = vld [vmem:[#allocation11 + $0x158] sm:$0xff] }
 0x762   : > { %8331 = vmatpush1.bf16.msra.mxu0 %v15224_v0  ;;  %8374 = vmatpush1.bf16.msra.mxu1 %v15226_v7  ;;  %v7013_v0 = vld [vmem:[#allocation11 + $0xb8] sm:$0xff]  ;;  %v15204_v7 = vcombine.low %v7000_v50, %v7004_v2  ;;  %v7040_v2 = vld [vmem:[#allocation11 + $0x190] sm:$0xff] }
 0x763   : > { %8332 = vmatprep.subr.bf16.mxu0 %v15233_v21  ;;  %8375 = vmatprep.subr.bf16.mxu1 %v15235_v25  ;;  %v15206_v21 = vcombine.low %v7001_v23, %v7005_v11  ;;  %v15213_v25 = vcombine.high %v7008_v61, %v7012_v62  ;;  %v15215_v24 = vcombine.high %v7009_v63, %v7013_v0  ;;  %v7044_v23 = vld [vmem:[#allocation11 + $0x1b0] sm:$0xff]  ;;  %v7041_v11 = vld [vmem:[#allocation11 + $0x198] sm:$0xff] }
 0x766   : > { %8333 = vmatpush1.bf16.msra.mxu0 %v15232_v52  ;;  %8376 = vmatpush1.bf16.msra.mxu1 %v15234_v39  ;;  %v7021_v52 = vld [vmem:[#allocation11 + $0xf8] sm:$0xff]  ;;  %v15212_v39 = vcombine.low %v7008_v61, %v7012_v62  ;;  %v7048_v62 = vld [vmem:[#allocation11 + $0x1d0] sm:$0xff] }
 0x767   : > { %8334 = vmatprep.subr.bf16.mxu0 %v15241_v40  ;;  %8377 = vmatprep.subr.bf16.mxu1 %v15243_v42  ;;  %v15214_v40 = vcombine.low %v7009_v63, %v7013_v0  ;;  %v15221_v42 = vcombine.high %v7016_v3, %v7020_v27  ;;  %v15223_v12 = vcombine.high %v7017_v37, %v7021_v52  ;;  %v7052_v63 = vld [vmem:[#allocation11 + $0x1f0] sm:$0xff]  ;;  %v7049_v0 = vld [vmem:[#allocation11 + $0x1d8] sm:$0xff] }
 0x76a   : > { %8335 = vmatpush1.bf16.msra.mxu0 %v15240_v10  ;;  %8378 = vmatpush1.bf16.msra.mxu1 %v15242_v15  ;;  %v7029_v10 = vld [vmem:[#allocation11 + $0x138] sm:$0xff]  ;;  %v15220_v15 = vcombine.low %v7016_v3, %v7020_v27  ;;  %v15252_v27 = vcombine.low %v7048_v62, %v7052_v63 }
 0x76b   : > { %8336 = vmatprep.subr.bf16.mxu0 %v15249_v31  ;;  %8379 = vmatprep.subr.bf16.mxu1 %v15251_v14  ;;  %v15222_v31 = vcombine.low %v7017_v37, %v7021_v52  ;;  %v15229_v14 = vcombine.high %v7024_v30, %v7028_v8  ;;  %v15231_v17 = vcombine.high %v7025_v28, %v7029_v10  ;;  %v8656_v52 = vld [vmem:[#allocation13] sm:$0xff] }
 0x76e   : > { %8337 = vmatpush1.bf16.msra.mxu0 %v15248_v43  ;;  %8380 = vmatpush1.bf16.msra.mxu1 %v15250_v33  ;;  %v7037_v43 = vld [vmem:[#allocation11 + $0x178] sm:$0xff]  ;;  %v15228_v33 = vcombine.low %v7024_v30, %v7028_v8 }
 0x76f   : > { %8408 = vmatprep.subr.bf16.mxu0 %v15197_v34  ;;  %8451 = vmatprep.subr.bf16.mxu1 %v15199_v20  ;;  %v15230_v34 = vcombine.low %v7025_v28, %v7029_v10  ;;  %v15237_v20 = vcombine.high %v7032_v19, %v7036_v29  ;;  %v15239_v50 = vcombine.high %v7033_v26, %v7037_v43  ;;  %v8664_v10 = vld [vmem:[#allocation13 + $0x40] sm:$0xff] }
 0x771   : > { %8355 = vmatmul.mubr.bf16.vlgmr.msra.gmra.mrb[32].mxu0 %v17695_v53  ;;  %8398 = vmatmul.mubr.bf16.vlgmr.msra.gmra.mrb[32].mxu1 %v17695_v53 }
 0x772   : > { %8409 = vmatpush1.bf16.msra.mxu0 %v15196_v54  ;;  %8452 = vmatpush1.bf16.msra.mxu1 %v15198_v55  ;;  %v7045_v54 = vld [vmem:[#allocation11 + $0x1b8] sm:$0xff]  ;;  %v15236_v55 = vcombine.low %v7032_v19, %v7036_v29 }
 0x773   : > { %8410 = vmatprep.subr.bf16.mxu0 %v15205_v58  ;;  %8453 = vmatprep.subr.bf16.mxu1 %v15207_v59  ;;  %v15238_v58 = vcombine.low %v7033_v26, %v7037_v43  ;;  %v15245_v59 = vcombine.high %v7040_v2, %v7044_v23  ;;  %v15247_v61 = vcombine.high %v7041_v11, %v7045_v54  ;;  %v8672_v26 = vld [vmem:[#allocation13 + $0x80] sm:$0xff] }
 0x774   : > { %8440 = vmatprep.mubr.bf16.mxu0 %v16972_v41  ;;  %8483 = vmatprep.mubr.bf16.mxu1 %v16972_v41  ;;  %v8676_v43 = vld [vmem:[#allocation13 + $0xa0] sm:$0xff] }
 0x776   : > { %8411 = vmatpush1.bf16.msra.mxu0 %v15204_v7  ;;  %8454 = vmatpush1.bf16.msra.mxu1 %v15206_v21  ;;  %v7053_v7 = vld [vmem:[#allocation11 + $0x1f8] sm:$0xff]  ;;  %v15244_v21 = vcombine.low %v7040_v2, %v7044_v23 }
 0x777   : > { %8412 = vmatprep.subr.bf16.mxu0 %v15213_v25  ;;  %8455 = vmatprep.subr.bf16.mxu1 %v15215_v24  ;;  %v15246_v25 = vcombine.low %v7041_v11, %v7045_v54  ;;  %v15253_v24 = vcombine.high %v7048_v62, %v7052_v63  ;;  %v15255_v3 = vcombine.high %v7049_v0, %v7053_v7  ;;  %v8680_v11 = vld [vmem:[#allocation13 + $0xc0] sm:$0xff] }
 0x778   : > { %v15254_v37 = vcombine.low %v7049_v0, %v7053_v7  ;;  %v8684_v54 = vld [vmem:[#allocation13 + $0xe0] sm:$0xff] }
 0x779   : > { %v8688_v0 = vld [vmem:[#allocation13 + $0x100] sm:$0xff] }
 0x77a   : > { %8413 = vmatpush1.bf16.msra.mxu0 %v15212_v39  ;;  %8456 = vmatpush1.bf16.msra.mxu1 %v15214_v40  ;;  %v8660_v39 = vld [vmem:[#allocation13 + $0x20] sm:$0xff]  ;;  %v8657_v40 = vld [vmem:[#allocation13 + $0x8] sm:$0xff] }
 0x77b   : > { %8414 = vmatprep.subr.bf16.mxu0 %v15221_v42  ;;  %8457 = vmatprep.subr.bf16.mxu1 %v15223_v12  ;;  %v15259_v42 = vcombine.high %v8656_v52, %v8660_v39  ;;  %v8661_v12 = vld [vmem:[#allocation13 + $0x28] sm:$0xff]  ;;  %v15258_v30 = vcombine.low %v8656_v52, %v8660_v39  ;;  %v8692_v7 = vld [vmem:[#allocation13 + $0x120] sm:$0xff] }
 0x77c   : > { %v15260_v8 = vcombine.low %v8657_v40, %v8661_v12  ;;  %v15261_v28 = vcombine.high %v8657_v40, %v8661_v12  ;;  %v8696_v52 = vld [vmem:[#allocation13 + $0x140] sm:$0xff]  ;;  %v8697_v40 = vld [vmem:[#allocation13 + $0x148] sm:$0xff] }
 0x77d   : > { %v8700_v39 = vld [vmem:[#allocation13 + $0x160] sm:$0xff]  ;;  %v8701_v12 = vld [vmem:[#allocation13 + $0x168] sm:$0xff] }
 0x77e   : > { %8415 = vmatpush1.bf16.msra.mxu0 %v15220_v15  ;;  %8458 = vmatpush1.bf16.msra.mxu1 %v15222_v31  ;;  %v8668_v15 = vld [vmem:[#allocation13 + $0x60] sm:$0xff]  ;;  %v8665_v31 = vld [vmem:[#allocation13 + $0x48] sm:$0xff] }
 0x77f   : > { %8416 = vmatprep.subr.bf16.mxu0 %v15229_v14  ;;  %8459 = vmatprep.subr.bf16.mxu1 %v15231_v17  ;;  %v15267_v14 = vcombine.high %v8664_v10, %v8668_v15  ;;  %v8669_v17 = vld [vmem:[#allocation13 + $0x68] sm:$0xff]  ;;  %v15266_v19 = vcombine.low %v8664_v10, %v8668_v15  ;;  %v8704_v10 = vld [vmem:[#allocation13 + $0x180] sm:$0xff] }
 0x780   : > { %v15268_v29 = vcombine.low %v8665_v31, %v8669_v17  ;;  %v8708_v15 = vld [vmem:[#allocation13 + $0x1a0] sm:$0xff] }
 0x782   : > { %8417 = vmatpush1.bf16.msra.mxu0 %v15228_v33  ;;  %8460 = vmatpush1.bf16.msra.mxu1 %v15230_v34  ;;  %v8673_v33 = vld [vmem:[#allocation13 + $0x88] sm:$0xff]  ;;  %v15275_v34 = vcombine.high %v8672_v26, %v8676_v43 }
 0x783   : > { %8418 = vmatprep.subr.bf16.mxu0 %v15237_v20  ;;  %8461 = vmatprep.subr.bf16.mxu1 %v15239_v50  ;;  %v8677_v20 = vld [vmem:[#allocation13 + $0xa8] sm:$0xff]  ;;  %v15274_v50 = vcombine.low %v8672_v26, %v8676_v43  ;;  %v8712_v26 = vld [vmem:[#allocation13 + $0x1c0] sm:$0xff] }
 0x784   : > { %v15276_v2 = vcombine.low %v8673_v33, %v8677_v20  ;;  %v15277_v23 = vcombine.high %v8673_v33, %v8677_v20  ;;  %v8716_v43 = vld [vmem:[#allocation13 + $0x1e0] sm:$0xff]  ;;  %v8713_v33 = vld [vmem:[#allocation13 + $0x1c8] sm:$0xff] }
 0x785   : > { %v8717_v20 = vld [vmem:[#allocation13 + $0x1e8] sm:$0xff] }
 0x786   : > { %8419 = vmatpush1.bf16.msra.mxu0 %v15236_v55  ;;  %8462 = vmatpush1.bf16.msra.mxu1 %v15238_v58  ;;  %v8681_v55 = vld [vmem:[#allocation13 + $0xc8] sm:$0xff]  ;;  %v15283_v58 = vcombine.high %v8680_v11, %v8684_v54 }
 0x787   : > { %8420 = vmatprep.subr.bf16.mxu0 %v15245_v59  ;;  %8463 = vmatprep.subr.bf16.mxu1 %v15247_v61  ;;  %v8685_v59 = vld [vmem:[#allocation13 + $0xe8] sm:$0xff]  ;;  %v15282_v61 = vcombine.low %v8680_v11, %v8684_v54  ;;  %v8720_v11 = vld [vmem:[#allocation13 + $0x200] sm:$0xff] }
 0x788   : > { %v15284_v62 = vcombine.low %v8681_v55, %v8685_v59  ;;  %v15285_v63 = vcombine.high %v8681_v55, %v8685_v59  ;;  %v8724_v54 = vld [vmem:[#allocation13 + $0x220] sm:$0xff]  ;;  %v8721_v55 = vld [vmem:[#allocation13 + $0x208] sm:$0xff] }
 0x789   : > { %v8725_v59 = vld [vmem:[#allocation13 + $0x228] sm:$0xff] }
 0x78a   : > { %8421 = vmatpush1.bf16.msra.mxu0 %v15244_v21  ;;  %8464 = vmatpush1.bf16.msra.mxu1 %v15246_v25  ;;  %v8689_v21 = vld [vmem:[#allocation13 + $0x108] sm:$0xff]  ;;  %v15291_v25 = vcombine.high %v8688_v0, %v8692_v7 }
 0x78b   : > { %8422 = vmatprep.subr.bf16.mxu0 %v15253_v24  ;;  %8465 = vmatprep.subr.bf16.mxu1 %v15255_v3  ;;  %v8693_v24 = vld [vmem:[#allocation13 + $0x128] sm:$0xff]  ;;  %v15290_v3 = vcombine.low %v8688_v0, %v8692_v7  ;;  %v8728_v0 = vld [vmem:[#allocation13 + $0x240] sm:$0xff] }
 0x78c   : > { %v8732_v7 = vld [vmem:[#allocation13 + $0x260] sm:$0xff] }
 0x78e   : > { %8423 = vmatpush1.bf16.msra.mxu0 %v15252_v27  ;;  %8466 = vmatpush1.bf16.msra.mxu1 %v15254_v37  ;;  %v15292_v27 = vcombine.low %v8689_v21, %v8693_v24  ;;  %v15293_v37 = vcombine.high %v8689_v21, %v8693_v24  ;;  %v8729_v21 = vld [vmem:[#allocation13 + $0x248] sm:$0xff] }
 0x78f   : > { %9424 = vmatprep.subr.bf16.mxu0 %v15259_v42  ;;  %9467 = vmatprep.subr.bf16.mxu1 %v15261_v28  ;;  %v15299_v42 = vcombine.high %v8696_v52, %v8700_v39  ;;  %v15301_v28 = vcombine.high %v8697_v40, %v8701_v12  ;;  %v8733_v24 = vld [vmem:[#allocation13 + $0x268] sm:$0xff] }
 0x791   : > { %8441 = vmatmul.mubr.bf16.vlgmr.msra.gmra.mrb[36].mxu0 %v17695_v53  ;;  %8484 = vmatmul.mubr.bf16.vlgmr.msra.gmra.mrb[36].mxu1 %v17695_v53  ;;  %v15269_v53 = vcombine.high %v8665_v31, %v8669_v17  ;;  %v8705_v31 = vld [vmem:[#allocation13 + $0x188] sm:$0xff] }
 0x792   : > { %9425 = vmatpush1.bf16.msra.mxu0 %v15258_v30  ;;  %9468 = vmatpush1.bf16.msra.mxu1 %v15260_v8  ;;  %v15298_v30 = vcombine.low %v8696_v52, %v8700_v39  ;;  %v15300_v8 = vcombine.low %v8697_v40, %v8701_v12  ;;  %v8709_v17 = vld [vmem:[#allocation13 + $0x1a8] sm:$0xff]  ;;  %v8736_v52 = vld [vmem:[#allocation13 + $0x280] sm:$0xff] }
 0x793   : > { %9426 = vmatprep.subr.bf16.mxu0 %v15267_v14  ;;  %9469 = vmatprep.subr.bf16.mxu1 %v15269_v53  ;;  %v15307_v14 = vcombine.high %v8704_v10, %v8708_v15  ;;  %v15308_v53 = vcombine.low %v8705_v31, %v8709_v17  ;;  %v8740_v39 = vld [vmem:[#allocation13 + $0x2a0] sm:$0xff]  ;;  %v8737_v40 = vld [vmem:[#allocation13 + $0x288] sm:$0xff] }
 0x794   : > { %v8741_v12 = vld [vmem:[#allocation13 + $0x2a8] sm:$0xff] }
 0x796   : > { %9427 = vmatpush1.bf16.msra.mxu0 %v15266_v19  ;;  %9470 = vmatpush1.bf16.msra.mxu1 %v15268_v29  ;;  %v15306_v19 = vcombine.low %v8704_v10, %v8708_v15  ;;  %v15309_v29 = vcombine.high %v8705_v31, %v8709_v17  ;;  %v8744_v10 = vld [vmem:[#allocation13 + $0x2c0] sm:$0xff]  ;;  %v8745_v31 = vld [vmem:[#allocation13 + $0x2c8] sm:$0xff] }
 0x797   : > { %9428 = vmatprep.subr.bf16.mxu0 %v15275_v34  ;;  %9471 = vmatprep.subr.bf16.mxu1 %v15277_v23  ;;  %v15315_v34 = vcombine.high %v8712_v26, %v8716_v43  ;;  %v15317_v23 = vcombine.high %v8713_v33, %v8717_v20  ;;  %v8748_v15 = vld [vmem:[#allocation13 + $0x2e0] sm:$0xff]  ;;  %v8749_v17 = vld [vmem:[#allocation13 + $0x2e8] sm:$0xff] }
 0x79a   : > { %9429 = vmatpush1.bf16.msra.mxu0 %v15274_v50  ;;  %9472 = vmatpush1.bf16.msra.mxu1 %v15276_v2  ;;  %v15314_v50 = vcombine.low %v8712_v26, %v8716_v43  ;;  %v15316_v2 = vcombine.low %v8713_v33, %v8717_v20  ;;  %v8752_v26 = vld [vmem:[#allocation13 + $0x300] sm:$0xff]  ;;  %v8753_v33 = vld [vmem:[#allocation13 + $0x308] sm:$0xff] }
 0x79b   : > { %9430 = vmatprep.subr.bf16.mxu0 %v15283_v58  ;;  %9473 = vmatprep.subr.bf16.mxu1 %v15285_v63  ;;  %v15323_v58 = vcombine.high %v8720_v11, %v8724_v54  ;;  %v15325_v63 = vcombine.high %v8721_v55, %v8725_v59  ;;  %v8756_v43 = vld [vmem:[#allocation13 + $0x320] sm:$0xff]  ;;  %v8757_v20 = vld [vmem:[#allocation13 + $0x328] sm:$0xff] }
 0x79e   : > { %9431 = vmatpush1.bf16.msra.mxu0 %v15282_v61  ;;  %9474 = vmatpush1.bf16.msra.mxu1 %v15284_v62  ;;  %v15322_v61 = vcombine.low %v8720_v11, %v8724_v54  ;;  %v15324_v62 = vcombine.low %v8721_v55, %v8725_v59  ;;  %v8760_v11 = vld [vmem:[#allocation13 + $0x340] sm:$0xff]  ;;  %v8761_v55 = vld [vmem:[#allocation13 + $0x348] sm:$0xff] }
 0x79f   : > { %9432 = vmatprep.subr.bf16.mxu0 %v15291_v25  ;;  %9475 = vmatprep.subr.bf16.mxu1 %v15293_v37  ;;  %v15331_v25 = vcombine.high %v8728_v0, %v8732_v7  ;;  %v15333_v37 = vcombine.high %v8729_v21, %v8733_v24  ;;  %v8764_v54 = vld [vmem:[#allocation13 + $0x360] sm:$0xff]  ;;  %v8765_v59 = vld [vmem:[#allocation13 + $0x368] sm:$0xff] }
 0x7a2   : > { %9433 = vmatpush1.bf16.msra.mxu0 %v15290_v3  ;;  %9476 = vmatpush1.bf16.msra.mxu1 %v15292_v27  ;;  %v15330_v3 = vcombine.low %v8728_v0, %v8732_v7  ;;  %v15332_v27 = vcombine.low %v8729_v21, %v8733_v24  ;;  %v8768_v0 = vld [vmem:[#allocation13 + $0x380] sm:$0xff]  ;;  %v8769_v21 = vld [vmem:[#allocation13 + $0x388] sm:$0xff] }
 0x7a3   : > { %9434 = vmatprep.subr.bf16.mxu0 %v15299_v42  ;;  %9477 = vmatprep.subr.bf16.mxu1 %v15301_v28  ;;  %v15339_v42 = vcombine.high %v8736_v52, %v8740_v39  ;;  %v15341_v28 = vcombine.high %v8737_v40, %v8741_v12  ;;  %v8772_v7 = vld [vmem:[#allocation13 + $0x3a0] sm:$0xff]  ;;  %v8773_v24 = vld [vmem:[#allocation13 + $0x3a8] sm:$0xff] }
 0x7a6   : > { %9435 = vmatpush1.bf16.msra.mxu0 %v15298_v30  ;;  %9478 = vmatpush1.bf16.msra.mxu1 %v15300_v8  ;;  %v15338_v30 = vcombine.low %v8736_v52, %v8740_v39  ;;  %v15340_v8 = vcombine.low %v8737_v40, %v8741_v12  ;;  %v8776_v52 = vld [vmem:[#allocation13 + $0x3c0] sm:$0xff]  ;;  %v8777_v40 = vld [vmem:[#allocation13 + $0x3c8] sm:$0xff] }
 0x7a7   : > { %9436 = vmatprep.subr.bf16.mxu0 %v15307_v14  ;;  %9479 = vmatprep.subr.bf16.mxu1 %v15309_v29  ;;  %v15347_v14 = vcombine.high %v8744_v10, %v8748_v15  ;;  %v15348_v29 = vcombine.low %v8745_v31, %v8749_v17  ;;  %v8780_v39 = vld [vmem:[#allocation13 + $0x3e0] sm:$0xff]  ;;  %v8781_v12 = vld [vmem:[#allocation13 + $0x3e8] sm:$0xff] }
 0x7aa   : > { %9437 = vmatpush1.bf16.msra.mxu0 %v15306_v19  ;;  %9480 = vmatpush1.bf16.msra.mxu1 %v15308_v53  ;;  %v15346_v19 = vcombine.low %v8744_v10, %v8748_v15  ;;  %v15349_v53 = vcombine.high %v8745_v31, %v8749_v17  ;;  %v17703_v10 = vld [vmem:[#allocation13 + $0x10] sm:$0xff]  ;;  %v17707_v31 = vld [vmem:[#allocation13 + $0x18] sm:$0xff] }
 0x7ab   : > { %9438 = vmatprep.subr.bf16.mxu0 %v15315_v34  ;;  %9481 = vmatprep.subr.bf16.mxu1 %v15317_v23  ;;  %v15355_v34 = vcombine.high %v8752_v26, %v8756_v43  ;;  %v15357_v23 = vcombine.high %v8753_v33, %v8757_v20  ;;  %v17705_v15 = vld [vmem:[#allocation13 + $0x30] sm:$0xff]  ;;  %v17711_v17 = vld [vmem:[#allocation13 + $0x38] sm:$0xff] }
 0x7ae   : > { %9439 = vmatpush1.bf16.msra.mxu0 %v15314_v50  ;;  %9482 = vmatpush1.bf16.msra.mxu1 %v15316_v2  ;;  %v15354_v50 = vcombine.low %v8752_v26, %v8756_v43  ;;  %v15356_v2 = vcombine.low %v8753_v33, %v8757_v20 }
 0x7af   : > { %9440 = vmatprep.subr.bf16.mxu0 %v15323_v58  ;;  %9483 = vmatprep.subr.bf16.mxu1 %v15325_v63  ;;  %v15363_v58 = vcombine.high %v8760_v11, %v8764_v54  ;;  %v15365_v63 = vcombine.high %v8761_v55, %v8765_v59 }
 0x7b2   : > { %9441 = vmatpush1.bf16.msra.mxu0 %v15322_v61  ;;  %9484 = vmatpush1.bf16.msra.mxu1 %v15324_v62  ;;  %v15362_v61 = vcombine.low %v8760_v11, %v8764_v54  ;;  %v15364_v62 = vcombine.low %v8761_v55, %v8765_v59 }
 0x7b3   : > { %9442 = vmatprep.subr.bf16.mxu0 %v15331_v25  ;;  %9485 = vmatprep.subr.bf16.mxu1 %v15333_v37  ;;  %v15371_v25 = vcombine.high %v8768_v0, %v8772_v7  ;;  %v15373_v37 = vcombine.high %v8769_v21, %v8773_v24 }
 0x7b6   : > { %9443 = vmatpush1.bf16.msra.mxu0 %v15330_v3  ;;  %9486 = vmatpush1.bf16.msra.mxu1 %v15332_v27  ;;  %v15370_v3 = vcombine.low %v8768_v0, %v8772_v7  ;;  %v15372_v27 = vcombine.low %v8769_v21, %v8773_v24 }
 0x7b7   : > { %9444 = vmatprep.subr.bf16.mxu0 %v15339_v42  ;;  %9487 = vmatprep.subr.bf16.mxu1 %v15341_v28  ;;  %v15379_v42 = vcombine.high %v8776_v52, %v8780_v39  ;;  %v15381_v28 = vcombine.high %v8777_v40, %v8781_v12 }
 0x7ba   : > { %9445 = vmatpush1.bf16.msra.mxu0 %v15338_v30  ;;  %9488 = vmatpush1.bf16.msra.mxu1 %v15340_v8  ;;  %v15378_v30 = vcombine.low %v8776_v52, %v8780_v39  ;;  %v15380_v8 = vcombine.low %v8777_v40, %v8781_v12 }
 0x7bb   : > { %9446 = vmatprep.subr.bf16.mxu0 %v15347_v14  ;;  %9489 = vmatprep.subr.bf16.mxu1 %v15349_v53  ;;  %v15263_v14 = vcombine.high %v17703_v10, %v17705_v15  ;;  %v15265_v53 = vcombine.high %v17707_v31, %v17711_v17 }
 0x7be   : > { %9447 = vmatpush1.bf16.msra.mxu0 %v15346_v19  ;;  %9490 = vmatpush1.bf16.msra.mxu1 %v15348_v29  ;;  %v15262_v19 = vcombine.low %v17703_v10, %v17705_v15  ;;  %v15264_v29 = vcombine.low %v17707_v31, %v17711_v17 }
 0x7bf   : > { %9448 = vmatprep.subr.bf16.mxu0 %v15355_v34  ;;  %9491 = vmatprep.subr.bf16.mxu1 %v15357_v23 }
 0x7c2   : > { %9449 = vmatpush1.bf16.msra.mxu0 %v15354_v50  ;;  %9492 = vmatpush1.bf16.msra.mxu1 %v15356_v2 }
 0x7c3   : > { %9450 = vmatprep.subr.bf16.mxu0 %v15363_v58  ;;  %9493 = vmatprep.subr.bf16.mxu1 %v15365_v63 }
 0x7c6   : > { %9451 = vmatpush1.bf16.msra.mxu0 %v15362_v61  ;;  %9494 = vmatpush1.bf16.msra.mxu1 %v15364_v62 }
 0x7c7   : > { %9452 = vmatprep.subr.bf16.mxu0 %v15371_v25  ;;  %9495 = vmatprep.subr.bf16.mxu1 %v15373_v37 }
 0x7ca   : > { %9453 = vmatpush1.bf16.msra.mxu0 %v15370_v3  ;;  %9496 = vmatpush1.bf16.msra.mxu1 %v15372_v27 }
 0x7cb   : > { %9454 = vmatprep.subr.bf16.mxu0 %v15379_v42  ;;  %9497 = vmatprep.subr.bf16.mxu1 %v15381_v28 }
 0x7ce   : > { %9455 = vmatpush1.bf16.msra.mxu0 %v15378_v30  ;;  %9498 = vmatpush1.bf16.msra.mxu1 %v15380_v8 }
 0x7cf   : > { %9510 = vmatprep.subr.bf16.mxu0 %v15263_v14  ;;  %9553 = vmatprep.subr.bf16.mxu1 %v15265_v53 }
 0x844   : > { %v8356_v26 = vpop.f32.mrb[32].mxu0  ;;  %v8399_v43 = vpop.f32.mrb[32].mxu1 }
 0x845   : > { %v8358_v33 = vpop.f32.mrb[33].mxu0  ;;  %v8401_v34 = vpop.f32.mrb[33].mxu1  ;;  %v8496_v11 = vadd.f32 %v8399_v43, %v17390_v22  ;;  %v8494_v55 = vadd.f32 %v8356_v26, %v17397_v47 }
 0x846   : > { %v8360_v20 = vpop.f32.mrb[34].mxu0  ;;  %v8403_v50 = vpop.f32.mrb[34].mxu1  ;;  %v8497_v54 = vadd.f32 %v8401_v34, %v17393_v46  ;;  %v8495_v59 = vadd.f32 %v8358_v33, %v17402_v49 }
 0x847   : > { %v8362_v2 = vpop.f32.mrb[35].mxu0  ;;  %v8405_v23 = vpop.f32.mrb[35].mxu1  ;;  %v8526_v58 = vmul.f32 0.5, %v8496_v11  ;;  %v8504_v61 = vadd.f32 %v8403_v50, %v17390_v22  ;;  %v8502_v63 = vadd.f32 %v8360_v20, %v17397_v47  ;;  %v8510_v0 = vmul.f32 0.5, %v8494_v55 }
 0x848   : > { %v8527_v62 = vmul.f32 0.5, %v8497_v54  ;;  %v8505_v7 = vadd.f32 %v8405_v23, %v17393_v46  ;;  %v8511_v21 = vmul.f32 0.5, %v8495_v59  ;;  %v8503_v24 = vadd.f32 %v8362_v2, %v17402_v49 }
 0x849   : > { %16463 = vtanh.f32 %v8526_v58  ;;  %v8528_v25 = vmul.f32 0.5, %v8504_v61  ;;  %v8512_v3 = vmul.f32 0.5, %v8502_v63 }
 0x84a   : > { %16465 = vtanh.f32 %v8527_v62  ;;  %v8529_v27 = vmul.f32 0.5, %v8505_v7  ;;  %v8513_v37 = vmul.f32 0.5, %v8503_v24 }
 0x84b   : > { %16467 = vtanh.f32 %v8510_v0 }
 0x84c   : > { %16469 = vtanh.f32 %v8511_v21 }
 0x84d   : > { %16471 = vtanh.f32 %v8528_v25 }
 0x84e   : > { %16473 = vtanh.f32 %v8512_v3 }
 0x84f   : > { %16475 = vtanh.f32 %v8529_v27 }
 0x850   : > { %16477 = vtanh.f32 %v8513_v37 }
 0x853   : > { %v16464_v30 = vpop.eup %16463 }
 0x854   : > { %v16466_v33 = vpop.eup %16465  ;;  %v8534_v20 = vmul.f32 0.5, %v16464_v30 }
 0x855   : > { %v16468_v34 = vpop.eup %16467  ;;  %v8535_v55 = vmul.f32 0.5, %v16466_v33 }
 0x856   : > { %v16470_v23 = vpop.eup %16469  ;;  %v8518_v61 = vmul.f32 0.5, %v16468_v34  ;;  %v8538_v0 = vadd.f32 0.5, %v8534_v20 }
 0x857   : > { %v16472_v54 = vpop.eup %16471  ;;  %v8519_v7 = vmul.f32 0.5, %v16470_v23  ;;  %v8539_v27 = vadd.f32 0.5, %v8535_v55 }
 0x858   : > { %v16474_v59 = vpop.eup %16473  ;;  %v8536_v25 = vmul.f32 0.5, %v16472_v54  ;;  %v8562_v30 = vmul.f32 %v8538_v0, %v17660_v32 }
 0x859   : > { %v16476_v63 = vpop.eup %16475 }
 0x85a   : > { %v16478_v3 = vpop.eup %16477 }
 0x864   : > { %v8442_v52 = vpop.f32.mrb[36].mxu0  ;;  %v8485_v39 = vpop.f32.mrb[36].mxu1 }
 0x865   : > { %v8498_v40 = vadd.f32 %v8442_v52, %v17414_v4  ;;  %v8444_v42 = vpop.f32.mrb[37].mxu0  ;;  %v8487_v12 = vpop.f32.mrb[37].mxu1  ;;  %v8500_v50 = vadd.f32 %v8485_v39, %v17418_v6  ;;  %v8522_v52 = vadd.f32 0.5, %v8518_v61  ;;  %v8520_v39 = vmul.f32 0.5, %v16474_v59 }
 0x866   : > { %v8499_v8 = vadd.f32 %v8444_v42, %v17416_v5  ;;  %v8446_v28 = vpop.f32.mrb[38].mxu0  ;;  %v8489_v14 = vpop.f32.mrb[38].mxu1  ;;  %v8501_v58 = vadd.f32 %v8487_v12, %v17424_v18 }
 0x867   : > { %16479 = vtanh.f32 %v8498_v40  ;;  %v8506_v53 = vadd.f32 %v8446_v28, %v17414_v4  ;;  %v8448_v26 = vpop.f32.mrb[39].mxu0  ;;  %v8491_v43 = vpop.f32.mrb[39].mxu1  ;;  %v8508_v11 = vadd.f32 %v8489_v14, %v17418_v6  ;;  %v8546_v21 = vmul.f32 0.5, %v8500_v50 }
 0x868   : > { %16481 = vtanh.f32 %v8499_v8  ;;  %v8507_v2 = vadd.f32 %v8448_v26, %v17416_v5  ;;  %v8509_v62 = vadd.f32 %v8491_v43, %v17424_v18  ;;  %v8547_v37 = vmul.f32 0.5, %v8501_v58 }
 0x869   : > { %16483 = vtanh.f32 %v8506_v53  ;;  %v8548_v24 = vmul.f32 0.5, %v8508_v11  ;;  %v8537_v40 = vmul.f32 0.5, %v16476_v63  ;;  %v8523_v8 = vadd.f32 0.5, %v8519_v7 }
 0x86a   : > { %16485 = vtanh.f32 %v8507_v2  ;;  %v8549_v42 = vmul.f32 0.5, %v8509_v62  ;;  %v8540_v14 = vadd.f32 0.5, %v8536_v25  ;;  %v8521_v53 = vmul.f32 0.5, %v16478_v3 }
 0x86b   : > { %16487 = vtanh.f32 %v8546_v21  ;;  %v8563_v43 = vmul.f32 %v8539_v27, %v17662_v36  ;;  %v8524_v34 = vadd.f32 0.5, %v8520_v39  ;;  %v8541_v20 = vadd.f32 0.5, %v8537_v40 }
 0x86c   : > { %16489 = vtanh.f32 %v8548_v24  ;;  %v8564_v32 = vmul.f32 %v8540_v14, %v17667_v35  ;;  %v8525_v11 = vadd.f32 0.5, %v8521_v53  ;;  %v8666_v53 = vld [vmem:[#allocation13 + $0x50] sm:$0xff] }
 0x86d   : > { %16491 = vtanh.f32 %v8547_v37  ;;  %v8565_v58 = vmul.f32 %v8541_v20, %v17671_v48  ;;  %v8674_v20 = vld [vmem:[#allocation13 + $0x90] sm:$0xff] }
 0x86e   : > { %16493 = vtanh.f32 %v8549_v42 }
 0x871   : > { %v16480_v12 = vpop.eup %16479 }
 0x872   : > { %v16482_v28 = vpop.eup %16481  ;;  %v8566_v26 = vmul.f32 %v16480_v12, %v8522_v52 }
 0x873   : > { %v8567_v33 = vmul.f32 %v16482_v28, %v8523_v8  ;;  %v16484_v2 = vpop.eup %16483 }
 0x874   : > { %v17737_v50 = vadd.f32 %v8566_v26, %v8562_v30  ;;  %v8568_v54 = vmul.f32 %v16484_v2, %v8524_v34  ;;  %v16486_v55 = vpop.eup %16485  ;;  %v8670_v26 = vld [vmem:[#allocation13 + $0x70] sm:$0xff] }
 0x875   : > { %v17739_v23 = vadd.f32 %v8567_v33, %v8563_v43  ;;  %v8569_v59 = vmul.f32 %v16486_v55, %v8525_v11  ;;  %v16488_v62 = vpop.eup %16487  ;;  %v8667_v43 = vld [vmem:[#allocation13 + $0x58] sm:$0xff]  ;;  %v15271_v2 = vcombine.high %v8666_v53, %v8670_v26  ;;  %v8678_v11 = vld [vmem:[#allocation13 + $0xb0] sm:$0xff] }
 0x876   : > { %16495 = vtanh.f32 %v17737_v50  ;;  %v17744_v36 = vadd.f32 %v8568_v54, %v8564_v32  ;;  %v16490_v63 = vpop.eup %16489  ;;  %v8554_v7 = vmul.f32 0.5, %v16488_v62  ;;  %v8671_v33 = vld [vmem:[#allocation13 + $0x78] sm:$0xff]  ;;  %v15279_v62 = vcombine.high %v8674_v20, %v8678_v11 }
 0x877   : > { %16497 = vtanh.f32 %v17739_v23  ;;  %v17748_v61 = vadd.f32 %v8569_v59, %v8565_v58  ;;  %v16492_v35 = vpop.eup %16491  ;;  %v8556_v21 = vmul.f32 0.5, %v16490_v63  ;;  %v15273_v32 = vcombine.high %v8667_v43, %v8671_v33  ;;  %v8675_v54 = vld [vmem:[#allocation13 + $0x98] sm:$0xff] }
 0x878   : > { %16499 = vtanh.f32 %v17744_v36  ;;  %v16494_v0 = vpop.eup %16493  ;;  %v8555_v48 = vmul.f32 0.5, %v16492_v35  ;;  %v8558_v27 = vadd.f32 0.5, %v8554_v7  ;;  %v8679_v55 = vld [vmem:[#allocation13 + $0xb8] sm:$0xff]  ;;  %v15270_v58 = vcombine.low %v8666_v53, %v8670_v26  ;;  %v8682_v35 = vld [vmem:[#allocation13 + $0xd0] sm:$0xff] }
 0x879   : > { %16501 = vtanh.f32 %v17748_v61  ;;  %v8557_v25 = vmul.f32 0.5, %v16494_v0  ;;  %v8560_v37 = vadd.f32 0.5, %v8556_v21  ;;  %v15272_v59 = vcombine.low %v8667_v43, %v8671_v33  ;;  %v8686_v0 = vld [vmem:[#allocation13 + $0xf0] sm:$0xff]  ;;  %v8683_v7 = vld [vmem:[#allocation13 + $0xd8] sm:$0xff] }
 0x87a   : > { %v8559_v40 = vadd.f32 0.5, %v8555_v48  ;;  %v15281_v63 = vcombine.high %v8675_v54, %v8679_v55  ;;  %v8687_v21 = vld [vmem:[#allocation13 + $0xf8] sm:$0xff]  ;;  %v15278_v10 = vcombine.low %v8674_v20, %v8678_v11  ;;  %v15280_v15 = vcombine.low %v8675_v54, %v8679_v55  ;;  %v8706_v53 = vld [vmem:[#allocation13 + $0x190] sm:$0xff] }
 0x87b   : > { %v8561_v12 = vadd.f32 0.5, %v8557_v25  ;;  %v15287_v31 = vcombine.high %v8682_v35, %v8686_v0  ;;  %v15289_v17 = vcombine.high %v8683_v7, %v8687_v21  ;;  %v8691_v48 = vld [vmem:[#allocation13 + $0x118] sm:$0xff]  ;;  %v8710_v26 = vld [vmem:[#allocation13 + $0x1b0] sm:$0xff] }
 0x87c   : > { %v8695_v25 = vld [vmem:[#allocation13 + $0x138] sm:$0xff]  ;;  %v8714_v54 = vld [vmem:[#allocation13 + $0x1d0] sm:$0xff] }
 0x87d   : > { %v8707_v43 = vld [vmem:[#allocation13 + $0x198] sm:$0xff]  ;;  %v8718_v55 = vld [vmem:[#allocation13 + $0x1f0] sm:$0xff] }
 0x87e   : > { %v8711_v33 = vld [vmem:[#allocation13 + $0x1b8] sm:$0xff] }
 0x87f   : > { %v15313_v11 = vcombine.high %v8707_v43, %v8711_v33 }
 0x880   : > { %v16496_v24 = vpop.eup %16495 }
 0x881   : > { %v16498_v3 = vpop.eup %16497  ;;  %v8578_v39 = vmul.f32 %v16496_v24, %v8558_v27  ;;  %v15286_v24 = vcombine.low %v8682_v35, %v8686_v0  ;;  %v15319_v35 = vcombine.high %v8714_v54, %v8718_v55 }
 0x882   : > { %v16500_v52 = vpop.eup %16499  ;;  %v8579_v8 = vmul.f32 %v16498_v3, %v8559_v40  ;;  %v15288_v3 = vcombine.low %v8683_v7, %v8687_v21  ;;  %v8699_v40 = vld [vmem:[#allocation13 + $0x158] sm:$0xff]  ;;  %v8722_v7 = vld [vmem:[#allocation13 + $0x210] sm:$0xff] }
 0x883   : > { %v8580_v42 = vmul.f32 %v16500_v52, %v8560_v37  ;;  %v16502_v30 = vpop.eup %16501  ;;  %v15297_v37 = vcombine.high %v8691_v48, %v8695_v25  ;;  %v8698_v52 = vld [vmem:[#allocation13 + $0x150] sm:$0xff] }
 0x884   : > { %v8581_v14 = vmul.f32 %v16502_v30, %v8561_v12  ;;  %v15296_v30 = vcombine.low %v8691_v48, %v8695_v25  ;;  %v8726_v21 = vld [vmem:[#allocation13 + $0x230] sm:$0xff] }
 0x885   : > { %v17751_v28 = vpack.c.bf16 %v8580_v42, %v8578_v39  ;;  %v8702_v39 = vld [vmem:[#allocation13 + $0x170] sm:$0xff]  ;;  %v8703_v42 = vld [vmem:[#allocation13 + $0x178] sm:$0xff] }
 0x886   : > { %v17753_v34 = vpack.c.bf16 %v8581_v14, %v8579_v8  ;;  %v15303_v8 = vcombine.high %v8698_v52, %v8702_v39  ;;  %v15305_v14 = vcombine.high %v8699_v40, %v8703_v42  ;;  %v15302_v20 = vcombine.low %v8698_v52, %v8702_v39  ;;  %v8730_v48 = vld [vmem:[#allocation13 + $0x250] sm:$0xff] }
 0x887   : > { %v8734_v25 = vld [vmem:[#allocation13 + $0x270] sm:$0xff] }
 0x888   : > { %9456 = vmatprep.mubr.bf16.mxu0 %v17753_v34  ;;  %9499 = vmatprep.mubr.bf16.mxu1 %v17753_v34  ;;  %v15335_v52 = vcombine.high %v8730_v48, %v8734_v25 }
 0x889   : > { %9457 = vmatmul.mubr.bf16.vlgmr.msra.gmra.mrb[40].mxu0 %v17751_v28  ;;  %9500 = vmatmul.mubr.bf16.vlgmr.msra.gmra.mrb[40].mxu1 %v17751_v28 }
 0x88a   : > { %9511 = vmatpush1.bf16.msra.mxu0 %v15262_v19  ;;  %9554 = vmatpush1.bf16.msra.mxu1 %v15264_v29  ;;  %v8690_v19 = vld [vmem:[#allocation13 + $0x110] sm:$0xff] }
 0x88b   : > { %9542 = vmatprep.mubr.bf16.mxu0 %v17753_v34  ;;  %9585 = vmatprep.mubr.bf16.mxu1 %v17753_v34  ;;  %v8694_v29 = vld [vmem:[#allocation13 + $0x130] sm:$0xff] }
 0x88c   : > { %9512 = vmatprep.subr.bf16.mxu0 %v15271_v2  ;;  %9555 = vmatprep.subr.bf16.mxu1 %v15273_v32  ;;  %v15295_v27 = vcombine.high %v8690_v19, %v8694_v29  ;;  %v15294_v12 = vcombine.low %v8690_v19, %v8694_v29  ;;  %v15304_v2 = vcombine.low %v8699_v40, %v8703_v42  ;;  %v8738_v40 = vld [vmem:[#allocation13 + $0x290] sm:$0xff] }
 0x88d   : > { %v15311_v32 = vcombine.high %v8706_v53, %v8710_v26  ;;  %v15327_v19 = vcombine.high %v8722_v7, %v8726_v21  ;;  %v8742_v42 = vld [vmem:[#allocation13 + $0x2b0] sm:$0xff] }
 0x88e   : > { %9513 = vmatpush1.bf16.msra.mxu0 %v15270_v58  ;;  %9556 = vmatpush1.bf16.msra.mxu1 %v15272_v59  ;;  %v8715_v58 = vld [vmem:[#allocation13 + $0x1d8] sm:$0xff] }
 0x88f   : > { %9514 = vmatprep.subr.bf16.mxu0 %v15279_v62  ;;  %9557 = vmatprep.subr.bf16.mxu1 %v15281_v63  ;;  %v8719_v59 = vld [vmem:[#allocation13 + $0x1f8] sm:$0xff]  ;;  %v15310_v62 = vcombine.low %v8706_v53, %v8710_v26  ;;  %v15312_v63 = vcombine.low %v8707_v43, %v8711_v33  ;;  %v15343_v53 = vcombine.high %v8738_v40, %v8742_v42  ;;  %v8746_v43 = vld [vmem:[#allocation13 + $0x2d0] sm:$0xff] }
 0x890   : > { %v15321_v0 = vcombine.high %v8715_v58, %v8719_v59  ;;  %v8750_v33 = vld [vmem:[#allocation13 + $0x2f0] sm:$0xff] }
 0x892   : > { %9515 = vmatpush1.bf16.msra.mxu0 %v15278_v10  ;;  %9558 = vmatpush1.bf16.msra.mxu1 %v15280_v15  ;;  %v8723_v10 = vld [vmem:[#allocation13 + $0x218] sm:$0xff] }
 0x893   : > { %9516 = vmatprep.subr.bf16.mxu0 %v15287_v31  ;;  %9559 = vmatprep.subr.bf16.mxu1 %v15289_v17  ;;  %v8727_v15 = vld [vmem:[#allocation13 + $0x238] sm:$0xff]  ;;  %v15318_v31 = vcombine.low %v8714_v54, %v8718_v55  ;;  %v15320_v17 = vcombine.low %v8715_v58, %v8719_v59  ;;  %v15351_v54 = vcombine.high %v8746_v43, %v8750_v33  ;;  %v8754_v58 = vld [vmem:[#allocation13 + $0x310] sm:$0xff] }
 0x894   : > { %v15329_v29 = vcombine.high %v8723_v10, %v8727_v15  ;;  %v8758_v59 = vld [vmem:[#allocation13 + $0x330] sm:$0xff] }
 0x896   : > { %9517 = vmatpush1.bf16.msra.mxu0 %v15286_v24  ;;  %9560 = vmatpush1.bf16.msra.mxu1 %v15288_v3  ;;  %v8731_v24 = vld [vmem:[#allocation13 + $0x258] sm:$0xff] }
 0x897   : > { %9518 = vmatprep.subr.bf16.mxu0 %v15295_v27  ;;  %9561 = vmatprep.subr.bf16.mxu1 %v15297_v37  ;;  %v8735_v3 = vld [vmem:[#allocation13 + $0x278] sm:$0xff]  ;;  %v15326_v27 = vcombine.low %v8722_v7, %v8726_v21  ;;  %v15328_v37 = vcombine.low %v8723_v10, %v8727_v15  ;;  %v15359_v7 = vcombine.high %v8754_v58, %v8758_v59  ;;  %v8762_v10 = vld [vmem:[#allocation13 + $0x350] sm:$0xff] }
 0x898   : > { %v15337_v39 = vcombine.high %v8731_v24, %v8735_v3  ;;  %v8766_v15 = vld [vmem:[#allocation13 + $0x370] sm:$0xff] }
 0x89a   : > { %9519 = vmatpush1.bf16.msra.mxu0 %v15294_v12  ;;  %9562 = vmatpush1.bf16.msra.mxu1 %v15296_v30  ;;  %v8739_v12 = vld [vmem:[#allocation13 + $0x298] sm:$0xff] }
 0x89b   : > { %9520 = vmatprep.subr.bf16.mxu0 %v15303_v8  ;;  %9563 = vmatprep.subr.bf16.mxu1 %v15305_v14  ;;  %v8743_v30 = vld [vmem:[#allocation13 + $0x2b8] sm:$0xff]  ;;  %v15334_v8 = vcombine.low %v8730_v48, %v8734_v25  ;;  %v15336_v14 = vcombine.low %v8731_v24, %v8735_v3  ;;  %v15367_v48 = vcombine.high %v8762_v10, %v8766_v15  ;;  %v8770_v24 = vld [vmem:[#allocation13 + $0x390] sm:$0xff] }
 0x89c   : > { %v15345_v26 = vcombine.high %v8739_v12, %v8743_v30  ;;  %v8774_v3 = vld [vmem:[#allocation13 + $0x3b0] sm:$0xff] }
 0x89e   : > { %9521 = vmatpush1.bf16.msra.mxu0 %v15302_v20  ;;  %9564 = vmatpush1.bf16.msra.mxu1 %v15304_v2  ;;  %v8747_v20 = vld [vmem:[#allocation13 + $0x2d8] sm:$0xff] }
 0x89f   : > { %9522 = vmatprep.subr.bf16.mxu0 %v15311_v32  ;;  %9565 = vmatprep.subr.bf16.mxu1 %v15313_v11  ;;  %v8751_v2 = vld [vmem:[#allocation13 + $0x2f8] sm:$0xff]  ;;  %v15342_v32 = vcombine.low %v8738_v40, %v8742_v42  ;;  %v15344_v11 = vcombine.low %v8739_v12, %v8743_v30  ;;  %v15375_v40 = vcombine.high %v8770_v24, %v8774_v3  ;;  %v8778_v12 = vld [vmem:[#allocation13 + $0x3d0] sm:$0xff] }
 0x8a0   : > { %v15353_v55 = vcombine.high %v8747_v20, %v8751_v2  ;;  %v8782_v30 = vld [vmem:[#allocation13 + $0x3f0] sm:$0xff] }
 0x8a2   : > { %9523 = vmatpush1.bf16.msra.mxu0 %v15310_v62  ;;  %9566 = vmatpush1.bf16.msra.mxu1 %v15312_v63  ;;  %v8755_v62 = vld [vmem:[#allocation13 + $0x318] sm:$0xff] }
 0x8a3   : > { %9524 = vmatprep.subr.bf16.mxu0 %v15319_v35  ;;  %9567 = vmatprep.subr.bf16.mxu1 %v15321_v0  ;;  %v8759_v63 = vld [vmem:[#allocation13 + $0x338] sm:$0xff]  ;;  %v15350_v35 = vcombine.low %v8746_v43, %v8750_v33  ;;  %v15352_v0 = vcombine.low %v8747_v20, %v8751_v2  ;;  %v15383_v43 = vcombine.high %v8778_v12, %v8782_v30  ;;  %v8590_v20 = vld [vmem:[#allocation11] sm:$0xff] }
 0x8a4   : > { %v15361_v21 = vcombine.high %v8755_v62, %v8759_v63  ;;  %v8594_v2 = vld [vmem:[#allocation11 + $0x20] sm:$0xff] }
 0x8a6   : > { %9525 = vmatpush1.bf16.msra.mxu0 %v15318_v31  ;;  %9568 = vmatpush1.bf16.msra.mxu1 %v15320_v17  ;;  %v8763_v31 = vld [vmem:[#allocation13 + $0x358] sm:$0xff] }
 0x8a7   : > { %9526 = vmatprep.subr.bf16.mxu0 %v15327_v19  ;;  %9569 = vmatprep.subr.bf16.mxu1 %v15329_v29  ;;  %v8767_v17 = vld [vmem:[#allocation13 + $0x378] sm:$0xff]  ;;  %v15358_v19 = vcombine.low %v8754_v58, %v8758_v59  ;;  %v15360_v29 = vcombine.low %v8755_v62, %v8759_v63  ;;  %v15388_v58 = vcombine.high %v8590_v20, %v8594_v2  ;;  %v8598_v62 = vld [vmem:[#allocation11 + $0x40] sm:$0xff] }
 0x8a8   : > { %v15369_v25 = vcombine.high %v8763_v31, %v8767_v17  ;;  %v8602_v63 = vld [vmem:[#allocation11 + $0x60] sm:$0xff] }
 0x8aa   : > { %9527 = vmatpush1.bf16.msra.mxu0 %v15326_v27  ;;  %9570 = vmatpush1.bf16.msra.mxu1 %v15328_v37  ;;  %v8771_v27 = vld [vmem:[#allocation13 + $0x398] sm:$0xff] }
 0x8ab   : > { %9528 = vmatprep.subr.bf16.mxu0 %v15335_v52  ;;  %9571 = vmatprep.subr.bf16.mxu1 %v15337_v39  ;;  %v8775_v37 = vld [vmem:[#allocation13 + $0x3b8] sm:$0xff]  ;;  %v15366_v52 = vcombine.low %v8762_v10, %v8766_v15  ;;  %v15368_v39 = vcombine.low %v8763_v31, %v8767_v17  ;;  %v15396_v10 = vcombine.high %v8598_v62, %v8602_v63  ;;  %v8606_v31 = vld [vmem:[#allocation11 + $0x80] sm:$0xff] }
 0x8ac   : > { %v15377_v42 = vcombine.high %v8771_v27, %v8775_v37  ;;  %v8610_v17 = vld [vmem:[#allocation11 + $0xa0] sm:$0xff] }
 0x8ae   : > { %9529 = vmatpush1.bf16.msra.mxu0 %v15334_v8  ;;  %9572 = vmatpush1.bf16.msra.mxu1 %v15336_v14  ;;  %v8779_v8 = vld [vmem:[#allocation13 + $0x3d8] sm:$0xff] }
 0x8af   : > { %9530 = vmatprep.subr.bf16.mxu0 %v15343_v53  ;;  %9573 = vmatprep.subr.bf16.mxu1 %v15345_v26  ;;  %v8783_v14 = vld [vmem:[#allocation13 + $0x3f8] sm:$0xff]  ;;  %v15374_v53 = vcombine.low %v8770_v24, %v8774_v3  ;;  %v15376_v26 = vcombine.low %v8771_v27, %v8775_v37  ;;  %v15404_v24 = vcombine.high %v8606_v31, %v8610_v17  ;;  %v8614_v27 = vld [vmem:[#allocation11 + $0xc0] sm:$0xff] }
 0x8b0   : > { %v15385_v33 = vcombine.high %v8779_v8, %v8783_v14  ;;  %v8618_v37 = vld [vmem:[#allocation11 + $0xe0] sm:$0xff] }
 0x8b2   : > { %9531 = vmatpush1.bf16.msra.mxu0 %v15342_v32  ;;  %9574 = vmatpush1.bf16.msra.mxu1 %v15344_v11  ;;  %v8591_v32 = vld [vmem:[#allocation11 + $0x8] sm:$0xff] }
 0x8b3   : > { %9532 = vmatprep.subr.bf16.mxu0 %v15351_v54  ;;  %9575 = vmatprep.subr.bf16.mxu1 %v15353_v55  ;;  %v8595_v11 = vld [vmem:[#allocation11 + $0x28] sm:$0xff]  ;;  %v15382_v54 = vcombine.low %v8778_v12, %v8782_v30  ;;  %v15384_v55 = vcombine.low %v8779_v8, %v8783_v14  ;;  %v15412_v12 = vcombine.high %v8614_v27, %v8618_v37  ;;  %v8622_v8 = vld [vmem:[#allocation11 + $0x100] sm:$0xff] }
 0x8b4   : > { %v15390_v59 = vcombine.high %v8591_v32, %v8595_v11  ;;  %v8626_v14 = vld [vmem:[#allocation11 + $0x120] sm:$0xff] }
 0x8b6   : > { %9533 = vmatpush1.bf16.msra.mxu0 %v15350_v35  ;;  %9576 = vmatpush1.bf16.msra.mxu1 %v15352_v0  ;;  %v8599_v35 = vld [vmem:[#allocation11 + $0x48] sm:$0xff] }
 0x8b7   : > { %9534 = vmatprep.subr.bf16.mxu0 %v15359_v7  ;;  %9577 = vmatprep.subr.bf16.mxu1 %v15361_v21  ;;  %v8603_v0 = vld [vmem:[#allocation11 + $0x68] sm:$0xff]  ;;  %v15387_v7 = vcombine.low %v8590_v20, %v8594_v2  ;;  %v15389_v21 = vcombine.low %v8591_v32, %v8595_v11  ;;  %v15420_v20 = vcombine.high %v8622_v8, %v8626_v14  ;;  %v8630_v32 = vld [vmem:[#allocation11 + $0x140] sm:$0xff] }
 0x8b8   : > { %v15398_v15 = vcombine.high %v8599_v35, %v8603_v0  ;;  %v8634_v11 = vld [vmem:[#allocation11 + $0x160] sm:$0xff] }
 0x8ba   : > { %9535 = vmatpush1.bf16.msra.mxu0 %v15358_v19  ;;  %9578 = vmatpush1.bf16.msra.mxu1 %v15360_v29  ;;  %v8607_v19 = vld [vmem:[#allocation11 + $0x88] sm:$0xff] }
 0x8bb   : > { %9536 = vmatprep.subr.bf16.mxu0 %v15367_v48  ;;  %9579 = vmatprep.subr.bf16.mxu1 %v15369_v25  ;;  %v8611_v29 = vld [vmem:[#allocation11 + $0xa8] sm:$0xff]  ;;  %v15395_v48 = vcombine.low %v8598_v62, %v8602_v63  ;;  %v15397_v25 = vcombine.low %v8599_v35, %v8603_v0  ;;  %v15428_v62 = vcombine.high %v8630_v32, %v8634_v11  ;;  %v8638_v35 = vld [vmem:[#allocation11 + $0x180] sm:$0xff] }
 0x8bc   : > { %v15406_v3 = vcombine.high %v8607_v19, %v8611_v29  ;;  %v8642_v0 = vld [vmem:[#allocation11 + $0x1a0] sm:$0xff] }
 0x8be   : > { %9537 = vmatpush1.bf16.msra.mxu0 %v15366_v52  ;;  %9580 = vmatpush1.bf16.msra.mxu1 %v15368_v39  ;;  %v8615_v52 = vld [vmem:[#allocation11 + $0xc8] sm:$0xff] }
 0x8bf   : > { %9538 = vmatprep.subr.bf16.mxu0 %v15375_v40  ;;  %9581 = vmatprep.subr.bf16.mxu1 %v15377_v42  ;;  %v8619_v39 = vld [vmem:[#allocation11 + $0xe8] sm:$0xff]  ;;  %v15403_v40 = vcombine.low %v8606_v31, %v8610_v17  ;;  %v15405_v42 = vcombine.low %v8607_v19, %v8611_v29  ;;  %v15436_v31 = vcombine.high %v8638_v35, %v8642_v0  ;;  %v8646_v19 = vld [vmem:[#allocation11 + $0x1c0] sm:$0xff] }
 0x8c0   : > { %v15414_v30 = vcombine.high %v8615_v52, %v8619_v39  ;;  %v8650_v29 = vld [vmem:[#allocation11 + $0x1e0] sm:$0xff] }
 0x8c2   : > { %9539 = vmatpush1.bf16.msra.mxu0 %v15374_v53  ;;  %9582 = vmatpush1.bf16.msra.mxu1 %v15376_v26  ;;  %v8623_v53 = vld [vmem:[#allocation11 + $0x108] sm:$0xff] }
 0x8c3   : > { %9540 = vmatprep.subr.bf16.mxu0 %v15383_v43  ;;  %9583 = vmatprep.subr.bf16.mxu1 %v15385_v33  ;;  %v8627_v26 = vld [vmem:[#allocation11 + $0x128] sm:$0xff]  ;;  %v15411_v43 = vcombine.low %v8614_v27, %v8618_v37  ;;  %v15413_v33 = vcombine.low %v8615_v52, %v8619_v39  ;;  %v15444_v27 = vcombine.high %v8646_v19, %v8650_v29  ;;  %v8592_v52 = vld [vmem:[#allocation11 + $0x10] sm:$0xff] }
 0x8c4   : > { %v15422_v2 = vcombine.high %v8623_v53, %v8627_v26  ;;  %v8596_v39 = vld [vmem:[#allocation11 + $0x30] sm:$0xff] }
 0x8c6   : > { %9541 = vmatpush1.bf16.msra.mxu0 %v15382_v54  ;;  %9584 = vmatpush1.bf16.msra.mxu1 %v15384_v55  ;;  %v8631_v54 = vld [vmem:[#allocation11 + $0x148] sm:$0xff] }
 0x8c7   : > { %9922 = vmatprep.subr.bf16.mxu0 %v15388_v58  ;;  %9965 = vmatprep.subr.bf16.mxu1 %v15390_v59  ;;  %v8635_v55 = vld [vmem:[#allocation11 + $0x168] sm:$0xff]  ;;  %v15419_v58 = vcombine.low %v8622_v8, %v8626_v14  ;;  %v15421_v59 = vcombine.low %v8623_v53, %v8627_v26  ;;  %v15392_v8 = vcombine.high %v8592_v52, %v8596_v39  ;;  %v8600_v53 = vld [vmem:[#allocation11 + $0x50] sm:$0xff] }
 0x8c8   : > { %v15430_v63 = vcombine.high %v8631_v54, %v8635_v55  ;;  %v8604_v26 = vld [vmem:[#allocation11 + $0x70] sm:$0xff] }
 0x8c9   : > { %9543 = vmatmul.mubr.bf16.vlgmr.msra.gmra.mrb[44].mxu0 %v17751_v28  ;;  %9586 = vmatmul.mubr.bf16.vlgmr.msra.gmra.mrb[44].mxu1 %v17751_v28 }
 0x8ca   : > { %9923 = vmatpush1.bf16.msra.mxu0 %v15387_v7  ;;  %9966 = vmatpush1.bf16.msra.mxu1 %v15389_v21  ;;  %v8639_v7 = vld [vmem:[#allocation11 + $0x188] sm:$0xff] }
 0x8cb   : > { %9924 = vmatprep.subr.bf16.mxu0 %v15396_v10  ;;  %9967 = vmatprep.subr.bf16.mxu1 %v15398_v15  ;;  %v8643_v21 = vld [vmem:[#allocation11 + $0x1a8] sm:$0xff]  ;;  %v15427_v10 = vcombine.low %v8630_v32, %v8634_v11  ;;  %v15429_v15 = vcombine.low %v8631_v54, %v8635_v55  ;;  %v15400_v11 = vcombine.high %v8600_v53, %v8604_v26  ;;  %v8608_v55 = vld [vmem:[#allocation11 + $0x90] sm:$0xff] }
 0x8cc   : > { %9954 = vmatprep.mubr.bf16.mxu0 %v16972_v41  ;;  %9997 = vmatprep.mubr.bf16.mxu1 %v16972_v41  ;;  %v15438_v17 = vcombine.high %v8639_v7, %v8643_v21 }
 0x8ce   : > { %9925 = vmatpush1.bf16.msra.mxu0 %v15395_v48  ;;  %9968 = vmatpush1.bf16.msra.mxu1 %v15397_v25  ;;  %v8647_v48 = vld [vmem:[#allocation11 + $0x1c8] sm:$0xff] }
 0x8cf   : > { %9926 = vmatprep.subr.bf16.mxu0 %v15404_v24  ;;  %9969 = vmatprep.subr.bf16.mxu1 %v15406_v3  ;;  %v8651_v25 = vld [vmem:[#allocation11 + $0x1e8] sm:$0xff]  ;;  %v15435_v24 = vcombine.low %v8638_v35, %v8642_v0  ;;  %v15437_v3 = vcombine.low %v8639_v7, %v8643_v21  ;;  %v8616_v21 = vld [vmem:[#allocation11 + $0xd0] sm:$0xff] }
 0x8d0   : > { %v15446_v37 = vcombine.high %v8647_v48, %v8651_v25 }
 0x8d2   : > { %9927 = vmatpush1.bf16.msra.mxu0 %v15403_v40  ;;  %9970 = vmatpush1.bf16.msra.mxu1 %v15405_v42  ;;  %v8593_v40 = vld [vmem:[#allocation11 + $0x18] sm:$0xff] }
 0x8d3   : > { %9928 = vmatprep.subr.bf16.mxu0 %v15412_v12  ;;  %9971 = vmatprep.subr.bf16.mxu1 %v15414_v30  ;;  %v8597_v42 = vld [vmem:[#allocation11 + $0x38] sm:$0xff]  ;;  %v15443_v12 = vcombine.low %v8646_v19, %v8650_v29  ;;  %v15445_v30 = vcombine.low %v8647_v48, %v8651_v25  ;;  %v8624_v25 = vld [vmem:[#allocation11 + $0x110] sm:$0xff] }
 0x8d4   : > { %v15394_v14 = vcombine.high %v8593_v40, %v8597_v42  ;;  %v15393_v32 = vcombine.low %v8593_v40, %v8597_v42  ;;  %v8632_v42 = vld [vmem:[#allocation11 + $0x150] sm:$0xff] }
 0x8d6   : > { %9929 = vmatpush1.bf16.msra.mxu0 %v15411_v43  ;;  %9972 = vmatpush1.bf16.msra.mxu1 %v15413_v33  ;;  %v8601_v43 = vld [vmem:[#allocation11 + $0x58] sm:$0xff] }
 0x8d7   : > { %9930 = vmatprep.subr.bf16.mxu0 %v15420_v20  ;;  %9973 = vmatprep.subr.bf16.mxu1 %v15422_v2  ;;  %v8605_v33 = vld [vmem:[#allocation11 + $0x78] sm:$0xff]  ;;  %v17772_v20 = vld [vmem:[%s17320_s9 + $0x28] sm:$0xff]   ;;  %v15391_v2 = vcombine.low %v8592_v52, %v8596_v39 }
 0x8d8   : > { %v15402_v54 = vcombine.high %v8601_v43, %v8605_v33  ;;  %v15401_v35 = vcombine.low %v8601_v43, %v8605_v33  ;;  %v8640_v33 = vld [vmem:[#allocation11 + $0x190] sm:$0xff] }
 0x8da   : > { %9931 = vmatpush1.bf16.msra.mxu0 %v15419_v58  ;;  %9974 = vmatpush1.bf16.msra.mxu1 %v15421_v59  ;;  %v8612_v58 = vld [vmem:[#allocation11 + $0xb0] sm:$0xff]  ;;  %v8609_v59 = vld [vmem:[#allocation11 + $0x98] sm:$0xff] }
 0x8db   : > { %9932 = vmatprep.subr.bf16.mxu0 %v15428_v62  ;;  %9975 = vmatprep.subr.bf16.mxu1 %v15430_v63  ;;  %v8613_v62 = vld [vmem:[#allocation11 + $0xb8] sm:$0xff]  ;;  %v15399_v63 = vcombine.low %v8600_v53, %v8604_v26  ;;  %v15408_v0 = vcombine.high %v8608_v55, %v8612_v58 }
 0x8dc   : > { %v15410_v7 = vcombine.high %v8609_v59, %v8613_v62  ;;  %v15409_v19 = vcombine.low %v8609_v59, %v8613_v62  ;;  %v8648_v62 = vld [vmem:[#allocation11 + $0x1d0] sm:$0xff] }
 0x8de   : > { %9933 = vmatpush1.bf16.msra.mxu0 %v15427_v10  ;;  %9976 = vmatpush1.bf16.msra.mxu1 %v15429_v15  ;;  %v8620_v10 = vld [vmem:[#allocation11 + $0xf0] sm:$0xff]  ;;  %v8617_v15 = vld [vmem:[#allocation11 + $0xd8] sm:$0xff] }
 0x8df   : > { %9934 = vmatprep.subr.bf16.mxu0 %v15436_v31  ;;  %9977 = vmatprep.subr.bf16.mxu1 %v15438_v17  ;;  %v8621_v31 = vld [vmem:[#allocation11 + $0xf8] sm:$0xff]  ;;  %v15407_v17 = vcombine.low %v8608_v55, %v8612_v58  ;;  %v15416_v29 = vcombine.high %v8616_v21, %v8620_v10 }
 0x8e0   : > { %v15418_v48 = vcombine.high %v8617_v15, %v8621_v31  ;;  %v15417_v52 = vcombine.low %v8617_v15, %v8621_v31 }
 0x8e2   : > { %9935 = vmatpush1.bf16.msra.mxu0 %v15435_v24  ;;  %9978 = vmatpush1.bf16.msra.mxu1 %v15437_v3  ;;  %v8628_v24 = vld [vmem:[#allocation11 + $0x130] sm:$0xff]  ;;  %v8625_v3 = vld [vmem:[#allocation11 + $0x118] sm:$0xff] }
 0x8e3   : > { %9936 = vmatprep.subr.bf16.mxu0 %v15444_v27  ;;  %9979 = vmatprep.subr.bf16.mxu1 %v15446_v37  ;;  %v8629_v27 = vld [vmem:[#allocation11 + $0x138] sm:$0xff]  ;;  %v15415_v37 = vcombine.low %v8616_v21, %v8620_v10  ;;  %v15424_v39 = vcombine.high %v8624_v25, %v8628_v24 }
 0x8e4   : > { %v15426_v40 = vcombine.high %v8625_v3, %v8629_v27  ;;  %v15425_v53 = vcombine.low %v8625_v3, %v8629_v27 }
 0x8e6   : > { %9937 = vmatpush1.bf16.msra.mxu0 %v15443_v12  ;;  %9980 = vmatpush1.bf16.msra.mxu1 %v15445_v30  ;;  %v8636_v12 = vld [vmem:[#allocation11 + $0x170] sm:$0xff]  ;;  %v8633_v30 = vld [vmem:[#allocation11 + $0x158] sm:$0xff] }
 0x8e7   : > { %10008 = vmatprep.subr.bf16.mxu0 %v15392_v8  ;;  %10051 = vmatprep.subr.bf16.mxu1 %v15394_v14  ;;  %v8637_v8 = vld [vmem:[#allocation11 + $0x178] sm:$0xff]  ;;  %v15423_v14 = vcombine.low %v8624_v25, %v8628_v24  ;;  %v15432_v26 = vcombine.high %v8632_v42, %v8636_v12  ;;  %v10261_v24 = vld [vmem:[#allocation13 + $0x28] sm:$0xff] }
 0x8e8   : > { %v15434_v43 = vcombine.high %v8633_v30, %v8637_v8  ;;  %v15433_v55 = vcombine.low %v8633_v30, %v8637_v8 }
 0x8e9   : > { %9955 = vmatmul.mubr.bf16.vlgmr.msra.gmra.mrb[40].mxu0 %v17772_v20  ;;  %9998 = vmatmul.mubr.bf16.vlgmr.msra.gmra.mrb[40].mxu1 %v17772_v20 }
 0x8ea   : > { %10009 = vmatpush1.bf16.msra.mxu0 %v15391_v2  ;;  %10052 = vmatpush1.bf16.msra.mxu1 %v15393_v32  ;;  %v8644_v2 = vld [vmem:[#allocation11 + $0x1b0] sm:$0xff]  ;;  %v8641_v32 = vld [vmem:[#allocation11 + $0x198] sm:$0xff] }
 0x8eb   : > { %10010 = vmatprep.subr.bf16.mxu0 %v15400_v11  ;;  %10053 = vmatprep.subr.bf16.mxu1 %v15402_v54  ;;  %v8645_v11 = vld [vmem:[#allocation11 + $0x1b8] sm:$0xff]  ;;  %v15431_v54 = vcombine.low %v8632_v42, %v8636_v12  ;;  %v15440_v58 = vcombine.high %v8640_v33, %v8644_v2  ;;  %v10269_v12 = vld [vmem:[#allocation13 + $0x68] sm:$0xff] }
 0x8ec   : > { %10040 = vmatprep.mubr.bf16.mxu0 %v16972_v41  ;;  %10083 = vmatprep.mubr.bf16.mxu1 %v16972_v41  ;;  %v15442_v59 = vcombine.high %v8641_v32, %v8645_v11  ;;  %v15441_v21 = vcombine.low %v8641_v32, %v8645_v11 }
 0x8ee   : > { %10011 = vmatpush1.bf16.msra.mxu0 %v15399_v63  ;;  %10054 = vmatpush1.bf16.msra.mxu1 %v15401_v35  ;;  %v8652_v63 = vld [vmem:[#allocation11 + $0x1f0] sm:$0xff]  ;;  %v8649_v35 = vld [vmem:[#allocation11 + $0x1d8] sm:$0xff] }
 0x8ef   : > { %10012 = vmatprep.subr.bf16.mxu0 %v15408_v0  ;;  %10055 = vmatprep.subr.bf16.mxu1 %v15410_v7  ;;  %v8653_v0 = vld [vmem:[#allocation11 + $0x1f8] sm:$0xff]  ;;  %v15439_v7 = vcombine.low %v8640_v33, %v8644_v2  ;;  %v15448_v10 = vcombine.high %v8648_v62, %v8652_v63  ;;  %v15447_v31 = vcombine.low %v8648_v62, %v8652_v63  ;;  %v10277_v33 = vld [vmem:[#allocation13 + $0xa8] sm:$0xff] }
 0x8f0   : > { %v15450_v15 = vcombine.high %v8649_v35, %v8653_v0  ;;  %v10285_v62 = vld [vmem:[#allocation13 + $0xe8] sm:$0xff] }
 0x8f2   : > { %10013 = vmatpush1.bf16.msra.mxu0 %v15407_v17  ;;  %10056 = vmatpush1.bf16.msra.mxu1 %v15409_v19  ;;  %v15449_v17 = vcombine.low %v8649_v35, %v8653_v0  ;;  %v10256_v19 = vld [vmem:[#allocation13] sm:$0xff] }
 0x8f3   : > { %10014 = vmatprep.subr.bf16.mxu0 %v15416_v29  ;;  %10057 = vmatprep.subr.bf16.mxu1 %v15418_v48  ;;  %v10260_v29 = vld [vmem:[#allocation13 + $0x20] sm:$0xff]  ;;  %v10257_v48 = vld [vmem:[#allocation13 + $0x8] sm:$0xff] }
 0x8f4   : > { %v15454_v25 = vcombine.high %v10256_v19, %v10260_v29  ;;  %v15453_v3 = vcombine.low %v10256_v19, %v10260_v29  ;;  %v15455_v27 = vcombine.low %v10257_v48, %v10261_v24 }
 0x8f6   : > { %10015 = vmatpush1.bf16.msra.mxu0 %v15415_v37  ;;  %10058 = vmatpush1.bf16.msra.mxu1 %v15417_v52  ;;  %v15456_v37 = vcombine.high %v10257_v48, %v10261_v24  ;;  %v10264_v52 = vld [vmem:[#allocation13 + $0x40] sm:$0xff]  ;;  %v10297_v24 = vld [vmem:[#allocation13 + $0x148] sm:$0xff] }
 0x8f7   : > { %10016 = vmatprep.subr.bf16.mxu0 %v15424_v39  ;;  %10059 = vmatprep.subr.bf16.mxu1 %v15426_v40  ;;  %v10268_v39 = vld [vmem:[#allocation13 + $0x60] sm:$0xff]  ;;  %v10265_v40 = vld [vmem:[#allocation13 + $0x48] sm:$0xff] }
 0x8f8   : > { %v15462_v42 = vcombine.high %v10264_v52, %v10268_v39  ;;  %v15461_v30 = vcombine.low %v10264_v52, %v10268_v39  ;;  %v15463_v8 = vcombine.low %v10265_v40, %v10269_v12  ;;  %v10296_v48 = vld [vmem:[#allocation13 + $0x140] sm:$0xff] }
 0x8fa   : > { %10017 = vmatpush1.bf16.msra.mxu0 %v15423_v14  ;;  %10060 = vmatpush1.bf16.msra.mxu1 %v15425_v53  ;;  %v10272_v14 = vld [vmem:[#allocation13 + $0x80] sm:$0xff] }
 0x8fb   : > { %10018 = vmatprep.subr.bf16.mxu0 %v15432_v26  ;;  %10061 = vmatprep.subr.bf16.mxu1 %v15434_v43  ;;  %v10276_v53 = vld [vmem:[#allocation13 + $0xa0] sm:$0xff]  ;;  %v10273_v26 = vld [vmem:[#allocation13 + $0x88] sm:$0xff] }
 0x8fc   : > { %v15470_v43 = vcombine.high %v10272_v14, %v10276_v53  ;;  %v15469_v2 = vcombine.low %v10272_v14, %v10276_v53  ;;  %v15471_v32 = vcombine.low %v10273_v26, %v10277_v33  ;;  %v15472_v11 = vcombine.high %v10273_v26, %v10277_v33  ;;  %v10312_v26 = vld [vmem:[#allocation13 + $0x1c0] sm:$0xff]  ;;  %v10313_v33 = vld [vmem:[#allocation13 + $0x1c8] sm:$0xff] }
 0x8fe   : > { %10019 = vmatpush1.bf16.msra.mxu0 %v15431_v54  ;;  %10062 = vmatpush1.bf16.msra.mxu1 %v15433_v55  ;;  %v10280_v54 = vld [vmem:[#allocation13 + $0xc0] sm:$0xff] }
 0x8ff   : > { %10020 = vmatprep.subr.bf16.mxu0 %v15440_v58  ;;  %10063 = vmatprep.subr.bf16.mxu1 %v15442_v59  ;;  %v10284_v55 = vld [vmem:[#allocation13 + $0xe0] sm:$0xff]  ;;  %v10281_v58 = vld [vmem:[#allocation13 + $0xc8] sm:$0xff] }
 0x900   : > { %v15478_v59 = vcombine.high %v10280_v54, %v10284_v55  ;;  %v15477_v63 = vcombine.low %v10280_v54, %v10284_v55  ;;  %v15479_v35 = vcombine.low %v10281_v58, %v10285_v62  ;;  %v15480_v0 = vcombine.high %v10281_v58, %v10285_v62  ;;  %v10320_v58 = vld [vmem:[#allocation13 + $0x200] sm:$0xff]  ;;  %v10321_v62 = vld [vmem:[#allocation13 + $0x208] sm:$0xff] }
 0x902   : > { %10021 = vmatpush1.bf16.msra.mxu0 %v15439_v7  ;;  %10064 = vmatpush1.bf16.msra.mxu1 %v15441_v21  ;;  %v10288_v7 = vld [vmem:[#allocation13 + $0x100] sm:$0xff] }
 0x903   : > { %10022 = vmatprep.subr.bf16.mxu0 %v15448_v10  ;;  %10065 = vmatprep.subr.bf16.mxu1 %v15450_v15  ;;  %v10292_v21 = vld [vmem:[#allocation13 + $0x120] sm:$0xff]  ;;  %v10289_v10 = vld [vmem:[#allocation13 + $0x108] sm:$0xff] }
 0x904   : > { %v15486_v15 = vcombine.high %v10288_v7, %v10292_v21 }
 0x906   : > { %10023 = vmatpush1.bf16.msra.mxu0 %v15447_v31  ;;  %10066 = vmatpush1.bf16.msra.mxu1 %v15449_v17  ;;  %v10293_v31 = vld [vmem:[#allocation13 + $0x128] sm:$0xff]  ;;  %v15485_v17 = vcombine.low %v10288_v7, %v10292_v21 }
 0x907   : > { %11024 = vmatprep.subr.bf16.mxu0 %v15454_v25  ;;  %11067 = vmatprep.subr.bf16.mxu1 %v15456_v37  ;;  %v15487_v19 = vcombine.low %v10289_v10, %v10293_v31  ;;  %v15488_v29 = vcombine.high %v10289_v10, %v10293_v31  ;;  %v10300_v25 = vld [vmem:[#allocation13 + $0x160] sm:$0xff]  ;;  %v10329_v31 = vld [vmem:[#allocation13 + $0x248] sm:$0xff] }
 0x908   : > { %v15493_v37 = vcombine.low %v10296_v48, %v10300_v25  ;;  %v10328_v10 = vld [vmem:[#allocation13 + $0x240] sm:$0xff] }
 0x909   : > { %10041 = vmatmul.mubr.bf16.vlgmr.msra.gmra.mrb[44].mxu0 %v17772_v20  ;;  %10084 = vmatmul.mubr.bf16.vlgmr.msra.gmra.mrb[44].mxu1 %v17772_v20  ;;  %v15464_v20 = vcombine.high %v10265_v40, %v10269_v12  ;;  %v10304_v40 = vld [vmem:[#allocation13 + $0x180] sm:$0xff]  ;;  %v10305_v12 = vld [vmem:[#allocation13 + $0x188] sm:$0xff] }
 0x90a   : > { %11025 = vmatpush1.bf16.msra.mxu0 %v15453_v3  ;;  %11068 = vmatpush1.bf16.msra.mxu1 %v15455_v27  ;;  %v15494_v3 = vcombine.high %v10296_v48, %v10300_v25  ;;  %v10301_v27 = vld [vmem:[#allocation13 + $0x168] sm:$0xff] }
 0x90b   : > { %11026 = vmatprep.subr.bf16.mxu0 %v15462_v42  ;;  %11069 = vmatprep.subr.bf16.mxu1 %v15464_v20  ;;  %v15495_v52 = vcombine.low %v10297_v24, %v10301_v27  ;;  %v15496_v39 = vcombine.high %v10297_v24, %v10301_v27  ;;  %v10308_v42 = vld [vmem:[#allocation13 + $0x1a0] sm:$0xff]  ;;  %v10337_v27 = vld [vmem:[#allocation13 + $0x288] sm:$0xff] }
 0x90c   : > { %v15501_v20 = vcombine.low %v10304_v40, %v10308_v42  ;;  %v10336_v24 = vld [vmem:[#allocation13 + $0x280] sm:$0xff] }
 0x90e   : > { %11027 = vmatpush1.bf16.msra.mxu0 %v15461_v30  ;;  %11070 = vmatpush1.bf16.msra.mxu1 %v15463_v8  ;;  %v15502_v30 = vcombine.high %v10304_v40, %v10308_v42  ;;  %v10309_v8 = vld [vmem:[#allocation13 + $0x1a8] sm:$0xff] }
 0x90f   : > { %11028 = vmatprep.subr.bf16.mxu0 %v15470_v43  ;;  %11071 = vmatprep.subr.bf16.mxu1 %v15472_v11  ;;  %v15504_v14 = vcombine.high %v10305_v12, %v10309_v8  ;;  %v15503_v53 = vcombine.low %v10305_v12, %v10309_v8  ;;  %v10316_v43 = vld [vmem:[#allocation13 + $0x1e0] sm:$0xff]  ;;  %v10345_v8 = vld [vmem:[#allocation13 + $0x2c8] sm:$0xff] }
 0x910   : > { %v15509_v11 = vcombine.low %v10312_v26, %v10316_v43  ;;  %v10344_v12 = vld [vmem:[#allocation13 + $0x2c0] sm:$0xff] }
 0x912   : > { %11029 = vmatpush1.bf16.msra.mxu0 %v15469_v2  ;;  %11072 = vmatpush1.bf16.msra.mxu1 %v15471_v32  ;;  %v15510_v2 = vcombine.high %v10312_v26, %v10316_v43  ;;  %v10317_v32 = vld [vmem:[#allocation13 + $0x1e8] sm:$0xff] }
 0x913   : > { %11030 = vmatprep.subr.bf16.mxu0 %v15478_v59  ;;  %11073 = vmatprep.subr.bf16.mxu1 %v15480_v0  ;;  %v15511_v54 = vcombine.low %v10313_v33, %v10317_v32  ;;  %v15512_v55 = vcombine.high %v10313_v33, %v10317_v32  ;;  %v10324_v59 = vld [vmem:[#allocation13 + $0x220] sm:$0xff]  ;;  %v10353_v32 = vld [vmem:[#allocation13 + $0x308] sm:$0xff] }
 0x914   : > { %v15517_v0 = vcombine.low %v10320_v58, %v10324_v59  ;;  %v10352_v33 = vld [vmem:[#allocation13 + $0x300] sm:$0xff] }
 0x916   : > { %11031 = vmatpush1.bf16.msra.mxu0 %v15477_v63  ;;  %11074 = vmatpush1.bf16.msra.mxu1 %v15479_v35  ;;  %v15518_v63 = vcombine.high %v10320_v58, %v10324_v59  ;;  %v10325_v35 = vld [vmem:[#allocation13 + $0x228] sm:$0xff] }
 0x917   : > { %11032 = vmatprep.subr.bf16.mxu0 %v15486_v15  ;;  %11075 = vmatprep.subr.bf16.mxu1 %v15488_v29  ;;  %v15519_v7 = vcombine.low %v10321_v62, %v10325_v35  ;;  %v15520_v21 = vcombine.high %v10321_v62, %v10325_v35  ;;  %v10332_v15 = vld [vmem:[#allocation13 + $0x260] sm:$0xff]  ;;  %v10361_v35 = vld [vmem:[#allocation13 + $0x348] sm:$0xff] }
 0x918   : > { %v15525_v29 = vcombine.low %v10328_v10, %v10332_v15  ;;  %v10360_v62 = vld [vmem:[#allocation13 + $0x340] sm:$0xff] }
 0x91a   : > { %11033 = vmatpush1.bf16.msra.mxu0 %v15485_v17  ;;  %11076 = vmatpush1.bf16.msra.mxu1 %v15487_v19  ;;  %v15526_v17 = vcombine.high %v10328_v10, %v10332_v15  ;;  %v10333_v19 = vld [vmem:[#allocation13 + $0x268] sm:$0xff] }
 0x91b   : > { %11034 = vmatprep.subr.bf16.mxu0 %v15494_v3  ;;  %11077 = vmatprep.subr.bf16.mxu1 %v15496_v39  ;;  %v15527_v48 = vcombine.low %v10329_v31, %v10333_v19  ;;  %v15528_v25 = vcombine.high %v10329_v31, %v10333_v19  ;;  %v10340_v3 = vld [vmem:[#allocation13 + $0x2a0] sm:$0xff]  ;;  %v10369_v19 = vld [vmem:[#allocation13 + $0x388] sm:$0xff] }
 0x91c   : > { %v15533_v39 = vcombine.low %v10336_v24, %v10340_v3  ;;  %v10368_v31 = vld [vmem:[#allocation13 + $0x380] sm:$0xff] }
 0x91e   : > { %11035 = vmatpush1.bf16.msra.mxu0 %v15493_v37  ;;  %11078 = vmatpush1.bf16.msra.mxu1 %v15495_v52  ;;  %v15534_v37 = vcombine.high %v10336_v24, %v10340_v3  ;;  %v10341_v52 = vld [vmem:[#allocation13 + $0x2a8] sm:$0xff] }
 0x91f   : > { %11036 = vmatprep.subr.bf16.mxu0 %v15502_v30  ;;  %11079 = vmatprep.subr.bf16.mxu1 %v15504_v14  ;;  %v15535_v40 = vcombine.low %v10337_v27, %v10341_v52  ;;  %v15536_v42 = vcombine.high %v10337_v27, %v10341_v52  ;;  %v10348_v30 = vld [vmem:[#allocation13 + $0x2e0] sm:$0xff]  ;;  %v10349_v14 = vld [vmem:[#allocation13 + $0x2e8] sm:$0xff] }
 0x920   : > { %v15543_v26 = vcombine.low %v10345_v8, %v10349_v14  ;;  %v15544_v43 = vcombine.high %v10345_v8, %v10349_v14  ;;  %v10376_v27 = vld [vmem:[#allocation13 + $0x3c0] sm:$0xff]  ;;  %v10377_v52 = vld [vmem:[#allocation13 + $0x3c8] sm:$0xff]  ;;  %v17780_v8 = vld [vmem:[#allocation13 + $0x10] sm:$0xff] }
 0x921   : > { %v17784_v14 = vld [vmem:[#allocation13 + $0x18] sm:$0xff] }
 0x922   : > { %11037 = vmatpush1.bf16.msra.mxu0 %v15501_v20  ;;  %11080 = vmatpush1.bf16.msra.mxu1 %v15503_v53  ;;  %v15542_v20 = vcombine.high %v10344_v12, %v10348_v30  ;;  %v15541_v53 = vcombine.low %v10344_v12, %v10348_v30 }
 0x923   : > { %11038 = vmatprep.subr.bf16.mxu0 %v15510_v2  ;;  %11081 = vmatprep.subr.bf16.mxu1 %v15512_v55  ;;  %v10356_v2 = vld [vmem:[#allocation13 + $0x320] sm:$0xff] }
 0x924   : > { %v15549_v55 = vcombine.low %v10352_v33, %v10356_v2 }
 0x926   : > { %11039 = vmatpush1.bf16.msra.mxu0 %v15509_v11  ;;  %11082 = vmatpush1.bf16.msra.mxu1 %v15511_v54  ;;  %v15550_v11 = vcombine.high %v10352_v33, %v10356_v2  ;;  %v10357_v54 = vld [vmem:[#allocation13 + $0x328] sm:$0xff] }
 0x927   : > { %11040 = vmatprep.subr.bf16.mxu0 %v15518_v63  ;;  %11083 = vmatprep.subr.bf16.mxu1 %v15520_v21  ;;  %v15551_v58 = vcombine.low %v10353_v32, %v10357_v54  ;;  %v15552_v59 = vcombine.high %v10353_v32, %v10357_v54  ;;  %v10364_v63 = vld [vmem:[#allocation13 + $0x360] sm:$0xff] }
 0x928   : > { %v15557_v21 = vcombine.low %v10360_v62, %v10364_v63 }
 0x92a   : > { %11041 = vmatpush1.bf16.msra.mxu0 %v15517_v0  ;;  %11084 = vmatpush1.bf16.msra.mxu1 %v15519_v7  ;;  %v15558_v0 = vcombine.high %v10360_v62, %v10364_v63  ;;  %v10365_v7 = vld [vmem:[#allocation13 + $0x368] sm:$0xff] }
 0x92b   : > { %11042 = vmatprep.subr.bf16.mxu0 %v15526_v17  ;;  %11085 = vmatprep.subr.bf16.mxu1 %v15528_v25  ;;  %v15559_v10 = vcombine.low %v10361_v35, %v10365_v7  ;;  %v15560_v15 = vcombine.high %v10361_v35, %v10365_v7  ;;  %v10372_v17 = vld [vmem:[#allocation13 + $0x3a0] sm:$0xff] }
 0x92c   : > { %v15565_v25 = vcombine.low %v10368_v31, %v10372_v17 }
 0x92e   : > { %11043 = vmatpush1.bf16.msra.mxu0 %v15525_v29  ;;  %11086 = vmatpush1.bf16.msra.mxu1 %v15527_v48  ;;  %v15566_v29 = vcombine.high %v10368_v31, %v10372_v17  ;;  %v10373_v48 = vld [vmem:[#allocation13 + $0x3a8] sm:$0xff] }
 0x92f   : > { %11044 = vmatprep.subr.bf16.mxu0 %v15534_v37  ;;  %11087 = vmatprep.subr.bf16.mxu1 %v15536_v42  ;;  %v15567_v24 = vcombine.low %v10369_v19, %v10373_v48  ;;  %v15568_v3 = vcombine.high %v10369_v19, %v10373_v48  ;;  %v10380_v37 = vld [vmem:[#allocation13 + $0x3e0] sm:$0xff] }
 0x930   : > { %v15573_v42 = vcombine.low %v10376_v27, %v10380_v37 }
 0x932   : > { %11045 = vmatpush1.bf16.msra.mxu0 %v15533_v39  ;;  %11088 = vmatpush1.bf16.msra.mxu1 %v15535_v40  ;;  %v15574_v39 = vcombine.high %v10376_v27, %v10380_v37  ;;  %v10381_v40 = vld [vmem:[#allocation13 + $0x3e8] sm:$0xff] }
 0x933   : > { %11046 = vmatprep.subr.bf16.mxu0 %v15542_v20  ;;  %11089 = vmatprep.subr.bf16.mxu1 %v15544_v43  ;;  %v15575_v12 = vcombine.low %v10377_v52, %v10381_v40  ;;  %v15576_v30 = vcombine.high %v10377_v52, %v10381_v40  ;;  %v17782_v20 = vld [vmem:[#allocation13 + $0x30] sm:$0xff] }
 0x934   : > { %v15457_v43 = vcombine.low %v17780_v8, %v17782_v20 }
 0x936   : > { %11047 = vmatpush1.bf16.msra.mxu0 %v15541_v53  ;;  %11090 = vmatpush1.bf16.msra.mxu1 %v15543_v26  ;;  %v15458_v53 = vcombine.high %v17780_v8, %v17782_v20  ;;  %v17788_v26 = vld [vmem:[#allocation13 + $0x38] sm:$0xff] }
 0x937   : > { %11048 = vmatprep.subr.bf16.mxu0 %v15550_v11  ;;  %11091 = vmatprep.subr.bf16.mxu1 %v15552_v59  ;;  %v15459_v33 = vcombine.low %v17784_v14, %v17788_v26  ;;  %v15460_v2 = vcombine.high %v17784_v14, %v17788_v26 }
 0x93a   : > { %11049 = vmatpush1.bf16.msra.mxu0 %v15549_v55  ;;  %11092 = vmatpush1.bf16.msra.mxu1 %v15551_v58 }
 0x93b   : > { %11050 = vmatprep.subr.bf16.mxu0 %v15558_v0  ;;  %11093 = vmatprep.subr.bf16.mxu1 %v15560_v15 }
 0x93e   : > { %11051 = vmatpush1.bf16.msra.mxu0 %v15557_v21  ;;  %11094 = vmatpush1.bf16.msra.mxu1 %v15559_v10 }
 0x93f   : > { %11052 = vmatprep.subr.bf16.mxu0 %v15566_v29  ;;  %11095 = vmatprep.subr.bf16.mxu1 %v15568_v3 }
 0x942   : > { %11053 = vmatpush1.bf16.msra.mxu0 %v15565_v25  ;;  %11096 = vmatpush1.bf16.msra.mxu1 %v15567_v24 }
 0x943   : > { %11054 = vmatprep.subr.bf16.mxu0 %v15574_v39  ;;  %11097 = vmatprep.subr.bf16.mxu1 %v15576_v30 }
 0x946   : > { %11055 = vmatpush1.bf16.msra.mxu0 %v15573_v42  ;;  %11098 = vmatpush1.bf16.msra.mxu1 %v15575_v12 }
 0x947   : > { %11110 = vmatprep.subr.bf16.mxu0 %v15458_v53  ;;  %11153 = vmatprep.subr.bf16.mxu1 %v15460_v2 }
 0x9bc   : > { %v9956_v32 = vpop.f32.mrb[40].mxu0  ;;  %v9999_v11 = vpop.f32.mrb[40].mxu1 }
 0x9bd   : > { %v9958_v54 = vpop.f32.mrb[41].mxu0  ;;  %v10001_v55 = vpop.f32.mrb[41].mxu1  ;;  %v10096_v35 = vadd.f32 %v9999_v11, %v17390_v22  ;;  %v10094_v7 = vadd.f32 %v9956_v32, %v17397_v47 }
 0x9be   : > { %v9960_v58 = vpop.f32.mrb[42].mxu0  ;;  %v10003_v59 = vpop.f32.mrb[42].mxu1  ;;  %v10097_v0 = vadd.f32 %v10001_v55, %v17393_v46  ;;  %v10095_v10 = vadd.f32 %v9958_v54, %v17402_v49 }
 0x9bf   : > { %v9962_v62 = vpop.f32.mrb[43].mxu0  ;;  %v10005_v63 = vpop.f32.mrb[43].mxu1  ;;  %v10126_v21 = vmul.f32 0.5, %v10096_v35  ;;  %v10104_v15 = vadd.f32 %v10003_v59, %v17390_v22  ;;  %v10102_v17 = vadd.f32 %v9960_v58, %v17397_v47  ;;  %v10110_v19 = vmul.f32 0.5, %v10094_v7 }
 0x9c0   : > { %v10127_v31 = vmul.f32 0.5, %v10097_v0  ;;  %v10105_v29 = vadd.f32 %v10005_v63, %v17393_v46  ;;  %v10111_v48 = vmul.f32 0.5, %v10095_v10  ;;  %v10103_v24 = vadd.f32 %v9962_v62, %v17402_v49 }
 0x9c1   : > { %16503 = vtanh.f32 %v10126_v21  ;;  %v10128_v25 = vmul.f32 0.5, %v10104_v15  ;;  %v10112_v3 = vmul.f32 0.5, %v10102_v17 }
 0x9c2   : > { %16505 = vtanh.f32 %v10127_v31  ;;  %v10129_v27 = vmul.f32 0.5, %v10105_v29  ;;  %v10113_v37 = vmul.f32 0.5, %v10103_v24 }
 0x9c3   : > { %16507 = vtanh.f32 %v10110_v19 }
 0x9c4   : > { %16509 = vtanh.f32 %v10111_v48 }
 0x9c5   : > { %16511 = vtanh.f32 %v10128_v25 }
 0x9c6   : > { %16513 = vtanh.f32 %v10112_v3 }
 0x9c7   : > { %16515 = vtanh.f32 %v10129_v27 }
 0x9c8   : > { %16517 = vtanh.f32 %v10113_v37 }
 0x9cb   : > { %v16504_v30 = vpop.eup %16503 }
 0x9cc   : > { %v16506_v58 = vpop.eup %16505  ;;  %v10134_v62 = vmul.f32 0.5, %v16504_v30 }
 0x9cd   : > { %v16508_v59 = vpop.eup %16507  ;;  %v10135_v10 = vmul.f32 0.5, %v16506_v58 }
 0x9ce   : > { %v16510_v0 = vpop.eup %16509  ;;  %v10118_v17 = vmul.f32 0.5, %v16508_v59  ;;  %v10138_v48 = vadd.f32 0.5, %v10134_v62 }
 0x9cf   : > { %v16512_v21 = vpop.eup %16511  ;;  %v10119_v25 = vmul.f32 0.5, %v16510_v0 }
 0x9d0   : > { %v16514_v31 = vpop.eup %16513  ;;  %v10136_v3 = vmul.f32 0.5, %v16512_v21 }
 0x9d1   : > { %v16516_v29 = vpop.eup %16515 }
 0x9d2   : > { %v16518_v37 = vpop.eup %16517  ;;  %v10137_v30 = vmul.f32 0.5, %v16516_v29 }
 0x9dc   : > { %v10042_v52 = vpop.f32.mrb[44].mxu0  ;;  %v10085_v39 = vpop.f32.mrb[44].mxu1 }
 0x9dd   : > { %v10098_v40 = vadd.f32 %v10042_v52, %v17414_v4  ;;  %v10044_v42 = vpop.f32.mrb[45].mxu0  ;;  %v10087_v12 = vpop.f32.mrb[45].mxu1  ;;  %v10100_v63 = vadd.f32 %v10085_v39, %v17418_v6  ;;  %v10139_v52 = vadd.f32 0.5, %v10135_v10 }
 0x9de   : > { %v10099_v53 = vadd.f32 %v10044_v42, %v17416_v5  ;;  %v10046_v2 = vpop.f32.mrb[46].mxu0  ;;  %v10089_v32 = vpop.f32.mrb[46].mxu1  ;;  %v10101_v15 = vadd.f32 %v10087_v12, %v17424_v18  ;;  %v10120_v42 = vmul.f32 0.5, %v16514_v31 }
 0x9df   : > { %16519 = vtanh.f32 %v10098_v40  ;;  %v10106_v11 = vadd.f32 %v10046_v2, %v17414_v4  ;;  %v10048_v54 = vpop.f32.mrb[47].mxu0  ;;  %v10091_v55 = vpop.f32.mrb[47].mxu1  ;;  %v10108_v7 = vadd.f32 %v10089_v32, %v17418_v6  ;;  %v10146_v24 = vmul.f32 0.5, %v10100_v63 }
 0x9e0   : > { %16521 = vtanh.f32 %v10099_v53  ;;  %v10107_v35 = vadd.f32 %v10048_v54, %v17416_v5  ;;  %v10109_v19 = vadd.f32 %v10091_v55, %v17424_v18  ;;  %v10147_v39 = vmul.f32 0.5, %v10101_v15 }
 0x9e1   : > { %16523 = vtanh.f32 %v10106_v11  ;;  %v10148_v27 = vmul.f32 0.5, %v10108_v7  ;;  %v10122_v40 = vadd.f32 0.5, %v10118_v17  ;;  %v10162_v2 = vmul.f32 %v10138_v48, %v17737_v50 }
 0x9e2   : > { %16525 = vtanh.f32 %v10107_v35  ;;  %v10149_v53 = vmul.f32 0.5, %v10109_v19  ;;  %v10123_v32 = vadd.f32 0.5, %v10119_v25  ;;  %v10140_v54 = vadd.f32 0.5, %v10136_v3 }
 0x9e3   : > { %16527 = vtanh.f32 %v10146_v24  ;;  %v10121_v55 = vmul.f32 0.5, %v16518_v37  ;;  %v10163_v59 = vmul.f32 %v10139_v52, %v17739_v23  ;;  %v10124_v63 = vadd.f32 0.5, %v10120_v42 }
 0x9e4   : > { %16529 = vtanh.f32 %v10148_v27  ;;  %v10141_v35 = vadd.f32 0.5, %v10137_v30  ;;  %v10164_v50 = vmul.f32 %v10140_v54, %v17744_v36 }
 0x9e5   : > { %16531 = vtanh.f32 %v10147_v39  ;;  %v10125_v10 = vadd.f32 0.5, %v10121_v55 }
 0x9e6   : > { %16533 = vtanh.f32 %v10149_v53  ;;  %v10165_v17 = vmul.f32 %v10141_v35, %v17748_v61  ;;  %v10271_v35 = vld [vmem:[#allocation13 + $0x78] sm:$0xff] }
 0x9e9   : > { %v16520_v12 = vpop.eup %16519 }
 0x9ea   : > { %v16522_v11 = vpop.eup %16521  ;;  %v10166_v58 = vmul.f32 %v16520_v12, %v10122_v40 }
 0x9eb   : > { %v10167_v62 = vmul.f32 %v16522_v11, %v10123_v32  ;;  %v16524_v7 = vpop.eup %16523 }
 0x9ec   : > { %v17814_v0 = vadd.f32 %v10166_v58, %v10162_v2  ;;  %v10168_v15 = vmul.f32 %v16524_v7, %v10124_v63  ;;  %v16526_v31 = vpop.eup %16525  ;;  %v10267_v63 = vld [vmem:[#allocation13 + $0x58] sm:$0xff] }
 0x9ed   : > { %v17816_v21 = vadd.f32 %v10167_v62, %v10163_v59  ;;  %v10169_v19 = vmul.f32 %v16526_v31, %v10125_v10  ;;  %v16528_v48 = vpop.eup %16527  ;;  %v10266_v59 = vld [vmem:[#allocation13 + $0x50] sm:$0xff] }
 0x9ee   : > { %16535 = vtanh.f32 %v17814_v0  ;;  %v17821_v23 = vadd.f32 %v10168_v15, %v10164_v50  ;;  %v16530_v25 = vpop.eup %16529  ;;  %v10154_v3 = vmul.f32 0.5, %v16528_v48  ;;  %v10270_v62 = vld [vmem:[#allocation13 + $0x70] sm:$0xff]  ;;  %v15468_v15 = vcombine.high %v10267_v63, %v10271_v35 }
 0x9ef   : > { %16537 = vtanh.f32 %v17816_v21  ;;  %v17825_v29 = vadd.f32 %v10169_v19, %v10165_v17  ;;  %v16532_v36 = vpop.eup %16531  ;;  %v10156_v27 = vmul.f32 0.5, %v16530_v25  ;;  %v10274_v50 = vld [vmem:[#allocation13 + $0x90] sm:$0xff]  ;;  %v15466_v10 = vcombine.high %v10266_v59, %v10270_v62  ;;  %v10275_v17 = vld [vmem:[#allocation13 + $0x98] sm:$0xff] }
 0x9f0   : > { %16539 = vtanh.f32 %v17821_v23  ;;  %v16534_v24 = vpop.eup %16533  ;;  %v10155_v61 = vmul.f32 0.5, %v16532_v36  ;;  %v10158_v40 = vadd.f32 0.5, %v10154_v3  ;;  %v10278_v31 = vld [vmem:[#allocation13 + $0xb0] sm:$0xff]  ;;  %v10279_v19 = vld [vmem:[#allocation13 + $0xb8] sm:$0xff]  ;;  %v15465_v48 = vcombine.low %v10266_v59, %v10270_v62 }
 0x9f1   : > { %16541 = vtanh.f32 %v17825_v29  ;;  %v10157_v37 = vmul.f32 0.5, %v16534_v24  ;;  %v10160_v42 = vadd.f32 0.5, %v10156_v27  ;;  %v15467_v25 = vcombine.low %v10267_v63, %v10271_v35  ;;  %v10282_v3 = vld [vmem:[#allocation13 + $0xd0] sm:$0xff] }
 0x9f2   : > { %v10159_v12 = vadd.f32 0.5, %v10155_v61  ;;  %v15474_v36 = vcombine.high %v10274_v50, %v10278_v31  ;;  %v15476_v24 = vcombine.high %v10275_v17, %v10279_v19  ;;  %v10286_v27 = vld [vmem:[#allocation13 + $0xf0] sm:$0xff]  ;;  %v10283_v61 = vld [vmem:[#allocation13 + $0xd8] sm:$0xff]  ;;  %v15473_v8 = vcombine.low %v10274_v50, %v10278_v31 }
 0x9f3   : > { %v10161_v32 = vadd.f32 0.5, %v10157_v37  ;;  %v10287_v37 = vld [vmem:[#allocation13 + $0xf8] sm:$0xff]  ;;  %v15475_v20 = vcombine.low %v10275_v17, %v10279_v19  ;;  %v15482_v14 = vcombine.high %v10282_v3, %v10286_v27  ;;  %v10306_v63 = vld [vmem:[#allocation13 + $0x190] sm:$0xff] }
 0x9f4   : > { %v15484_v26 = vcombine.high %v10283_v61, %v10287_v37  ;;  %v10310_v35 = vld [vmem:[#allocation13 + $0x1b0] sm:$0xff]  ;;  %v10307_v50 = vld [vmem:[#allocation13 + $0x198] sm:$0xff] }
 0x9f5   : > { %v15506_v17 = vcombine.high %v10306_v63, %v10310_v35 }
 0x9f8   : > { %v16536_v52 = vpop.eup %16535 }
 0x9f9   : > { %v16538_v39 = vpop.eup %16537  ;;  %v10178_v53 = vmul.f32 %v16536_v52, %v10158_v40  ;;  %v10291_v52 = vld [vmem:[#allocation13 + $0x118] sm:$0xff]  ;;  %v15481_v40 = vcombine.low %v10282_v3, %v10286_v27  ;;  %v15505_v3 = vcombine.low %v10306_v63, %v10310_v35 }
 0x9fa   : > { %v16540_v30 = vpop.eup %16539  ;;  %v10179_v54 = vmul.f32 %v16538_v39, %v10159_v12  ;;  %v10295_v39 = vld [vmem:[#allocation13 + $0x138] sm:$0xff]  ;;  %v10298_v12 = vld [vmem:[#allocation13 + $0x150] sm:$0xff] }
 0x9fb   : > { %v10180_v2 = vmul.f32 %v16540_v30, %v10160_v42  ;;  %v16542_v11 = vpop.eup %16541  ;;  %v15483_v42 = vcombine.low %v10283_v61, %v10287_v37 }
 0x9fc   : > { %v10181_v58 = vmul.f32 %v16542_v11, %v10161_v32  ;;  %v10299_v32 = vld [vmem:[#allocation13 + $0x158] sm:$0xff] }
 0x9fd   : > { %v17828_v55 = vpack.c.bf16 %v10180_v2, %v10178_v53  ;;  %v15492_v53 = vcombine.high %v10291_v52, %v10295_v39  ;;  %v10302_v2 = vld [vmem:[#allocation13 + $0x170] sm:$0xff]  ;;  %v10303_v11 = vld [vmem:[#allocation13 + $0x178] sm:$0xff] }
 0x9fe   : > { %v17830_v7 = vpack.c.bf16 %v10181_v58, %v10179_v54  ;;  %v15491_v58 = vcombine.low %v10291_v52, %v10295_v39  ;;  %v15498_v59 = vcombine.high %v10298_v12, %v10302_v2  ;;  %v15500_v62 = vcombine.high %v10299_v32, %v10303_v11 }
 0x9ff   : > { %v15499_v31 = vcombine.low %v10299_v32, %v10303_v11 }
 0xa00   : > { %11056 = vmatprep.mubr.bf16.mxu0 %v17830_v7  ;;  %11099 = vmatprep.mubr.bf16.mxu1 %v17830_v7 }
 0xa01   : > { %11057 = vmatmul.mubr.bf16.vlgmr.msra.gmra.mrb[48].mxu0 %v17828_v55  ;;  %11100 = vmatmul.mubr.bf16.vlgmr.msra.gmra.mrb[48].mxu1 %v17828_v55 }
 0xa02   : > { %11111 = vmatpush1.bf16.msra.mxu0 %v15457_v43  ;;  %11154 = vmatpush1.bf16.msra.mxu1 %v15459_v33  ;;  %v10290_v43 = vld [vmem:[#allocation13 + $0x110] sm:$0xff] }
 0xa03   : > { %11142 = vmatprep.mubr.bf16.mxu0 %v17830_v7  ;;  %11185 = vmatprep.mubr.bf16.mxu1 %v17830_v7  ;;  %v10294_v33 = vld [vmem:[#allocation13 + $0x130] sm:$0xff] }
 0xa04   : > { %11112 = vmatprep.subr.bf16.mxu0 %v15466_v10  ;;  %11155 = vmatprep.subr.bf16.mxu1 %v15468_v15  ;;  %v15490_v30 = vcombine.high %v10290_v43, %v10294_v33  ;;  %v15489_v54 = vcombine.low %v10290_v43, %v10294_v33  ;;  %v10311_v10 = vld [vmem:[#allocation13 + $0x1b8] sm:$0xff]  ;;  %v15497_v15 = vcombine.low %v10298_v12, %v10302_v2 }
 0xa05   : > { %v15508_v19 = vcombine.high %v10307_v50, %v10311_v10  ;;  %v15507_v27 = vcombine.low %v10307_v50, %v10311_v10 }
 0xa06   : > { %11113 = vmatpush1.bf16.msra.mxu0 %v15465_v48  ;;  %11156 = vmatpush1.bf16.msra.mxu1 %v15467_v25  ;;  %v10314_v48 = vld [vmem:[#allocation13 + $0x1d0] sm:$0xff] }
 0xa07   : > { %11114 = vmatprep.subr.bf16.mxu0 %v15474_v36  ;;  %11157 = vmatprep.subr.bf16.mxu1 %v15476_v24  ;;  %v10318_v25 = vld [vmem:[#allocation13 + $0x1f0] sm:$0xff]  ;;  %v10315_v36 = vld [vmem:[#allocation13 + $0x1d8] sm:$0xff] }
 0xa08   : > { %v10319_v24 = vld [vmem:[#allocation13 + $0x1f8] sm:$0xff]  ;;  %v15514_v61 = vcombine.high %v10314_v48, %v10318_v25  ;;  %v15513_v43 = vcombine.low %v10314_v48, %v10318_v25 }
 0xa09   : > { %v15516_v37 = vcombine.high %v10315_v36, %v10319_v24  ;;  %v15515_v33 = vcombine.low %v10315_v36, %v10319_v24 }
 0xa0a   : > { %11115 = vmatpush1.bf16.msra.mxu0 %v15473_v8  ;;  %11158 = vmatpush1.bf16.msra.mxu1 %v15475_v20  ;;  %v10322_v8 = vld [vmem:[#allocation13 + $0x210] sm:$0xff] }
 0xa0b   : > { %11116 = vmatprep.subr.bf16.mxu0 %v15482_v14  ;;  %11159 = vmatprep.subr.bf16.mxu1 %v15484_v26  ;;  %v10326_v20 = vld [vmem:[#allocation13 + $0x230] sm:$0xff]  ;;  %v10323_v14 = vld [vmem:[#allocation13 + $0x218] sm:$0xff] }
 0xa0c   : > { %v10327_v26 = vld [vmem:[#allocation13 + $0x238] sm:$0xff]  ;;  %v15522_v52 = vcombine.high %v10322_v8, %v10326_v20  ;;  %v15521_v12 = vcombine.low %v10322_v8, %v10326_v20 }
 0xa0d   : > { %v15524_v39 = vcombine.high %v10323_v14, %v10327_v26  ;;  %v15523_v2 = vcombine.low %v10323_v14, %v10327_v26 }
 0xa0e   : > { %11117 = vmatpush1.bf16.msra.mxu0 %v15481_v40  ;;  %11160 = vmatpush1.bf16.msra.mxu1 %v15483_v42  ;;  %v10330_v40 = vld [vmem:[#allocation13 + $0x250] sm:$0xff] }
 0xa0f   : > { %11118 = vmatprep.subr.bf16.mxu0 %v15490_v30  ;;  %11161 = vmatprep.subr.bf16.mxu1 %v15492_v53  ;;  %v10334_v42 = vld [vmem:[#allocation13 + $0x270] sm:$0xff]  ;;  %v10331_v30 = vld [vmem:[#allocation13 + $0x258] sm:$0xff] }
 0xa10   : > { %v10335_v53 = vld [vmem:[#allocation13 + $0x278] sm:$0xff]  ;;  %v15530_v32 = vcombine.high %v10330_v40, %v10334_v42  ;;  %v15529_v63 = vcombine.low %v10330_v40, %v10334_v42 }
 0xa11   : > { %v15532_v11 = vcombine.high %v10331_v30, %v10335_v53  ;;  %v15531_v35 = vcombine.low %v10331_v30, %v10335_v53 }
 0xa12   : > { %11119 = vmatpush1.bf16.msra.mxu0 %v15489_v54  ;;  %11162 = vmatpush1.bf16.msra.mxu1 %v15491_v58  ;;  %v10338_v54 = vld [vmem:[#allocation13 + $0x290] sm:$0xff] }
 0xa13   : > { %11120 = vmatprep.subr.bf16.mxu0 %v15498_v59  ;;  %11163 = vmatprep.subr.bf16.mxu1 %v15500_v62  ;;  %v10342_v58 = vld [vmem:[#allocation13 + $0x2b0] sm:$0xff]  ;;  %v10339_v59 = vld [vmem:[#allocation13 + $0x298] sm:$0xff] }
 0xa14   : > { %v10343_v62 = vld [vmem:[#allocation13 + $0x2b8] sm:$0xff]  ;;  %v15538_v50 = vcombine.high %v10338_v54, %v10342_v58  ;;  %v15537_v48 = vcombine.low %v10338_v54, %v10342_v58 }
 0xa15   : > { %v15540_v10 = vcombine.high %v10339_v59, %v10343_v62  ;;  %v15539_v25 = vcombine.low %v10339_v59, %v10343_v62 }
 0xa16   : > { %11121 = vmatpush1.bf16.msra.mxu0 %v15497_v15  ;;  %11164 = vmatpush1.bf16.msra.mxu1 %v15499_v31  ;;  %v10346_v15 = vld [vmem:[#allocation13 + $0x2d0] sm:$0xff] }
 0xa17   : > { %11122 = vmatprep.subr.bf16.mxu0 %v15506_v17  ;;  %11165 = vmatprep.subr.bf16.mxu1 %v15508_v19  ;;  %v10350_v31 = vld [vmem:[#allocation13 + $0x2f0] sm:$0xff]  ;;  %v10347_v17 = vld [vmem:[#allocation13 + $0x2d8] sm:$0xff] }
 0xa18   : > { %v10351_v19 = vld [vmem:[#allocation13 + $0x2f8] sm:$0xff]  ;;  %v15546_v36 = vcombine.high %v10346_v15, %v10350_v31  ;;  %v15545_v8 = vcombine.low %v10346_v15, %v10350_v31 }
 0xa19   : > { %v15548_v24 = vcombine.high %v10347_v17, %v10351_v19  ;;  %v15547_v20 = vcombine.low %v10347_v17, %v10351_v19 }
 0xa1a   : > { %11123 = vmatpush1.bf16.msra.mxu0 %v15505_v3  ;;  %11166 = vmatpush1.bf16.msra.mxu1 %v15507_v27  ;;  %v10354_v3 = vld [vmem:[#allocation13 + $0x310] sm:$0xff] }
 0xa1b   : > { %11124 = vmatprep.subr.bf16.mxu0 %v15514_v61  ;;  %11167 = vmatprep.subr.bf16.mxu1 %v15516_v37  ;;  %v10358_v27 = vld [vmem:[#allocation13 + $0x330] sm:$0xff]  ;;  %v10355_v61 = vld [vmem:[#allocation13 + $0x318] sm:$0xff] }
 0xa1c   : > { %v10359_v37 = vld [vmem:[#allocation13 + $0x338] sm:$0xff]  ;;  %v15554_v14 = vcombine.high %v10354_v3, %v10358_v27  ;;  %v15553_v40 = vcombine.low %v10354_v3, %v10358_v27 }
 0xa1d   : > { %v15556_v26 = vcombine.high %v10355_v61, %v10359_v37  ;;  %v15555_v42 = vcombine.low %v10355_v61, %v10359_v37 }
 0xa1e   : > { %11125 = vmatpush1.bf16.msra.mxu0 %v15513_v43  ;;  %11168 = vmatpush1.bf16.msra.mxu1 %v15515_v33  ;;  %v10362_v43 = vld [vmem:[#allocation13 + $0x350] sm:$0xff] }
 0xa1f   : > { %11126 = vmatprep.subr.bf16.mxu0 %v15522_v52  ;;  %11169 = vmatprep.subr.bf16.mxu1 %v15524_v39  ;;  %v10366_v33 = vld [vmem:[#allocation13 + $0x370] sm:$0xff]  ;;  %v10363_v52 = vld [vmem:[#allocation13 + $0x358] sm:$0xff] }
 0xa20   : > { %v10367_v39 = vld [vmem:[#allocation13 + $0x378] sm:$0xff]  ;;  %v15562_v30 = vcombine.high %v10362_v43, %v10366_v33  ;;  %v15561_v54 = vcombine.low %v10362_v43, %v10366_v33 }
 0xa21   : > { %v15564_v53 = vcombine.high %v10363_v52, %v10367_v39  ;;  %v15563_v58 = vcombine.low %v10363_v52, %v10367_v39 }
 0xa22   : > { %11127 = vmatpush1.bf16.msra.mxu0 %v15521_v12  ;;  %11170 = vmatpush1.bf16.msra.mxu1 %v15523_v2  ;;  %v10370_v12 = vld [vmem:[#allocation13 + $0x390] sm:$0xff] }
 0xa23   : > { %11128 = vmatprep.subr.bf16.mxu0 %v15530_v32  ;;  %11171 = vmatprep.subr.bf16.mxu1 %v15532_v11  ;;  %v10374_v2 = vld [vmem:[#allocation13 + $0x3b0] sm:$0xff]  ;;  %v10371_v32 = vld [vmem:[#allocation13 + $0x398] sm:$0xff] }
 0xa24   : > { %v10375_v11 = vld [vmem:[#allocation13 + $0x3b8] sm:$0xff]  ;;  %v15570_v59 = vcombine.high %v10370_v12, %v10374_v2  ;;  %v15569_v15 = vcombine.low %v10370_v12, %v10374_v2 }
 0xa25   : > { %v15572_v62 = vcombine.high %v10371_v32, %v10375_v11  ;;  %v15571_v31 = vcombine.low %v10371_v32, %v10375_v11 }
 0xa26   : > { %11129 = vmatpush1.bf16.msra.mxu0 %v15529_v63  ;;  %11172 = vmatpush1.bf16.msra.mxu1 %v15531_v35  ;;  %v10378_v63 = vld [vmem:[#allocation13 + $0x3d0] sm:$0xff] }
 0xa27   : > { %11130 = vmatprep.subr.bf16.mxu0 %v15538_v50  ;;  %11173 = vmatprep.subr.bf16.mxu1 %v15540_v10  ;;  %v10382_v35 = vld [vmem:[#allocation13 + $0x3f0] sm:$0xff]  ;;  %v10379_v50 = vld [vmem:[#allocation13 + $0x3d8] sm:$0xff] }
 0xa28   : > { %v10383_v10 = vld [vmem:[#allocation13 + $0x3f8] sm:$0xff]  ;;  %v15578_v17 = vcombine.high %v10378_v63, %v10382_v35  ;;  %v15577_v3 = vcombine.low %v10378_v63, %v10382_v35 }
 0xa29   : > { %v15580_v19 = vcombine.high %v10379_v50, %v10383_v10  ;;  %v15579_v27 = vcombine.low %v10379_v50, %v10383_v10 }
 0xa2a   : > { %11131 = vmatpush1.bf16.msra.mxu0 %v15537_v48  ;;  %11174 = vmatpush1.bf16.msra.mxu1 %v15539_v25  ;;  %v10190_v48 = vld [vmem:[#allocation11] sm:$0xff] }
 0xa2b   : > { %11132 = vmatprep.subr.bf16.mxu0 %v15546_v36  ;;  %11175 = vmatprep.subr.bf16.mxu1 %v15548_v24  ;;  %v10194_v25 = vld [vmem:[#allocation11 + $0x20] sm:$0xff]  ;;  %v10191_v36 = vld [vmem:[#allocation11 + $0x8] sm:$0xff] }
 0xa2c   : > { %v10195_v24 = vld [vmem:[#allocation11 + $0x28] sm:$0xff]  ;;  %v15583_v61 = vcombine.high %v10190_v48, %v10194_v25  ;;  %v15582_v43 = vcombine.low %v10190_v48, %v10194_v25 }
 0xa2d   : > { %v15585_v37 = vcombine.high %v10191_v36, %v10195_v24  ;;  %v15584_v33 = vcombine.low %v10191_v36, %v10195_v24 }
 0xa2e   : > { %11133 = vmatpush1.bf16.msra.mxu0 %v15545_v8  ;;  %11176 = vmatpush1.bf16.msra.mxu1 %v15547_v20  ;;  %v10198_v8 = vld [vmem:[#allocation11 + $0x40] sm:$0xff] }
 0xa2f   : > { %11134 = vmatprep.subr.bf16.mxu0 %v15554_v14  ;;  %11177 = vmatprep.subr.bf16.mxu1 %v15556_v26  ;;  %v10202_v20 = vld [vmem:[#allocation11 + $0x60] sm:$0xff]  ;;  %v10199_v14 = vld [vmem:[#allocation11 + $0x48] sm:$0xff] }
 0xa30   : > { %v10203_v26 = vld [vmem:[#allocation11 + $0x68] sm:$0xff]  ;;  %v15591_v52 = vcombine.high %v10198_v8, %v10202_v20  ;;  %v15590_v12 = vcombine.low %v10198_v8, %v10202_v20 }
 0xa31   : > { %v15593_v39 = vcombine.high %v10199_v14, %v10203_v26  ;;  %v15592_v2 = vcombine.low %v10199_v14, %v10203_v26 }
 0xa32   : > { %11135 = vmatpush1.bf16.msra.mxu0 %v15553_v40  ;;  %11178 = vmatpush1.bf16.msra.mxu1 %v15555_v42  ;;  %v10206_v40 = vld [vmem:[#allocation11 + $0x80] sm:$0xff] }
 0xa33   : > { %11136 = vmatprep.subr.bf16.mxu0 %v15562_v30  ;;  %11179 = vmatprep.subr.bf16.mxu1 %v15564_v53  ;;  %v10210_v42 = vld [vmem:[#allocation11 + $0xa0] sm:$0xff]  ;;  %v10207_v30 = vld [vmem:[#allocation11 + $0x88] sm:$0xff] }
 0xa34   : > { %v10211_v53 = vld [vmem:[#allocation11 + $0xa8] sm:$0xff]  ;;  %v15599_v32 = vcombine.high %v10206_v40, %v10210_v42  ;;  %v15598_v63 = vcombine.low %v10206_v40, %v10210_v42 }
 0xa35   : > { %v15601_v11 = vcombine.high %v10207_v30, %v10211_v53  ;;  %v15600_v35 = vcombine.low %v10207_v30, %v10211_v53 }
 0xa36   : > { %11137 = vmatpush1.bf16.msra.mxu0 %v15561_v54  ;;  %11180 = vmatpush1.bf16.msra.mxu1 %v15563_v58  ;;  %v10214_v54 = vld [vmem:[#allocation11 + $0xc0] sm:$0xff] }
 0xa37   : > { %11138 = vmatprep.subr.bf16.mxu0 %v15570_v59  ;;  %11181 = vmatprep.subr.bf16.mxu1 %v15572_v62  ;;  %v10218_v58 = vld [vmem:[#allocation11 + $0xe0] sm:$0xff]  ;;  %v10215_v59 = vld [vmem:[#allocation11 + $0xc8] sm:$0xff] }
 0xa38   : > { %v10219_v62 = vld [vmem:[#allocation11 + $0xe8] sm:$0xff]  ;;  %v15607_v50 = vcombine.high %v10214_v54, %v10218_v58  ;;  %v15606_v48 = vcombine.low %v10214_v54, %v10218_v58 }
 0xa39   : > { %v15609_v10 = vcombine.high %v10215_v59, %v10219_v62  ;;  %v15608_v25 = vcombine.low %v10215_v59, %v10219_v62 }
 0xa3a   : > { %11139 = vmatpush1.bf16.msra.mxu0 %v15569_v15  ;;  %11182 = vmatpush1.bf16.msra.mxu1 %v15571_v31  ;;  %v10222_v15 = vld [vmem:[#allocation11 + $0x100] sm:$0xff] }
 0xa3b   : > { %11140 = vmatprep.subr.bf16.mxu0 %v15578_v17  ;;  %11183 = vmatprep.subr.bf16.mxu1 %v15580_v19  ;;  %v10226_v31 = vld [vmem:[#allocation11 + $0x120] sm:$0xff]  ;;  %v10223_v17 = vld [vmem:[#allocation11 + $0x108] sm:$0xff] }
 0xa3c   : > { %v10227_v19 = vld [vmem:[#allocation11 + $0x128] sm:$0xff]  ;;  %v15615_v36 = vcombine.high %v10222_v15, %v10226_v31  ;;  %v15614_v8 = vcombine.low %v10222_v15, %v10226_v31 }
 0xa3d   : > { %v15617_v24 = vcombine.high %v10223_v17, %v10227_v19  ;;  %v15616_v20 = vcombine.low %v10223_v17, %v10227_v19 }
 0xa3e   : > { %11141 = vmatpush1.bf16.msra.mxu0 %v15577_v3  ;;  %11184 = vmatpush1.bf16.msra.mxu1 %v15579_v27  ;;  %v10230_v3 = vld [vmem:[#allocation11 + $0x140] sm:$0xff] }
 0xa3f   : > { %11522 = vmatprep.subr.bf16.mxu0 %v15583_v61  ;;  %11565 = vmatprep.subr.bf16.mxu1 %v15585_v37  ;;  %v10234_v27 = vld [vmem:[#allocation11 + $0x160] sm:$0xff]  ;;  %v10231_v61 = vld [vmem:[#allocation11 + $0x148] sm:$0xff] }
 0xa40   : > { %v10235_v37 = vld [vmem:[#allocation11 + $0x168] sm:$0xff]  ;;  %v15623_v14 = vcombine.high %v10230_v3, %v10234_v27  ;;  %v15622_v40 = vcombine.low %v10230_v3, %v10234_v27  ;;  %v17849_v3 = vld [vmem:[%s17320_s9 + $0x30] sm:$0xff]  }
 0xa41   : > { %11143 = vmatmul.mubr.bf16.vlgmr.msra.gmra.mrb[52].mxu0 %v17828_v55  ;;  %11186 = vmatmul.mubr.bf16.vlgmr.msra.gmra.mrb[52].mxu1 %v17828_v55  ;;  %v15625_v26 = vcombine.high %v10231_v61, %v10235_v37  ;;  %v15624_v42 = vcombine.low %v10231_v61, %v10235_v37 }
 0xa42   : > { %11523 = vmatpush1.bf16.msra.mxu0 %v15582_v43  ;;  %11566 = vmatpush1.bf16.msra.mxu1 %v15584_v33  ;;  %v10238_v43 = vld [vmem:[#allocation11 + $0x180] sm:$0xff] }
 0xa43   : > { %11524 = vmatprep.subr.bf16.mxu0 %v15591_v52  ;;  %11567 = vmatprep.subr.bf16.mxu1 %v15593_v39  ;;  %v10242_v33 = vld [vmem:[#allocation11 + $0x1a0] sm:$0xff]  ;;  %v10239_v52 = vld [vmem:[#allocation11 + $0x188] sm:$0xff] }
 0xa44   : > { %11554 = vmatprep.mubr.bf16.mxu0 %v16972_v41  ;;  %11597 = vmatprep.mubr.bf16.mxu1 %v16972_v41  ;;  %v10243_v39 = vld [vmem:[#allocation11 + $0x1a8] sm:$0xff]  ;;  %v15631_v30 = vcombine.high %v10238_v43, %v10242_v33  ;;  %v15630_v54 = vcombine.low %v10238_v43, %v10242_v33  ;;  %v10213_v43 = vld [vmem:[#allocation11 + $0xb8] sm:$0xff] }
 0xa45   : > { %v15633_v53 = vcombine.high %v10239_v52, %v10243_v39  ;;  %v15632_v58 = vcombine.low %v10239_v52, %v10243_v39 }
 0xa46   : > { %11525 = vmatpush1.bf16.msra.mxu0 %v15590_v12  ;;  %11568 = vmatpush1.bf16.msra.mxu1 %v15592_v2  ;;  %v10246_v12 = vld [vmem:[#allocation11 + $0x1c0] sm:$0xff] }
 0xa47   : > { %11526 = vmatprep.subr.bf16.mxu0 %v15599_v32  ;;  %11569 = vmatprep.subr.bf16.mxu1 %v15601_v11  ;;  %v10250_v2 = vld [vmem:[#allocation11 + $0x1e0] sm:$0xff]  ;;  %v10247_v32 = vld [vmem:[#allocation11 + $0x1c8] sm:$0xff] }
 0xa48   : > { %v10251_v11 = vld [vmem:[#allocation11 + $0x1e8] sm:$0xff]  ;;  %v15639_v59 = vcombine.high %v10246_v12, %v10250_v2  ;;  %v15638_v15 = vcombine.low %v10246_v12, %v10250_v2  ;;  %v10221_v12 = vld [vmem:[#allocation11 + $0xf8] sm:$0xff] }
 0xa49   : > { %v15641_v62 = vcombine.high %v10247_v32, %v10251_v11  ;;  %v15640_v31 = vcombine.low %v10247_v32, %v10251_v11 }
 0xa4a   : > { %11527 = vmatpush1.bf16.msra.mxu0 %v15598_v63  ;;  %11570 = vmatpush1.bf16.msra.mxu1 %v15600_v35  ;;  %v10192_v63 = vld [vmem:[#allocation11 + $0x10] sm:$0xff] }
 0xa4b   : > { %11528 = vmatprep.subr.bf16.mxu0 %v15607_v50  ;;  %11571 = vmatprep.subr.bf16.mxu1 %v15609_v10  ;;  %v10196_v35 = vld [vmem:[#allocation11 + $0x30] sm:$0xff]  ;;  %v10193_v50 = vld [vmem:[#allocation11 + $0x18] sm:$0xff] }
 0xa4c   : > { %v10197_v10 = vld [vmem:[#allocation11 + $0x38] sm:$0xff]  ;;  %v15587_v17 = vcombine.high %v10192_v63, %v10196_v35  ;;  %v15586_v27 = vcombine.low %v10192_v63, %v10196_v35 }
 0xa4d   : > { %v15589_v19 = vcombine.high %v10193_v50, %v10197_v10  ;;  %v15588_v61 = vcombine.low %v10193_v50, %v10197_v10  ;;  %v10229_v63 = vld [vmem:[#allocation11 + $0x138] sm:$0xff] }
 0xa4e   : > { %11529 = vmatpush1.bf16.msra.mxu0 %v15606_v48  ;;  %11572 = vmatpush1.bf16.msra.mxu1 %v15608_v25  ;;  %v10200_v48 = vld [vmem:[#allocation11 + $0x50] sm:$0xff] }
 0xa4f   : > { %11530 = vmatprep.subr.bf16.mxu0 %v15615_v36  ;;  %11573 = vmatprep.subr.bf16.mxu1 %v15617_v24  ;;  %v10204_v25 = vld [vmem:[#allocation11 + $0x70] sm:$0xff]  ;;  %v10201_v36 = vld [vmem:[#allocation11 + $0x58] sm:$0xff] }
 0xa50   : > { %v10205_v24 = vld [vmem:[#allocation11 + $0x78] sm:$0xff]  ;;  %v15595_v37 = vcombine.high %v10200_v48, %v10204_v25  ;;  %v15594_v33 = vcombine.low %v10200_v48, %v10204_v25 }
 0xa51   : > { %v15596_v52 = vcombine.low %v10201_v36, %v10205_v24  ;;  %v10237_v48 = vld [vmem:[#allocation11 + $0x178] sm:$0xff] }
 0xa52   : > { %11531 = vmatpush1.bf16.msra.mxu0 %v15614_v8  ;;  %11574 = vmatpush1.bf16.msra.mxu1 %v15616_v20  ;;  %v15597_v8 = vcombine.high %v10201_v36, %v10205_v24  ;;  %v10208_v20 = vld [vmem:[#allocation11 + $0x90] sm:$0xff] }
 0xa53   : > { %11532 = vmatprep.subr.bf16.mxu0 %v15623_v14  ;;  %11575 = vmatprep.subr.bf16.mxu1 %v15625_v26  ;;  %v10212_v14 = vld [vmem:[#allocation11 + $0xb0] sm:$0xff]  ;;  %v10209_v26 = vld [vmem:[#allocation11 + $0x98] sm:$0xff] }
 0xa54   : > { %v15603_v39 = vcombine.high %v10208_v20, %v10212_v14  ;;  %v15602_v2 = vcombine.low %v10208_v20, %v10212_v14  ;;  %v15604_v32 = vcombine.low %v10209_v26, %v10213_v43  ;;  %v10245_v20 = vld [vmem:[#allocation11 + $0x1b8] sm:$0xff] }
 0xa56   : > { %11533 = vmatpush1.bf16.msra.mxu0 %v15622_v40  ;;  %11576 = vmatpush1.bf16.msra.mxu1 %v15624_v42  ;;  %v15605_v40 = vcombine.high %v10209_v26, %v10213_v43  ;;  %v10216_v42 = vld [vmem:[#allocation11 + $0xd0] sm:$0xff] }
 0xa57   : > { %11534 = vmatprep.subr.bf16.mxu0 %v15631_v30  ;;  %11577 = vmatprep.subr.bf16.mxu1 %v15633_v53  ;;  %v10220_v30 = vld [vmem:[#allocation11 + $0xf0] sm:$0xff]  ;;  %v10217_v53 = vld [vmem:[#allocation11 + $0xd8] sm:$0xff] }
 0xa58   : > { %v15611_v11 = vcombine.high %v10216_v42, %v10220_v30  ;;  %v15610_v35 = vcombine.low %v10216_v42, %v10220_v30  ;;  %v15612_v50 = vcombine.low %v10217_v53, %v10221_v12  ;;  %v10253_v42 = vld [vmem:[#allocation11 + $0x1f8] sm:$0xff] }
 0xa5a   : > { %11535 = vmatpush1.bf16.msra.mxu0 %v15630_v54  ;;  %11578 = vmatpush1.bf16.msra.mxu1 %v15632_v58  ;;  %v15613_v54 = vcombine.high %v10217_v53, %v10221_v12  ;;  %v10224_v58 = vld [vmem:[#allocation11 + $0x110] sm:$0xff] }
 0xa5b   : > { %11536 = vmatprep.subr.bf16.mxu0 %v15639_v59  ;;  %11579 = vmatprep.subr.bf16.mxu1 %v15641_v62  ;;  %v10228_v59 = vld [vmem:[#allocation11 + $0x130] sm:$0xff]  ;;  %v10225_v62 = vld [vmem:[#allocation11 + $0x118] sm:$0xff] }
 0xa5c   : > { %v15619_v10 = vcombine.high %v10224_v58, %v10228_v59  ;;  %v15618_v25 = vcombine.low %v10224_v58, %v10228_v59  ;;  %v15620_v36 = vcombine.low %v10225_v62, %v10229_v63  ;;  %v11860_v58 = vld [vmem:[#allocation13 + $0x20] sm:$0xff]  ;;  %v11857_v59 = vld [vmem:[#allocation13 + $0x8] sm:$0xff] }
 0xa5e   : > { %11537 = vmatpush1.bf16.msra.mxu0 %v15638_v15  ;;  %11580 = vmatpush1.bf16.msra.mxu1 %v15640_v31  ;;  %v15621_v15 = vcombine.high %v10225_v62, %v10229_v63  ;;  %v10232_v31 = vld [vmem:[#allocation11 + $0x150] sm:$0xff]  ;;  %v11861_v63 = vld [vmem:[#allocation13 + $0x28] sm:$0xff] }
 0xa5f   : > { %11608 = vmatprep.subr.bf16.mxu0 %v15587_v17  ;;  %11651 = vmatprep.subr.bf16.mxu1 %v15589_v19  ;;  %v10236_v17 = vld [vmem:[#allocation11 + $0x170] sm:$0xff]  ;;  %v10233_v19 = vld [vmem:[#allocation11 + $0x158] sm:$0xff] }
 0xa60   : > { %v15627_v24 = vcombine.high %v10232_v31, %v10236_v17  ;;  %v15626_v14 = vcombine.low %v10232_v31, %v10236_v17  ;;  %v15628_v26 = vcombine.low %v10233_v19, %v10237_v48  ;;  %v11868_v31 = vld [vmem:[#allocation13 + $0x60] sm:$0xff]  ;;  %v11865_v17 = vld [vmem:[#allocation13 + $0x48] sm:$0xff] }
 0xa61   : > { %11555 = vmatmul.mubr.bf16.vlgmr.msra.gmra.mrb[48].mxu0 %v17849_v3  ;;  %11598 = vmatmul.mubr.bf16.vlgmr.msra.gmra.mrb[48].mxu1 %v17849_v3 }
 0xa62   : > { %11609 = vmatpush1.bf16.msra.mxu0 %v15586_v27  ;;  %11652 = vmatpush1.bf16.msra.mxu1 %v15588_v61  ;;  %v15629_v27 = vcombine.high %v10233_v19, %v10237_v48  ;;  %v10240_v61 = vld [vmem:[#allocation11 + $0x190] sm:$0xff]  ;;  %v11869_v48 = vld [vmem:[#allocation13 + $0x68] sm:$0xff] }
 0xa63   : > { %11610 = vmatprep.subr.bf16.mxu0 %v15595_v37  ;;  %11653 = vmatprep.subr.bf16.mxu1 %v15597_v8  ;;  %v10244_v37 = vld [vmem:[#allocation11 + $0x1b0] sm:$0xff]  ;;  %v10241_v8 = vld [vmem:[#allocation11 + $0x198] sm:$0xff] }
 0xa64   : > { %11640 = vmatprep.mubr.bf16.mxu0 %v16972_v41  ;;  %11683 = vmatprep.mubr.bf16.mxu1 %v16972_v41  ;;  %v15635_v43 = vcombine.high %v10240_v61, %v10244_v37  ;;  %v15634_v30 = vcombine.low %v10240_v61, %v10244_v37  ;;  %v15636_v53 = vcombine.low %v10241_v8, %v10245_v20  ;;  %v11873_v61 = vld [vmem:[#allocation13 + $0x88] sm:$0xff] }
 0xa66   : > { %11611 = vmatpush1.bf16.msra.mxu0 %v15594_v33  ;;  %11654 = vmatpush1.bf16.msra.mxu1 %v15596_v52  ;;  %v15637_v33 = vcombine.high %v10241_v8, %v10245_v20  ;;  %v10248_v52 = vld [vmem:[#allocation11 + $0x1d0] sm:$0xff]  ;;  %v11877_v8 = vld [vmem:[#allocation13 + $0xa8] sm:$0xff] }
 0xa67   : > { %11612 = vmatprep.subr.bf16.mxu0 %v15603_v39  ;;  %11655 = vmatprep.subr.bf16.mxu1 %v15605_v40  ;;  %v10252_v39 = vld [vmem:[#allocation11 + $0x1f0] sm:$0xff]  ;;  %v10249_v40 = vld [vmem:[#allocation11 + $0x1d8] sm:$0xff] }
 0xa68   : > { %v15643_v12 = vcombine.high %v10248_v52, %v10252_v39 }
 0xa6a   : > { %11613 = vmatpush1.bf16.msra.mxu0 %v15602_v2  ;;  %11656 = vmatpush1.bf16.msra.mxu1 %v15604_v32  ;;  %v15645_v2 = vcombine.high %v10249_v40, %v10253_v42  ;;  %v15642_v32 = vcombine.low %v10248_v52, %v10252_v39  ;;  %v11881_v52 = vld [vmem:[#allocation13 + $0xc8] sm:$0xff] }
 0xa6b   : > { %11614 = vmatprep.subr.bf16.mxu0 %v15611_v11  ;;  %11657 = vmatprep.subr.bf16.mxu1 %v15613_v54  ;;  %v15644_v11 = vcombine.low %v10249_v40, %v10253_v42  ;;  %v11856_v54 = vld [vmem:[#allocation13] sm:$0xff]  ;;  %v11885_v40 = vld [vmem:[#allocation13 + $0xe8] sm:$0xff] }
 0xa6c   : > { %v15649_v62 = vcombine.high %v11856_v54, %v11860_v58 }
 0xa6e   : > { %11615 = vmatpush1.bf16.msra.mxu0 %v15610_v35  ;;  %11658 = vmatpush1.bf16.msra.mxu1 %v15612_v50  ;;  %v15648_v35 = vcombine.low %v11856_v54, %v11860_v58  ;;  %v15650_v50 = vcombine.low %v11857_v59, %v11861_v63  ;;  %v11893_v54 = vld [vmem:[#allocation13 + $0x128] sm:$0xff] }
 0xa6f   : > { %11616 = vmatprep.subr.bf16.mxu0 %v15619_v10  ;;  %11659 = vmatprep.subr.bf16.mxu1 %v15621_v15  ;;  %v15651_v10 = vcombine.high %v11857_v59, %v11861_v63  ;;  %v11864_v15 = vld [vmem:[#allocation13 + $0x40] sm:$0xff] }
 0xa70   : > { %v15657_v19 = vcombine.high %v11864_v15, %v11868_v31  ;;  %v11896_v63 = vld [vmem:[#allocation13 + $0x140] sm:$0xff] }
 0xa72   : > { %11617 = vmatpush1.bf16.msra.mxu0 %v15618_v25  ;;  %11660 = vmatpush1.bf16.msra.mxu1 %v15620_v36  ;;  %v15656_v25 = vcombine.low %v11864_v15, %v11868_v31  ;;  %v15658_v36 = vcombine.low %v11865_v17, %v11869_v48  ;;  %v11901_v15 = vld [vmem:[#allocation13 + $0x168] sm:$0xff] }
 0xa73   : > { %11618 = vmatprep.subr.bf16.mxu0 %v15627_v24  ;;  %11661 = vmatprep.subr.bf16.mxu1 %v15629_v27  ;;  %v11872_v24 = vld [vmem:[#allocation13 + $0x80] sm:$0xff] }
 0xa74   : > { %v11876_v27 = vld [vmem:[#allocation13 + $0xa0] sm:$0xff] }
 0xa75   : > { %v15665_v37 = vcombine.high %v11872_v24, %v11876_v27  ;;  %v15664_v20 = vcombine.low %v11872_v24, %v11876_v27  ;;  %v11909_v24 = vld [vmem:[#allocation13 + $0x1a8] sm:$0xff] }
 0xa76   : > { %11619 = vmatpush1.bf16.msra.mxu0 %v15626_v14  ;;  %11662 = vmatpush1.bf16.msra.mxu1 %v15628_v26  ;;  %v15666_v14 = vcombine.low %v11873_v61, %v11877_v8  ;;  %v15667_v26 = vcombine.high %v11873_v61, %v11877_v8  ;;  %v11912_v8 = vld [vmem:[#allocation13 + $0x1c0] sm:$0xff] }
 0xa77   : > { %11620 = vmatprep.subr.bf16.mxu0 %v15635_v43  ;;  %11663 = vmatprep.subr.bf16.mxu1 %v15637_v33  ;;  %v11880_v43 = vld [vmem:[#allocation13 + $0xc0] sm:$0xff] }
 0xa78   : > { %v11884_v33 = vld [vmem:[#allocation13 + $0xe0] sm:$0xff] }
 0xa79   : > { %v15673_v39 = vcombine.high %v11880_v43, %v11884_v33  ;;  %v15672_v42 = vcombine.low %v11880_v43, %v11884_v33  ;;  %v11917_v43 = vld [vmem:[#allocation13 + $0x1e8] sm:$0xff] }
 0xa7a   : > { %11621 = vmatpush1.bf16.msra.mxu0 %v15634_v30  ;;  %11664 = vmatpush1.bf16.msra.mxu1 %v15636_v53  ;;  %v15674_v30 = vcombine.low %v11881_v52, %v11885_v40  ;;  %v15675_v53 = vcombine.high %v11881_v52, %v11885_v40  ;;  %v11920_v40 = vld [vmem:[#allocation13 + $0x200] sm:$0xff] }
 0xa7b   : > { %11622 = vmatprep.subr.bf16.mxu0 %v15643_v12  ;;  %11665 = vmatprep.subr.bf16.mxu1 %v15645_v2  ;;  %v11888_v12 = vld [vmem:[#allocation13 + $0x100] sm:$0xff] }
 0xa7c   : > { %v11892_v2 = vld [vmem:[#allocation13 + $0x120] sm:$0xff] }
 0xa7d   : > { %v15680_v58 = vcombine.low %v11888_v12, %v11892_v2 }
 0xa7e   : > { %11623 = vmatpush1.bf16.msra.mxu0 %v15642_v32  ;;  %11666 = vmatpush1.bf16.msra.mxu1 %v15644_v11  ;;  %v11889_v32 = vld [vmem:[#allocation13 + $0x108] sm:$0xff]  ;;  %v15681_v11 = vcombine.high %v11888_v12, %v11892_v2 }
 0xa7f   : > { %12624 = vmatprep.subr.bf16.mxu0 %v15649_v62  ;;  %12667 = vmatprep.subr.bf16.mxu1 %v15651_v10  ;;  %v15682_v59 = vcombine.low %v11889_v32, %v11893_v54  ;;  %v15683_v62 = vcombine.high %v11889_v32, %v11893_v54  ;;  %v11925_v12 = vld [vmem:[#allocation13 + $0x228] sm:$0xff]  ;;  %v11928_v54 = vld [vmem:[#allocation13 + $0x240] sm:$0xff] }
 0xa81   : > { %11641 = vmatmul.mubr.bf16.vlgmr.msra.gmra.mrb[52].mxu0 %v17849_v3  ;;  %11684 = vmatmul.mubr.bf16.vlgmr.msra.gmra.mrb[52].mxu1 %v17849_v3  ;;  %v15659_v3 = vcombine.high %v11865_v17, %v11869_v48  ;;  %v11904_v48 = vld [vmem:[#allocation13 + $0x180] sm:$0xff] }
 0xa82   : > { %12625 = vmatpush1.bf16.msra.mxu0 %v15648_v35  ;;  %12668 = vmatpush1.bf16.msra.mxu1 %v15650_v50  ;;  %v11900_v35 = vld [vmem:[#allocation13 + $0x160] sm:$0xff]  ;;  %v11897_v50 = vld [vmem:[#allocation13 + $0x148] sm:$0xff] }
 0xa83   : > { %12626 = vmatprep.subr.bf16.mxu0 %v15657_v19  ;;  %12669 = vmatprep.subr.bf16.mxu1 %v15659_v3  ;;  %v15689_v10 = vcombine.high %v11896_v63, %v11900_v35  ;;  %v15688_v31 = vcombine.low %v11896_v63, %v11900_v35  ;;  %v15690_v17 = vcombine.low %v11897_v50, %v11901_v15  ;;  %v11933_v63 = vld [vmem:[#allocation13 + $0x268] sm:$0xff] }
 0xa84   : > { %v15691_v19 = vcombine.high %v11897_v50, %v11901_v15  ;;  %v11936_v15 = vld [vmem:[#allocation13 + $0x280] sm:$0xff] }
 0xa86   : > { %12627 = vmatpush1.bf16.msra.mxu0 %v15656_v25  ;;  %12670 = vmatpush1.bf16.msra.mxu1 %v15658_v36  ;;  %v11908_v25 = vld [vmem:[#allocation13 + $0x1a0] sm:$0xff]  ;;  %v11905_v36 = vld [vmem:[#allocation13 + $0x188] sm:$0xff] }
 0xa87   : > { %12628 = vmatprep.subr.bf16.mxu0 %v15665_v37  ;;  %12671 = vmatprep.subr.bf16.mxu1 %v15667_v26  ;;  %v15697_v3 = vcombine.high %v11904_v48, %v11908_v25  ;;  %v15696_v27 = vcombine.low %v11904_v48, %v11908_v25  ;;  %v15699_v61 = vcombine.high %v11905_v36, %v11909_v24  ;;  %v11941_v48 = vld [vmem:[#allocation13 + $0x2a8] sm:$0xff] }
 0xa88   : > { %v15698_v37 = vcombine.low %v11905_v36, %v11909_v24  ;;  %v11944_v24 = vld [vmem:[#allocation13 + $0x2c0] sm:$0xff] }
 0xa8a   : > { %12629 = vmatpush1.bf16.msra.mxu0 %v15664_v20  ;;  %12672 = vmatpush1.bf16.msra.mxu1 %v15666_v14  ;;  %v11916_v20 = vld [vmem:[#allocation13 + $0x1e0] sm:$0xff]  ;;  %v11913_v14 = vld [vmem:[#allocation13 + $0x1c8] sm:$0xff] }
 0xa8b   : > { %12630 = vmatprep.subr.bf16.mxu0 %v15673_v39  ;;  %12673 = vmatprep.subr.bf16.mxu1 %v15675_v53  ;;  %v15705_v26 = vcombine.high %v11912_v8, %v11916_v20  ;;  %v15704_v33 = vcombine.low %v11912_v8, %v11916_v20  ;;  %v15706_v52 = vcombine.low %v11913_v14, %v11917_v43  ;;  %v11949_v8 = vld [vmem:[#allocation13 + $0x2e8] sm:$0xff] }
 0xa8c   : > { %v15707_v39 = vcombine.high %v11913_v14, %v11917_v43  ;;  %v11952_v43 = vld [vmem:[#allocation13 + $0x300] sm:$0xff] }
 0xa8e   : > { %12631 = vmatpush1.bf16.msra.mxu0 %v15672_v42  ;;  %12674 = vmatpush1.bf16.msra.mxu1 %v15674_v30  ;;  %v11924_v42 = vld [vmem:[#allocation13 + $0x220] sm:$0xff]  ;;  %v11921_v30 = vld [vmem:[#allocation13 + $0x208] sm:$0xff] }
 0xa8f   : > { %12632 = vmatprep.subr.bf16.mxu0 %v15681_v11  ;;  %12675 = vmatprep.subr.bf16.mxu1 %v15683_v62  ;;  %v15713_v53 = vcombine.high %v11920_v40, %v11924_v42  ;;  %v15712_v2 = vcombine.low %v11920_v40, %v11924_v42  ;;  %v15714_v32 = vcombine.low %v11921_v30, %v11925_v12  ;;  %v11957_v40 = vld [vmem:[#allocation13 + $0x328] sm:$0xff] }
 0xa90   : > { %v15715_v11 = vcombine.high %v11921_v30, %v11925_v12  ;;  %v11960_v12 = vld [vmem:[#allocation13 + $0x340] sm:$0xff] }
 0xa92   : > { %12633 = vmatpush1.bf16.msra.mxu0 %v15680_v58  ;;  %12676 = vmatpush1.bf16.msra.mxu1 %v15682_v59  ;;  %v11932_v58 = vld [vmem:[#allocation13 + $0x260] sm:$0xff]  ;;  %v11929_v59 = vld [vmem:[#allocation13 + $0x248] sm:$0xff] }
 0xa93   : > { %12634 = vmatprep.subr.bf16.mxu0 %v15689_v10  ;;  %12677 = vmatprep.subr.bf16.mxu1 %v15691_v19  ;;  %v15721_v62 = vcombine.high %v11928_v54, %v11932_v58  ;;  %v15720_v35 = vcombine.low %v11928_v54, %v11932_v58  ;;  %v15722_v50 = vcombine.low %v11929_v59, %v11933_v63  ;;  %v11965_v54 = vld [vmem:[#allocation13 + $0x368] sm:$0xff] }
 0xa94   : > { %v15723_v10 = vcombine.high %v11929_v59, %v11933_v63  ;;  %v11968_v63 = vld [vmem:[#allocation13 + $0x380] sm:$0xff] }
 0xa96   : > { %12635 = vmatpush1.bf16.msra.mxu0 %v15688_v31  ;;  %12678 = vmatpush1.bf16.msra.mxu1 %v15690_v17  ;;  %v11940_v31 = vld [vmem:[#allocation13 + $0x2a0] sm:$0xff]  ;;  %v11937_v17 = vld [vmem:[#allocation13 + $0x288] sm:$0xff] }
 0xa97   : > { %12636 = vmatprep.subr.bf16.mxu0 %v15697_v3  ;;  %12679 = vmatprep.subr.bf16.mxu1 %v15699_v61  ;;  %v15729_v19 = vcombine.high %v11936_v15, %v11940_v31  ;;  %v15728_v25 = vcombine.low %v11936_v15, %v11940_v31  ;;  %v15730_v36 = vcombine.low %v11937_v17, %v11941_v48  ;;  %v11945_v61 = vld [vmem:[#allocation13 + $0x2c8] sm:$0xff] }
 0xa98   : > { %v15731_v3 = vcombine.high %v11937_v17, %v11941_v48  ;;  %v15738_v14 = vcombine.low %v11945_v61, %v11949_v8  ;;  %v11973_v15 = vld [vmem:[#allocation13 + $0x3a8] sm:$0xff]  ;;  %v11976_v48 = vld [vmem:[#allocation13 + $0x3c0] sm:$0xff] }
 0xa9a   : > { %12637 = vmatpush1.bf16.msra.mxu0 %v15696_v27  ;;  %12680 = vmatpush1.bf16.msra.mxu1 %v15698_v37  ;;  %v11948_v27 = vld [vmem:[#allocation13 + $0x2e0] sm:$0xff] }
 0xa9b   : > { %12638 = vmatprep.subr.bf16.mxu0 %v15705_v26  ;;  %12681 = vmatprep.subr.bf16.mxu1 %v15707_v39  ;;  %v15737_v37 = vcombine.high %v11944_v24, %v11948_v27  ;;  %v15736_v20 = vcombine.low %v11944_v24, %v11948_v27  ;;  %v15739_v26 = vcombine.high %v11945_v61, %v11949_v8  ;;  %v11981_v24 = vld [vmem:[#allocation13 + $0x3e8] sm:$0xff]  ;;  %v17857_v8 = vld [vmem:[#allocation13 + $0x10] sm:$0xff] }
 0xa9e   : > { %12639 = vmatpush1.bf16.msra.mxu0 %v15704_v33  ;;  %12682 = vmatpush1.bf16.msra.mxu1 %v15706_v52  ;;  %v11956_v33 = vld [vmem:[#allocation13 + $0x320] sm:$0xff]  ;;  %v11953_v52 = vld [vmem:[#allocation13 + $0x308] sm:$0xff] }
 0xa9f   : > { %12640 = vmatprep.subr.bf16.mxu0 %v15713_v53  ;;  %12683 = vmatprep.subr.bf16.mxu1 %v15715_v11  ;;  %v15745_v39 = vcombine.high %v11952_v43, %v11956_v33  ;;  %v15744_v42 = vcombine.low %v11952_v43, %v11956_v33  ;;  %v15746_v30 = vcombine.low %v11953_v52, %v11957_v40  ;;  %v17865_v43 = vld [vmem:[#allocation13 + $0x38] sm:$0xff] }
 0xaa0   : > { %v15747_v53 = vcombine.high %v11953_v52, %v11957_v40 }
 0xaa2   : > { %12641 = vmatpush1.bf16.msra.mxu0 %v15712_v2  ;;  %12684 = vmatpush1.bf16.msra.mxu1 %v15714_v32  ;;  %v11964_v2 = vld [vmem:[#allocation13 + $0x360] sm:$0xff]  ;;  %v11961_v32 = vld [vmem:[#allocation13 + $0x348] sm:$0xff] }
 0xaa3   : > { %12642 = vmatprep.subr.bf16.mxu0 %v15721_v62  ;;  %12685 = vmatprep.subr.bf16.mxu1 %v15723_v10  ;;  %v15753_v11 = vcombine.high %v11960_v12, %v11964_v2  ;;  %v15752_v58 = vcombine.low %v11960_v12, %v11964_v2  ;;  %v15754_v59 = vcombine.low %v11961_v32, %v11965_v54 }
 0xaa4   : > { %v15755_v62 = vcombine.high %v11961_v32, %v11965_v54 }
 0xaa6   : > { %12643 = vmatpush1.bf16.msra.mxu0 %v15720_v35  ;;  %12686 = vmatpush1.bf16.msra.mxu1 %v15722_v50  ;;  %v11972_v35 = vld [vmem:[#allocation13 + $0x3a0] sm:$0xff]  ;;  %v11969_v50 = vld [vmem:[#allocation13 + $0x388] sm:$0xff] }
 0xaa7   : > { %12644 = vmatprep.subr.bf16.mxu0 %v15729_v19  ;;  %12687 = vmatprep.subr.bf16.mxu1 %v15731_v3  ;;  %v15761_v10 = vcombine.high %v11968_v63, %v11972_v35  ;;  %v15760_v31 = vcombine.low %v11968_v63, %v11972_v35  ;;  %v15762_v17 = vcombine.low %v11969_v50, %v11973_v15 }
 0xaa8   : > { %v15763_v19 = vcombine.high %v11969_v50, %v11973_v15 }
 0xaaa   : > { %12645 = vmatpush1.bf16.msra.mxu0 %v15728_v25  ;;  %12688 = vmatpush1.bf16.msra.mxu1 %v15730_v36  ;;  %v11980_v25 = vld [vmem:[#allocation13 + $0x3e0] sm:$0xff]  ;;  %v11977_v36 = vld [vmem:[#allocation13 + $0x3c8] sm:$0xff] }
 0xaab   : > { %12646 = vmatprep.subr.bf16.mxu0 %v15737_v37  ;;  %12689 = vmatprep.subr.bf16.mxu1 %v15739_v26  ;;  %v15769_v3 = vcombine.high %v11976_v48, %v11980_v25  ;;  %v15768_v27 = vcombine.low %v11976_v48, %v11980_v25  ;;  %v15770_v61 = vcombine.low %v11977_v36, %v11981_v24 }
 0xaac   : > { %v15771_v37 = vcombine.high %v11977_v36, %v11981_v24 }
 0xaae   : > { %12647 = vmatpush1.bf16.msra.mxu0 %v15736_v20  ;;  %12690 = vmatpush1.bf16.msra.mxu1 %v15738_v14  ;;  %v17859_v20 = vld [vmem:[#allocation13 + $0x30] sm:$0xff]  ;;  %v17861_v14 = vld [vmem:[#allocation13 + $0x18] sm:$0xff] }
 0xaaf   : > { %12648 = vmatprep.subr.bf16.mxu0 %v15745_v39  ;;  %12691 = vmatprep.subr.bf16.mxu1 %v15747_v53  ;;  %v15653_v26 = vcombine.high %v17857_v8, %v17859_v20  ;;  %v15652_v33 = vcombine.low %v17857_v8, %v17859_v20  ;;  %v15654_v52 = vcombine.low %v17861_v14, %v17865_v43 }
 0xab0   : > { %v15655_v39 = vcombine.high %v17861_v14, %v17865_v43 }
 0xab2   : > { %12649 = vmatpush1.bf16.msra.mxu0 %v15744_v42  ;;  %12692 = vmatpush1.bf16.msra.mxu1 %v15746_v30 }
 0xab3   : > { %12650 = vmatprep.subr.bf16.mxu0 %v15753_v11  ;;  %12693 = vmatprep.subr.bf16.mxu1 %v15755_v62 }
 0xab6   : > { %12651 = vmatpush1.bf16.msra.mxu0 %v15752_v58  ;;  %12694 = vmatpush1.bf16.msra.mxu1 %v15754_v59 }
 0xab7   : > { %12652 = vmatprep.subr.bf16.mxu0 %v15761_v10  ;;  %12695 = vmatprep.subr.bf16.mxu1 %v15763_v19 }
 0xaba   : > { %12653 = vmatpush1.bf16.msra.mxu0 %v15760_v31  ;;  %12696 = vmatpush1.bf16.msra.mxu1 %v15762_v17 }
 0xabb   : > { %12654 = vmatprep.subr.bf16.mxu0 %v15769_v3  ;;  %12697 = vmatprep.subr.bf16.mxu1 %v15771_v37 }
 0xabe   : > { %12655 = vmatpush1.bf16.msra.mxu0 %v15768_v27  ;;  %12698 = vmatpush1.bf16.msra.mxu1 %v15770_v61 }
 0xabf   : > { %12710 = vmatprep.subr.bf16.mxu0 %v15653_v26  ;;  %12753 = vmatprep.subr.bf16.mxu1 %v15655_v39 }
 0xb34   : > { %v11556_v40 = vpop.f32.mrb[48].mxu0  ;;  %v11599_v42 = vpop.f32.mrb[48].mxu1 }
 0xb35   : > { %v11558_v30 = vpop.f32.mrb[49].mxu0  ;;  %v11601_v53 = vpop.f32.mrb[49].mxu1  ;;  %v11696_v54 = vadd.f32 %v11599_v42, %v17390_v22  ;;  %v11694_v59 = vadd.f32 %v11556_v40, %v17397_v47 }
 0xb36   : > { %v11560_v12 = vpop.f32.mrb[50].mxu0  ;;  %v11603_v2 = vpop.f32.mrb[50].mxu1  ;;  %v11697_v58 = vadd.f32 %v11601_v53, %v17393_v46  ;;  %v11695_v63 = vadd.f32 %v11558_v30, %v17402_v49 }
 0xb37   : > { %v11562_v32 = vpop.f32.mrb[51].mxu0  ;;  %v11605_v11 = vpop.f32.mrb[51].mxu1  ;;  %v11726_v62 = vmul.f32 0.5, %v11696_v54  ;;  %v11704_v35 = vadd.f32 %v11603_v2, %v17390_v22  ;;  %v11702_v10 = vadd.f32 %v11560_v12, %v17397_v47  ;;  %v11710_v15 = vmul.f32 0.5, %v11694_v59 }
 0xb38   : > { %v11727_v50 = vmul.f32 0.5, %v11697_v58  ;;  %v11705_v31 = vadd.f32 %v11605_v11, %v17393_v46  ;;  %v11711_v17 = vmul.f32 0.5, %v11695_v63  ;;  %v11703_v48 = vadd.f32 %v11562_v32, %v17402_v49 }
 0xb39   : > { %16543 = vtanh.f32 %v11726_v62  ;;  %v11728_v19 = vmul.f32 0.5, %v11704_v35  ;;  %v11712_v25 = vmul.f32 0.5, %v11702_v10 }
 0xb3a   : > { %16545 = vtanh.f32 %v11727_v50  ;;  %v11729_v36 = vmul.f32 0.5, %v11705_v31  ;;  %v11713_v3 = vmul.f32 0.5, %v11703_v48 }
 0xb3b   : > { %16547 = vtanh.f32 %v11710_v15 }
 0xb3c   : > { %16549 = vtanh.f32 %v11711_v17 }
 0xb3d   : > { %16551 = vtanh.f32 %v11728_v19 }
 0xb3e   : > { %16553 = vtanh.f32 %v11712_v25 }
 0xb3f   : > { %16555 = vtanh.f32 %v11729_v36 }
 0xb40   : > { %16557 = vtanh.f32 %v11713_v3 }
 0xb43   : > { %v16544_v39 = vpop.eup %16543 }
 0xb44   : > { %v16546_v32 = vpop.eup %16545  ;;  %v11734_v54 = vmul.f32 0.5, %v16544_v39 }
 0xb45   : > { %v16548_v11 = vpop.eup %16547  ;;  %v11735_v50 = vmul.f32 0.5, %v16546_v32 }
 0xb46   : > { %v16550_v62 = vpop.eup %16549  ;;  %v11718_v31 = vmul.f32 0.5, %v16548_v11  ;;  %v11738_v48 = vadd.f32 0.5, %v11734_v54 }
 0xb47   : > { %v16552_v35 = vpop.eup %16551  ;;  %v11719_v25 = vmul.f32 0.5, %v16550_v62 }
 0xb48   : > { %v16554_v15 = vpop.eup %16553  ;;  %v11736_v3 = vmul.f32 0.5, %v16552_v35  ;;  %v11722_v39 = vadd.f32 0.5, %v11718_v31 }
 0xb49   : > { %v16556_v19 = vpop.eup %16555 }
 0xb4a   : > { %v11740_v32 = vadd.f32 0.5, %v11736_v3 }
 0xb54   : > { %v11642_v24 = vpop.f32.mrb[52].mxu0  ;;  %v11685_v27 = vpop.f32.mrb[52].mxu1 }
 0xb55   : > { %v11698_v61 = vadd.f32 %v11642_v24, %v17414_v4  ;;  %v11644_v37 = vpop.f32.mrb[53].mxu0  ;;  %v11687_v26 = vpop.f32.mrb[53].mxu1  ;;  %v11700_v58 = vadd.f32 %v11685_v27, %v17418_v6 }
 0xb56   : > { %v11699_v40 = vadd.f32 %v11644_v37, %v17416_v5  ;;  %v11646_v42 = vpop.f32.mrb[54].mxu0  ;;  %v11689_v30 = vpop.f32.mrb[54].mxu1  ;;  %v11701_v10 = vadd.f32 %v11687_v26, %v17424_v18 }
 0xb57   : > { %16559 = vtanh.f32 %v11698_v61  ;;  %v11706_v53 = vadd.f32 %v11646_v42, %v17414_v4  ;;  %v11648_v12 = vpop.f32.mrb[55].mxu0  ;;  %v11691_v2 = vpop.f32.mrb[55].mxu1  ;;  %v11708_v63 = vadd.f32 %v11689_v30, %v17418_v6  ;;  %v11746_v36 = vmul.f32 0.5, %v11700_v58 }
 0xb58   : > { %16561 = vtanh.f32 %v11699_v40  ;;  %v11707_v59 = vadd.f32 %v11648_v12, %v17416_v5  ;;  %v11709_v17 = vadd.f32 %v11691_v2, %v17424_v18  ;;  %v16558_v27 = vpop.eup %16557  ;;  %v11739_v61 = vadd.f32 0.5, %v11735_v50 }
 0xb59   : > { %16563 = vtanh.f32 %v11706_v53  ;;  %v11748_v24 = vmul.f32 0.5, %v11708_v63  ;;  %v11747_v37 = vmul.f32 0.5, %v11701_v10  ;;  %v11720_v40 = vmul.f32 0.5, %v16554_v15 }
 0xb5a   : > { %16565 = vtanh.f32 %v11707_v59  ;;  %v11737_v42 = vmul.f32 0.5, %v16556_v19  ;;  %v11749_v30 = vmul.f32 0.5, %v11709_v17  ;;  %v11762_v53 = vmul.f32 %v11738_v48, %v17814_v0 }
 0xb5b   : > { %v11723_v12 = vadd.f32 0.5, %v11719_v25  ;;  %16567 = vtanh.f32 %v11746_v36  ;;  %v11721_v11 = vmul.f32 0.5, %v16558_v27  ;;  %v11763_v58 = vmul.f32 %v11739_v61, %v17816_v21 }
 0xb5c   : > { %16569 = vtanh.f32 %v11748_v24  ;;  %v11724_v62 = vadd.f32 0.5, %v11720_v40  ;;  %v11741_v63 = vadd.f32 0.5, %v11737_v42  ;;  %v11764_v0 = vmul.f32 %v11740_v32, %v17821_v23 }
 0xb5d   : > { %16571 = vtanh.f32 %v11747_v37  ;;  %v11725_v15 = vadd.f32 0.5, %v11721_v11 }
 0xb5e   : > { %16573 = vtanh.f32 %v11749_v30  ;;  %v11765_v19 = vmul.f32 %v11741_v63, %v17825_v29  ;;  %v11870_v63 = vld [vmem:[#allocation13 + $0x70] sm:$0xff] }
 0xb61   : > { %v16560_v26 = vpop.eup %16559 }
 0xb62   : > { %v16562_v2 = vpop.eup %16561  ;;  %v11766_v54 = vmul.f32 %v16560_v26, %v11722_v39 }
 0xb63   : > { %v11767_v59 = vmul.f32 %v16562_v2, %v11723_v12  ;;  %v16564_v50 = vpop.eup %16563 }
 0xb64   : > { %v17891_v35 = vadd.f32 %v11766_v54, %v11762_v53  ;;  %v11768_v31 = vmul.f32 %v16564_v50, %v11724_v62  ;;  %v16566_v17 = vpop.eup %16565  ;;  %v11866_v62 = vld [vmem:[#allocation13 + $0x50] sm:$0xff]  ;;  %v11867_v50 = vld [vmem:[#allocation13 + $0x58] sm:$0xff] }
 0xb65   : > { %v17893_v10 = vadd.f32 %v11767_v59, %v11763_v58  ;;  %v11769_v48 = vmul.f32 %v16566_v17, %v11725_v15  ;;  %v16568_v36 = vpop.eup %16567  ;;  %v15661_v17 = vcombine.high %v11866_v62, %v11870_v63 }
 0xb66   : > { %16575 = vtanh.f32 %v17891_v35  ;;  %v17898_v21 = vadd.f32 %v11768_v31, %v11764_v0  ;;  %v16570_v3 = vpop.eup %16569  ;;  %v11754_v27 = vmul.f32 0.5, %v16568_v36  ;;  %v11871_v0 = vld [vmem:[#allocation13 + $0x78] sm:$0xff]  ;;  %v11874_v31 = vld [vmem:[#allocation13 + $0x90] sm:$0xff] }
 0xb67   : > { %16577 = vtanh.f32 %v17893_v10  ;;  %v17902_v25 = vadd.f32 %v11769_v48, %v11765_v19  ;;  %v16572_v23 = vpop.eup %16571  ;;  %v11756_v61 = vmul.f32 0.5, %v16570_v3  ;;  %v15663_v19 = vcombine.high %v11867_v50, %v11871_v0  ;;  %v11878_v48 = vld [vmem:[#allocation13 + $0xb0] sm:$0xff]  ;;  %v11875_v36 = vld [vmem:[#allocation13 + $0x98] sm:$0xff] }
 0xb68   : > { %16579 = vtanh.f32 %v17898_v21  ;;  %v16574_v24 = vpop.eup %16573  ;;  %v11755_v29 = vmul.f32 0.5, %v16572_v23  ;;  %v11758_v42 = vadd.f32 0.5, %v11754_v27  ;;  %v11879_v3 = vld [vmem:[#allocation13 + $0xb8] sm:$0xff]  ;;  %v15660_v23 = vcombine.low %v11866_v62, %v11870_v63 }
 0xb69   : > { %16581 = vtanh.f32 %v17902_v25  ;;  %v11757_v37 = vmul.f32 0.5, %v16574_v24  ;;  %v11760_v30 = vadd.f32 0.5, %v11756_v61  ;;  %v15662_v24 = vcombine.low %v11867_v50, %v11871_v0 }
 0xb6a   : > { %v11759_v12 = vadd.f32 0.5, %v11755_v29  ;;  %v15669_v27 = vcombine.high %v11874_v31, %v11878_v48  ;;  %v15671_v61 = vcombine.high %v11875_v36, %v11879_v3  ;;  %v11882_v29 = vld [vmem:[#allocation13 + $0xd0] sm:$0xff]  ;;  %v15668_v8 = vcombine.low %v11874_v31, %v11878_v48  ;;  %v11911_v48 = vld [vmem:[#allocation13 + $0x1b8] sm:$0xff] }
 0xb6b   : > { %v11761_v32 = vadd.f32 0.5, %v11757_v37  ;;  %v11886_v37 = vld [vmem:[#allocation13 + $0xf0] sm:$0xff]  ;;  %v15670_v20 = vcombine.low %v11875_v36, %v11879_v3 }
 0xb6c   : > { %v15677_v14 = vcombine.high %v11882_v29, %v11886_v37  ;;  %v11906_v31 = vld [vmem:[#allocation13 + $0x190] sm:$0xff] }
 0xb70   : > { %v16576_v39 = vpop.eup %16575 }
 0xb71   : > { %v16578_v40 = vpop.eup %16577  ;;  %v11778_v53 = vmul.f32 %v16576_v39, %v11758_v42  ;;  %v11883_v39 = vld [vmem:[#allocation13 + $0xd8] sm:$0xff] }
 0xb72   : > { %v16580_v26 = vpop.eup %16579  ;;  %v11779_v54 = vmul.f32 %v16578_v40, %v11759_v12  ;;  %v11887_v40 = vld [vmem:[#allocation13 + $0xf8] sm:$0xff] }
 0xb73   : > { %v11780_v2 = vmul.f32 %v16580_v26, %v11760_v30  ;;  %v16582_v11 = vpop.eup %16581  ;;  %v15679_v43 = vcombine.high %v11883_v39, %v11887_v40  ;;  %v11891_v42 = vld [vmem:[#allocation13 + $0x118] sm:$0xff]  ;;  %v15676_v26 = vcombine.low %v11882_v29, %v11886_v37 }
 0xb74   : > { %v11781_v59 = vmul.f32 %v16582_v11, %v11761_v32  ;;  %v11895_v30 = vld [vmem:[#allocation13 + $0x138] sm:$0xff]  ;;  %v11898_v32 = vld [vmem:[#allocation13 + $0x150] sm:$0xff] }
 0xb75   : > { %v17905_v58 = vpack.c.bf16 %v11780_v2, %v11778_v53  ;;  %v15678_v53 = vcombine.low %v11883_v39, %v11887_v40  ;;  %v15687_v2 = vcombine.high %v11891_v42, %v11895_v30  ;;  %v11902_v11 = vld [vmem:[#allocation13 + $0x170] sm:$0xff]  ;;  %v15686_v63 = vcombine.low %v11891_v42, %v11895_v30  ;;  %v11915_v29 = vld [vmem:[#allocation13 + $0x1d8] sm:$0xff] }
 0xb76   : > { %v17907_v15 = vpack.c.bf16 %v11781_v59, %v11779_v54  ;;  %v11899_v54 = vld [vmem:[#allocation13 + $0x158] sm:$0xff]  ;;  %v15693_v50 = vcombine.high %v11898_v32, %v11902_v11  ;;  %v15692_v36 = vcombine.low %v11898_v32, %v11902_v11 }
 0xb77   : > { %v11903_v59 = vld [vmem:[#allocation13 + $0x178] sm:$0xff] }
 0xb78   : > { %12656 = vmatprep.mubr.bf16.mxu0 %v17907_v15  ;;  %12699 = vmatprep.mubr.bf16.mxu1 %v17907_v15  ;;  %v15695_v0 = vcombine.high %v11899_v54, %v11903_v59  ;;  %v15694_v3 = vcombine.low %v11899_v54, %v11903_v59  ;;  %v11919_v37 = vld [vmem:[#allocation13 + $0x1f8] sm:$0xff] }
 0xb79   : > { %12657 = vmatmul.mubr.bf16.vlgmr.msra.gmra.mrb[56].mxu0 %v17905_v58  ;;  %12700 = vmatmul.mubr.bf16.vlgmr.msra.gmra.mrb[56].mxu1 %v17905_v58  ;;  %v15710_v30 = vcombine.low %v11915_v29, %v11919_v37  ;;  %v11931_v32 = vld [vmem:[#allocation13 + $0x258] sm:$0xff] }
 0xb7a   : > { %12711 = vmatpush1.bf16.msra.mxu0 %v15652_v33  ;;  %12754 = vmatpush1.bf16.msra.mxu1 %v15654_v52  ;;  %v11890_v33 = vld [vmem:[#allocation13 + $0x110] sm:$0xff]  ;;  %v11935_v11 = vld [vmem:[#allocation13 + $0x278] sm:$0xff] }
 0xb7b   : > { %12742 = vmatprep.mubr.bf16.mxu0 %v17907_v15  ;;  %12785 = vmatprep.mubr.bf16.mxu1 %v17907_v15  ;;  %v11894_v52 = vld [vmem:[#allocation13 + $0x130] sm:$0xff] }
 0xb7c   : > { %12712 = vmatprep.subr.bf16.mxu0 %v15661_v17  ;;  %12755 = vmatprep.subr.bf16.mxu1 %v15663_v19  ;;  %v15685_v12 = vcombine.high %v11890_v33, %v11894_v52  ;;  %v15684_v62 = vcombine.low %v11890_v33, %v11894_v52  ;;  %v11910_v17 = vld [vmem:[#allocation13 + $0x1b0] sm:$0xff]  ;;  %v11907_v19 = vld [vmem:[#allocation13 + $0x198] sm:$0xff] }
 0xb7d   : > { %v15700_v39 = vcombine.low %v11906_v31, %v11910_v17  ;;  %v15702_v40 = vcombine.low %v11907_v19, %v11911_v48  ;;  %v11923_v33 = vld [vmem:[#allocation13 + $0x218] sm:$0xff] }
 0xb7e   : > { %12713 = vmatpush1.bf16.msra.mxu0 %v15660_v23  ;;  %12756 = vmatpush1.bf16.msra.mxu1 %v15662_v24  ;;  %v15701_v23 = vcombine.high %v11906_v31, %v11910_v17  ;;  %v15703_v24 = vcombine.high %v11907_v19, %v11911_v48  ;;  %v11927_v52 = vld [vmem:[#allocation13 + $0x238] sm:$0xff]  ;;  %v15726_v48 = vcombine.low %v11931_v32, %v11935_v11 }
 0xb7f   : > { %12714 = vmatprep.subr.bf16.mxu0 %v15669_v27  ;;  %12757 = vmatprep.subr.bf16.mxu1 %v15671_v61  ;;  %v11914_v27 = vld [vmem:[#allocation13 + $0x1d0] sm:$0xff]  ;;  %v15718_v59 = vcombine.low %v11923_v33, %v11927_v52  ;;  %v11939_v31 = vld [vmem:[#allocation13 + $0x298] sm:$0xff] }
 0xb80   : > { %v11918_v61 = vld [vmem:[#allocation13 + $0x1f0] sm:$0xff]  ;;  %v11943_v17 = vld [vmem:[#allocation13 + $0x2b8] sm:$0xff] }
 0xb81   : > { %v15708_v42 = vcombine.low %v11914_v27, %v11918_v61 }
 0xb82   : > { %12715 = vmatpush1.bf16.msra.mxu0 %v15668_v8  ;;  %12758 = vmatpush1.bf16.msra.mxu1 %v15670_v20  ;;  %v15709_v8 = vcombine.high %v11914_v27, %v11918_v61  ;;  %v15711_v20 = vcombine.high %v11915_v29, %v11919_v37  ;;  %v11947_v27 = vld [vmem:[#allocation13 + $0x2d8] sm:$0xff]  ;;  %v15734_v37 = vcombine.low %v11939_v31, %v11943_v17 }
 0xb83   : > { %12716 = vmatprep.subr.bf16.mxu0 %v15677_v14  ;;  %12759 = vmatprep.subr.bf16.mxu1 %v15679_v43  ;;  %v11922_v14 = vld [vmem:[#allocation13 + $0x210] sm:$0xff]  ;;  %v11951_v61 = vld [vmem:[#allocation13 + $0x2f8] sm:$0xff] }
 0xb84   : > { %v11926_v43 = vld [vmem:[#allocation13 + $0x230] sm:$0xff] }
 0xb85   : > { %v15716_v54 = vcombine.low %v11922_v14, %v11926_v43 }
 0xb86   : > { %12717 = vmatpush1.bf16.msra.mxu0 %v15676_v26  ;;  %12760 = vmatpush1.bf16.msra.mxu1 %v15678_v53  ;;  %v15717_v26 = vcombine.high %v11922_v14, %v11926_v43  ;;  %v15719_v53 = vcombine.high %v11923_v33, %v11927_v52  ;;  %v11955_v14 = vld [vmem:[#allocation13 + $0x318] sm:$0xff]  ;;  %v15742_v52 = vcombine.low %v11947_v27, %v11951_v61 }
 0xb87   : > { %12718 = vmatprep.subr.bf16.mxu0 %v15685_v12  ;;  %12761 = vmatprep.subr.bf16.mxu1 %v15687_v2  ;;  %v11930_v12 = vld [vmem:[#allocation13 + $0x250] sm:$0xff]  ;;  %v11959_v43 = vld [vmem:[#allocation13 + $0x338] sm:$0xff] }
 0xb88   : > { %v11934_v2 = vld [vmem:[#allocation13 + $0x270] sm:$0xff] }
 0xb89   : > { %v15724_v19 = vcombine.low %v11930_v12, %v11934_v2 }
 0xb8a   : > { %12719 = vmatpush1.bf16.msra.mxu0 %v15684_v62  ;;  %12762 = vmatpush1.bf16.msra.mxu1 %v15686_v63  ;;  %v15725_v62 = vcombine.high %v11930_v12, %v11934_v2  ;;  %v15727_v63 = vcombine.high %v11931_v32, %v11935_v11  ;;  %v11963_v12 = vld [vmem:[#allocation13 + $0x358] sm:$0xff]  ;;  %v15750_v11 = vcombine.low %v11955_v14, %v11959_v43 }
 0xb8b   : > { %12720 = vmatprep.subr.bf16.mxu0 %v15693_v50  ;;  %12763 = vmatprep.subr.bf16.mxu1 %v15695_v0  ;;  %v11938_v50 = vld [vmem:[#allocation13 + $0x290] sm:$0xff]  ;;  %v11967_v2 = vld [vmem:[#allocation13 + $0x378] sm:$0xff] }
 0xb8c   : > { %v11942_v0 = vld [vmem:[#allocation13 + $0x2b0] sm:$0xff] }
 0xb8d   : > { %v15732_v29 = vcombine.low %v11938_v50, %v11942_v0 }
 0xb8e   : > { %12721 = vmatpush1.bf16.msra.mxu0 %v15692_v36  ;;  %12764 = vmatpush1.bf16.msra.mxu1 %v15694_v3  ;;  %v15733_v36 = vcombine.high %v11938_v50, %v11942_v0  ;;  %v15735_v3 = vcombine.high %v11939_v31, %v11943_v17  ;;  %v11971_v50 = vld [vmem:[#allocation13 + $0x398] sm:$0xff]  ;;  %v15758_v17 = vcombine.low %v11963_v12, %v11967_v2 }
 0xb8f   : > { %12722 = vmatprep.subr.bf16.mxu0 %v15701_v23  ;;  %12765 = vmatprep.subr.bf16.mxu1 %v15703_v24  ;;  %v11946_v23 = vld [vmem:[#allocation13 + $0x2d0] sm:$0xff]  ;;  %v11975_v0 = vld [vmem:[#allocation13 + $0x3b8] sm:$0xff] }
 0xb90   : > { %v11950_v24 = vld [vmem:[#allocation13 + $0x2f0] sm:$0xff] }
 0xb91   : > { %v15740_v33 = vcombine.low %v11946_v23, %v11950_v24 }
 0xb92   : > { %12723 = vmatpush1.bf16.msra.mxu0 %v15700_v39  ;;  %12766 = vmatpush1.bf16.msra.mxu1 %v15702_v40  ;;  %v15741_v39 = vcombine.high %v11946_v23, %v11950_v24  ;;  %v15743_v40 = vcombine.high %v11947_v27, %v11951_v61  ;;  %v11979_v23 = vld [vmem:[#allocation13 + $0x3d8] sm:$0xff]  ;;  %v15766_v61 = vcombine.low %v11971_v50, %v11975_v0 }
 0xb93   : > { %12724 = vmatprep.subr.bf16.mxu0 %v15709_v8  ;;  %12767 = vmatprep.subr.bf16.mxu1 %v15711_v20  ;;  %v11954_v8 = vld [vmem:[#allocation13 + $0x310] sm:$0xff]  ;;  %v11983_v24 = vld [vmem:[#allocation13 + $0x3f8] sm:$0xff] }
 0xb94   : > { %v11958_v20 = vld [vmem:[#allocation13 + $0x330] sm:$0xff] }
 0xb95   : > { %v15748_v32 = vcombine.low %v11954_v8, %v11958_v20 }
 0xb96   : > { %12725 = vmatpush1.bf16.msra.mxu0 %v15708_v42  ;;  %12768 = vmatpush1.bf16.msra.mxu1 %v15710_v30  ;;  %v15749_v42 = vcombine.high %v11954_v8, %v11958_v20  ;;  %v15751_v30 = vcombine.high %v11955_v14, %v11959_v43  ;;  %v11791_v8 = vld [vmem:[#allocation11 + $0x8] sm:$0xff]  ;;  %v15774_v43 = vcombine.low %v11979_v23, %v11983_v24 }
 0xb97   : > { %12726 = vmatprep.subr.bf16.mxu0 %v15717_v26  ;;  %12769 = vmatprep.subr.bf16.mxu1 %v15719_v53  ;;  %v11962_v26 = vld [vmem:[#allocation13 + $0x350] sm:$0xff]  ;;  %v11795_v20 = vld [vmem:[#allocation11 + $0x28] sm:$0xff] }
 0xb98   : > { %v11966_v53 = vld [vmem:[#allocation13 + $0x370] sm:$0xff] }
 0xb99   : > { %v15756_v31 = vcombine.low %v11962_v26, %v11966_v53 }
 0xb9a   : > { %12727 = vmatpush1.bf16.msra.mxu0 %v15716_v54  ;;  %12770 = vmatpush1.bf16.msra.mxu1 %v15718_v59  ;;  %v15757_v54 = vcombine.high %v11962_v26, %v11966_v53  ;;  %v15759_v59 = vcombine.high %v11963_v12, %v11967_v2  ;;  %v11799_v26 = vld [vmem:[#allocation11 + $0x48] sm:$0xff]  ;;  %v15779_v2 = vcombine.low %v11791_v8, %v11795_v20 }
 0xb9b   : > { %12728 = vmatprep.subr.bf16.mxu0 %v15725_v62  ;;  %12771 = vmatprep.subr.bf16.mxu1 %v15727_v63  ;;  %v11970_v62 = vld [vmem:[#allocation13 + $0x390] sm:$0xff]  ;;  %v11803_v53 = vld [vmem:[#allocation11 + $0x68] sm:$0xff] }
 0xb9c   : > { %v11974_v63 = vld [vmem:[#allocation13 + $0x3b0] sm:$0xff] }
 0xb9d   : > { %v15764_v27 = vcombine.low %v11970_v62, %v11974_v63 }
 0xb9e   : > { %12729 = vmatpush1.bf16.msra.mxu0 %v15724_v19  ;;  %12772 = vmatpush1.bf16.msra.mxu1 %v15726_v48  ;;  %v15765_v19 = vcombine.high %v11970_v62, %v11974_v63  ;;  %v15767_v48 = vcombine.high %v11971_v50, %v11975_v0  ;;  %v11807_v62 = vld [vmem:[#allocation11 + $0x88] sm:$0xff]  ;;  %v15787_v0 = vcombine.low %v11799_v26, %v11803_v53 }
 0xb9f   : > { %12730 = vmatprep.subr.bf16.mxu0 %v15733_v36  ;;  %12773 = vmatprep.subr.bf16.mxu1 %v15735_v3  ;;  %v11978_v36 = vld [vmem:[#allocation13 + $0x3d0] sm:$0xff]  ;;  %v11811_v63 = vld [vmem:[#allocation11 + $0xa8] sm:$0xff] }
 0xba0   : > { %v11982_v3 = vld [vmem:[#allocation13 + $0x3f0] sm:$0xff] }
 0xba1   : > { %v15772_v14 = vcombine.low %v11978_v36, %v11982_v3 }
 0xba2   : > { %12731 = vmatpush1.bf16.msra.mxu0 %v15732_v29  ;;  %12774 = vmatpush1.bf16.msra.mxu1 %v15734_v37  ;;  %v15773_v29 = vcombine.high %v11978_v36, %v11982_v3  ;;  %v15775_v37 = vcombine.high %v11979_v23, %v11983_v24  ;;  %v11815_v36 = vld [vmem:[#allocation11 + $0xc8] sm:$0xff]  ;;  %v15795_v24 = vcombine.low %v11807_v62, %v11811_v63 }
 0xba3   : > { %12732 = vmatprep.subr.bf16.mxu0 %v15741_v39  ;;  %12775 = vmatprep.subr.bf16.mxu1 %v15743_v40  ;;  %v11790_v39 = vld [vmem:[#allocation11] sm:$0xff]  ;;  %v11819_v3 = vld [vmem:[#allocation11 + $0xe8] sm:$0xff] }
 0xba4   : > { %v11794_v40 = vld [vmem:[#allocation11 + $0x20] sm:$0xff] }
 0xba5   : > { %v15777_v12 = vcombine.low %v11790_v39, %v11794_v40 }
 0xba6   : > { %12733 = vmatpush1.bf16.msra.mxu0 %v15740_v33  ;;  %12776 = vmatpush1.bf16.msra.mxu1 %v15742_v52  ;;  %v15778_v33 = vcombine.high %v11790_v39, %v11794_v40  ;;  %v15780_v52 = vcombine.high %v11791_v8, %v11795_v20  ;;  %v11823_v39 = vld [vmem:[#allocation11 + $0x108] sm:$0xff]  ;;  %v15803_v20 = vcombine.low %v11815_v36, %v11819_v3 }
 0xba7   : > { %12734 = vmatprep.subr.bf16.mxu0 %v15749_v42  ;;  %12777 = vmatprep.subr.bf16.mxu1 %v15751_v30  ;;  %v11798_v42 = vld [vmem:[#allocation11 + $0x40] sm:$0xff]  ;;  %v11827_v40 = vld [vmem:[#allocation11 + $0x128] sm:$0xff] }
 0xba8   : > { %v11802_v30 = vld [vmem:[#allocation11 + $0x60] sm:$0xff] }
 0xba9   : > { %v15785_v50 = vcombine.low %v11798_v42, %v11802_v30 }
 0xbaa   : > { %12735 = vmatpush1.bf16.msra.mxu0 %v15748_v32  ;;  %12778 = vmatpush1.bf16.msra.mxu1 %v15750_v11  ;;  %v15786_v32 = vcombine.high %v11798_v42, %v11802_v30  ;;  %v15788_v11 = vcombine.high %v11799_v26, %v11803_v53  ;;  %v11831_v42 = vld [vmem:[#allocation11 + $0x148] sm:$0xff]  ;;  %v15811_v53 = vcombine.low %v11823_v39, %v11827_v40 }
 0xbab   : > { %12736 = vmatprep.subr.bf16.mxu0 %v15757_v54  ;;  %12779 = vmatprep.subr.bf16.mxu1 %v15759_v59  ;;  %v11806_v54 = vld [vmem:[#allocation11 + $0x80] sm:$0xff]  ;;  %v11835_v30 = vld [vmem:[#allocation11 + $0x168] sm:$0xff] }
 0xbac   : > { %v11810_v59 = vld [vmem:[#allocation11 + $0xa0] sm:$0xff] }
 0xbad   : > { %v15793_v23 = vcombine.low %v11806_v54, %v11810_v59 }
 0xbae   : > { %12737 = vmatpush1.bf16.msra.mxu0 %v15756_v31  ;;  %12780 = vmatpush1.bf16.msra.mxu1 %v15758_v17  ;;  %v15794_v31 = vcombine.high %v11806_v54, %v11810_v59  ;;  %v15796_v17 = vcombine.high %v11807_v62, %v11811_v63  ;;  %v11839_v54 = vld [vmem:[#allocation11 + $0x188] sm:$0xff]  ;;  %v15819_v63 = vcombine.low %v11831_v42, %v11835_v30 }
 0xbaf   : > { %12738 = vmatprep.subr.bf16.mxu0 %v15765_v19  ;;  %12781 = vmatprep.subr.bf16.mxu1 %v15767_v48  ;;  %v11814_v19 = vld [vmem:[#allocation11 + $0xc0] sm:$0xff]  ;;  %v11843_v59 = vld [vmem:[#allocation11 + $0x1a8] sm:$0xff] }
 0xbb0   : > { %v11818_v48 = vld [vmem:[#allocation11 + $0xe0] sm:$0xff] }
 0xbb1   : > { %v15801_v8 = vcombine.low %v11814_v19, %v11818_v48 }
 0xbb2   : > { %12739 = vmatpush1.bf16.msra.mxu0 %v15764_v27  ;;  %12782 = vmatpush1.bf16.msra.mxu1 %v15766_v61  ;;  %v15802_v27 = vcombine.high %v11814_v19, %v11818_v48  ;;  %v15804_v61 = vcombine.high %v11815_v36, %v11819_v3  ;;  %v11847_v19 = vld [vmem:[#allocation11 + $0x1c8] sm:$0xff]  ;;  %v15827_v3 = vcombine.low %v11839_v54, %v11843_v59 }
 0xbb3   : > { %12740 = vmatprep.subr.bf16.mxu0 %v15773_v29  ;;  %12783 = vmatprep.subr.bf16.mxu1 %v15775_v37  ;;  %v11822_v29 = vld [vmem:[#allocation11 + $0x100] sm:$0xff]  ;;  %v11851_v48 = vld [vmem:[#allocation11 + $0x1e8] sm:$0xff] }
 0xbb4   : > { %v11826_v37 = vld [vmem:[#allocation11 + $0x120] sm:$0xff] }
 0xbb5   : > { %v15809_v26 = vcombine.low %v11822_v29, %v11826_v37 }
 0xbb6   : > { %12741 = vmatpush1.bf16.msra.mxu0 %v15772_v14  ;;  %12784 = vmatpush1.bf16.msra.mxu1 %v15774_v43  ;;  %v15810_v14 = vcombine.high %v11822_v29, %v11826_v37  ;;  %v15812_v43 = vcombine.high %v11823_v39, %v11827_v40  ;;  %v11793_v29 = vld [vmem:[#allocation11 + $0x18] sm:$0xff]  ;;  %v15835_v40 = vcombine.low %v11847_v19, %v11851_v48 }
 0xbb7   : > { %13122 = vmatprep.subr.bf16.mxu0 %v15778_v33  ;;  %13165 = vmatprep.subr.bf16.mxu1 %v15780_v52  ;;  %v11830_v33 = vld [vmem:[#allocation11 + $0x140] sm:$0xff]  ;;  %v11797_v37 = vld [vmem:[#allocation11 + $0x38] sm:$0xff] }
 0xbb8   : > { %v11834_v52 = vld [vmem:[#allocation11 + $0x160] sm:$0xff] }
 0xbb9   : > { %12743 = vmatmul.mubr.bf16.vlgmr.msra.gmra.mrb[60].mxu0 %v17905_v58  ;;  %12786 = vmatmul.mubr.bf16.vlgmr.msra.gmra.mrb[60].mxu1 %v17905_v58  ;;  %v15817_v62 = vcombine.low %v11830_v33, %v11834_v52 }
 0xbba   : > { %13123 = vmatpush1.bf16.msra.mxu0 %v15777_v12  ;;  %13166 = vmatpush1.bf16.msra.mxu1 %v15779_v2  ;;  %v15818_v12 = vcombine.high %v11830_v33, %v11834_v52  ;;  %v15820_v2 = vcombine.high %v11831_v42, %v11835_v30  ;;  %v11801_v33 = vld [vmem:[#allocation11 + $0x58] sm:$0xff] }
 0xbbb   : > { %13124 = vmatprep.subr.bf16.mxu0 %v15786_v32  ;;  %13167 = vmatprep.subr.bf16.mxu1 %v15788_v11  ;;  %v11838_v32 = vld [vmem:[#allocation11 + $0x180] sm:$0xff]  ;;  %v11805_v52 = vld [vmem:[#allocation11 + $0x78] sm:$0xff] }
 0xbbc   : > { %13154 = vmatprep.mubr.bf16.mxu0 %v16972_v41  ;;  %13197 = vmatprep.mubr.bf16.mxu1 %v16972_v41  ;;  %v11842_v11 = vld [vmem:[#allocation11 + $0x1a0] sm:$0xff]  ;;  %v17926_v42 = vld [vmem:[%s17320_s9 + $0x38] sm:$0xff]  }
 0xbbd   : > { %v15825_v36 = vcombine.low %v11838_v32, %v11842_v11 }
 0xbbe   : > { %13125 = vmatpush1.bf16.msra.mxu0 %v15785_v50  ;;  %13168 = vmatpush1.bf16.msra.mxu1 %v15787_v0  ;;  %v15826_v50 = vcombine.high %v11838_v32, %v11842_v11  ;;  %v15828_v0 = vcombine.high %v11839_v54, %v11843_v59  ;;  %v11812_v32 = vld [vmem:[#allocation11 + $0xb0] sm:$0xff]  ;;  %v11809_v11 = vld [vmem:[#allocation11 + $0x98] sm:$0xff] }
 0xbbf   : > { %13126 = vmatprep.subr.bf16.mxu0 %v15794_v31  ;;  %13169 = vmatprep.subr.bf16.mxu1 %v15796_v17  ;;  %v11846_v31 = vld [vmem:[#allocation11 + $0x1c0] sm:$0xff]  ;;  %v11813_v54 = vld [vmem:[#allocation11 + $0xb8] sm:$0xff] }
 0xbc0   : > { %v11850_v17 = vld [vmem:[#allocation11 + $0x1e0] sm:$0xff] }
 0xbc1   : > { %v15833_v39 = vcombine.low %v11846_v31, %v11850_v17 }
 0xbc2   : > { %13127 = vmatpush1.bf16.msra.mxu0 %v15793_v23  ;;  %13170 = vmatpush1.bf16.msra.mxu1 %v15795_v24  ;;  %v15834_v23 = vcombine.high %v11846_v31, %v11850_v17  ;;  %v15836_v24 = vcombine.high %v11847_v19, %v11851_v48  ;;  %v11820_v31 = vld [vmem:[#allocation11 + $0xf0] sm:$0xff]  ;;  %v11817_v17 = vld [vmem:[#allocation11 + $0xd8] sm:$0xff] }
 0xbc3   : > { %13128 = vmatprep.subr.bf16.mxu0 %v15802_v27  ;;  %13171 = vmatprep.subr.bf16.mxu1 %v15804_v61  ;;  %v11792_v27 = vld [vmem:[#allocation11 + $0x10] sm:$0xff]  ;;  %v11821_v19 = vld [vmem:[#allocation11 + $0xf8] sm:$0xff] }
 0xbc4   : > { %v11796_v61 = vld [vmem:[#allocation11 + $0x30] sm:$0xff] }
 0xbc5   : > { %v15781_v30 = vcombine.low %v11792_v27, %v11796_v61 }
 0xbc6   : > { %13129 = vmatpush1.bf16.msra.mxu0 %v15801_v8  ;;  %13172 = vmatpush1.bf16.msra.mxu1 %v15803_v20  ;;  %v15782_v8 = vcombine.high %v11792_v27, %v11796_v61  ;;  %v15784_v20 = vcombine.high %v11793_v29, %v11797_v37  ;;  %v11828_v27 = vld [vmem:[#allocation11 + $0x130] sm:$0xff]  ;;  %v11825_v61 = vld [vmem:[#allocation11 + $0x118] sm:$0xff] }
 0xbc7   : > { %13130 = vmatprep.subr.bf16.mxu0 %v15810_v14  ;;  %13173 = vmatprep.subr.bf16.mxu1 %v15812_v43  ;;  %v11800_v14 = vld [vmem:[#allocation11 + $0x50] sm:$0xff] }
 0xbc8   : > { %v11804_v43 = vld [vmem:[#allocation11 + $0x70] sm:$0xff] }
 0xbc9   : > { %v15789_v59 = vcombine.low %v11800_v14, %v11804_v43 }
 0xbca   : > { %13131 = vmatpush1.bf16.msra.mxu0 %v15809_v26  ;;  %13174 = vmatpush1.bf16.msra.mxu1 %v15811_v53  ;;  %v15783_v26 = vcombine.low %v11793_v29, %v11797_v37  ;;  %v15790_v53 = vcombine.high %v11800_v14, %v11804_v43  ;;  %v11829_v29 = vld [vmem:[#allocation11 + $0x138] sm:$0xff] }
 0xbcb   : > { %13132 = vmatprep.subr.bf16.mxu0 %v15818_v12  ;;  %13175 = vmatprep.subr.bf16.mxu1 %v15820_v2  ;;  %v15792_v12 = vcombine.high %v11801_v33, %v11805_v52  ;;  %v11808_v2 = vld [vmem:[#allocation11 + $0x90] sm:$0xff]  ;;  %v11833_v14 = vld [vmem:[#allocation11 + $0x158] sm:$0xff] }
 0xbcc   : > { %v15797_v48 = vcombine.low %v11808_v2, %v11812_v32  ;;  %v11837_v43 = vld [vmem:[#allocation11 + $0x178] sm:$0xff] }
 0xbce   : > { %13133 = vmatpush1.bf16.msra.mxu0 %v15817_v62  ;;  %13176 = vmatpush1.bf16.msra.mxu1 %v15819_v63  ;;  %v15791_v62 = vcombine.low %v11801_v33, %v11805_v52  ;;  %v15798_v63 = vcombine.high %v11808_v2, %v11812_v32  ;;  %v15815_v52 = vcombine.low %v11825_v61, %v11829_v29  ;;  %v11841_v2 = vld [vmem:[#allocation11 + $0x198] sm:$0xff] }
 0xbcf   : > { %13134 = vmatprep.subr.bf16.mxu0 %v15826_v50  ;;  %13177 = vmatprep.subr.bf16.mxu1 %v15828_v0  ;;  %v15800_v50 = vcombine.high %v11809_v11, %v11813_v54  ;;  %v11816_v0 = vld [vmem:[#allocation11 + $0xd0] sm:$0xff]  ;;  %v11845_v32 = vld [vmem:[#allocation11 + $0x1b8] sm:$0xff] }
 0xbd0   : > { %v15805_v37 = vcombine.low %v11816_v0, %v11820_v31 }
 0xbd2   : > { %13135 = vmatpush1.bf16.msra.mxu0 %v15825_v36  ;;  %13178 = vmatpush1.bf16.msra.mxu1 %v15827_v3  ;;  %v15799_v36 = vcombine.low %v11809_v11, %v11813_v54  ;;  %v15806_v3 = vcombine.high %v11816_v0, %v11820_v31  ;;  %v15823_v54 = vcombine.low %v11833_v14, %v11837_v43  ;;  %v11849_v0 = vld [vmem:[#allocation11 + $0x1d8] sm:$0xff] }
 0xbd3   : > { %13136 = vmatprep.subr.bf16.mxu0 %v15834_v23  ;;  %13179 = vmatprep.subr.bf16.mxu1 %v15836_v24  ;;  %v15808_v23 = vcombine.high %v11817_v17, %v11821_v19  ;;  %v11824_v24 = vld [vmem:[#allocation11 + $0x110] sm:$0xff]  ;;  %v11853_v31 = vld [vmem:[#allocation11 + $0x1f8] sm:$0xff] }
 0xbd4   : > { %v15813_v33 = vcombine.low %v11824_v24, %v11828_v27 }
 0xbd6   : > { %13137 = vmatpush1.bf16.msra.mxu0 %v15833_v39  ;;  %13180 = vmatpush1.bf16.msra.mxu1 %v15835_v40  ;;  %v15807_v39 = vcombine.low %v11817_v17, %v11821_v19  ;;  %v15814_v40 = vcombine.high %v11824_v24, %v11828_v27  ;;  %v15831_v19 = vcombine.low %v11841_v2, %v11845_v32  ;;  %v16241_v24 = vld [vmem:[#allocation14 + $0x4] ss:$8 sps:$4 sm:$0xff]   ;;  %v16239_v27 = vld [vmem:[#allocation14] ss:$8 sps:$4 sm:$0xff]  }
 0xbd7   : > { %13208 = vmatprep.subr.bf16.mxu0 %v15782_v8  ;;  %13251 = vmatprep.subr.bf16.mxu1 %v15784_v20  ;;  %v11832_v8 = vld [vmem:[#allocation11 + $0x150] sm:$0xff] }
 0xbd8   : > { %v11836_v20 = vld [vmem:[#allocation11 + $0x170] sm:$0xff] }
 0xbd9   : > { %13155 = vmatmul.mubr.bf16.vlgmr.msra.gmra.mrb[56].mxu0 %v17926_v42  ;;  %13198 = vmatmul.mubr.bf16.vlgmr.msra.gmra.mrb[56].mxu1 %v17926_v42  ;;  %v15821_v11 = vcombine.low %v11832_v8, %v11836_v20 }
 0xbda   : > { %13209 = vmatpush1.bf16.msra.mxu0 %v15781_v30  ;;  %13252 = vmatpush1.bf16.msra.mxu1 %v15783_v26  ;;  %v15822_v30 = vcombine.high %v11832_v8, %v11836_v20  ;;  %v15824_v26 = vcombine.high %v11833_v14, %v11837_v43  ;;  %v16253_v8 = vld [vmem:[#allocation14 + $0x44] ss:$8 sps:$4 sm:$0xff]   ;;  %v16251_v20 = vld [vmem:[#allocation14 + $0x40] ss:$8 sps:$4 sm:$0xff]   ;;  %v16256_v14 = vld [vmem:[#allocation14 + $0x54] ss:$8 sps:$4 sm:$0xff]  }
 0xbdb   : > { %13210 = vmatprep.subr.bf16.mxu0 %v15790_v53  ;;  %13253 = vmatprep.subr.bf16.mxu1 %v15792_v12  ;;  %v11840_v53 = vld [vmem:[#allocation11 + $0x190] sm:$0xff]  ;;  %v16259_v43 = vld [vmem:[#allocation14 + $0x64] ss:$8 sps:$4 sm:$0xff]  }
 0xbdc   : > { %13240 = vmatprep.mubr.bf16.mxu0 %v16972_v41  ;;  %13283 = vmatprep.mubr.bf16.mxu1 %v16972_v41  ;;  %v15816_v41 = vcombine.high %v11825_v61, %v11829_v29  ;;  %v11844_v12 = vld [vmem:[#allocation11 + $0x1b0] sm:$0xff] }
 0xbdd   : > { %v15829_v17 = vcombine.low %v11840_v53, %v11844_v12  ;;  %v16244_v61 = vld [vmem:[#allocation14 + $0x14] ss:$8 sps:$4 sm:$0xff]   ;;  %v16242_v29 = vld [vmem:[#allocation14 + $0x10] ss:$8 sps:$4 sm:$0xff]  }
 0xbde   : > { %13211 = vmatpush1.bf16.msra.mxu0 %v15789_v59  ;;  %13254 = vmatpush1.bf16.msra.mxu1 %v15791_v62  ;;  %v15830_v59 = vcombine.high %v11840_v53, %v11844_v12  ;;  %v15832_v62 = vcombine.high %v11841_v2, %v11845_v32  ;;  %v16268_v53 = vld [vmem:[#allocation14 + $0x94] ss:$8 sps:$4 sm:$0xff]   ;;  %v16266_v12 = vld [vmem:[#allocation14 + $0x90] ss:$8 sps:$4 sm:$0xff]   ;;  %v16271_v2 = vld [vmem:[#allocation14 + $0xa4] ss:$8 sps:$4 sm:$0xff]  }
 0xbdf   : > { %13212 = vmatprep.subr.bf16.mxu0 %v15798_v63  ;;  %13255 = vmatprep.subr.bf16.mxu1 %v15800_v50  ;;  %v11848_v63 = vld [vmem:[#allocation11 + $0x1d0] sm:$0xff]  ;;  %v16269_v32 = vld [vmem:[#allocation14 + $0xa0] ss:$8 sps:$4 sm:$0xff]  }
 0xbe0   : > { %v11852_v50 = vld [vmem:[#allocation11 + $0x1f0] sm:$0xff] }
 0xbe2   : > { %13213 = vmatpush1.bf16.msra.mxu0 %v15797_v48  ;;  %13256 = vmatpush1.bf16.msra.mxu1 %v15799_v36  ;;  %v15838_v48 = vcombine.high %v11848_v63, %v11852_v50  ;;  %v15840_v36 = vcombine.high %v11849_v0, %v11853_v31 }
 0xbe3   : > { %13214 = vmatprep.subr.bf16.mxu0 %v15806_v3  ;;  %13257 = vmatprep.subr.bf16.mxu1 %v15808_v23  ;;  %v15837_v3 = vcombine.low %v11848_v63, %v11852_v50  ;;  %v15839_v23 = vcombine.low %v11849_v0, %v11853_v31  ;;  %v16280_v63 = vld [vmem:[#allocation14 + $0xd4] ss:$8 sps:$4 sm:$0xff]   ;;  %v16278_v50 = vld [vmem:[#allocation14 + $0xd0] ss:$8 sps:$4 sm:$0xff]   ;;  %v16283_v0 = vld [vmem:[#allocation14 + $0xe4] ss:$8 sps:$4 sm:$0xff]  }
 0xbe4   : > { %v16281_v31 = vld [vmem:[#allocation14 + $0xe0] ss:$8 sps:$4 sm:$0xff]  }
 0xbe6   : > { %13215 = vmatpush1.bf16.msra.mxu0 %v15805_v37  ;;  %13258 = vmatpush1.bf16.msra.mxu1 %v15807_v39  ;;  %v16247_v37 = vld [vmem:[#allocation14 + $0x24] ss:$8 sps:$4 sm:$0xff]   ;;  %v16245_v39 = vld [vmem:[#allocation14 + $0x20] ss:$8 sps:$4 sm:$0xff]  }
 0xbe7   : > { %13216 = vmatprep.subr.bf16.mxu0 %v15814_v40  ;;  %13259 = vmatprep.subr.bf16.mxu1 %v15816_v41  ;;  %v16250_v40 = vld [vmem:[#allocation14 + $0x34] ss:$8 sps:$4 sm:$0xff]   ;;  %v16248_v41 = vld [vmem:[#allocation14 + $0x30] ss:$8 sps:$4 sm:$0xff]  }
 0xbea   : > { %13217 = vmatpush1.bf16.msra.mxu0 %v15813_v33  ;;  %13260 = vmatpush1.bf16.msra.mxu1 %v15815_v52  ;;  %v16262_v33 = vld [vmem:[#allocation14 + $0x74] ss:$8 sps:$4 sm:$0xff]   ;;  %v16260_v52 = vld [vmem:[#allocation14 + $0x70] ss:$8 sps:$4 sm:$0xff]  }
 0xbeb   : > { %13218 = vmatprep.subr.bf16.mxu0 %v15822_v30  ;;  %13261 = vmatprep.subr.bf16.mxu1 %v15824_v26  ;;  %v16265_v30 = vld [vmem:[#allocation14 + $0x84] ss:$8 sps:$4 sm:$0xff]   ;;  %v16263_v26 = vld [vmem:[#allocation14 + $0x80] ss:$8 sps:$4 sm:$0xff]  }
 0xbee   : > { %13219 = vmatpush1.bf16.msra.mxu0 %v15821_v11  ;;  %13262 = vmatpush1.bf16.msra.mxu1 %v15823_v54  ;;  %v16274_v11 = vld [vmem:[#allocation14 + $0xb4] ss:$8 sps:$4 sm:$0xff]   ;;  %v16272_v54 = vld [vmem:[#allocation14 + $0xb0] ss:$8 sps:$4 sm:$0xff]  }
 0xbef   : > { %13220 = vmatprep.subr.bf16.mxu0 %v15830_v59  ;;  %13263 = vmatprep.subr.bf16.mxu1 %v15832_v62  ;;  %v16277_v59 = vld [vmem:[#allocation14 + $0xc4] ss:$8 sps:$4 sm:$0xff]   ;;  %v16275_v62 = vld [vmem:[#allocation14 + $0xc0] ss:$8 sps:$4 sm:$0xff]  }
 0xbf2   : > { %13221 = vmatpush1.bf16.msra.mxu0 %v15829_v17  ;;  %13264 = vmatpush1.bf16.msra.mxu1 %v15831_v19  ;;  %v16286_v17 = vld [vmem:[#allocation14 + $0xf4] ss:$8 sps:$4 sm:$0xff]   ;;  %v16284_v19 = vld [vmem:[#allocation14 + $0xf0] ss:$8 sps:$4 sm:$0xff]  }
 0xbf3   : > { %13222 = vmatprep.subr.bf16.mxu0 %v15838_v48  ;;  %13265 = vmatprep.subr.bf16.mxu1 %v15840_v36  ;;  %v16300_v48 = vld [vmem:[#allocation16 + $0x30] sm:$0xff]   ;;  %v16301_v36 = vld [vmem:[#allocation16 + $0x78] sm:$0xff]  }
 0xbf6   : > { %13223 = vmatpush1.bf16.msra.mxu0 %v15837_v3  ;;  %13266 = vmatpush1.bf16.msra.mxu1 %v15839_v23  ;;  %v16302_v3 = vld [vmem:[#allocation16 + $0x38] sm:$0xff]  }
 0xbf7   : > { %13647 = vmatprep.subr.bf16.mxu0 %v16241_v24 }
 0xbf9   : > { %13241 = vmatmul.mubr.bf16.vlgmr.msra.gmra.mrb[60].mxu0 %v17926_v42  ;;  %13284 = vmatmul.mubr.bf16.vlgmr.msra.gmra.mrb[60].mxu1 %v17926_v42  ;;  %v16254_v42 = vld [vmem:[#allocation14 + $0x50] ss:$8 sps:$4 sm:$0xff]  }
 0xbfa   : > { %13648 = vmatpush1.bf16.msra.mxu0 %v16239_v27  ;;  %13679 = vmatprep.mubr.bf16.mxu0 %v17445_v1  ;;  %v16257_v1 = vld [vmem:[#allocation14 + $0x60] ss:$8 sps:$4 sm:$0xff]  }
 0xbfb   : > { %13649 = vmatprep.subr.bf16.mxu0 %v16244_v61 }
 0xbfe   : > { %13650 = vmatpush1.bf16.msra.mxu0 %v16242_v29 }
 0xbff   : > { %13651 = vmatprep.subr.bf16.mxu0 %v16247_v37 }
 0xc02   : > { %13652 = vmatpush1.bf16.msra.mxu0 %v16245_v39 }
 0xc03   : > { %13653 = vmatprep.subr.bf16.mxu0 %v16250_v40 }
 0xc06   : > { %13654 = vmatpush1.bf16.msra.mxu0 %v16248_v41 }
 0xc07   : > { %13655 = vmatprep.subr.bf16.mxu0 %v16253_v8 }
 0xc0a   : > { %13656 = vmatpush1.bf16.msra.mxu0 %v16251_v20 }
 0xc0b   : > { %13657 = vmatprep.subr.bf16.mxu0 %v16256_v14 }
 0xc0e   : > { %13658 = vmatpush1.bf16.msra.mxu0 %v16254_v42 }
 0xc0f   : > { %13659 = vmatprep.subr.bf16.mxu0 %v16259_v43 }
 0xc12   : > { %13660 = vmatpush1.bf16.msra.mxu0 %v16257_v1 }
 0xc13   : > { %13661 = vmatprep.subr.bf16.mxu0 %v16262_v33 }
 0xc16   : > { %13662 = vmatpush1.bf16.msra.mxu0 %v16260_v52 }
 0xc17   : > { %13663 = vmatprep.subr.bf16.mxu0 %v16265_v30 }
 0xc1a   : > { %13664 = vmatpush1.bf16.msra.mxu0 %v16263_v26 }
 0xc1b   : > { %13665 = vmatprep.subr.bf16.mxu0 %v16268_v53 }
 0xc1e   : > { %13666 = vmatpush1.bf16.msra.mxu0 %v16266_v12 }
 0xc1f   : > { %13667 = vmatprep.subr.bf16.mxu0 %v16271_v2 }
 0xc22   : > { %13668 = vmatpush1.bf16.msra.mxu0 %v16269_v32 }
 0xc23   : > { %13669 = vmatprep.subr.bf16.mxu0 %v16274_v11 }
 0xc26   : > { %13670 = vmatpush1.bf16.msra.mxu0 %v16272_v54 }
 0xc27   : > { %13671 = vmatprep.subr.bf16.mxu0 %v16277_v59 }
 0xc2a   : > { %13672 = vmatpush1.bf16.msra.mxu0 %v16275_v62 }
 0xc2b   : > { %13673 = vmatprep.subr.bf16.mxu0 %v16280_v63 }
 0xc2e   : > { %13674 = vmatpush1.bf16.msra.mxu0 %v16278_v50 }
 0xc2f   : > { %13675 = vmatprep.subr.bf16.mxu0 %v16283_v0 }
 0xc32   : > { %13676 = vmatpush1.bf16.msra.mxu0 %v16281_v31 }
 0xc33   : > { %13677 = vmatprep.subr.bf16.mxu0 %v16286_v17 }
 0xc36   : > { %13678 = vmatpush1.bf16.msra.mxu0 %v16284_v19 }
 0xc39   : > { %13680 = vmatmul.mubr.bf16.vlgmr.msra.gmra.mrb[64].mxu0 %v17443_v56  ;;  %v16287_v56 = vld [vmem:[#allocation16 + $0x40] sm:$0xff]  }
 0xc3a   : > { %13689 = vmatprep.mubr.bf16.mxu0 %v17522_v57  ;;  %v16289_v57 = vld [vmem:[#allocation16 + $0x48] sm:$0xff]   ;;  %15905 = vmatprep.subr.bf16.mxu1 %v16287_v56 }
 0xc41   : > { %13690 = vmatmul.mubr.bf16.gmra.mrb[68].mxu0 %v17520_v51  ;;  %v16288_v51 = vld [vmem:[#allocation16] sm:$0xff]  }
 0xc42   : > { %13699 = vmatprep.mubr.bf16.mxu0 %v17599_v13  ;;  %15906 = vmatpush3.bf16.msra.mxu1 %v16288_v51  ;;  %v16291_v13 = vld [vmem:[#allocation16 + $0x50] sm:$0xff]  }
 0xc43   : > { %15907 = vmatprep.subr.bf16.mxu1 %v16289_v57 }
 0xc49   : > { %13700 = vmatmul.mubr.bf16.gmra.mrb[72].mxu0 %v17597_v16  ;;  %v16290_v16 = vld [vmem:[#allocation16 + $0x8] sm:$0xff]  }
 0xc4a   : > { %13709 = vmatprep.mubr.bf16.mxu0 %v17676_v9  ;;  %15908 = vmatpush3.bf16.msra.mxu1 %v16290_v16  ;;  %v16293_v9 = vld [vmem:[#allocation16 + $0x58] sm:$0xff]  }
 0xc4b   : > { %15909 = vmatprep.subr.bf16.mxu1 %v16291_v13 }
 0xc51   : > { %13710 = vmatmul.mubr.bf16.gmra.mrb[76].mxu0 %v17674_v60  ;;  %v16292_v60 = vld [vmem:[#allocation16 + $0x10] sm:$0xff]  }
 0xc52   : > { %13719 = vmatprep.mubr.bf16.mxu0 %v17753_v34  ;;  %15910 = vmatpush3.bf16.msra.mxu1 %v16292_v60  ;;  %v16295_v34 = vld [vmem:[#allocation16 + $0x60] sm:$0xff]  }
 0xc53   : > { %15911 = vmatprep.subr.bf16.mxu1 %v16293_v9 }
 0xc59   : > { %13720 = vmatmul.mubr.bf16.gmra.mrb[80].mxu0 %v17751_v28  ;;  %v16294_v28 = vld [vmem:[#allocation16 + $0x18] sm:$0xff]  }
 0xc5a   : > { %13729 = vmatprep.mubr.bf16.mxu0 %v17830_v7  ;;  %15912 = vmatpush3.bf16.msra.mxu1 %v16294_v28  ;;  %v16297_v7 = vld [vmem:[#allocation16 + $0x68] sm:$0xff]  }
 0xc5b   : > { %15913 = vmatprep.subr.bf16.mxu1 %v16295_v34 }
 0xc61   : > { %13730 = vmatmul.mubr.bf16.gmra.mrb[84].mxu0 %v17828_v55  ;;  %v16296_v55 = vld [vmem:[#allocation16 + $0x20] sm:$0xff]  }
 0xc62   : > { %13739 = vmatprep.mubr.bf16.mxu0 %v17907_v15  ;;  %15914 = vmatpush3.bf16.msra.mxu1 %v16296_v55  ;;  %v16299_v15 = vld [vmem:[#allocation16 + $0x70] sm:$0xff]  }
 0xc63   : > { %15915 = vmatprep.subr.bf16.mxu1 %v16297_v7 }
 0xc69   : > { %13740 = vmatmul.mubr.bf16.gmra.mrb[88].mxu0 %v17905_v58  ;;  %v16298_v58 = vld [vmem:[#allocation16 + $0x28] sm:$0xff]  }
 0xc6a   : > { %15916 = vmatpush3.bf16.msra.mxu1 %v16298_v58 }
 0xc6b   : > { %15917 = vmatprep.subr.bf16.mxu1 %v16299_v15 }
 0xc6e   : > { %15918 = vmatpush3.bf16.msra.mxu1 %v16300_v48 }
 0xc6f   : > { %15919 = vmatprep.subr.bf16.mxu1 %v16301_v36 }
 0xc72   : > { %15920 = vmatpush3.bf16.msra.mxu1 %v16302_v3 }
 0xcac   : > { %v13156_v23 = vpop.f32.mrb[56].mxu0  ;;  %v13199_v24 = vpop.f32.mrb[56].mxu1 }
 0xcad   : > { %v13158_v27 = vpop.f32.mrb[57].mxu0  ;;  %v13201_v61 = vpop.f32.mrb[57].mxu1  ;;  %v13296_v41 = vadd.f32 %v13199_v24, %v17390_v22  ;;  %v13294_v20 = vadd.f32 %v13156_v23, %v17397_v47 }
 0xcae   : > { %v13160_v29 = vpop.f32.mrb[58].mxu0  ;;  %v13203_v37 = vpop.f32.mrb[58].mxu1  ;;  %v13297_v8 = vadd.f32 %v13201_v61, %v17393_v46  ;;  %v13295_v42 = vadd.f32 %v13158_v27, %v17402_v49 }
 0xcaf   : > { %v13162_v39 = vpop.f32.mrb[59].mxu0  ;;  %v13205_v40 = vpop.f32.mrb[59].mxu1  ;;  %v13326_v14 = vmul.f32 0.5, %v13296_v41  ;;  %v13304_v43 = vadd.f32 %v13203_v37, %v17390_v22  ;;  %v13302_v33 = vadd.f32 %v13160_v29, %v17397_v47  ;;  %v13310_v52 = vmul.f32 0.5, %v13294_v20 }
 0xcb0   : > { %v13327_v1 = vmul.f32 0.5, %v13297_v8  ;;  %v13305_v30 = vadd.f32 %v13205_v40, %v17393_v46  ;;  %v13311_v26 = vmul.f32 0.5, %v13295_v42  ;;  %v13303_v12 = vadd.f32 %v13162_v39, %v17402_v49 }
 0xcb1   : > { %16583 = vtanh.f32 %v13326_v14  ;;  %v13328_v53 = vmul.f32 0.5, %v13304_v43  ;;  %v13312_v2 = vmul.f32 0.5, %v13302_v33 }
 0xcb2   : > { %16585 = vtanh.f32 %v13327_v1  ;;  %v13329_v32 = vmul.f32 0.5, %v13305_v30  ;;  %v13313_v11 = vmul.f32 0.5, %v13303_v12 }
 0xcb3   : > { %16587 = vtanh.f32 %v13310_v52 }
 0xcb4   : > { %16589 = vtanh.f32 %v13311_v26 }
 0xcb5   : > { %16591 = vtanh.f32 %v13328_v53 }
 0xcb6   : > { %16593 = vtanh.f32 %v13312_v2 }
 0xcb7   : > { %16595 = vtanh.f32 %v13329_v32 }
 0xcb8   : > { %16597 = vtanh.f32 %v13313_v11 }
 0xcbb   : > { %v16584_v62 = vpop.eup %16583 }
 0xcbc   : > { %v16586_v51 = vpop.eup %16585  ;;  %v13334_v16 = vmul.f32 0.5, %v16584_v62 }
 0xcbd   : > { %v16588_v57 = vpop.eup %16587  ;;  %v13335_v55 = vmul.f32 0.5, %v16586_v51 }
 0xcbe   : > { %v16590_v60 = vpop.eup %16589  ;;  %v13318_v15 = vmul.f32 0.5, %v16588_v57  ;;  %v13338_v36 = vadd.f32 0.5, %v13334_v16 }
 0xcbf   : > { %v16592_v34 = vpop.eup %16591  ;;  %v13319_v3 = vmul.f32 0.5, %v16590_v60  ;;  %v13339_v27 = vadd.f32 0.5, %v13335_v55 }
 0xcc0   : > { %v16594_v58 = vpop.eup %16593  ;;  %v13336_v23 = vmul.f32 0.5, %v16592_v34  ;;  %v13322_v61 = vadd.f32 0.5, %v13318_v15  ;;  %v13362_v40 = vmul.f32 %v13338_v36, %v17891_v35  ;;  %v13475_v34 = vld [vmem:[%s18192_s7] sm:$0x3] }
 0xcc1   : > { %v16596_v48 = vpop.eup %16595  ;;  %v13323_v41 = vadd.f32 0.5, %v13319_v3  ;;  %v13363_v42 = vmul.f32 %v13339_v27, %v17893_v10  ;;  %v18005_v55 = vrot.slane %v13475_v34, %v543_v44 }
 0xcc2   : > { %v13337_v29 = vmul.f32 0.5, %v16596_v48 }
 0xcc4   : > { %v13341_v33 = vadd.f32 0.5, %v13337_v29 }
 0xcc6   : > { %v13365_v32 = vmul.f32 %v13341_v33, %v17902_v25 }
 0xccc   : > { %v13242_v22 = vpop.f32.mrb[60].mxu0  ;;  %v13285_v54 = vpop.f32.mrb[60].mxu1 }
 0xccd   : > { %v13298_v47 = vadd.f32 %v13242_v22, %v17414_v4  ;;  %v13244_v46 = vpop.f32.mrb[61].mxu0  ;;  %v13287_v59 = vpop.f32.mrb[61].mxu1  ;;  %v13300_v63 = vadd.f32 %v13285_v54, %v17418_v6 }
 0xcce   : > { %v13299_v49 = vadd.f32 %v13244_v46, %v17416_v5  ;;  %v13246_v50 = vpop.f32.mrb[62].mxu0  ;;  %v13289_v0 = vpop.f32.mrb[62].mxu1  ;;  %v13301_v31 = vadd.f32 %v13287_v59, %v17424_v18 }
 0xccf   : > { %16599 = vtanh.f32 %v13298_v47  ;;  %v13306_v17 = vadd.f32 %v13246_v50, %v17414_v4  ;;  %v13248_v19 = vpop.f32.mrb[63].mxu0  ;;  %v13291_v56 = vpop.f32.mrb[63].mxu1  ;;  %v13346_v9 = vmul.f32 0.5, %v13300_v63  ;;  %v13308_v28 = vadd.f32 %v13289_v0, %v17418_v6 }
 0xcd0   : > { %16601 = vtanh.f32 %v13299_v49  ;;  %v13307_v13 = vadd.f32 %v13248_v19, %v17416_v5  ;;  %v13347_v7 = vmul.f32 0.5, %v13301_v31  ;;  %v13309_v4 = vadd.f32 %v13291_v56, %v17424_v18  ;;  %v16598_v5 = vpop.eup %16597 }
 0xcd1   : > { %16603 = vtanh.f32 %v13306_v17  ;;  %v13348_v24 = vmul.f32 0.5, %v13308_v28  ;;  %v13320_v6 = vmul.f32 0.5, %v16594_v58  ;;  %v13340_v18 = vadd.f32 0.5, %v13336_v23 }
 0xcd2   : > { %16605 = vtanh.f32 %v13307_v13  ;;  %v13349_v37 = vmul.f32 0.5, %v13309_v4  ;;  %v13321_v20 = vmul.f32 0.5, %v16598_v5 }
 0xcd3   : > { %16607 = vtanh.f32 %v13346_v9  ;;  %v13324_v1 = vadd.f32 0.5, %v13320_v6  ;;  %v13364_v53 = vmul.f32 %v13340_v18, %v17898_v21 }
 0xcd4   : > { %16609 = vtanh.f32 %v13347_v7  ;;  %v13325_v35 = vadd.f32 0.5, %v13321_v20  ;;  %v18009_v7 = vrot.slane %v13475_v34, %v547_v45 }
 0xcd5   : > { %16611 = vtanh.f32 %v13348_v24 }
 0xcd6   : > { %16613 = vtanh.f32 %v13349_v37 }
 0xcd9   : > { %v16600_v39 = vpop.eup %16599 }
 0xcda   : > { %v16602_v8 = vpop.eup %16601  ;;  %v13366_v14 = vmul.f32 %v16600_v39, %v13322_v61 }
 0xcdb   : > { %v13367_v43 = vmul.f32 %v16602_v8, %v13323_v41  ;;  %v16604_v30 = vpop.eup %16603 }
 0xcdc   : > { %v17966_v52 = vadd.f32 %v13366_v14, %v13362_v40  ;;  %v13368_v12 = vmul.f32 %v16604_v30, %v13324_v1  ;;  %v16606_v2 = vpop.eup %16605 }
 0xcdd   : > { %v17968_v26 = vadd.f32 %v13367_v43, %v13363_v42  ;;  %v16608_v10 = vpop.eup %16607  ;;  %v13369_v22 = vmul.f32 %v16606_v2, %v13325_v35 }
 0xcde   : > { %16615 = vtanh.f32 %v17966_v52  ;;  %13391 = vst [vmem:[#allocation3] sm:$0xff] %v17966_v52  ;;  %v17976_v11 = vadd.f32 %v13368_v12, %v13364_v53  ;;  %v16610_v54 = vpop.eup %16609  ;;  %v13354_v47 = vmul.f32 0.5, %v16608_v10  ;;  %14064 = vst [vmem:[#allocation20] sm:$0xff] (!%p15890_p5), %v17966_v52 }
 0xcdf   : > { %16617 = vtanh.f32 %v17968_v26  ;;  %13392 = vst [vmem:[#allocation3 + $0x8] sm:$0xff] %v17968_v26  ;;  %v17980_v21 = vadd.f32 %v13369_v22, %v13365_v32  ;;  %v16612_v46 = vpop.eup %16611  ;;  %v13355_v59 = vmul.f32 0.5, %v16610_v54  ;;  %14065 = vst [vmem:[#allocation20 + $0x8] sm:$0xff] (!%p15890_p5), %v17968_v26 }
 0xce0   : > { %16619 = vtanh.f32 %v17976_v11  ;;  %13393 = vst [vmem:[#allocation3 + $0x10] sm:$0xff] %v17976_v11  ;;  %v16614_v62 = vpop.eup %16613  ;;  %v13358_v63 = vadd.f32 0.5, %v13354_v47  ;;  %v13356_v25 = vmul.f32 0.5, %v16612_v46  ;;  %14066 = vst [vmem:[#allocation20 + $0x10] sm:$0xff] (!%p15890_p5), %v17976_v11 }
 0xce1   : > { %16621 = vtanh.f32 %v17980_v21  ;;  %13394 = vst [vmem:[#allocation3 + $0x18] sm:$0xff] %v17980_v21  ;;  %v13359_v50 = vadd.f32 0.5, %v13355_v59  ;;  %v13357_v31 = vmul.f32 0.5, %v16614_v62  ;;  %14067 = vst [vmem:[#allocation20 + $0x18] sm:$0xff] (!%p15890_p5), %v17980_v21 }
 0xce2   : > { %v13360_v56 = vadd.f32 0.5, %v13356_v25 }
 0xce3   : > { %v13361_v57 = vadd.f32 0.5, %v13357_v31 }
 0xce8   : > { %v16616_v49 = vpop.eup %16615 }
 0xce9   : > { %v16618_v0 = vpop.eup %16617  ;;  %v17984_v17 = vmul.f32 %v16616_v49, %v13358_v63 }
 0xcea   : > { %v17986_v19 = vmul.f32 %v16618_v0, %v13359_v50  ;;  %v16620_v51 = vpop.eup %16619 }
 0xceb   : > { %13387 = vst [vmem:[#allocation2] sm:$0xff] %v17984_v17  ;;  %v17990_v16 = vmul.f32 %v16620_v51, %v13360_v56  ;;  %v16622_v13 = vpop.eup %16621  ;;  %14060 = vst [vmem:[#allocation18] sm:$0xff] (!%p15890_p5), %v17984_v17 }
 0xcec   : > { %13388 = vst [vmem:[#allocation2 + $0x8] sm:$0xff] %v17986_v19  ;;  %v17992_v60 = vmul.f32 %v16622_v13, %v13361_v57  ;;  %14061 = vst [vmem:[#allocation18 + $0x8] sm:$0xff] (!%p15890_p5), %v17986_v19 }
 0xced   : > { %13389 = vst [vmem:[#allocation2 + $0x10] sm:$0xff] %v17990_v16  ;;  %v13441_v9 = vpack.c.bf16 %v17990_v16, %v17984_v17  ;;  %14062 = vst [vmem:[#allocation18 + $0x10] sm:$0xff] (!%p15890_p5), %v17990_v16 }
 0xcee   : > { %13390 = vst [vmem:[#allocation2 + $0x18] sm:$0xff] %v17992_v60  ;;  %v13442_v28 = vpack.c.bf16 %v17992_v60, %v17986_v19  ;;  %14063 = vst [vmem:[#allocation18 + $0x18] sm:$0xff] (!%p15890_p5), %v17992_v60 }
 0xcf0   : > { %13749 = vmatprep.mubr.bf16.mxu0 %v13442_v28 }
 0xcf1   : > { %13750 = vmatmul.mubr.bf16.gmra.mrb[92].mxu0 %v13441_v9 }
 0xd0c   : > { %v13681_v58 = vpop.f32.mrb[64].mxu0 }
 0xd0d   : > { %v13682_v15 = vadd.f32 %v13681_v58, %v18005_v55  ;;  %v13683_v4 = vpop.f32.mrb[65].mxu0 }
 0xd0e   : > { %v13684_v48 = vadd.f32 %v13683_v4, %v18009_v7  ;;  %v13685_v36 = vpop.f32.mrb[66].mxu0 }
 0xd0f   : > { %v13686_v3 = vadd.f32 %v13685_v36, %v18005_v55  ;;  %v13687_v23 = vpop.f32.mrb[67].mxu0  ;;  %v13760_v5 = vmax.f32 %v13682_v15, 0.0 }
 0xd10   : > { %v13688_v24 = vadd.f32 %v13687_v23, %v18009_v7  ;;  %v13761_v44 = vmax.f32 %v13684_v48, 0.0 }
 0xd11   : > { %v13762_v27 = vmax.f32 %v13686_v3, 0.0 }
 0xd12   : > { %v13763_v61 = vmax.f32 %v13688_v24, 0.0 }
 0xd13   : > { %v13792_v6 = vpack.c.bf16 %v13762_v27, %v13760_v5 }
 0xd14   : > { %v13793_v38 = vpack.c.bf16 %v13763_v61, %v13761_v44  ;;  %v13691_v45 = vpop.f32.mrb[68].mxu0 }
 0xd15   : > { %v13692_v29 = vadd.f32 %v13691_v45, %v18005_v55  ;;  %v13693_v37 = vpop.f32.mrb[69].mxu0 }
 0xd16   : > { %v13694_v39 = vadd.f32 %v13693_v37, %v18009_v7  ;;  %v13695_v40 = vpop.f32.mrb[70].mxu0  ;;  %13975 = vmatprep.mubr.bf16.mxu1 %v13793_v38 }
 0xd17   : > { %v13696_v41 = vadd.f32 %v13695_v40, %v18005_v55  ;;  %v13697_v8 = vpop.f32.mrb[71].mxu0  ;;  %13976 = vmatmul.mubr.bf16.vlgmr.msra.gmra.mrb[64].mxu1 %v13792_v6  ;;  %v13764_v20 = vmax.f32 %v13692_v29, 0.0 }
 0xd18   : > { %v13698_v18 = vadd.f32 %v13697_v8, %v18009_v7  ;;  %v13765_v42 = vmax.f32 %v13694_v39, 0.0 }
 0xd19   : > { %v13766_v14 = vmax.f32 %v13696_v41, 0.0 }
 0xd1a   : > { %v13767_v43 = vmax.f32 %v13698_v18, 0.0 }
 0xd1b   : > { %v13794_v1 = vpack.c.bf16 %v13766_v14, %v13764_v20 }
 0xd1c   : > { %v13795_v33 = vpack.c.bf16 %v13767_v43, %v13765_v42  ;;  %v13701_v30 = vpop.f32.mrb[72].mxu0 }
 0xd1d   : > { %v13702_v53 = vadd.f32 %v13701_v30, %v18005_v55  ;;  %v13703_v35 = vpop.f32.mrb[73].mxu0 }
 0xd1e   : > { %v13704_v12 = vadd.f32 %v13703_v35, %v18009_v7  ;;  %v13705_v2 = vpop.f32.mrb[74].mxu0  ;;  %13983 = vmatprep.mubr.bf16.mxu1 %v13795_v33 }
 0xd1f   : > { %v13706_v10 = vadd.f32 %v13705_v2, %v18005_v55  ;;  %v13707_v32 = vpop.f32.mrb[75].mxu0  ;;  %13984 = vmatmul.mubr.bf16.gmra.mrb[68].mxu1 %v13794_v1  ;;  %v13768_v54 = vmax.f32 %v13702_v53, 0.0 }
 0xd20   : > { %v13708_v22 = vadd.f32 %v13707_v32, %v18009_v7  ;;  %v13769_v46 = vmax.f32 %v13704_v12, 0.0 }
 0xd21   : > { %v13770_v47 = vmax.f32 %v13706_v10, 0.0 }
 0xd22   : > { %v13771_v59 = vmax.f32 %v13708_v22, 0.0 }
 0xd23   : > { %v13796_v62 = vpack.c.bf16 %v13770_v47, %v13768_v54 }
 0xd24   : > { %v13797_v63 = vpack.c.bf16 %v13771_v59, %v13769_v46  ;;  %v13711_v25 = vpop.f32.mrb[76].mxu0 }
 0xd25   : > { %v13712_v49 = vadd.f32 %v13711_v25, %v18005_v55  ;;  %v13713_v50 = vpop.f32.mrb[77].mxu0 }
 0xd26   : > { %v13714_v0 = vadd.f32 %v13713_v50, %v18009_v7  ;;  %v13715_v31 = vpop.f32.mrb[78].mxu0  ;;  %13991 = vmatprep.mubr.bf16.mxu1 %v13797_v63 }
 0xd27   : > { %v13716_v56 = vadd.f32 %v13715_v31, %v18005_v55  ;;  %v13717_v51 = vpop.f32.mrb[79].mxu0  ;;  %13992 = vmatmul.mubr.bf16.gmra.mrb[72].mxu1 %v13796_v62  ;;  %v13772_v13 = vmax.f32 %v13712_v49, 0.0 }
 0xd28   : > { %v13718_v57 = vadd.f32 %v13717_v51, %v18009_v7  ;;  %v13773_v28 = vmax.f32 %v13714_v0, 0.0 }
 0xd29   : > { %v13774_v9 = vmax.f32 %v13716_v56, 0.0 }
 0xd2a   : > { %v13775_v34 = vmax.f32 %v13718_v57, 0.0 }
 0xd2b   : > { %v13798_v58 = vpack.c.bf16 %v13774_v9, %v13772_v13 }
 0xd2c   : > { %v13799_v15 = vpack.c.bf16 %v13775_v34, %v13773_v28  ;;  %v13721_v4 = vpop.f32.mrb[80].mxu0 }
 0xd2d   : > { %v13722_v48 = vadd.f32 %v13721_v4, %v18005_v55  ;;  %v13723_v36 = vpop.f32.mrb[81].mxu0 }
 0xd2e   : > { %v13724_v3 = vadd.f32 %v13723_v36, %v18009_v7  ;;  %v13725_v23 = vpop.f32.mrb[82].mxu0  ;;  %13999 = vmatprep.mubr.bf16.mxu1 %v13799_v15 }
 0xd2f   : > { %v13726_v24 = vadd.f32 %v13725_v23, %v18005_v55  ;;  %v13727_v5 = vpop.f32.mrb[83].mxu0  ;;  %14000 = vmatmul.mubr.bf16.gmra.mrb[76].mxu1 %v13798_v58  ;;  %v13776_v44 = vmax.f32 %v13722_v48, 0.0 }
 0xd30   : > { %v13728_v27 = vadd.f32 %v13727_v5, %v18009_v7  ;;  %v13777_v6 = vmax.f32 %v13724_v3, 0.0  ;;  %v18046_v3 = vld [vmem:[%s18240_s17] ss:$0 sm:$0xff] }
 0xd31   : > { %v13778_v61 = vmax.f32 %v13726_v24, 0.0 }
 0xd32   : > { %v13779_v38 = vmax.f32 %v13728_v27, 0.0 }
 0xd33   : > { %v13800_v45 = vpack.c.bf16 %v13778_v61, %v13776_v44 }
 0xd34   : > { %v13801_v29 = vpack.c.bf16 %v13779_v38, %v13777_v6  ;;  %v13731_v37 = vpop.f32.mrb[84].mxu0 }
 0xd35   : > { %v13732_v39 = vadd.f32 %v13731_v37, %v18005_v55  ;;  %v13733_v40 = vpop.f32.mrb[85].mxu0 }
 0xd36   : > { %v13734_v41 = vadd.f32 %v13733_v40, %v18009_v7  ;;  %v13735_v8 = vpop.f32.mrb[86].mxu0  ;;  %14007 = vmatprep.mubr.bf16.mxu1 %v13801_v29 }
 0xd37   : > { %v13736_v18 = vadd.f32 %v13735_v8, %v18005_v55  ;;  %v13737_v20 = vpop.f32.mrb[87].mxu0  ;;  %14008 = vmatmul.mubr.bf16.gmra.mrb[80].mxu1 %v13800_v45  ;;  %v13780_v42 = vmax.f32 %v13732_v39, 0.0 }
 0xd38   : > { %v13738_v14 = vadd.f32 %v13737_v20, %v18009_v7  ;;  %v13781_v1 = vmax.f32 %v13734_v41, 0.0 }
 0xd39   : > { %v13782_v43 = vmax.f32 %v13736_v18, 0.0 }
 0xd3a   : > { %v13783_v33 = vmax.f32 %v13738_v14, 0.0 }
 0xd3b   : > { %v13802_v30 = vpack.c.bf16 %v13782_v43, %v13780_v42 }
 0xd3c   : > { %v13803_v53 = vpack.c.bf16 %v13783_v33, %v13781_v1  ;;  %v13741_v35 = vpop.f32.mrb[88].mxu0 }
 0xd3d   : > { %v13742_v12 = vadd.f32 %v13741_v35, %v18005_v55  ;;  %v13743_v2 = vpop.f32.mrb[89].mxu0 }
 0xd3e   : > { %v13744_v10 = vadd.f32 %v13743_v2, %v18009_v7  ;;  %v13745_v32 = vpop.f32.mrb[90].mxu0  ;;  %14015 = vmatprep.mubr.bf16.mxu1 %v13803_v53 }
 0xd3f   : > { %v13746_v22 = vadd.f32 %v13745_v32, %v18005_v55  ;;  %v13747_v54 = vpop.f32.mrb[91].mxu0  ;;  %14016 = vmatmul.mubr.bf16.gmra.mrb[84].mxu1 %v13802_v30  ;;  %v13784_v46 = vmax.f32 %v13742_v12, 0.0 }
 0xd40   : > { %v13748_v47 = vadd.f32 %v13747_v54, %v18009_v7  ;;  %v13785_v62 = vmax.f32 %v13744_v10, 0.0 }
 0xd41   : > { %v13786_v59 = vmax.f32 %v13746_v22, 0.0 }
 0xd42   : > { %v13787_v63 = vmax.f32 %v13748_v47, 0.0 }
 0xd43   : > { %v13804_v25 = vpack.c.bf16 %v13786_v59, %v13784_v46 }
 0xd44   : > { %v13805_v49 = vpack.c.bf16 %v13787_v63, %v13785_v62 }
 0xd46   : > { %14023 = vmatprep.mubr.bf16.mxu1 %v13805_v49 }
 0xd47   : > { %14024 = vmatmul.mubr.bf16.gmra.mrb[88].mxu1 %v13804_v25 }
 0xdc4   : > { %v13751_v50 = vpop.f32.mrb[92].mxu0 }
 0xdc5   : > { %v13752_v0 = vadd.f32 %v13751_v50, %v18005_v55  ;;  %v13753_v31 = vpop.f32.mrb[93].mxu0 }
 0xdc6   : > { %v13754_v56 = vadd.f32 %v13753_v31, %v18009_v7  ;;  %v13755_v51 = vpop.f32.mrb[94].mxu0 }
 0xdc7   : > { %v13756_v57 = vadd.f32 %v13755_v51, %v18005_v55  ;;  %v13757_v13 = vpop.f32.mrb[95].mxu0  ;;  %v13788_v28 = vmax.f32 %v13752_v0, 0.0 }
 0xdc8   : > { %v13758_v9 = vadd.f32 %v13757_v13, %v18009_v7  ;;  %v13789_v58 = vmax.f32 %v13754_v56, 0.0 }
 0xdc9   : > { %v13790_v34 = vmax.f32 %v13756_v57, 0.0 }
 0xdca   : > { %v13791_v15 = vmax.f32 %v13758_v9, 0.0 }
 0xdcb   : > { %v13806_v4 = vpack.c.bf16 %v13790_v34, %v13788_v28 }
 0xdcc   : > { %v13807_v48 = vpack.c.bf16 %v13791_v15, %v13789_v58 }
 0xdce   : > { %14031 = vmatprep.mubr.bf16.mxu1 %v13807_v48 }
 0xdcf   : > { %14032 = vmatmul.mubr.bf16.gmra.mrb[92].mxu1 %v13806_v4 }
 0xdea   : > { %v15921_v36 = vpop.f32.mrb[64].mxu1 }
 0xdeb   : > { %v15922_v55 = vpop.f32.mrb[65].mxu1 }
 0xdec   : > { %v15923_v23 = vadd.f32 %v15922_v55, %v15921_v36  ;;  %v15924_v7 = vpop.f32.mrb[66].mxu1 }
 0xded   : > { %v15925_v24 = vpop.f32.mrb[67].mxu1 }
 0xdee   : > { %v13978_v5 = vadd.f32 %v15923_v23, %v18046_v3  ;;  %v15926_v27 = vadd.f32 %v15925_v24, %v15924_v7 }
 0xdf0   : > { %14040 = vst [vmem:[%s17339_s14] sm:$0xff] %v13978_v5  ;;  %v13981_v44 = vadd.f32 %v15926_v27, %v18046_v3 }
 0xdf2   : > { %14041 = vst [vmem:[%s17339_s14 + $0x8] sm:$0xff] %v13981_v44  ;;  %v15927_v61 = vpop.f32.mrb[68].mxu1 }
 0xdf3   : > { %v15928_v6 = vpop.f32.mrb[69].mxu1 }
 0xdf4   : > { %v15929_v38 = vadd.f32 %v15928_v6, %v15927_v61  ;;  %v15930_v45 = vpop.f32.mrb[70].mxu1 }
 0xdf5   : > { %v15931_v29 = vpop.f32.mrb[71].mxu1 }
 0xdf6   : > { %v13986_v37 = vadd.f32 %v15929_v38, %v18046_v3  ;;  %v15932_v39 = vadd.f32 %v15931_v29, %v15930_v45 }
 0xdf8   : > { %14042 = vst [vmem:[%s17339_s14 + $0x10] sm:$0xff] %v13986_v37  ;;  %v13989_v40 = vadd.f32 %v15932_v39, %v18046_v3 }
 0xdfa   : > { %14043 = vst [vmem:[%s17339_s14 + $0x18] sm:$0xff] %v13989_v40  ;;  %v15933_v41 = vpop.f32.mrb[72].mxu1 }
 0xdfb   : > { %v15934_v8 = vpop.f32.mrb[73].mxu1 }
 0xdfc   : > { %v15935_v18 = vadd.f32 %v15934_v8, %v15933_v41  ;;  %v15936_v20 = vpop.f32.mrb[74].mxu1 }
 0xdfd   : > { %v15937_v14 = vpop.f32.mrb[75].mxu1 }
 0xdfe   : > { %v13994_v42 = vadd.f32 %v15935_v18, %v18046_v3  ;;  %v15938_v43 = vadd.f32 %v15937_v14, %v15936_v20 }
 0xe00   : > { %14044 = vst [vmem:[%s17339_s14 + $0x20] sm:$0xff] %v13994_v42  ;;  %v13997_v1 = vadd.f32 %v15938_v43, %v18046_v3 }
 0xe02   : > { %14045 = vst [vmem:[%s17339_s14 + $0x28] sm:$0xff] %v13997_v1  ;;  %v15939_v33 = vpop.f32.mrb[76].mxu1 }
 0xe03   : > { %v15940_v30 = vpop.f32.mrb[77].mxu1 }
 0xe04   : > { %v15941_v53 = vadd.f32 %v15940_v30, %v15939_v33  ;;  %v15942_v35 = vpop.f32.mrb[78].mxu1 }
 0xe05   : > { %v15943_v12 = vpop.f32.mrb[79].mxu1 }
 0xe06   : > { %v14002_v2 = vadd.f32 %v15941_v53, %v18046_v3  ;;  %v15944_v10 = vadd.f32 %v15943_v12, %v15942_v35 }
 0xe08   : > { %14046 = vst [vmem:[%s17339_s14 + $0x30] sm:$0xff] %v14002_v2  ;;  %v14005_v32 = vadd.f32 %v15944_v10, %v18046_v3 }
 0xe0a   : > { %14047 = vst [vmem:[%s17339_s14 + $0x38] sm:$0xff] %v14005_v32  ;;  %v15945_v22 = vpop.f32.mrb[80].mxu1 }
 0xe0b   : > { %v15946_v54 = vpop.f32.mrb[81].mxu1 }
 0xe0c   : > { %v15947_v47 = vadd.f32 %v15946_v54, %v15945_v22  ;;  %v15948_v46 = vpop.f32.mrb[82].mxu1 }
 0xe0d   : > { %v15949_v59 = vpop.f32.mrb[83].mxu1 }
 0xe0e   : > { %v14010_v62 = vadd.f32 %v15947_v47, %v18046_v3  ;;  %v15950_v63 = vadd.f32 %v15949_v59, %v15948_v46 }
 0xe10   : > { %14048 = vst [vmem:[%s17339_s14 + $0x40] sm:$0xff] %v14010_v62  ;;  %v14013_v25 = vadd.f32 %v15950_v63, %v18046_v3 }
 0xe12   : > { %14049 = vst [vmem:[%s17339_s14 + $0x48] sm:$0xff] %v14013_v25  ;;  %v15951_v49 = vpop.f32.mrb[84].mxu1 }
 0xe13   : > { %v15952_v50 = vpop.f32.mrb[85].mxu1 }
 0xe14   : > { %v15953_v0 = vadd.f32 %v15952_v50, %v15951_v49  ;;  %v15954_v31 = vpop.f32.mrb[86].mxu1 }
 0xe15   : > { %v15955_v56 = vpop.f32.mrb[87].mxu1 }
 0xe16   : > { %v14018_v51 = vadd.f32 %v15953_v0, %v18046_v3  ;;  %v15956_v57 = vadd.f32 %v15955_v56, %v15954_v31 }
 0xe18   : > { %14050 = vst [vmem:[%s17339_s14 + $0x50] sm:$0xff] %v14018_v51  ;;  %v14021_v13 = vadd.f32 %v15956_v57, %v18046_v3 }
 0xe1a   : > { %14051 = vst [vmem:[%s17339_s14 + $0x58] sm:$0xff] %v14021_v13  ;;  %v15957_v9 = vpop.f32.mrb[88].mxu1 }
 0xe1b   : > { %v15958_v28 = vpop.f32.mrb[89].mxu1 }
 0xe1c   : > { %v15959_v34 = vadd.f32 %v15958_v28, %v15957_v9  ;;  %v15960_v58 = vpop.f32.mrb[90].mxu1 }
 0xe1d   : > { %v15961_v15 = vpop.f32.mrb[91].mxu1 }
 0xe1e   : > { %v14026_v4 = vadd.f32 %v15959_v34, %v18046_v3  ;;  %v15962_v48 = vadd.f32 %v15961_v15, %v15960_v58 }
 0xe20   : > { %14052 = vst [vmem:[%s17339_s14 + $0x60] sm:$0xff] %v14026_v4  ;;  %v14029_v36 = vadd.f32 %v15962_v48, %v18046_v3 }
 0xe22   : > { %14053 = vst [vmem:[%s17339_s14 + $0x68] sm:$0xff] %v14029_v36 }
 0xea2   : > { %v15963_v55 = vpop.f32.mrb[92].mxu1 }
 0xea3   : > { %v15964_v23 = vpop.f32.mrb[93].mxu1 }
 0xea4   : > { %v15965_v7 = vadd.f32 %v15964_v23, %v15963_v55  ;;  %v15966_v24 = vpop.f32.mrb[94].mxu1  ;;  %14059 = sbr.rel (%p15890_p5) target bundleno = 3755 (0xeab), region = 96 }
 0xea5   : > { %v15967_v5 = vpop.f32.mrb[95].mxu1 }
 0xea6   : > { %v14034_v27 = vadd.f32 %v15965_v7, %v18046_v3  ;;  %v15968_v44 = vadd.f32 %v15967_v5, %v15966_v24 }
 0xea8   : > { %14054 = vst [vmem:[%s17339_s14 + $0x70] sm:$0xff] %v14034_v27  ;;  %v14037_v61 = vadd.f32 %v15968_v44, %v18046_v3 }
 0xeaa   : > { %14055 = vst [vmem:[%s17339_s14 + $0x78] sm:$0xff] %v14037_v61 }
 0xeab PF: > { %s16973_s19 = smov [#allocation18]   ;;  %p18241_p1 = scmp.eq.s32.totalorder %s17066_s27, 3 }
 0xeac   : > { %s14096_s16 = sshll.u32 %s16973_s19, 4  ;;  %s14097_s16 = int_to_ptr.vmem [resolvable:$true] %s14096_s16 }
 0xead   : > { %s16821_s3 = scalar_lea.vmem %s14097_s16, 512  ;;  %p16828_p13 = scmp.lt.s32.totalorder %s14097_s16, %s14097_s16 }
 0xeae   : > { %p16822_p10 = scmp.ne.s32.totalorder %s14097_s16, %s16821_s3  ;;  %p16829_p0 = scmp.lt.s32.totalorder %s16821_s3, %s16821_s3 }
 0xeb0   : > { %p16823_p11 = pnand %p16822_p10, %p18241_p1  ;;  %p16830_p7 = por %p16829_p0, %p16828_p13 }
 0xeb2   : > { %p16824_p12 = pneg %p16823_p11 }
 0xeb4   : > { %p16831_p9 = pnand %p16830_p7, %p16824_p12 }
 0xeb6   : > { %16834 = shalt.err (!%p16831_p9)
}
 0xeb7   : > { %s18242_s28 = sld [smem:[#allocation32_spill]]  ;;  %p18243_p8 = pmov %p18241_p1 }
 0xebd   : > { %s16835_s25 = scalar_lea.hbm %s18242_s28, 512 }
 0xebe   : > { %p16836_p3 = scmp.ne.s32.totalorder %s18242_s28, %s16835_s25  ;;  %p16841_p6 = scmp.lt.u32.totalorder %s16835_s25, %s18242_s28 }
 0xec0   : > { %p16837_p4 = pnand %p16836_p3, %p18243_p8 }
 0xec2   : > { %p16838_p2 = pneg %p16837_p4 }
 0xec4   : > { %p16843_p5 = pnand %p16841_p6, %p16838_p2 }
 0xec6   : > { %16846 = shalt.err (!%p16843_p5)
}
 0xec7   : > { %s16974_s10 = smov 256   ;;  %s16975_s17 = smov 16  }
 0xec8   : > { %p18244_p10 = pmov %p18241_p1  ;;  %s15904_s29 = sshll.u32 %s17066_s27, 11 }
 0xec9   : > { %s14083_s9 = sshll.u32 %s17339_s14, 4  ;;  %s18245_s26 = sld [smem:[#allocation31_spill]]  ;;  %s18117_s9 = int_to_ptr.vmem [resolvable:$true] %s14083_s9 }
 0xeca   : > { %16125 = dma.vmem_to_hbm [thread:$0]  (%p18244_p10), %s14097_s16, 512, %s18242_s28, [#allocation19], %s16974_s10, %s16974_s10, %s16975_s17  }
 0xecb   : > { %s14069_s18 = scalar_lea.sflag [#allocation7], %s17316_s20  ;;  %s16847_s0 = scalar_lea.vmem %s18117_s9, 2048 }
 0xecc   : > { %p16848_p1 = scmp.ne.s32.totalorder %s18117_s9, %s16847_s0  ;;  %p18246_p11 = scmp.ne.s32.totalorder %s18228_s30, 0 }
 0xecd   : > { %s16976_s19 = smov [#allocation17]  }
 0xece   : > { %p16849_p12 = pnand %p16848_p1, %p18246_p11  ;;  %s16851_s16 = sshll.u32 %s16976_s19, 4  ;;  %s16852_s16 = int_to_ptr.vmem [resolvable:$false] %s16851_s16 }
 0xecf   : > { %s18115_s11 = scalar_lea.hbm %s18245_s26, %s15904_s29  ;;  %s16853_s14 = scalar_lea.vmem %s16852_s16, 4096 }
 0xed0   : > { %p16850_p13 = pneg %p16849_p12  ;;  %p16854_p0 = scmp.lt.s32.totalorder %s18117_s9, %s16852_s16 }
 0xed1   : > { %p16855_p7 = scmp.lt.s32.totalorder %s16853_s14, %s16847_s0 }
 0xed3   : > { %p16856_p9 = por %p16855_p7, %p16854_p0 }
 0xed5   : > { %p16857_p3 = pnand %p16856_p9, %p16850_p13 }
 0xed7   : > { %16860 = shalt.err (!%p16857_p3)
}
 0xed8   : > { %s16861_s3 = scalar_lea.hbm %s18115_s11, 2048  ;;  %s16865_s1 = scalar_lea.hbm %s18245_s26, 8192 }
 0xed9   : > { %p16862_p8 = scmp.ne.s32.totalorder %s18115_s11, %s16861_s3  ;;  %p16866_p6 = scmp.lt.u32.totalorder %s18115_s11, %s18245_s26 }
 0xeda   : > { %p16867_p5 = scmp.lt.u32.totalorder %s16865_s1, %s16861_s3  ;;  %p16869_p1 = scmp.lt.u32.totalorder %s16861_s3, %s18115_s11 }
 0xedb   : > { %p16863_p4 = pnand %p16862_p8, %p18246_p11 }
 0xedc   : > { %p16868_p10 = por %p16867_p5, %p16866_p6 }
 0xedd   : > { %p16864_p2 = pneg %p16863_p4 }
 0xede   : > { %p16870_p12 = por %p16869_p1, %p16868_p10 }
 0xee0   : > { %p16871_p13 = pnand %p16870_p12, %p16864_p2 }
 0xee2   : > { %16874 = shalt.err (!%p16871_p13)
}
 0xee3   : > { %s16977_s0 = smov 128   ;;  %s16978_s14 = smov 8  }
 0xee4   : > { %16123 = dma.vmem_to_hbm [thread:$0]  (%p18246_p11), %s18117_s9, 2048, %s18115_s11, %s14069_s18, %s16977_s0, %s16977_s0, %s16978_s14  }
 0xee5   : > { %s16979_s29 = smov [#allocation20]   ;;  %p18247_p7 = scmp.eq.s32.totalorder %s17066_s27, 3 }
 0xee6   : > { %s14109_s25 = sshll.u32 %s16979_s29, 4  ;;  %s14110_s25 = int_to_ptr.vmem [resolvable:$true] %s14109_s25 }
 0xee7   : > { %s16875_s19 = scalar_lea.vmem %s14110_s25, 512  ;;  %p16882_p8 = scmp.lt.s32.totalorder %s14110_s25, %s14110_s25 }
 0xee8   : > { %p16876_p0 = scmp.ne.s32.totalorder %s14110_s25, %s16875_s19  ;;  %p16883_p4 = scmp.lt.s32.totalorder %s16875_s19, %s16875_s19 }
 0xeea   : > { %p16877_p9 = pnand %p16876_p0, %p18247_p7  ;;  %p16884_p2 = por %p16883_p4, %p16882_p8 }
 0xeec   : > { %p16878_p3 = pneg %p16877_p9 }
 0xeee   : > { %p16885_p6 = pnand %p16884_p2, %p16878_p3 }
 0xef0   : > { %16888 = shalt.err (!%p16885_p6)
}
 0xef1   : > { %s18248_s16 = sld [smem:[#allocation33_spill]]  ;;  %p18249_p5 = pmov %p18247_p7 }
 0xef7   : > { %s16889_s30 = scalar_lea.hbm %s18248_s16, 512 }
 0xef8   : > { %p16890_p11 = scmp.ne.s32.totalorder %s18248_s16, %s16889_s30  ;;  %p16895_p12 = scmp.lt.u32.totalorder %s16889_s30, %s18248_s16 }
 0xefa   : > { %p16891_p10 = pnand %p16890_p11, %p18249_p5 }
 0xefc   : > { %p16892_p1 = pneg %p16891_p10 }
 0xefe   : > { %p16897_p13 = pnand %p16895_p12, %p16892_p1 }
 0xf00   : > { %16900 = shalt.err (!%p16897_p13)
}
 0xf01   : > { %p18250_p0 = pmov %p18249_p5 }
 0xf03   : > { %16127 = dma.vmem_to_hbm [thread:$0]  (%p18250_p0), %s14110_s25, 512, %s18248_s16, [#allocation19], %s16974_s10, %s16974_s10, %s16975_s17  }
 0xf04   : > { %p18251_p7 = pmov %p18250_p0 }
 0xf05   : > { %p18252_p9 = pmov %p18250_p0 }
 0xf06   : > { %16934 = dma.done.wait (%p18251_p7), [#allocation19], 1024  }
 0xf07   : > { %16936 = vsyncadd (%p18252_p9), [#allocation19], 4294966272 }
 0xf08 PF: > { %p16177_p3 = scmp.ge.s32.totalorder %s16955_s24, 2  ;;  %s14132_s29 = sand.u32 1, %s16943_s21  }
 0xf09   : > { %p18253_p8 = scmp.ne.s32.totalorder %s18229_s12, 0  ;;  %s14133_s19 = scalar_lea.sflag [#allocation7], %s14132_s29 }
 0xf0b   : > { %p16157_p4 = pnand %p16177_p3, %p18253_p8 }
 0xf0d   : > { %16938 = dma.done.wait (!%p16157_p4), %s14133_s19, 2048  }
 0xf0e   : > { %16940 = vsyncadd (!%p16157_p4), %s14133_s19, 4294965248  ;;  %p30_p2 = scmp.ge.s32.totalorder %s17232_s15, 6   ;;  %s18254_s21 = smov %s16947_s22 }
 0xf0f   : > { %s18255_s22 = smov %s16951_s23  ;;  %s18256_s23 = smov %s17243_s13 }
 0xf10   : > { %s18257_s24 = smov %s17232_s15  ;;  %32 = sbr.rel (!%p30_p2) target bundleno = 17 (0x11), region = 167 }
 0xf17   :  { %14138 = vsyncpa [#allocation6], 1 }
 0xf18   :  { %14140 = vsyncpa [#allocation6 + $0x1], 1 }
 0xf19   :  { %14141 = vsyncpa [#allocation9], 1 }
 0xf1a   :  { %14142 = vsyncpa [#allocation12], 1 }
 0xf1b   :  { %14143 = vsyncpa [#allocation15], 1 }
 0xf1c   :  { %14144 = vsyncpa [#allocation7], 1 }
 0xf1d   :  { %14146 = vsyncpa [#allocation7 + $0x1], 1 }
 0xf1e   :  { %14147 = vsyncpa [#allocation19], 1 }

</bundles_post_ra>
